<compile_context>
chip_gen: v7x
topology: tpu7x:2x2x1
jax: 0.10.0
libtpu: 0.0.40
codegen_flags: <defaults>
</compile_context>

<pallas_src>
import numpy as np
import jax
import jax.numpy as jnp
from jax.experimental import pallas as pl
from jax.experimental.pallas import tpu as pltpu

# ----------------------------- hyperparameters ------------------------------
HIDDEN = 40
GRID_SIZE = 10
SPLINE_ORDER = 3
N_COEFF = GRID_SIZE + SPLINE_ORDER            # 13 B-spline bases per feature
GRID_RANGE = (0.0, 1.0)
COUNT_HARMONIC = 8
N_CHANNELS = 14
FRAME = 64
IN_FEATURES = 4 * (COUNT_HARMONIC + 1) * N_CHANNELS     # 4 * 9 * 14 = 504


def _round_up(n, m):
    return ((n + m - 1) // m) * m


IN_PAD = _round_up(IN_FEATURES, 128)          # 512
D1, D2, D3, D4 = 2 * HIDDEN, 4 * HIDDEN, 2 * HIDDEN, HIDDEN        # 80,160,80,40
D1P, D2P, D3P, D4P = 128, 256, 128, 128       # lane-padded hidden widths
KAN_DIMS = [(IN_FEATURES, D1, IN_PAD, D1P),
            (D1, D2, D1P, D2P),
            (D2, D3, D2P, D3P),
            (D3, D4, D3P, D4P)]
HEAD_H2 = HIDDEN // 2                         # 20
H1F = 128                                     # 3*40 = 120 -> 128
H2F = 64                                      # 3*20 = 60  -> 64
OUT_PAD = 128                                 # lane-dense output, sliced to 3 outside

# Uniform extended knot vector (identical for every input feature), matching KANLinear.
_H = (GRID_RANGE[1] - GRID_RANGE[0]) / GRID_SIZE
KNOTS = tuple(float(np.float32(j * _H + GRID_RANGE[0]))
              for j in range(-SPLINE_ORDER, GRID_SIZE + SPLINE_ORDER + 1))   # 17 knots


# ------------------------------ kernel helpers -------------------------------
def _sigmoid(x):
    # exp + reciprocal both go to the EUP slot (free vs. the saturated VPU path).
    return pl.reciprocal(1.0 + jnp.exp(-x), approx=True)


def _silu(x):
    return x * _sigmoid(x)


def _leaky_relu(x, slope):
    return jnp.where(x >= 0, x, slope * x)


def _b_spline_bases(x):
    """Cheapened Cox-de Boor. x: (B, n) f32 -> list of N_COEFF arrays (B, n)."""
    t = KNOTS
    # order-0 pieces: (x >= t[j]) & (x < t[j+1]) == ge[j] - ge[j+1] (monotone knots)
    ge = [(x >= t[j]).astype(x.dtype) for j in range(len(t))]
    bases = [ge[j] - ge[j + 1] for j in range(len(t) - 1)]          # 16 pieces
    dx = [x - t[j] for j in range(len(t))]                          # hoisted once
    for k in range(1, SPLINE_ORDER + 1):
        new = []
        for j in range(len(bases) - 1):
            inv_l = 1.0 / (t[j + k] - t[j])                         # python consts
            neg_inv_r = -1.0 / (t[j + k + 1] - t[j + 1])
            new.append((dx[j] * inv_l) * bases[j] +
                       (dx[j + k + 1] * neg_inv_r) * bases[j + 1])
        bases = new
    return bases                                                    # N_COEFF pieces


def _kan_layer(x, base_w_ref, spline_w_ref):
    """KANLinear: silu(x) @ Wb + [B0(x)|...|B12(x)] @ Ws_folded  (one long-K matmul)."""
    base_out = jnp.dot(_silu(x).astype(jnp.bfloat16), base_w_ref[...],
                       preferred_element_type=jnp.float32)
    bases = _b_spline_bases(x)
    stacked = jnp.concatenate(bases, axis=-1).astype(jnp.bfloat16)  # (B, 13*in_pad)
    spline_out = jnp.dot(stacked, spline_w_ref[...],
                         preferred_element_type=jnp.float32)
    return base_out + spline_out


def _fft_mlp_kan_kernel(x_ref,
                        bw1, sw1, bw2, sw2, bw3, sw3, bw4, sw4,
                        w1f, b1f, w2f, b2f, w3f, b3f,
                        out_ref):
    x = x_ref[...]                                   # (B_blk, 512) f32
    x = _kan_layer(x, bw1, sw1)                      # (B_blk, 128)  (80 valid)
    x = _kan_layer(x, bw2, sw2)                      # (B_blk, 256)  (160 valid)
    x = _kan_layer(x, bw3, sw3)                      # (B_blk, 128)  (80 valid)
    x = _kan_layer(x, bw4, sw4)                      # (B_blk, 128)  (40 valid)
    # Fused heads. nn.LeakyReLU(True) -> negative_slope=1.0 == identity (removed).
    y = jnp.dot(x.astype(jnp.bfloat16), w1f[...],
                preferred_element_type=jnp.float32) + b1f[...]       # (B,128)
    y = jnp.dot(y.astype(jnp.bfloat16), w2f[...],
                preferred_element_type=jnp.float32) + b2f[...]       # (B,64)
    y = _leaky_relu(y, 0.05)
    y = jnp.dot(y.astype(jnp.bfloat16), w3f[...],
                preferred_element_type=jnp.float32) + b3f[...]       # (B,128)
    out_ref[...] = _sigmoid(y)                       # cols 0..2 valid, rest sliced off


# ------------------------------ JAX glue (FFT) --------------------------------
def fft_features(x):
    """x: (B, 64, 14) -> (B, 504) features, mirroring fft_calc(count_harmonic=8)."""
    B = x.shape[0]
    x = x.reshape(B, N_CHANNELS, FRAME)              # raw reshape, as in torch code
    prev = x[:, :, :32]
    cur = x[:, :, 32:]
    n = jnp.arange(32, dtype=jnp.float32)
    k = jnp.arange(COUNT_HARMONIC + 1, dtype=jnp.float32)
    ang = 2.0 * jnp.pi * jnp.outer(n, k) / 32.0      # (32, 9)
    cos_m, sin_m = jnp.cos(ang), jnp.sin(ang)

    def dft(s):
        re = jnp.einsum('bcn,nk->bck', s, cos_m)
        im = -jnp.einsum('bcn,nk->bck', s, sin_m)
        return re, im

    re_p, im_p = dft(prev)
    re_c, im_c = dft(cur)
    amp_p = jnp.sqrt(re_p * re_p + im_p * im_p)
    amp_c = jnp.sqrt(re_c * re_c + im_c * im_c)
    phase_c = jnp.arctan2(im_c, re_c)
    # NOTE: reference uses the *current* window for both phase features (verbatim).
    feat = jnp.concatenate([amp_p, phase_c, amp_c, phase_c], axis=-1)  # (B,14,36)
    return feat.reshape(B, -1)                                          # (B,504)


# ------------------------------ parameters -----------------------------------
def init_params(key):
    keys = jax.random.split(key, 32)
    ki = iter(keys)
    params = []
    for fin, fout, finp, foutp in KAN_DIMS:
        base_w = np.asarray(jax.random.normal(next(ki), (fout, fin), jnp.float32)) / np.sqrt(fin)
        spline_w = np.asarray(jax.random.normal(next(ki), (fout, fin, N_COEFF), jnp.float32)) * 0.01
        scaler = np.asarray(jax.random.normal(next(ki), (fout, fin), jnp.float32)) / np.sqrt(fin)
        scaled = spline_w * scaler[..., None]                           # (out, in, 13)
        bw = np.zeros((finp, foutp), np.float32)
        bw[:fin, :fout] = base_w.T                                      # (in_pad, out_pad)
        sw = np.zeros((N_COEFF, finp, foutp), np.float32)
        sw[:, :fin, :fout] = np.transpose(scaled, (2, 1, 0))            # coeff-major
        params.append(jnp.asarray(bw, jnp.bfloat16))
        params.append(jnp.asarray(sw.reshape(N_COEFF * finp, foutp), jnp.bfloat16))

    # Fused MLP heads (block-diagonal weights, zero-padded to lane multiples).
    W1f = np.zeros((D4P, H1F), np.float32); b1f = np.zeros((1, H1F), np.float32)
    W2f = np.zeros((H1F, H2F), np.float32); b2f = np.zeros((1, H2F), np.float32)
    W3f = np.zeros((H2F, OUT_PAD), np.float32); b3f = np.zeros((1, OUT_PAD), np.float32)
    for h in range(3):
        w1 = np.asarray(jax.random.normal(next(ki), (HIDDEN, HIDDEN), jnp.float32)) / np.sqrt(HIDDEN)
        b1 = np.asarray(jax.random.normal(next(ki), (HIDDEN,), jnp.float32)) * 0.01
        w2 = np.asarray(jax.random.normal(next(ki), (HIDDEN, HEAD_H2), jnp.float32)) / np.sqrt(HIDDEN)
        b2 = np.asarray(jax.random.normal(next(ki), (HEAD_H2,), jnp.float32)) * 0.01
        w3 = np.asarray(jax.random.normal(next(ki), (HEAD_H2, 1), jnp.float32)) / np.sqrt(HEAD_H2)
        b3 = np.asarray(jax.random.normal(next(ki), (1,), jnp.float32)) * 0.01
        W1f[:HIDDEN, h * HIDDEN:(h + 1) * HIDDEN] = w1
        b1f[0, h * HIDDEN:(h + 1) * HIDDEN] = b1
        W2f[h * HIDDEN:(h + 1) * HIDDEN, h * HEAD_H2:(h + 1) * HEAD_H2] = w2
        b2f[0, h * HEAD_H2:(h + 1) * HEAD_H2] = b2
        W3f[h * HEAD_H2:(h + 1) * HEAD_H2, h] = w3[:, 0]
        b3f[0, h] = b3[0]
    params += [jnp.asarray(W1f, jnp.bfloat16), jnp.asarray(b1f, jnp.float32),
               jnp.asarray(W2f, jnp.bfloat16), jnp.asarray(b2f, jnp.float32),
               jnp.asarray(W3f, jnp.bfloat16), jnp.asarray(b3f, jnp.float32)]
    return params


# ------------------------------ forward wrapper -------------------------------
@jax.jit
def forward(x, params):
    feat = fft_features(x.astype(jnp.float32))                 # (B, 504)
    B = feat.shape[0]
    b_blk = min(128, _round_up(B, 8))                          # safe on v5e/v6e/v7x
    b_pad = _round_up(B, b_blk)
    feat = jnp.pad(feat, ((0, b_pad - B), (0, IN_PAD - IN_FEATURES)))

    n_blk = b_pad // b_blk
    in_specs = [pl.BlockSpec((b_blk, IN_PAD), lambda i: (i, 0))]
    in_specs += [pl.BlockSpec(p.shape, lambda i: (0, 0)) for p in params]   # resident
    out_spec = pl.BlockSpec((b_blk, OUT_PAD), lambda i: (i, 0))

    flops = 2 * b_pad * ((N_COEFF + 1) * sum(fp * op for _, _, fp, op in KAN_DIMS)
                         + D4P * H1F + H1F * H2F + H2F * OUT_PAD)
    transc = b_pad * (IN_PAD + D1P + D2P + D3P + OUT_PAD)
    bytes_acc = (int(np.prod(feat.shape)) * 4 + b_pad * OUT_PAD * 4
                 + sum(int(np.prod(p.shape)) * p.dtype.itemsize for p in params))

    out = pl.pallas_call(
        _fft_mlp_kan_kernel,
        grid=(n_blk,),
        out_shape=jax.ShapeDtypeStruct((b_pad, OUT_PAD), jnp.float32),
        in_specs=in_specs,
        out_specs=out_spec,
        compiler_params=pltpu.CompilerParams(
            dimension_semantics=("parallel",),
            vmem_limit_bytes=48 * 1024 * 1024),
        cost_estimate=pl.CostEstimate(flops=int(flops),
                                      transcendentals=int(transc),
                                      bytes_accessed=int(bytes_acc)),
    )(feat, *params)
    return out[:B, :3]


if __name__ == "__main__":
    key = jax.random.PRNGKey(0)
    pkey, xkey = jax.random.split(key)
    params = init_params(pkey)
    B = 2
    x = jax.random.normal(xkey, (B, FRAME, N_CHANNELS), jnp.float32)
    out = forward(x, params)
    jax.block_until_ready(out)
    assert out.shape == (B, 3)
    assert bool(jnp.all(jnp.isfinite(out)))
    print("KERNEL_OK")
</pallas_src>

<mosaic_0001>
module attributes {stable_mosaic.version = 11 : i64} {
  func.func @_fft_mlp_kan_kernel(%arg0: i32, %arg1: memref<8x512xf32, #tpu.memory_space<vmem>>, %arg2: memref<512x128xbf16, #tpu.memory_space<vmem>>, %arg3: memref<6656x128xbf16, #tpu.memory_space<vmem>>, %arg4: memref<128x256xbf16, #tpu.memory_space<vmem>>, %arg5: memref<1664x256xbf16, #tpu.memory_space<vmem>>, %arg6: memref<256x128xbf16, #tpu.memory_space<vmem>>, %arg7: memref<3328x128xbf16, #tpu.memory_space<vmem>>, %arg8: memref<128x128xbf16, #tpu.memory_space<vmem>>, %arg9: memref<1664x128xbf16, #tpu.memory_space<vmem>>, %arg10: memref<128x128xbf16, #tpu.memory_space<vmem>>, %arg11: memref<1x128xf32, #tpu.memory_space<vmem>>, %arg12: memref<128x64xbf16, #tpu.memory_space<vmem>>, %arg13: memref<1x64xf32, #tpu.memory_space<vmem>>, %arg14: memref<64x128xbf16, #tpu.memory_space<vmem>>, %arg15: memref<1x128xf32, #tpu.memory_space<vmem>>, %arg16: memref<8x128xf32, #tpu.memory_space<vmem>>) attributes {dimension_semantics = [#tpu.dimension_semantics<parallel>], iteration_bounds = array<i64: 1>, scalar_prefetch = 0 : i64, scratch_operands = 0 : i64, tpu.core_type = #tpu.core_type<tc>, window_params = [{transform_indices = @transform_0, window_bounds = array<i64: 8, 512>}, {pipeline_mode = #tpu.pipeline_mode<synchronous>, transform_indices = @transform_1, window_bounds = array<i64: 512, 128>}, {pipeline_mode = #tpu.pipeline_mode<synchronous>, transform_indices = @transform_2, window_bounds = array<i64: 6656, 128>}, {pipeline_mode = #tpu.pipeline_mode<synchronous>, transform_indices = @transform_3, window_bounds = array<i64: 128, 256>}, {pipeline_mode = #tpu.pipeline_mode<synchronous>, transform_indices = @transform_4, window_bounds = array<i64: 1664, 256>}, {pipeline_mode = #tpu.pipeline_mode<synchronous>, transform_indices = @transform_5, window_bounds = array<i64: 256, 128>}, {pipeline_mode = #tpu.pipeline_mode<synchronous>, transform_indices = @transform_6, window_bounds = array<i64: 3328, 128>}, {pipeline_mode = #tpu.pipeline_mode<synchronous>, transform_indices = @transform_7, window_bounds = array<i64: 128, 128>}, {pipeline_mode = #tpu.pipeline_mode<synchronous>, transform_indices = @transform_8, window_bounds = array<i64: 1664, 128>}, {pipeline_mode = #tpu.pipeline_mode<synchronous>, transform_indices = @transform_9, window_bounds = array<i64: 128, 128>}, {pipeline_mode = #tpu.pipeline_mode<synchronous>, transform_indices = @transform_10, window_bounds = array<i64: 1, 128>}, {pipeline_mode = #tpu.pipeline_mode<synchronous>, transform_indices = @transform_11, window_bounds = array<i64: 128, 64>}, {pipeline_mode = #tpu.pipeline_mode<synchronous>, transform_indices = @transform_12, window_bounds = array<i64: 1, 64>}, {pipeline_mode = #tpu.pipeline_mode<synchronous>, transform_indices = @transform_13, window_bounds = array<i64: 64, 128>}, {pipeline_mode = #tpu.pipeline_mode<synchronous>, transform_indices = @transform_14, window_bounds = array<i64: 1, 128>}, {transform_indices = @transform_15, window_bounds = array<i64: 8, 128>}]} {
    %c0 = arith.constant 0 : index
    %c0_0 = arith.constant 0 : index
    %0 = vector.load %arg1[%c0, %c0_0] : memref<8x512xf32, #tpu.memory_space<vmem>>, vector<8x512xf32>
    %cst = arith.constant 0.000000e+00 : f32
    %1 = vector.broadcast %cst : f32 to vector<8x512xf32>
    %2 = arith.subf %1, %0 : vector<8x512xf32>
    %3 = math.exp %2 : vector<8x512xf32>
    %cst_1 = arith.constant 1.000000e+00 : f32
    %4 = vector.broadcast %cst_1 : f32 to vector<8x512xf32>
    %5 = arith.addf %4, %3 : vector<8x512xf32>
    %6 = tpu.reciprocal %5 {approx = true} : vector<8x512xf32> -> vector<8x512xf32>
    %7 = arith.mulf %0, %6 : vector<8x512xf32>
    %8 = arith.truncf %7 : vector<8x512xf32> to vector<8x512xbf16>
    %c0_2 = arith.constant 0 : index
    %c0_3 = arith.constant 0 : index
    %9 = vector.load %arg2[%c0_2, %c0_3] : memref<512x128xbf16, #tpu.memory_space<vmem>>, vector<512x128xbf16>
    %cst_4 = arith.constant dense<0.000000e+00> : vector<8x128xf32>
    %10 = tpu.matmul %8, %9, %cst_4 {dimension_numbers = #tpu.dot_dimension_numbers<[1], [0], [0], [1], [0, 0, 1, 1], [], []>} : vector<8x512xbf16>, vector<512x128xbf16>, vector<8x128xf32> -> vector<8x128xf32>
    %cst_5 = arith.constant -3.000000e-01 : f32
    %11 = vector.broadcast %cst_5 : f32 to vector<8x512xf32>
    %12 = arith.cmpf oge, %0, %11 : vector<8x512xf32>
    %13 = arith.extui %12 : vector<8x512xi1> to vector<8x512xi32>
    %14 = arith.sitofp %13 : vector<8x512xi32> to vector<8x512xf32>
    %cst_6 = arith.constant -2.000000e-01 : f32
    %15 = vector.broadcast %cst_6 : f32 to vector<8x512xf32>
    %16 = arith.cmpf oge, %0, %15 : vector<8x512xf32>
    %17 = arith.extui %16 : vector<8x512xi1> to vector<8x512xi32>
    %18 = arith.sitofp %17 : vector<8x512xi32> to vector<8x512xf32>
    %cst_7 = arith.constant -1.000000e-01 : f32
    %19 = vector.broadcast %cst_7 : f32 to vector<8x512xf32>
    %20 = arith.cmpf oge, %0, %19 : vector<8x512xf32>
    %21 = arith.extui %20 : vector<8x512xi1> to vector<8x512xi32>
    %22 = arith.sitofp %21 : vector<8x512xi32> to vector<8x512xf32>
    %cst_8 = arith.constant 0.000000e+00 : f32
    %23 = vector.broadcast %cst_8 : f32 to vector<8x512xf32>
    %24 = arith.cmpf oge, %0, %23 : vector<8x512xf32>
    %25 = arith.extui %24 : vector<8x512xi1> to vector<8x512xi32>
    %26 = arith.sitofp %25 : vector<8x512xi32> to vector<8x512xf32>
    %cst_9 = arith.constant 1.000000e-01 : f32
    %27 = vector.broadcast %cst_9 : f32 to vector<8x512xf32>
    %28 = arith.cmpf oge, %0, %27 : vector<8x512xf32>
    %29 = arith.extui %28 : vector<8x512xi1> to vector<8x512xi32>
    %30 = arith.sitofp %29 : vector<8x512xi32> to vector<8x512xf32>
    %cst_10 = arith.constant 2.000000e-01 : f32
    %31 = vector.broadcast %cst_10 : f32 to vector<8x512xf32>
    %32 = arith.cmpf oge, %0, %31 : vector<8x512xf32>
    %33 = arith.extui %32 : vector<8x512xi1> to vector<8x512xi32>
    %34 = arith.sitofp %33 : vector<8x512xi32> to vector<8x512xf32>
    %cst_11 = arith.constant 3.000000e-01 : f32
    %35 = vector.broadcast %cst_11 : f32 to vector<8x512xf32>
    %36 = arith.cmpf oge, %0, %35 : vector<8x512xf32>
    %37 = arith.extui %36 : vector<8x512xi1> to vector<8x512xi32>
    %38 = arith.sitofp %37 : vector<8x512xi32> to vector<8x512xf32>
    %cst_12 = arith.constant 4.000000e-01 : f32
    %39 = vector.broadcast %cst_12 : f32 to vector<8x512xf32>
    %40 = arith.cmpf oge, %0, %39 : vector<8x512xf32>
    %41 = arith.extui %40 : vector<8x512xi1> to vector<8x512xi32>
    %42 = arith.sitofp %41 : vector<8x512xi32> to vector<8x512xf32>
    %cst_13 = arith.constant 5.000000e-01 : f32
    %43 = vector.broadcast %cst_13 : f32 to vector<8x512xf32>
    %44 = arith.cmpf oge, %0, %43 : vector<8x512xf32>
    %45 = arith.extui %44 : vector<8x512xi1> to vector<8x512xi32>
    %46 = arith.sitofp %45 : vector<8x512xi32> to vector<8x512xf32>
    %cst_14 = arith.constant 6.000000e-01 : f32
    %47 = vector.broadcast %cst_14 : f32 to vector<8x512xf32>
    %48 = arith.cmpf oge, %0, %47 : vector<8x512xf32>
    %49 = arith.extui %48 : vector<8x512xi1> to vector<8x512xi32>
    %50 = arith.sitofp %49 : vector<8x512xi32> to vector<8x512xf32>
    %cst_15 = arith.constant 0.699999988 : f32
    %51 = vector.broadcast %cst_15 : f32 to vector<8x512xf32>
    %52 = arith.cmpf oge, %0, %51 : vector<8x512xf32>
    %53 = arith.extui %52 : vector<8x512xi1> to vector<8x512xi32>
    %54 = arith.sitofp %53 : vector<8x512xi32> to vector<8x512xf32>
    %cst_16 = arith.constant 8.000000e-01 : f32
    %55 = vector.broadcast %cst_16 : f32 to vector<8x512xf32>
    %56 = arith.cmpf oge, %0, %55 : vector<8x512xf32>
    %57 = arith.extui %56 : vector<8x512xi1> to vector<8x512xi32>
    %58 = arith.sitofp %57 : vector<8x512xi32> to vector<8x512xf32>
    %cst_17 = arith.constant 0.899999976 : f32
    %59 = vector.broadcast %cst_17 : f32 to vector<8x512xf32>
    %60 = arith.cmpf oge, %0, %59 : vector<8x512xf32>
    %61 = arith.extui %60 : vector<8x512xi1> to vector<8x512xi32>
    %62 = arith.sitofp %61 : vector<8x512xi32> to vector<8x512xf32>
    %cst_18 = arith.constant 1.000000e+00 : f32
    %63 = vector.broadcast %cst_18 : f32 to vector<8x512xf32>
    %64 = arith.cmpf oge, %0, %63 : vector<8x512xf32>
    %65 = arith.extui %64 : vector<8x512xi1> to vector<8x512xi32>
    %66 = arith.sitofp %65 : vector<8x512xi32> to vector<8x512xf32>
    %cst_19 = arith.constant 1.100000e+00 : f32
    %67 = vector.broadcast %cst_19 : f32 to vector<8x512xf32>
    %68 = arith.cmpf oge, %0, %67 : vector<8x512xf32>
    %69 = arith.extui %68 : vector<8x512xi1> to vector<8x512xi32>
    %70 = arith.sitofp %69 : vector<8x512xi32> to vector<8x512xf32>
    %cst_20 = arith.constant 1.200000e+00 : f32
    %71 = vector.broadcast %cst_20 : f32 to vector<8x512xf32>
    %72 = arith.cmpf oge, %0, %71 : vector<8x512xf32>
    %73 = arith.extui %72 : vector<8x512xi1> to vector<8x512xi32>
    %74 = arith.sitofp %73 : vector<8x512xi32> to vector<8x512xf32>
    %cst_21 = arith.constant 1.300000e+00 : f32
    %75 = vector.broadcast %cst_21 : f32 to vector<8x512xf32>
    %76 = arith.cmpf oge, %0, %75 : vector<8x512xf32>
    %77 = arith.extui %76 : vector<8x512xi1> to vector<8x512xi32>
    %78 = arith.sitofp %77 : vector<8x512xi32> to vector<8x512xf32>
    %79 = arith.subf %14, %18 : vector<8x512xf32>
    %80 = arith.subf %18, %22 : vector<8x512xf32>
    %81 = arith.subf %22, %26 : vector<8x512xf32>
    %82 = arith.subf %26, %30 : vector<8x512xf32>
    %83 = arith.subf %30, %34 : vector<8x512xf32>
    %84 = arith.subf %34, %38 : vector<8x512xf32>
    %85 = arith.subf %38, %42 : vector<8x512xf32>
    %86 = arith.subf %42, %46 : vector<8x512xf32>
    %87 = arith.subf %46, %50 : vector<8x512xf32>
    %88 = arith.subf %50, %54 : vector<8x512xf32>
    %89 = arith.subf %54, %58 : vector<8x512xf32>
    %90 = arith.subf %58, %62 : vector<8x512xf32>
    %91 = arith.subf %62, %66 : vector<8x512xf32>
    %92 = arith.subf %66, %70 : vector<8x512xf32>
    %93 = arith.subf %70, %74 : vector<8x512xf32>
    %94 = arith.subf %74, %78 : vector<8x512xf32>
    %cst_22 = arith.constant -3.000000e-01 : f32
    %95 = vector.broadcast %cst_22 : f32 to vector<8x512xf32>
    %96 = arith.subf %0, %95 : vector<8x512xf32>
    %cst_23 = arith.constant -2.000000e-01 : f32
    %97 = vector.broadcast %cst_23 : f32 to vector<8x512xf32>
    %98 = arith.subf %0, %97 : vector<8x512xf32>
    %cst_24 = arith.constant -1.000000e-01 : f32
    %99 = vector.broadcast %cst_24 : f32 to vector<8x512xf32>
    %100 = arith.subf %0, %99 : vector<8x512xf32>
    %cst_25 = arith.constant 0.000000e+00 : f32
    %101 = vector.broadcast %cst_25 : f32 to vector<8x512xf32>
    %102 = arith.subf %0, %101 : vector<8x512xf32>
    %cst_26 = arith.constant 1.000000e-01 : f32
    %103 = vector.broadcast %cst_26 : f32 to vector<8x512xf32>
    %104 = arith.subf %0, %103 : vector<8x512xf32>
    %cst_27 = arith.constant 2.000000e-01 : f32
    %105 = vector.broadcast %cst_27 : f32 to vector<8x512xf32>
    %106 = arith.subf %0, %105 : vector<8x512xf32>
    %cst_28 = arith.constant 3.000000e-01 : f32
    %107 = vector.broadcast %cst_28 : f32 to vector<8x512xf32>
    %108 = arith.subf %0, %107 : vector<8x512xf32>
    %cst_29 = arith.constant 4.000000e-01 : f32
    %109 = vector.broadcast %cst_29 : f32 to vector<8x512xf32>
    %110 = arith.subf %0, %109 : vector<8x512xf32>
    %cst_30 = arith.constant 5.000000e-01 : f32
    %111 = vector.broadcast %cst_30 : f32 to vector<8x512xf32>
    %112 = arith.subf %0, %111 : vector<8x512xf32>
    %cst_31 = arith.constant 6.000000e-01 : f32
    %113 = vector.broadcast %cst_31 : f32 to vector<8x512xf32>
    %114 = arith.subf %0, %113 : vector<8x512xf32>
    %cst_32 = arith.constant 0.699999988 : f32
    %115 = vector.broadcast %cst_32 : f32 to vector<8x512xf32>
    %116 = arith.subf %0, %115 : vector<8x512xf32>
    %cst_33 = arith.constant 8.000000e-01 : f32
    %117 = vector.broadcast %cst_33 : f32 to vector<8x512xf32>
    %118 = arith.subf %0, %117 : vector<8x512xf32>
    %cst_34 = arith.constant 0.899999976 : f32
    %119 = vector.broadcast %cst_34 : f32 to vector<8x512xf32>
    %120 = arith.subf %0, %119 : vector<8x512xf32>
    %cst_35 = arith.constant 1.000000e+00 : f32
    %121 = vector.broadcast %cst_35 : f32 to vector<8x512xf32>
    %122 = arith.subf %0, %121 : vector<8x512xf32>
    %cst_36 = arith.constant 1.100000e+00 : f32
    %123 = vector.broadcast %cst_36 : f32 to vector<8x512xf32>
    %124 = arith.subf %0, %123 : vector<8x512xf32>
    %cst_37 = arith.constant 1.200000e+00 : f32
    %125 = vector.broadcast %cst_37 : f32 to vector<8x512xf32>
    %126 = arith.subf %0, %125 : vector<8x512xf32>
    %cst_38 = arith.constant 1.300000e+00 : f32
    %127 = vector.broadcast %cst_38 : f32 to vector<8x512xf32>
    %128 = arith.subf %0, %127 : vector<8x512xf32>
    %cst_39 = arith.constant 9.99999904 : f32
    %129 = vector.broadcast %cst_39 : f32 to vector<8x512xf32>
    %130 = arith.mulf %96, %129 : vector<8x512xf32>
    %131 = arith.mulf %130, %79 : vector<8x512xf32>
    %cst_40 = arith.constant -1.000000e+01 : f32
    %132 = vector.broadcast %cst_40 : f32 to vector<8x512xf32>
    %133 = arith.mulf %100, %132 : vector<8x512xf32>
    %134 = arith.mulf %133, %80 : vector<8x512xf32>
    %135 = arith.addf %131, %134 : vector<8x512xf32>
    %cst_41 = arith.constant 1.000000e+01 : f32
    %136 = vector.broadcast %cst_41 : f32 to vector<8x512xf32>
    %137 = arith.mulf %98, %136 : vector<8x512xf32>
    %138 = arith.mulf %137, %80 : vector<8x512xf32>
    %cst_42 = arith.constant -1.000000e+01 : f32
    %139 = vector.broadcast %cst_42 : f32 to vector<8x512xf32>
    %140 = arith.mulf %102, %139 : vector<8x512xf32>
    %141 = arith.mulf %140, %81 : vector<8x512xf32>
    %142 = arith.addf %138, %141 : vector<8x512xf32>
    %cst_43 = arith.constant 1.000000e+01 : f32
    %143 = vector.broadcast %cst_43 : f32 to vector<8x512xf32>
    %144 = arith.mulf %100, %143 : vector<8x512xf32>
    %145 = arith.mulf %144, %81 : vector<8x512xf32>
    %cst_44 = arith.constant -1.000000e+01 : f32
    %146 = vector.broadcast %cst_44 : f32 to vector<8x512xf32>
    %147 = arith.mulf %104, %146 : vector<8x512xf32>
    %148 = arith.mulf %147, %82 : vector<8x512xf32>
    %149 = arith.addf %145, %148 : vector<8x512xf32>
    %cst_45 = arith.constant 1.000000e+01 : f32
    %150 = vector.broadcast %cst_45 : f32 to vector<8x512xf32>
    %151 = arith.mulf %102, %150 : vector<8x512xf32>
    %152 = arith.mulf %151, %82 : vector<8x512xf32>
    %cst_46 = arith.constant -1.000000e+01 : f32
    %153 = vector.broadcast %cst_46 : f32 to vector<8x512xf32>
    %154 = arith.mulf %106, %153 : vector<8x512xf32>
    %155 = arith.mulf %154, %83 : vector<8x512xf32>
    %156 = arith.addf %152, %155 : vector<8x512xf32>
    %cst_47 = arith.constant 1.000000e+01 : f32
    %157 = vector.broadcast %cst_47 : f32 to vector<8x512xf32>
    %158 = arith.mulf %104, %157 : vector<8x512xf32>
    %159 = arith.mulf %158, %83 : vector<8x512xf32>
    %cst_48 = arith.constant -9.99999904 : f32
    %160 = vector.broadcast %cst_48 : f32 to vector<8x512xf32>
    %161 = arith.mulf %108, %160 : vector<8x512xf32>
    %162 = arith.mulf %161, %84 : vector<8x512xf32>
    %163 = arith.addf %159, %162 : vector<8x512xf32>
    %cst_49 = arith.constant 9.99999904 : f32
    %164 = vector.broadcast %cst_49 : f32 to vector<8x512xf32>
    %165 = arith.mulf %106, %164 : vector<8x512xf32>
    %166 = arith.mulf %165, %84 : vector<8x512xf32>
    %cst_50 = arith.constant -10.000001 : f32
    %167 = vector.broadcast %cst_50 : f32 to vector<8x512xf32>
    %168 = arith.mulf %110, %167 : vector<8x512xf32>
    %169 = arith.mulf %168, %85 : vector<8x512xf32>
    %170 = arith.addf %166, %169 : vector<8x512xf32>
    %cst_51 = arith.constant 10.000001 : f32
    %171 = vector.broadcast %cst_51 : f32 to vector<8x512xf32>
    %172 = arith.mulf %108, %171 : vector<8x512xf32>
    %173 = arith.mulf %172, %85 : vector<8x512xf32>
    %cst_52 = arith.constant -10.000001 : f32
    %174 = vector.broadcast %cst_52 : f32 to vector<8x512xf32>
    %175 = arith.mulf %112, %174 : vector<8x512xf32>
    %176 = arith.mulf %175, %86 : vector<8x512xf32>
    %177 = arith.addf %173, %176 : vector<8x512xf32>
    %cst_53 = arith.constant 10.000001 : f32
    %178 = vector.broadcast %cst_53 : f32 to vector<8x512xf32>
    %179 = arith.mulf %110, %178 : vector<8x512xf32>
    %180 = arith.mulf %179, %86 : vector<8x512xf32>
    %cst_54 = arith.constant -9.99999809 : f32
    %181 = vector.broadcast %cst_54 : f32 to vector<8x512xf32>
    %182 = arith.mulf %114, %181 : vector<8x512xf32>
    %183 = arith.mulf %182, %87 : vector<8x512xf32>
    %184 = arith.addf %180, %183 : vector<8x512xf32>
    %cst_55 = arith.constant 9.99999809 : f32
    %185 = vector.broadcast %cst_55 : f32 to vector<8x512xf32>
    %186 = arith.mulf %112, %185 : vector<8x512xf32>
    %187 = arith.mulf %186, %87 : vector<8x512xf32>
    %cst_56 = arith.constant -10.0000038 : f32
    %188 = vector.broadcast %cst_56 : f32 to vector<8x512xf32>
    %189 = arith.mulf %116, %188 : vector<8x512xf32>
    %190 = arith.mulf %189, %88 : vector<8x512xf32>
    %191 = arith.addf %187, %190 : vector<8x512xf32>
    %cst_57 = arith.constant 10.0000038 : f32
    %192 = vector.broadcast %cst_57 : f32 to vector<8x512xf32>
    %193 = arith.mulf %114, %192 : vector<8x512xf32>
    %194 = arith.mulf %193, %88 : vector<8x512xf32>
    %cst_58 = arith.constant -9.99999809 : f32
    %195 = vector.broadcast %cst_58 : f32 to vector<8x512xf32>
    %196 = arith.mulf %118, %195 : vector<8x512xf32>
    %197 = arith.mulf %196, %89 : vector<8x512xf32>
    %198 = arith.addf %194, %197 : vector<8x512xf32>
    %cst_59 = arith.constant 9.99999809 : f32
    %199 = vector.broadcast %cst_59 : f32 to vector<8x512xf32>
    %200 = arith.mulf %116, %199 : vector<8x512xf32>
    %201 = arith.mulf %200, %89 : vector<8x512xf32>
    %cst_60 = arith.constant -10.0000038 : f32
    %202 = vector.broadcast %cst_60 : f32 to vector<8x512xf32>
    %203 = arith.mulf %120, %202 : vector<8x512xf32>
    %204 = arith.mulf %203, %90 : vector<8x512xf32>
    %205 = arith.addf %201, %204 : vector<8x512xf32>
    %cst_61 = arith.constant 10.0000038 : f32
    %206 = vector.broadcast %cst_61 : f32 to vector<8x512xf32>
    %207 = arith.mulf %118, %206 : vector<8x512xf32>
    %208 = arith.mulf %207, %90 : vector<8x512xf32>
    %cst_62 = arith.constant -9.99999809 : f32
    %209 = vector.broadcast %cst_62 : f32 to vector<8x512xf32>
    %210 = arith.mulf %122, %209 : vector<8x512xf32>
    %211 = arith.mulf %210, %91 : vector<8x512xf32>
    %212 = arith.addf %208, %211 : vector<8x512xf32>
    %cst_63 = arith.constant 9.99999809 : f32
    %213 = vector.broadcast %cst_63 : f32 to vector<8x512xf32>
    %214 = arith.mulf %120, %213 : vector<8x512xf32>
    %215 = arith.mulf %214, %91 : vector<8x512xf32>
    %cst_64 = arith.constant -9.99999809 : f32
    %216 = vector.broadcast %cst_64 : f32 to vector<8x512xf32>
    %217 = arith.mulf %124, %216 : vector<8x512xf32>
    %218 = arith.mulf %217, %92 : vector<8x512xf32>
    %219 = arith.addf %215, %218 : vector<8x512xf32>
    %cst_65 = arith.constant 9.99999809 : f32
    %220 = vector.broadcast %cst_65 : f32 to vector<8x512xf32>
    %221 = arith.mulf %122, %220 : vector<8x512xf32>
    %222 = arith.mulf %221, %92 : vector<8x512xf32>
    %cst_66 = arith.constant -9.99999809 : f32
    %223 = vector.broadcast %cst_66 : f32 to vector<8x512xf32>
    %224 = arith.mulf %126, %223 : vector<8x512xf32>
    %225 = arith.mulf %224, %93 : vector<8x512xf32>
    %226 = arith.addf %222, %225 : vector<8x512xf32>
    %cst_67 = arith.constant 9.99999809 : f32
    %227 = vector.broadcast %cst_67 : f32 to vector<8x512xf32>
    %228 = arith.mulf %124, %227 : vector<8x512xf32>
    %229 = arith.mulf %228, %93 : vector<8x512xf32>
    %cst_68 = arith.constant -10.0000095 : f32
    %230 = vector.broadcast %cst_68 : f32 to vector<8x512xf32>
    %231 = arith.mulf %128, %230 : vector<8x512xf32>
    %232 = arith.mulf %231, %94 : vector<8x512xf32>
    %233 = arith.addf %229, %232 : vector<8x512xf32>
    %cst_69 = arith.constant 4.99999952 : f32
    %234 = vector.broadcast %cst_69 : f32 to vector<8x512xf32>
    %235 = arith.mulf %96, %234 : vector<8x512xf32>
    %236 = arith.mulf %235, %135 : vector<8x512xf32>
    %cst_70 = arith.constant -5.000000e+00 : f32
    %237 = vector.broadcast %cst_70 : f32 to vector<8x512xf32>
    %238 = arith.mulf %102, %237 : vector<8x512xf32>
    %239 = arith.mulf %238, %142 : vector<8x512xf32>
    %240 = arith.addf %236, %239 : vector<8x512xf32>
    %cst_71 = arith.constant 5.000000e+00 : f32
    %241 = vector.broadcast %cst_71 : f32 to vector<8x512xf32>
    %242 = arith.mulf %98, %241 : vector<8x512xf32>
    %243 = arith.mulf %242, %142 : vector<8x512xf32>
    %cst_72 = arith.constant -5.000000e+00 : f32
    %244 = vector.broadcast %cst_72 : f32 to vector<8x512xf32>
    %245 = arith.mulf %104, %244 : vector<8x512xf32>
    %246 = arith.mulf %245, %149 : vector<8x512xf32>
    %247 = arith.addf %243, %246 : vector<8x512xf32>
    %cst_73 = arith.constant 5.000000e+00 : f32
    %248 = vector.broadcast %cst_73 : f32 to vector<8x512xf32>
    %249 = arith.mulf %100, %248 : vector<8x512xf32>
    %250 = arith.mulf %249, %149 : vector<8x512xf32>
    %cst_74 = arith.constant -5.000000e+00 : f32
    %251 = vector.broadcast %cst_74 : f32 to vector<8x512xf32>
    %252 = arith.mulf %106, %251 : vector<8x512xf32>
    %253 = arith.mulf %252, %156 : vector<8x512xf32>
    %254 = arith.addf %250, %253 : vector<8x512xf32>
    %cst_75 = arith.constant 5.000000e+00 : f32
    %255 = vector.broadcast %cst_75 : f32 to vector<8x512xf32>
    %256 = arith.mulf %102, %255 : vector<8x512xf32>
    %257 = arith.mulf %256, %156 : vector<8x512xf32>
    %cst_76 = arith.constant -4.99999952 : f32
    %258 = vector.broadcast %cst_76 : f32 to vector<8x512xf32>
    %259 = arith.mulf %108, %258 : vector<8x512xf32>
    %260 = arith.mulf %259, %163 : vector<8x512xf32>
    %261 = arith.addf %257, %260 : vector<8x512xf32>
    %cst_77 = arith.constant 4.99999952 : f32
    %262 = vector.broadcast %cst_77 : f32 to vector<8x512xf32>
    %263 = arith.mulf %104, %262 : vector<8x512xf32>
    %264 = arith.mulf %263, %163 : vector<8x512xf32>
    %cst_78 = arith.constant -5.000000e+00 : f32
    %265 = vector.broadcast %cst_78 : f32 to vector<8x512xf32>
    %266 = arith.mulf %110, %265 : vector<8x512xf32>
    %267 = arith.mulf %266, %170 : vector<8x512xf32>
    %268 = arith.addf %264, %267 : vector<8x512xf32>
    %cst_79 = arith.constant 5.000000e+00 : f32
    %269 = vector.broadcast %cst_79 : f32 to vector<8x512xf32>
    %270 = arith.mulf %106, %269 : vector<8x512xf32>
    %271 = arith.mulf %270, %170 : vector<8x512xf32>
    %cst_80 = arith.constant -5.00000048 : f32
    %272 = vector.broadcast %cst_80 : f32 to vector<8x512xf32>
    %273 = arith.mulf %112, %272 : vector<8x512xf32>
    %274 = arith.mulf %273, %177 : vector<8x512xf32>
    %275 = arith.addf %271, %274 : vector<8x512xf32>
    %cst_81 = arith.constant 5.00000048 : f32
    %276 = vector.broadcast %cst_81 : f32 to vector<8x512xf32>
    %277 = arith.mulf %108, %276 : vector<8x512xf32>
    %278 = arith.mulf %277, %177 : vector<8x512xf32>
    %cst_82 = arith.constant -4.99999952 : f32
    %279 = vector.broadcast %cst_82 : f32 to vector<8x512xf32>
    %280 = arith.mulf %114, %279 : vector<8x512xf32>
    %281 = arith.mulf %280, %184 : vector<8x512xf32>
    %282 = arith.addf %278, %281 : vector<8x512xf32>
    %cst_83 = arith.constant 4.99999952 : f32
    %283 = vector.broadcast %cst_83 : f32 to vector<8x512xf32>
    %284 = arith.mulf %110, %283 : vector<8x512xf32>
    %285 = arith.mulf %284, %184 : vector<8x512xf32>
    %cst_84 = arith.constant -5.00000048 : f32
    %286 = vector.broadcast %cst_84 : f32 to vector<8x512xf32>
    %287 = arith.mulf %116, %286 : vector<8x512xf32>
    %288 = arith.mulf %287, %191 : vector<8x512xf32>
    %289 = arith.addf %285, %288 : vector<8x512xf32>
    %cst_85 = arith.constant 5.00000048 : f32
    %290 = vector.broadcast %cst_85 : f32 to vector<8x512xf32>
    %291 = arith.mulf %112, %290 : vector<8x512xf32>
    %292 = arith.mulf %291, %191 : vector<8x512xf32>
    %cst_86 = arith.constant -5.00000048 : f32
    %293 = vector.broadcast %cst_86 : f32 to vector<8x512xf32>
    %294 = arith.mulf %118, %293 : vector<8x512xf32>
    %295 = arith.mulf %294, %198 : vector<8x512xf32>
    %296 = arith.addf %292, %295 : vector<8x512xf32>
    %cst_87 = arith.constant 5.00000048 : f32
    %297 = vector.broadcast %cst_87 : f32 to vector<8x512xf32>
    %298 = arith.mulf %114, %297 : vector<8x512xf32>
    %299 = arith.mulf %298, %198 : vector<8x512xf32>
    %cst_88 = arith.constant -5.00000048 : f32
    %300 = vector.broadcast %cst_88 : f32 to vector<8x512xf32>
    %301 = arith.mulf %120, %300 : vector<8x512xf32>
    %302 = arith.mulf %301, %205 : vector<8x512xf32>
    %303 = arith.addf %299, %302 : vector<8x512xf32>
    %cst_89 = arith.constant 5.00000048 : f32
    %304 = vector.broadcast %cst_89 : f32 to vector<8x512xf32>
    %305 = arith.mulf %116, %304 : vector<8x512xf32>
    %306 = arith.mulf %305, %205 : vector<8x512xf32>
    %cst_90 = arith.constant -5.00000048 : f32
    %307 = vector.broadcast %cst_90 : f32 to vector<8x512xf32>
    %308 = arith.mulf %122, %307 : vector<8x512xf32>
    %309 = arith.mulf %308, %212 : vector<8x512xf32>
    %310 = arith.addf %306, %309 : vector<8x512xf32>
    %cst_91 = arith.constant 5.00000048 : f32
    %311 = vector.broadcast %cst_91 : f32 to vector<8x512xf32>
    %312 = arith.mulf %118, %311 : vector<8x512xf32>
    %313 = arith.mulf %312, %212 : vector<8x512xf32>
    %cst_92 = arith.constant -4.99999905 : f32
    %314 = vector.broadcast %cst_92 : f32 to vector<8x512xf32>
    %315 = arith.mulf %124, %314 : vector<8x512xf32>
    %316 = arith.mulf %315, %219 : vector<8x512xf32>
    %317 = arith.addf %313, %316 : vector<8x512xf32>
    %cst_93 = arith.constant 4.99999905 : f32
    %318 = vector.broadcast %cst_93 : f32 to vector<8x512xf32>
    %319 = arith.mulf %120, %318 : vector<8x512xf32>
    %320 = arith.mulf %319, %219 : vector<8x512xf32>
    %cst_94 = arith.constant -4.99999905 : f32
    %321 = vector.broadcast %cst_94 : f32 to vector<8x512xf32>
    %322 = arith.mulf %126, %321 : vector<8x512xf32>
    %323 = arith.mulf %322, %226 : vector<8x512xf32>
    %324 = arith.addf %320, %323 : vector<8x512xf32>
    %cst_95 = arith.constant 4.99999905 : f32
    %325 = vector.broadcast %cst_95 : f32 to vector<8x512xf32>
    %326 = arith.mulf %122, %325 : vector<8x512xf32>
    %327 = arith.mulf %326, %226 : vector<8x512xf32>
    %cst_96 = arith.constant -5.00000191 : f32
    %328 = vector.broadcast %cst_96 : f32 to vector<8x512xf32>
    %329 = arith.mulf %128, %328 : vector<8x512xf32>
    %330 = arith.mulf %329, %233 : vector<8x512xf32>
    %331 = arith.addf %327, %330 : vector<8x512xf32>
    %cst_97 = arith.constant 3.33333325 : f32
    %332 = vector.broadcast %cst_97 : f32 to vector<8x512xf32>
    %333 = arith.mulf %96, %332 : vector<8x512xf32>
    %334 = arith.mulf %333, %240 : vector<8x512xf32>
    %cst_98 = arith.constant -3.33333325 : f32
    %335 = vector.broadcast %cst_98 : f32 to vector<8x512xf32>
    %336 = arith.mulf %104, %335 : vector<8x512xf32>
    %337 = arith.mulf %336, %247 : vector<8x512xf32>
    %338 = arith.addf %334, %337 : vector<8x512xf32>
    %cst_99 = arith.constant 3.33333325 : f32
    %339 = vector.broadcast %cst_99 : f32 to vector<8x512xf32>
    %340 = arith.mulf %98, %339 : vector<8x512xf32>
    %341 = arith.mulf %340, %247 : vector<8x512xf32>
    %cst_100 = arith.constant -3.33333325 : f32
    %342 = vector.broadcast %cst_100 : f32 to vector<8x512xf32>
    %343 = arith.mulf %106, %342 : vector<8x512xf32>
    %344 = arith.mulf %343, %254 : vector<8x512xf32>
    %345 = arith.addf %341, %344 : vector<8x512xf32>
    %cst_101 = arith.constant 3.33333325 : f32
    %346 = vector.broadcast %cst_101 : f32 to vector<8x512xf32>
    %347 = arith.mulf %100, %346 : vector<8x512xf32>
    %348 = arith.mulf %347, %254 : vector<8x512xf32>
    %cst_102 = arith.constant -3.33333325 : f32
    %349 = vector.broadcast %cst_102 : f32 to vector<8x512xf32>
    %350 = arith.mulf %108, %349 : vector<8x512xf32>
    %351 = arith.mulf %350, %261 : vector<8x512xf32>
    %352 = arith.addf %348, %351 : vector<8x512xf32>
    %cst_103 = arith.constant 3.33333325 : f32
    %353 = vector.broadcast %cst_103 : f32 to vector<8x512xf32>
    %354 = arith.mulf %102, %353 : vector<8x512xf32>
    %355 = arith.mulf %354, %261 : vector<8x512xf32>
    %cst_104 = arith.constant -3.33333325 : f32
    %356 = vector.broadcast %cst_104 : f32 to vector<8x512xf32>
    %357 = arith.mulf %110, %356 : vector<8x512xf32>
    %358 = arith.mulf %357, %268 : vector<8x512xf32>
    %359 = arith.addf %355, %358 : vector<8x512xf32>
    %cst_105 = arith.constant 3.33333325 : f32
    %360 = vector.broadcast %cst_105 : f32 to vector<8x512xf32>
    %361 = arith.mulf %104, %360 : vector<8x512xf32>
    %362 = arith.mulf %361, %268 : vector<8x512xf32>
    %cst_106 = arith.constant -3.33333325 : f32
    %363 = vector.broadcast %cst_106 : f32 to vector<8x512xf32>
    %364 = arith.mulf %112, %363 : vector<8x512xf32>
    %365 = arith.mulf %364, %275 : vector<8x512xf32>
    %366 = arith.addf %362, %365 : vector<8x512xf32>
    %cst_107 = arith.constant 3.33333325 : f32
    %367 = vector.broadcast %cst_107 : f32 to vector<8x512xf32>
    %368 = arith.mulf %106, %367 : vector<8x512xf32>
    %369 = arith.mulf %368, %275 : vector<8x512xf32>
    %cst_108 = arith.constant -3.33333325 : f32
    %370 = vector.broadcast %cst_108 : f32 to vector<8x512xf32>
    %371 = arith.mulf %114, %370 : vector<8x512xf32>
    %372 = arith.mulf %371, %282 : vector<8x512xf32>
    %373 = arith.addf %369, %372 : vector<8x512xf32>
    %cst_109 = arith.constant 3.33333325 : f32
    %374 = vector.broadcast %cst_109 : f32 to vector<8x512xf32>
    %375 = arith.mulf %108, %374 : vector<8x512xf32>
    %376 = arith.mulf %375, %282 : vector<8x512xf32>
    %cst_110 = arith.constant -3.33333349 : f32
    %377 = vector.broadcast %cst_110 : f32 to vector<8x512xf32>
    %378 = arith.mulf %116, %377 : vector<8x512xf32>
    %379 = arith.mulf %378, %289 : vector<8x512xf32>
    %380 = arith.addf %376, %379 : vector<8x512xf32>
    %cst_111 = arith.constant 3.33333349 : f32
    %381 = vector.broadcast %cst_111 : f32 to vector<8x512xf32>
    %382 = arith.mulf %110, %381 : vector<8x512xf32>
    %383 = arith.mulf %382, %289 : vector<8x512xf32>
    %cst_112 = arith.constant -3.33333325 : f32
    %384 = vector.broadcast %cst_112 : f32 to vector<8x512xf32>
    %385 = arith.mulf %118, %384 : vector<8x512xf32>
    %386 = arith.mulf %385, %296 : vector<8x512xf32>
    %387 = arith.addf %383, %386 : vector<8x512xf32>
    %cst_113 = arith.constant 3.33333325 : f32
    %388 = vector.broadcast %cst_113 : f32 to vector<8x512xf32>
    %389 = arith.mulf %112, %388 : vector<8x512xf32>
    %390 = arith.mulf %389, %296 : vector<8x512xf32>
    %cst_114 = arith.constant -3.33333397 : f32
    %391 = vector.broadcast %cst_114 : f32 to vector<8x512xf32>
    %392 = arith.mulf %120, %391 : vector<8x512xf32>
    %393 = arith.mulf %392, %303 : vector<8x512xf32>
    %394 = arith.addf %390, %393 : vector<8x512xf32>
    %cst_115 = arith.constant 3.33333397 : f32
    %395 = vector.broadcast %cst_115 : f32 to vector<8x512xf32>
    %396 = arith.mulf %114, %395 : vector<8x512xf32>
    %397 = arith.mulf %396, %303 : vector<8x512xf32>
    %cst_116 = arith.constant -3.33333325 : f32
    %398 = vector.broadcast %cst_116 : f32 to vector<8x512xf32>
    %399 = arith.mulf %122, %398 : vector<8x512xf32>
    %400 = arith.mulf %399, %310 : vector<8x512xf32>
    %401 = arith.addf %397, %400 : vector<8x512xf32>
    %cst_117 = arith.constant 3.33333325 : f32
    %402 = vector.broadcast %cst_117 : f32 to vector<8x512xf32>
    %403 = arith.mulf %116, %402 : vector<8x512xf32>
    %404 = arith.mulf %403, %310 : vector<8x512xf32>
    %cst_118 = arith.constant -3.33333325 : f32
    %405 = vector.broadcast %cst_118 : f32 to vector<8x512xf32>
    %406 = arith.mulf %124, %405 : vector<8x512xf32>
    %407 = arith.mulf %406, %317 : vector<8x512xf32>
    %408 = arith.addf %404, %407 : vector<8x512xf32>
    %cst_119 = arith.constant 3.33333325 : f32
    %409 = vector.broadcast %cst_119 : f32 to vector<8x512xf32>
    %410 = arith.mulf %118, %409 : vector<8x512xf32>
    %411 = arith.mulf %410, %317 : vector<8x512xf32>
    %cst_120 = arith.constant -3.33333254 : f32
    %412 = vector.broadcast %cst_120 : f32 to vector<8x512xf32>
    %413 = arith.mulf %126, %412 : vector<8x512xf32>
    %414 = arith.mulf %413, %324 : vector<8x512xf32>
    %415 = arith.addf %411, %414 : vector<8x512xf32>
    %cst_121 = arith.constant 3.33333254 : f32
    %416 = vector.broadcast %cst_121 : f32 to vector<8x512xf32>
    %417 = arith.mulf %120, %416 : vector<8x512xf32>
    %418 = arith.mulf %417, %324 : vector<8x512xf32>
    %cst_122 = arith.constant -3.33333397 : f32
    %419 = vector.broadcast %cst_122 : f32 to vector<8x512xf32>
    %420 = arith.mulf %128, %419 : vector<8x512xf32>
    %421 = arith.mulf %420, %331 : vector<8x512xf32>
    %422 = arith.addf %418, %421 : vector<8x512xf32>
    %423 = tpu.concatenate %338, %345, %352, %359, %366, %373, %380, %387, %394, %401, %408, %415, %422 in 1 : vector<8x512xf32>, vector<8x512xf32>, vector<8x512xf32>, vector<8x512xf32>, vector<8x512xf32>, vector<8x512xf32>, vector<8x512xf32>, vector<8x512xf32>, vector<8x512xf32>, vector<8x512xf32>, vector<8x512xf32>, vector<8x512xf32>, vector<8x512xf32> -> vector<8x6656xf32>
    %424 = arith.truncf %423 : vector<8x6656xf32> to vector<8x6656xbf16>
    %c0_123 = arith.constant 0 : index
    %c0_124 = arith.constant 0 : index
    %425 = vector.load %arg3[%c0_123, %c0_124] : memref<6656x128xbf16, #tpu.memory_space<vmem>>, vector<6656x128xbf16>
    %cst_125 = arith.constant dense<0.000000e+00> : vector<8x128xf32>
    %426 = tpu.matmul %424, %425, %cst_125 {dimension_numbers = #tpu.dot_dimension_numbers<[1], [0], [0], [1], [0, 0, 1, 1], [], []>} : vector<8x6656xbf16>, vector<6656x128xbf16>, vector<8x128xf32> -> vector<8x128xf32>
    %427 = arith.addf %10, %426 : vector<8x128xf32>
    %cst_126 = arith.constant 0.000000e+00 : f32
    %428 = vector.broadcast %cst_126 : f32 to vector<8x128xf32>
    %429 = arith.subf %428, %427 : vector<8x128xf32>
    %430 = math.exp %429 : vector<8x128xf32>
    %cst_127 = arith.constant 1.000000e+00 : f32
    %431 = vector.broadcast %cst_127 : f32 to vector<8x128xf32>
    %432 = arith.addf %431, %430 : vector<8x128xf32>
    %433 = tpu.reciprocal %432 {approx = true} : vector<8x128xf32> -> vector<8x128xf32>
    %434 = arith.mulf %427, %433 : vector<8x128xf32>
    %435 = arith.truncf %434 : vector<8x128xf32> to vector<8x128xbf16>
    %c0_128 = arith.constant 0 : index
    %c0_129 = arith.constant 0 : index
    %436 = vector.load %arg4[%c0_128, %c0_129] : memref<128x256xbf16, #tpu.memory_space<vmem>>, vector<128x256xbf16>
    %cst_130 = arith.constant dense<0.000000e+00> : vector<8x256xf32>
    %437 = tpu.matmul %435, %436, %cst_130 {dimension_numbers = #tpu.dot_dimension_numbers<[1], [0], [0], [1], [0, 0, 1, 1], [], []>} : vector<8x128xbf16>, vector<128x256xbf16>, vector<8x256xf32> -> vector<8x256xf32>
    %cst_131 = arith.constant -3.000000e-01 : f32
    %438 = vector.broadcast %cst_131 : f32 to vector<8x128xf32>
    %439 = arith.cmpf oge, %427, %438 : vector<8x128xf32>
    %440 = arith.extui %439 : vector<8x128xi1> to vector<8x128xi32>
    %441 = arith.sitofp %440 : vector<8x128xi32> to vector<8x128xf32>
    %cst_132 = arith.constant -2.000000e-01 : f32
    %442 = vector.broadcast %cst_132 : f32 to vector<8x128xf32>
    %443 = arith.cmpf oge, %427, %442 : vector<8x128xf32>
    %444 = arith.extui %443 : vector<8x128xi1> to vector<8x128xi32>
    %445 = arith.sitofp %444 : vector<8x128xi32> to vector<8x128xf32>
    %cst_133 = arith.constant -1.000000e-01 : f32
    %446 = vector.broadcast %cst_133 : f32 to vector<8x128xf32>
    %447 = arith.cmpf oge, %427, %446 : vector<8x128xf32>
    %448 = arith.extui %447 : vector<8x128xi1> to vector<8x128xi32>
    %449 = arith.sitofp %448 : vector<8x128xi32> to vector<8x128xf32>
    %cst_134 = arith.constant 0.000000e+00 : f32
    %450 = vector.broadcast %cst_134 : f32 to vector<8x128xf32>
    %451 = arith.cmpf oge, %427, %450 : vector<8x128xf32>
    %452 = arith.extui %451 : vector<8x128xi1> to vector<8x128xi32>
    %453 = arith.sitofp %452 : vector<8x128xi32> to vector<8x128xf32>
    %cst_135 = arith.constant 1.000000e-01 : f32
    %454 = vector.broadcast %cst_135 : f32 to vector<8x128xf32>
    %455 = arith.cmpf oge, %427, %454 : vector<8x128xf32>
    %456 = arith.extui %455 : vector<8x128xi1> to vector<8x128xi32>
    %457 = arith.sitofp %456 : vector<8x128xi32> to vector<8x128xf32>
    %cst_136 = arith.constant 2.000000e-01 : f32
    %458 = vector.broadcast %cst_136 : f32 to vector<8x128xf32>
    %459 = arith.cmpf oge, %427, %458 : vector<8x128xf32>
    %460 = arith.extui %459 : vector<8x128xi1> to vector<8x128xi32>
    %461 = arith.sitofp %460 : vector<8x128xi32> to vector<8x128xf32>
    %cst_137 = arith.constant 3.000000e-01 : f32
    %462 = vector.broadcast %cst_137 : f32 to vector<8x128xf32>
    %463 = arith.cmpf oge, %427, %462 : vector<8x128xf32>
    %464 = arith.extui %463 : vector<8x128xi1> to vector<8x128xi32>
    %465 = arith.sitofp %464 : vector<8x128xi32> to vector<8x128xf32>
    %cst_138 = arith.constant 4.000000e-01 : f32
    %466 = vector.broadcast %cst_138 : f32 to vector<8x128xf32>
    %467 = arith.cmpf oge, %427, %466 : vector<8x128xf32>
    %468 = arith.extui %467 : vector<8x128xi1> to vector<8x128xi32>
    %469 = arith.sitofp %468 : vector<8x128xi32> to vector<8x128xf32>
    %cst_139 = arith.constant 5.000000e-01 : f32
    %470 = vector.broadcast %cst_139 : f32 to vector<8x128xf32>
    %471 = arith.cmpf oge, %427, %470 : vector<8x128xf32>
    %472 = arith.extui %471 : vector<8x128xi1> to vector<8x128xi32>
    %473 = arith.sitofp %472 : vector<8x128xi32> to vector<8x128xf32>
    %cst_140 = arith.constant 6.000000e-01 : f32
    %474 = vector.broadcast %cst_140 : f32 to vector<8x128xf32>
    %475 = arith.cmpf oge, %427, %474 : vector<8x128xf32>
    %476 = arith.extui %475 : vector<8x128xi1> to vector<8x128xi32>
    %477 = arith.sitofp %476 : vector<8x128xi32> to vector<8x128xf32>
    %cst_141 = arith.constant 0.699999988 : f32
    %478 = vector.broadcast %cst_141 : f32 to vector<8x128xf32>
    %479 = arith.cmpf oge, %427, %478 : vector<8x128xf32>
    %480 = arith.extui %479 : vector<8x128xi1> to vector<8x128xi32>
    %481 = arith.sitofp %480 : vector<8x128xi32> to vector<8x128xf32>
    %cst_142 = arith.constant 8.000000e-01 : f32
    %482 = vector.broadcast %cst_142 : f32 to vector<8x128xf32>
    %483 = arith.cmpf oge, %427, %482 : vector<8x128xf32>
    %484 = arith.extui %483 : vector<8x128xi1> to vector<8x128xi32>
    %485 = arith.sitofp %484 : vector<8x128xi32> to vector<8x128xf32>
    %cst_143 = arith.constant 0.899999976 : f32
    %486 = vector.broadcast %cst_143 : f32 to vector<8x128xf32>
    %487 = arith.cmpf oge, %427, %486 : vector<8x128xf32>
    %488 = arith.extui %487 : vector<8x128xi1> to vector<8x128xi32>
    %489 = arith.sitofp %488 : vector<8x128xi32> to vector<8x128xf32>
    %cst_144 = arith.constant 1.000000e+00 : f32
    %490 = vector.broadcast %cst_144 : f32 to vector<8x128xf32>
    %491 = arith.cmpf oge, %427, %490 : vector<8x128xf32>
    %492 = arith.extui %491 : vector<8x128xi1> to vector<8x128xi32>
    %493 = arith.sitofp %492 : vector<8x128xi32> to vector<8x128xf32>
    %cst_145 = arith.constant 1.100000e+00 : f32
    %494 = vector.broadcast %cst_145 : f32 to vector<8x128xf32>
    %495 = arith.cmpf oge, %427, %494 : vector<8x128xf32>
    %496 = arith.extui %495 : vector<8x128xi1> to vector<8x128xi32>
    %497 = arith.sitofp %496 : vector<8x128xi32> to vector<8x128xf32>
    %cst_146 = arith.constant 1.200000e+00 : f32
    %498 = vector.broadcast %cst_146 : f32 to vector<8x128xf32>
    %499 = arith.cmpf oge, %427, %498 : vector<8x128xf32>
    %500 = arith.extui %499 : vector<8x128xi1> to vector<8x128xi32>
    %501 = arith.sitofp %500 : vector<8x128xi32> to vector<8x128xf32>
    %cst_147 = arith.constant 1.300000e+00 : f32
    %502 = vector.broadcast %cst_147 : f32 to vector<8x128xf32>
    %503 = arith.cmpf oge, %427, %502 : vector<8x128xf32>
    %504 = arith.extui %503 : vector<8x128xi1> to vector<8x128xi32>
    %505 = arith.sitofp %504 : vector<8x128xi32> to vector<8x128xf32>
    %506 = arith.subf %441, %445 : vector<8x128xf32>
    %507 = arith.subf %445, %449 : vector<8x128xf32>
    %508 = arith.subf %449, %453 : vector<8x128xf32>
    %509 = arith.subf %453, %457 : vector<8x128xf32>
    %510 = arith.subf %457, %461 : vector<8x128xf32>
    %511 = arith.subf %461, %465 : vector<8x128xf32>
    %512 = arith.subf %465, %469 : vector<8x128xf32>
    %513 = arith.subf %469, %473 : vector<8x128xf32>
    %514 = arith.subf %473, %477 : vector<8x128xf32>
    %515 = arith.subf %477, %481 : vector<8x128xf32>
    %516 = arith.subf %481, %485 : vector<8x128xf32>
    %517 = arith.subf %485, %489 : vector<8x128xf32>
    %518 = arith.subf %489, %493 : vector<8x128xf32>
    %519 = arith.subf %493, %497 : vector<8x128xf32>
    %520 = arith.subf %497, %501 : vector<8x128xf32>
    %521 = arith.subf %501, %505 : vector<8x128xf32>
    %cst_148 = arith.constant -3.000000e-01 : f32
    %522 = vector.broadcast %cst_148 : f32 to vector<8x128xf32>
    %523 = arith.subf %427, %522 : vector<8x128xf32>
    %cst_149 = arith.constant -2.000000e-01 : f32
    %524 = vector.broadcast %cst_149 : f32 to vector<8x128xf32>
    %525 = arith.subf %427, %524 : vector<8x128xf32>
    %cst_150 = arith.constant -1.000000e-01 : f32
    %526 = vector.broadcast %cst_150 : f32 to vector<8x128xf32>
    %527 = arith.subf %427, %526 : vector<8x128xf32>
    %cst_151 = arith.constant 0.000000e+00 : f32
    %528 = vector.broadcast %cst_151 : f32 to vector<8x128xf32>
    %529 = arith.subf %427, %528 : vector<8x128xf32>
    %cst_152 = arith.constant 1.000000e-01 : f32
    %530 = vector.broadcast %cst_152 : f32 to vector<8x128xf32>
    %531 = arith.subf %427, %530 : vector<8x128xf32>
    %cst_153 = arith.constant 2.000000e-01 : f32
    %532 = vector.broadcast %cst_153 : f32 to vector<8x128xf32>
    %533 = arith.subf %427, %532 : vector<8x128xf32>
    %cst_154 = arith.constant 3.000000e-01 : f32
    %534 = vector.broadcast %cst_154 : f32 to vector<8x128xf32>
    %535 = arith.subf %427, %534 : vector<8x128xf32>
    %cst_155 = arith.constant 4.000000e-01 : f32
    %536 = vector.broadcast %cst_155 : f32 to vector<8x128xf32>
    %537 = arith.subf %427, %536 : vector<8x128xf32>
    %cst_156 = arith.constant 5.000000e-01 : f32
    %538 = vector.broadcast %cst_156 : f32 to vector<8x128xf32>
    %539 = arith.subf %427, %538 : vector<8x128xf32>
    %cst_157 = arith.constant 6.000000e-01 : f32
    %540 = vector.broadcast %cst_157 : f32 to vector<8x128xf32>
    %541 = arith.subf %427, %540 : vector<8x128xf32>
    %cst_158 = arith.constant 0.699999988 : f32
    %542 = vector.broadcast %cst_158 : f32 to vector<8x128xf32>
    %543 = arith.subf %427, %542 : vector<8x128xf32>
    %cst_159 = arith.constant 8.000000e-01 : f32
    %544 = vector.broadcast %cst_159 : f32 to vector<8x128xf32>
    %545 = arith.subf %427, %544 : vector<8x128xf32>
    %cst_160 = arith.constant 0.899999976 : f32
    %546 = vector.broadcast %cst_160 : f32 to vector<8x128xf32>
    %547 = arith.subf %427, %546 : vector<8x128xf32>
    %cst_161 = arith.constant 1.000000e+00 : f32
    %548 = vector.broadcast %cst_161 : f32 to vector<8x128xf32>
    %549 = arith.subf %427, %548 : vector<8x128xf32>
    %cst_162 = arith.constant 1.100000e+00 : f32
    %550 = vector.broadcast %cst_162 : f32 to vector<8x128xf32>
    %551 = arith.subf %427, %550 : vector<8x128xf32>
    %cst_163 = arith.constant 1.200000e+00 : f32
    %552 = vector.broadcast %cst_163 : f32 to vector<8x128xf32>
    %553 = arith.subf %427, %552 : vector<8x128xf32>
    %cst_164 = arith.constant 1.300000e+00 : f32
    %554 = vector.broadcast %cst_164 : f32 to vector<8x128xf32>
    %555 = arith.subf %427, %554 : vector<8x128xf32>
    %cst_165 = arith.constant 9.99999904 : f32
    %556 = vector.broadcast %cst_165 : f32 to vector<8x128xf32>
    %557 = arith.mulf %523, %556 : vector<8x128xf32>
    %558 = arith.mulf %557, %506 : vector<8x128xf32>
    %cst_166 = arith.constant -1.000000e+01 : f32
    %559 = vector.broadcast %cst_166 : f32 to vector<8x128xf32>
    %560 = arith.mulf %527, %559 : vector<8x128xf32>
    %561 = arith.mulf %560, %507 : vector<8x128xf32>
    %562 = arith.addf %558, %561 : vector<8x128xf32>
    %cst_167 = arith.constant 1.000000e+01 : f32
    %563 = vector.broadcast %cst_167 : f32 to vector<8x128xf32>
    %564 = arith.mulf %525, %563 : vector<8x128xf32>
    %565 = arith.mulf %564, %507 : vector<8x128xf32>
    %cst_168 = arith.constant -1.000000e+01 : f32
    %566 = vector.broadcast %cst_168 : f32 to vector<8x128xf32>
    %567 = arith.mulf %529, %566 : vector<8x128xf32>
    %568 = arith.mulf %567, %508 : vector<8x128xf32>
    %569 = arith.addf %565, %568 : vector<8x128xf32>
    %cst_169 = arith.constant 1.000000e+01 : f32
    %570 = vector.broadcast %cst_169 : f32 to vector<8x128xf32>
    %571 = arith.mulf %527, %570 : vector<8x128xf32>
    %572 = arith.mulf %571, %508 : vector<8x128xf32>
    %cst_170 = arith.constant -1.000000e+01 : f32
    %573 = vector.broadcast %cst_170 : f32 to vector<8x128xf32>
    %574 = arith.mulf %531, %573 : vector<8x128xf32>
    %575 = arith.mulf %574, %509 : vector<8x128xf32>
    %576 = arith.addf %572, %575 : vector<8x128xf32>
    %cst_171 = arith.constant 1.000000e+01 : f32
    %577 = vector.broadcast %cst_171 : f32 to vector<8x128xf32>
    %578 = arith.mulf %529, %577 : vector<8x128xf32>
    %579 = arith.mulf %578, %509 : vector<8x128xf32>
    %cst_172 = arith.constant -1.000000e+01 : f32
    %580 = vector.broadcast %cst_172 : f32 to vector<8x128xf32>
    %581 = arith.mulf %533, %580 : vector<8x128xf32>
    %582 = arith.mulf %581, %510 : vector<8x128xf32>
    %583 = arith.addf %579, %582 : vector<8x128xf32>
    %cst_173 = arith.constant 1.000000e+01 : f32
    %584 = vector.broadcast %cst_173 : f32 to vector<8x128xf32>
    %585 = arith.mulf %531, %584 : vector<8x128xf32>
    %586 = arith.mulf %585, %510 : vector<8x128xf32>
    %cst_174 = arith.constant -9.99999904 : f32
    %587 = vector.broadcast %cst_174 : f32 to vector<8x128xf32>
    %588 = arith.mulf %535, %587 : vector<8x128xf32>
    %589 = arith.mulf %588, %511 : vector<8x128xf32>
    %590 = arith.addf %586, %589 : vector<8x128xf32>
    %cst_175 = arith.constant 9.99999904 : f32
    %591 = vector.broadcast %cst_175 : f32 to vector<8x128xf32>
    %592 = arith.mulf %533, %591 : vector<8x128xf32>
    %593 = arith.mulf %592, %511 : vector<8x128xf32>
    %cst_176 = arith.constant -10.000001 : f32
    %594 = vector.broadcast %cst_176 : f32 to vector<8x128xf32>
    %595 = arith.mulf %537, %594 : vector<8x128xf32>
    %596 = arith.mulf %595, %512 : vector<8x128xf32>
    %597 = arith.addf %593, %596 : vector<8x128xf32>
    %cst_177 = arith.constant 10.000001 : f32
    %598 = vector.broadcast %cst_177 : f32 to vector<8x128xf32>
    %599 = arith.mulf %535, %598 : vector<8x128xf32>
    %600 = arith.mulf %599, %512 : vector<8x128xf32>
    %cst_178 = arith.constant -10.000001 : f32
    %601 = vector.broadcast %cst_178 : f32 to vector<8x128xf32>
    %602 = arith.mulf %539, %601 : vector<8x128xf32>
    %603 = arith.mulf %602, %513 : vector<8x128xf32>
    %604 = arith.addf %600, %603 : vector<8x128xf32>
    %cst_179 = arith.constant 10.000001 : f32
    %605 = vector.broadcast %cst_179 : f32 to vector<8x128xf32>
    %606 = arith.mulf %537, %605 : vector<8x128xf32>
    %607 = arith.mulf %606, %513 : vector<8x128xf32>
    %cst_180 = arith.constant -9.99999809 : f32
    %608 = vector.broadcast %cst_180 : f32 to vector<8x128xf32>
    %609 = arith.mulf %541, %608 : vector<8x128xf32>
    %610 = arith.mulf %609, %514 : vector<8x128xf32>
    %611 = arith.addf %607, %610 : vector<8x128xf32>
    %cst_181 = arith.constant 9.99999809 : f32
    %612 = vector.broadcast %cst_181 : f32 to vector<8x128xf32>
    %613 = arith.mulf %539, %612 : vector<8x128xf32>
    %614 = arith.mulf %613, %514 : vector<8x128xf32>
    %cst_182 = arith.constant -10.0000038 : f32
    %615 = vector.broadcast %cst_182 : f32 to vector<8x128xf32>
    %616 = arith.mulf %543, %615 : vector<8x128xf32>
    %617 = arith.mulf %616, %515 : vector<8x128xf32>
    %618 = arith.addf %614, %617 : vector<8x128xf32>
    %cst_183 = arith.constant 10.0000038 : f32
    %619 = vector.broadcast %cst_183 : f32 to vector<8x128xf32>
    %620 = arith.mulf %541, %619 : vector<8x128xf32>
    %621 = arith.mulf %620, %515 : vector<8x128xf32>
    %cst_184 = arith.constant -9.99999809 : f32
    %622 = vector.broadcast %cst_184 : f32 to vector<8x128xf32>
    %623 = arith.mulf %545, %622 : vector<8x128xf32>
    %624 = arith.mulf %623, %516 : vector<8x128xf32>
    %625 = arith.addf %621, %624 : vector<8x128xf32>
    %cst_185 = arith.constant 9.99999809 : f32
    %626 = vector.broadcast %cst_185 : f32 to vector<8x128xf32>
    %627 = arith.mulf %543, %626 : vector<8x128xf32>
    %628 = arith.mulf %627, %516 : vector<8x128xf32>
    %cst_186 = arith.constant -10.0000038 : f32
    %629 = vector.broadcast %cst_186 : f32 to vector<8x128xf32>
    %630 = arith.mulf %547, %629 : vector<8x128xf32>
    %631 = arith.mulf %630, %517 : vector<8x128xf32>
    %632 = arith.addf %628, %631 : vector<8x128xf32>
    %cst_187 = arith.constant 10.0000038 : f32
    %633 = vector.broadcast %cst_187 : f32 to vector<8x128xf32>
    %634 = arith.mulf %545, %633 : vector<8x128xf32>
    %635 = arith.mulf %634, %517 : vector<8x128xf32>
    %cst_188 = arith.constant -9.99999809 : f32
    %636 = vector.broadcast %cst_188 : f32 to vector<8x128xf32>
    %637 = arith.mulf %549, %636 : vector<8x128xf32>
    %638 = arith.mulf %637, %518 : vector<8x128xf32>
    %639 = arith.addf %635, %638 : vector<8x128xf32>
    %cst_189 = arith.constant 9.99999809 : f32
    %640 = vector.broadcast %cst_189 : f32 to vector<8x128xf32>
    %641 = arith.mulf %547, %640 : vector<8x128xf32>
    %642 = arith.mulf %641, %518 : vector<8x128xf32>
    %cst_190 = arith.constant -9.99999809 : f32
    %643 = vector.broadcast %cst_190 : f32 to vector<8x128xf32>
    %644 = arith.mulf %551, %643 : vector<8x128xf32>
    %645 = arith.mulf %644, %519 : vector<8x128xf32>
    %646 = arith.addf %642, %645 : vector<8x128xf32>
    %cst_191 = arith.constant 9.99999809 : f32
    %647 = vector.broadcast %cst_191 : f32 to vector<8x128xf32>
    %648 = arith.mulf %549, %647 : vector<8x128xf32>
    %649 = arith.mulf %648, %519 : vector<8x128xf32>
    %cst_192 = arith.constant -9.99999809 : f32
    %650 = vector.broadcast %cst_192 : f32 to vector<8x128xf32>
    %651 = arith.mulf %553, %650 : vector<8x128xf32>
    %652 = arith.mulf %651, %520 : vector<8x128xf32>
    %653 = arith.addf %649, %652 : vector<8x128xf32>
    %cst_193 = arith.constant 9.99999809 : f32
    %654 = vector.broadcast %cst_193 : f32 to vector<8x128xf32>
    %655 = arith.mulf %551, %654 : vector<8x128xf32>
    %656 = arith.mulf %655, %520 : vector<8x128xf32>
    %cst_194 = arith.constant -10.0000095 : f32
    %657 = vector.broadcast %cst_194 : f32 to vector<8x128xf32>
    %658 = arith.mulf %555, %657 : vector<8x128xf32>
    %659 = arith.mulf %658, %521 : vector<8x128xf32>
    %660 = arith.addf %656, %659 : vector<8x128xf32>
    %cst_195 = arith.constant 4.99999952 : f32
    %661 = vector.broadcast %cst_195 : f32 to vector<8x128xf32>
    %662 = arith.mulf %523, %661 : vector<8x128xf32>
    %663 = arith.mulf %662, %562 : vector<8x128xf32>
    %cst_196 = arith.constant -5.000000e+00 : f32
    %664 = vector.broadcast %cst_196 : f32 to vector<8x128xf32>
    %665 = arith.mulf %529, %664 : vector<8x128xf32>
    %666 = arith.mulf %665, %569 : vector<8x128xf32>
    %667 = arith.addf %663, %666 : vector<8x128xf32>
    %cst_197 = arith.constant 5.000000e+00 : f32
    %668 = vector.broadcast %cst_197 : f32 to vector<8x128xf32>
    %669 = arith.mulf %525, %668 : vector<8x128xf32>
    %670 = arith.mulf %669, %569 : vector<8x128xf32>
    %cst_198 = arith.constant -5.000000e+00 : f32
    %671 = vector.broadcast %cst_198 : f32 to vector<8x128xf32>
    %672 = arith.mulf %531, %671 : vector<8x128xf32>
    %673 = arith.mulf %672, %576 : vector<8x128xf32>
    %674 = arith.addf %670, %673 : vector<8x128xf32>
    %cst_199 = arith.constant 5.000000e+00 : f32
    %675 = vector.broadcast %cst_199 : f32 to vector<8x128xf32>
    %676 = arith.mulf %527, %675 : vector<8x128xf32>
    %677 = arith.mulf %676, %576 : vector<8x128xf32>
    %cst_200 = arith.constant -5.000000e+00 : f32
    %678 = vector.broadcast %cst_200 : f32 to vector<8x128xf32>
    %679 = arith.mulf %533, %678 : vector<8x128xf32>
    %680 = arith.mulf %679, %583 : vector<8x128xf32>
    %681 = arith.addf %677, %680 : vector<8x128xf32>
    %cst_201 = arith.constant 5.000000e+00 : f32
    %682 = vector.broadcast %cst_201 : f32 to vector<8x128xf32>
    %683 = arith.mulf %529, %682 : vector<8x128xf32>
    %684 = arith.mulf %683, %583 : vector<8x128xf32>
    %cst_202 = arith.constant -4.99999952 : f32
    %685 = vector.broadcast %cst_202 : f32 to vector<8x128xf32>
    %686 = arith.mulf %535, %685 : vector<8x128xf32>
    %687 = arith.mulf %686, %590 : vector<8x128xf32>
    %688 = arith.addf %684, %687 : vector<8x128xf32>
    %cst_203 = arith.constant 4.99999952 : f32
    %689 = vector.broadcast %cst_203 : f32 to vector<8x128xf32>
    %690 = arith.mulf %531, %689 : vector<8x128xf32>
    %691 = arith.mulf %690, %590 : vector<8x128xf32>
    %cst_204 = arith.constant -5.000000e+00 : f32
    %692 = vector.broadcast %cst_204 : f32 to vector<8x128xf32>
    %693 = arith.mulf %537, %692 : vector<8x128xf32>
    %694 = arith.mulf %693, %597 : vector<8x128xf32>
    %695 = arith.addf %691, %694 : vector<8x128xf32>
    %cst_205 = arith.constant 5.000000e+00 : f32
    %696 = vector.broadcast %cst_205 : f32 to vector<8x128xf32>
    %697 = arith.mulf %533, %696 : vector<8x128xf32>
    %698 = arith.mulf %697, %597 : vector<8x128xf32>
    %cst_206 = arith.constant -5.00000048 : f32
    %699 = vector.broadcast %cst_206 : f32 to vector<8x128xf32>
    %700 = arith.mulf %539, %699 : vector<8x128xf32>
    %701 = arith.mulf %700, %604 : vector<8x128xf32>
    %702 = arith.addf %698, %701 : vector<8x128xf32>
    %cst_207 = arith.constant 5.00000048 : f32
    %703 = vector.broadcast %cst_207 : f32 to vector<8x128xf32>
    %704 = arith.mulf %535, %703 : vector<8x128xf32>
    %705 = arith.mulf %704, %604 : vector<8x128xf32>
    %cst_208 = arith.constant -4.99999952 : f32
    %706 = vector.broadcast %cst_208 : f32 to vector<8x128xf32>
    %707 = arith.mulf %541, %706 : vector<8x128xf32>
    %708 = arith.mulf %707, %611 : vector<8x128xf32>
    %709 = arith.addf %705, %708 : vector<8x128xf32>
    %cst_209 = arith.constant 4.99999952 : f32
    %710 = vector.broadcast %cst_209 : f32 to vector<8x128xf32>
    %711 = arith.mulf %537, %710 : vector<8x128xf32>
    %712 = arith.mulf %711, %611 : vector<8x128xf32>
    %cst_210 = arith.constant -5.00000048 : f32
    %713 = vector.broadcast %cst_210 : f32 to vector<8x128xf32>
    %714 = arith.mulf %543, %713 : vector<8x128xf32>
    %715 = arith.mulf %714, %618 : vector<8x128xf32>
    %716 = arith.addf %712, %715 : vector<8x128xf32>
    %cst_211 = arith.constant 5.00000048 : f32
    %717 = vector.broadcast %cst_211 : f32 to vector<8x128xf32>
    %718 = arith.mulf %539, %717 : vector<8x128xf32>
    %719 = arith.mulf %718, %618 : vector<8x128xf32>
    %cst_212 = arith.constant -5.00000048 : f32
    %720 = vector.broadcast %cst_212 : f32 to vector<8x128xf32>
    %721 = arith.mulf %545, %720 : vector<8x128xf32>
    %722 = arith.mulf %721, %625 : vector<8x128xf32>
    %723 = arith.addf %719, %722 : vector<8x128xf32>
    %cst_213 = arith.constant 5.00000048 : f32
    %724 = vector.broadcast %cst_213 : f32 to vector<8x128xf32>
    %725 = arith.mulf %541, %724 : vector<8x128xf32>
    %726 = arith.mulf %725, %625 : vector<8x128xf32>
    %cst_214 = arith.constant -5.00000048 : f32
    %727 = vector.broadcast %cst_214 : f32 to vector<8x128xf32>
    %728 = arith.mulf %547, %727 : vector<8x128xf32>
    %729 = arith.mulf %728, %632 : vector<8x128xf32>
    %730 = arith.addf %726, %729 : vector<8x128xf32>
    %cst_215 = arith.constant 5.00000048 : f32
    %731 = vector.broadcast %cst_215 : f32 to vector<8x128xf32>
    %732 = arith.mulf %543, %731 : vector<8x128xf32>
    %733 = arith.mulf %732, %632 : vector<8x128xf32>
    %cst_216 = arith.constant -5.00000048 : f32
    %734 = vector.broadcast %cst_216 : f32 to vector<8x128xf32>
    %735 = arith.mulf %549, %734 : vector<8x128xf32>
    %736 = arith.mulf %735, %639 : vector<8x128xf32>
    %737 = arith.addf %733, %736 : vector<8x128xf32>
    %cst_217 = arith.constant 5.00000048 : f32
    %738 = vector.broadcast %cst_217 : f32 to vector<8x128xf32>
    %739 = arith.mulf %545, %738 : vector<8x128xf32>
    %740 = arith.mulf %739, %639 : vector<8x128xf32>
    %cst_218 = arith.constant -4.99999905 : f32
    %741 = vector.broadcast %cst_218 : f32 to vector<8x128xf32>
    %742 = arith.mulf %551, %741 : vector<8x128xf32>
    %743 = arith.mulf %742, %646 : vector<8x128xf32>
    %744 = arith.addf %740, %743 : vector<8x128xf32>
    %cst_219 = arith.constant 4.99999905 : f32
    %745 = vector.broadcast %cst_219 : f32 to vector<8x128xf32>
    %746 = arith.mulf %547, %745 : vector<8x128xf32>
    %747 = arith.mulf %746, %646 : vector<8x128xf32>
    %cst_220 = arith.constant -4.99999905 : f32
    %748 = vector.broadcast %cst_220 : f32 to vector<8x128xf32>
    %749 = arith.mulf %553, %748 : vector<8x128xf32>
    %750 = arith.mulf %749, %653 : vector<8x128xf32>
    %751 = arith.addf %747, %750 : vector<8x128xf32>
    %cst_221 = arith.constant 4.99999905 : f32
    %752 = vector.broadcast %cst_221 : f32 to vector<8x128xf32>
    %753 = arith.mulf %549, %752 : vector<8x128xf32>
    %754 = arith.mulf %753, %653 : vector<8x128xf32>
    %cst_222 = arith.constant -5.00000191 : f32
    %755 = vector.broadcast %cst_222 : f32 to vector<8x128xf32>
    %756 = arith.mulf %555, %755 : vector<8x128xf32>
    %757 = arith.mulf %756, %660 : vector<8x128xf32>
    %758 = arith.addf %754, %757 : vector<8x128xf32>
    %cst_223 = arith.constant 3.33333325 : f32
    %759 = vector.broadcast %cst_223 : f32 to vector<8x128xf32>
    %760 = arith.mulf %523, %759 : vector<8x128xf32>
    %761 = arith.mulf %760, %667 : vector<8x128xf32>
    %cst_224 = arith.constant -3.33333325 : f32
    %762 = vector.broadcast %cst_224 : f32 to vector<8x128xf32>
    %763 = arith.mulf %531, %762 : vector<8x128xf32>
    %764 = arith.mulf %763, %674 : vector<8x128xf32>
    %765 = arith.addf %761, %764 : vector<8x128xf32>
    %cst_225 = arith.constant 3.33333325 : f32
    %766 = vector.broadcast %cst_225 : f32 to vector<8x128xf32>
    %767 = arith.mulf %525, %766 : vector<8x128xf32>
    %768 = arith.mulf %767, %674 : vector<8x128xf32>
    %cst_226 = arith.constant -3.33333325 : f32
    %769 = vector.broadcast %cst_226 : f32 to vector<8x128xf32>
    %770 = arith.mulf %533, %769 : vector<8x128xf32>
    %771 = arith.mulf %770, %681 : vector<8x128xf32>
    %772 = arith.addf %768, %771 : vector<8x128xf32>
    %cst_227 = arith.constant 3.33333325 : f32
    %773 = vector.broadcast %cst_227 : f32 to vector<8x128xf32>
    %774 = arith.mulf %527, %773 : vector<8x128xf32>
    %775 = arith.mulf %774, %681 : vector<8x128xf32>
    %cst_228 = arith.constant -3.33333325 : f32
    %776 = vector.broadcast %cst_228 : f32 to vector<8x128xf32>
    %777 = arith.mulf %535, %776 : vector<8x128xf32>
    %778 = arith.mulf %777, %688 : vector<8x128xf32>
    %779 = arith.addf %775, %778 : vector<8x128xf32>
    %cst_229 = arith.constant 3.33333325 : f32
    %780 = vector.broadcast %cst_229 : f32 to vector<8x128xf32>
    %781 = arith.mulf %529, %780 : vector<8x128xf32>
    %782 = arith.mulf %781, %688 : vector<8x128xf32>
    %cst_230 = arith.constant -3.33333325 : f32
    %783 = vector.broadcast %cst_230 : f32 to vector<8x128xf32>
    %784 = arith.mulf %537, %783 : vector<8x128xf32>
    %785 = arith.mulf %784, %695 : vector<8x128xf32>
    %786 = arith.addf %782, %785 : vector<8x128xf32>
    %cst_231 = arith.constant 3.33333325 : f32
    %787 = vector.broadcast %cst_231 : f32 to vector<8x128xf32>
    %788 = arith.mulf %531, %787 : vector<8x128xf32>
    %789 = arith.mulf %788, %695 : vector<8x128xf32>
    %cst_232 = arith.constant -3.33333325 : f32
    %790 = vector.broadcast %cst_232 : f32 to vector<8x128xf32>
    %791 = arith.mulf %539, %790 : vector<8x128xf32>
    %792 = arith.mulf %791, %702 : vector<8x128xf32>
    %793 = arith.addf %789, %792 : vector<8x128xf32>
    %cst_233 = arith.constant 3.33333325 : f32
    %794 = vector.broadcast %cst_233 : f32 to vector<8x128xf32>
    %795 = arith.mulf %533, %794 : vector<8x128xf32>
    %796 = arith.mulf %795, %702 : vector<8x128xf32>
    %cst_234 = arith.constant -3.33333325 : f32
    %797 = vector.broadcast %cst_234 : f32 to vector<8x128xf32>
    %798 = arith.mulf %541, %797 : vector<8x128xf32>
    %799 = arith.mulf %798, %709 : vector<8x128xf32>
    %800 = arith.addf %796, %799 : vector<8x128xf32>
    %cst_235 = arith.constant 3.33333325 : f32
    %801 = vector.broadcast %cst_235 : f32 to vector<8x128xf32>
    %802 = arith.mulf %535, %801 : vector<8x128xf32>
    %803 = arith.mulf %802, %709 : vector<8x128xf32>
    %cst_236 = arith.constant -3.33333349 : f32
    %804 = vector.broadcast %cst_236 : f32 to vector<8x128xf32>
    %805 = arith.mulf %543, %804 : vector<8x128xf32>
    %806 = arith.mulf %805, %716 : vector<8x128xf32>
    %807 = arith.addf %803, %806 : vector<8x128xf32>
    %cst_237 = arith.constant 3.33333349 : f32
    %808 = vector.broadcast %cst_237 : f32 to vector<8x128xf32>
    %809 = arith.mulf %537, %808 : vector<8x128xf32>
    %810 = arith.mulf %809, %716 : vector<8x128xf32>
    %cst_238 = arith.constant -3.33333325 : f32
    %811 = vector.broadcast %cst_238 : f32 to vector<8x128xf32>
    %812 = arith.mulf %545, %811 : vector<8x128xf32>
    %813 = arith.mulf %812, %723 : vector<8x128xf32>
    %814 = arith.addf %810, %813 : vector<8x128xf32>
    %cst_239 = arith.constant 3.33333325 : f32
    %815 = vector.broadcast %cst_239 : f32 to vector<8x128xf32>
    %816 = arith.mulf %539, %815 : vector<8x128xf32>
    %817 = arith.mulf %816, %723 : vector<8x128xf32>
    %cst_240 = arith.constant -3.33333397 : f32
    %818 = vector.broadcast %cst_240 : f32 to vector<8x128xf32>
    %819 = arith.mulf %547, %818 : vector<8x128xf32>
    %820 = arith.mulf %819, %730 : vector<8x128xf32>
    %821 = arith.addf %817, %820 : vector<8x128xf32>
    %cst_241 = arith.constant 3.33333397 : f32
    %822 = vector.broadcast %cst_241 : f32 to vector<8x128xf32>
    %823 = arith.mulf %541, %822 : vector<8x128xf32>
    %824 = arith.mulf %823, %730 : vector<8x128xf32>
    %cst_242 = arith.constant -3.33333325 : f32
    %825 = vector.broadcast %cst_242 : f32 to vector<8x128xf32>
    %826 = arith.mulf %549, %825 : vector<8x128xf32>
    %827 = arith.mulf %826, %737 : vector<8x128xf32>
    %828 = arith.addf %824, %827 : vector<8x128xf32>
    %cst_243 = arith.constant 3.33333325 : f32
    %829 = vector.broadcast %cst_243 : f32 to vector<8x128xf32>
    %830 = arith.mulf %543, %829 : vector<8x128xf32>
    %831 = arith.mulf %830, %737 : vector<8x128xf32>
    %cst_244 = arith.constant -3.33333325 : f32
    %832 = vector.broadcast %cst_244 : f32 to vector<8x128xf32>
    %833 = arith.mulf %551, %832 : vector<8x128xf32>
    %834 = arith.mulf %833, %744 : vector<8x128xf32>
    %835 = arith.addf %831, %834 : vector<8x128xf32>
    %cst_245 = arith.constant 3.33333325 : f32
    %836 = vector.broadcast %cst_245 : f32 to vector<8x128xf32>
    %837 = arith.mulf %545, %836 : vector<8x128xf32>
    %838 = arith.mulf %837, %744 : vector<8x128xf32>
    %cst_246 = arith.constant -3.33333254 : f32
    %839 = vector.broadcast %cst_246 : f32 to vector<8x128xf32>
    %840 = arith.mulf %553, %839 : vector<8x128xf32>
    %841 = arith.mulf %840, %751 : vector<8x128xf32>
    %842 = arith.addf %838, %841 : vector<8x128xf32>
    %cst_247 = arith.constant 3.33333254 : f32
    %843 = vector.broadcast %cst_247 : f32 to vector<8x128xf32>
    %844 = arith.mulf %547, %843 : vector<8x128xf32>
    %845 = arith.mulf %844, %751 : vector<8x128xf32>
    %cst_248 = arith.constant -3.33333397 : f32
    %846 = vector.broadcast %cst_248 : f32 to vector<8x128xf32>
    %847 = arith.mulf %555, %846 : vector<8x128xf32>
    %848 = arith.mulf %847, %758 : vector<8x128xf32>
    %849 = arith.addf %845, %848 : vector<8x128xf32>
    %850 = tpu.concatenate %765, %772, %779, %786, %793, %800, %807, %814, %821, %828, %835, %842, %849 in 1 : vector<8x128xf32>, vector<8x128xf32>, vector<8x128xf32>, vector<8x128xf32>, vector<8x128xf32>, vector<8x128xf32>, vector<8x128xf32>, vector<8x128xf32>, vector<8x128xf32>, vector<8x128xf32>, vector<8x128xf32>, vector<8x128xf32>, vector<8x128xf32> -> vector<8x1664xf32>
    %851 = arith.truncf %850 : vector<8x1664xf32> to vector<8x1664xbf16>
    %c0_249 = arith.constant 0 : index
    %c0_250 = arith.constant 0 : index
    %852 = vector.load %arg5[%c0_249, %c0_250] : memref<1664x256xbf16, #tpu.memory_space<vmem>>, vector<1664x256xbf16>
    %cst_251 = arith.constant dense<0.000000e+00> : vector<8x256xf32>
    %853 = tpu.matmul %851, %852, %cst_251 {dimension_numbers = #tpu.dot_dimension_numbers<[1], [0], [0], [1], [0, 0, 1, 1], [], []>} : vector<8x1664xbf16>, vector<1664x256xbf16>, vector<8x256xf32> -> vector<8x256xf32>
    %854 = arith.addf %437, %853 : vector<8x256xf32>
    %cst_252 = arith.constant 0.000000e+00 : f32
    %855 = vector.broadcast %cst_252 : f32 to vector<8x256xf32>
    %856 = arith.subf %855, %854 : vector<8x256xf32>
    %857 = math.exp %856 : vector<8x256xf32>
    %cst_253 = arith.constant 1.000000e+00 : f32
    %858 = vector.broadcast %cst_253 : f32 to vector<8x256xf32>
    %859 = arith.addf %858, %857 : vector<8x256xf32>
    %860 = tpu.reciprocal %859 {approx = true} : vector<8x256xf32> -> vector<8x256xf32>
    %861 = arith.mulf %854, %860 : vector<8x256xf32>
    %862 = arith.truncf %861 : vector<8x256xf32> to vector<8x256xbf16>
    %c0_254 = arith.constant 0 : index
    %c0_255 = arith.constant 0 : index
    %863 = vector.load %arg6[%c0_254, %c0_255] : memref<256x128xbf16, #tpu.memory_space<vmem>>, vector<256x128xbf16>
    %cst_256 = arith.constant dense<0.000000e+00> : vector<8x128xf32>
    %864 = tpu.matmul %862, %863, %cst_256 {dimension_numbers = #tpu.dot_dimension_numbers<[1], [0], [0], [1], [0, 0, 1, 1], [], []>} : vector<8x256xbf16>, vector<256x128xbf16>, vector<8x128xf32> -> vector<8x128xf32>
    %cst_257 = arith.constant -3.000000e-01 : f32
    %865 = vector.broadcast %cst_257 : f32 to vector<8x256xf32>
    %866 = arith.cmpf oge, %854, %865 : vector<8x256xf32>
    %867 = arith.extui %866 : vector<8x256xi1> to vector<8x256xi32>
    %868 = arith.sitofp %867 : vector<8x256xi32> to vector<8x256xf32>
    %cst_258 = arith.constant -2.000000e-01 : f32
    %869 = vector.broadcast %cst_258 : f32 to vector<8x256xf32>
    %870 = arith.cmpf oge, %854, %869 : vector<8x256xf32>
    %871 = arith.extui %870 : vector<8x256xi1> to vector<8x256xi32>
    %872 = arith.sitofp %871 : vector<8x256xi32> to vector<8x256xf32>
    %cst_259 = arith.constant -1.000000e-01 : f32
    %873 = vector.broadcast %cst_259 : f32 to vector<8x256xf32>
    %874 = arith.cmpf oge, %854, %873 : vector<8x256xf32>
    %875 = arith.extui %874 : vector<8x256xi1> to vector<8x256xi32>
    %876 = arith.sitofp %875 : vector<8x256xi32> to vector<8x256xf32>
    %cst_260 = arith.constant 0.000000e+00 : f32
    %877 = vector.broadcast %cst_260 : f32 to vector<8x256xf32>
    %878 = arith.cmpf oge, %854, %877 : vector<8x256xf32>
    %879 = arith.extui %878 : vector<8x256xi1> to vector<8x256xi32>
    %880 = arith.sitofp %879 : vector<8x256xi32> to vector<8x256xf32>
    %cst_261 = arith.constant 1.000000e-01 : f32
    %881 = vector.broadcast %cst_261 : f32 to vector<8x256xf32>
    %882 = arith.cmpf oge, %854, %881 : vector<8x256xf32>
    %883 = arith.extui %882 : vector<8x256xi1> to vector<8x256xi32>
    %884 = arith.sitofp %883 : vector<8x256xi32> to vector<8x256xf32>
    %cst_262 = arith.constant 2.000000e-01 : f32
    %885 = vector.broadcast %cst_262 : f32 to vector<8x256xf32>
    %886 = arith.cmpf oge, %854, %885 : vector<8x256xf32>
    %887 = arith.extui %886 : vector<8x256xi1> to vector<8x256xi32>
    %888 = arith.sitofp %887 : vector<8x256xi32> to vector<8x256xf32>
    %cst_263 = arith.constant 3.000000e-01 : f32
    %889 = vector.broadcast %cst_263 : f32 to vector<8x256xf32>
    %890 = arith.cmpf oge, %854, %889 : vector<8x256xf32>
    %891 = arith.extui %890 : vector<8x256xi1> to vector<8x256xi32>
    %892 = arith.sitofp %891 : vector<8x256xi32> to vector<8x256xf32>
    %cst_264 = arith.constant 4.000000e-01 : f32
    %893 = vector.broadcast %cst_264 : f32 to vector<8x256xf32>
    %894 = arith.cmpf oge, %854, %893 : vector<8x256xf32>
    %895 = arith.extui %894 : vector<8x256xi1> to vector<8x256xi32>
    %896 = arith.sitofp %895 : vector<8x256xi32> to vector<8x256xf32>
    %cst_265 = arith.constant 5.000000e-01 : f32
    %897 = vector.broadcast %cst_265 : f32 to vector<8x256xf32>
    %898 = arith.cmpf oge, %854, %897 : vector<8x256xf32>
    %899 = arith.extui %898 : vector<8x256xi1> to vector<8x256xi32>
    %900 = arith.sitofp %899 : vector<8x256xi32> to vector<8x256xf32>
    %cst_266 = arith.constant 6.000000e-01 : f32
    %901 = vector.broadcast %cst_266 : f32 to vector<8x256xf32>
    %902 = arith.cmpf oge, %854, %901 : vector<8x256xf32>
    %903 = arith.extui %902 : vector<8x256xi1> to vector<8x256xi32>
    %904 = arith.sitofp %903 : vector<8x256xi32> to vector<8x256xf32>
    %cst_267 = arith.constant 0.699999988 : f32
    %905 = vector.broadcast %cst_267 : f32 to vector<8x256xf32>
    %906 = arith.cmpf oge, %854, %905 : vector<8x256xf32>
    %907 = arith.extui %906 : vector<8x256xi1> to vector<8x256xi32>
    %908 = arith.sitofp %907 : vector<8x256xi32> to vector<8x256xf32>
    %cst_268 = arith.constant 8.000000e-01 : f32
    %909 = vector.broadcast %cst_268 : f32 to vector<8x256xf32>
    %910 = arith.cmpf oge, %854, %909 : vector<8x256xf32>
    %911 = arith.extui %910 : vector<8x256xi1> to vector<8x256xi32>
    %912 = arith.sitofp %911 : vector<8x256xi32> to vector<8x256xf32>
    %cst_269 = arith.constant 0.899999976 : f32
    %913 = vector.broadcast %cst_269 : f32 to vector<8x256xf32>
    %914 = arith.cmpf oge, %854, %913 : vector<8x256xf32>
    %915 = arith.extui %914 : vector<8x256xi1> to vector<8x256xi32>
    %916 = arith.sitofp %915 : vector<8x256xi32> to vector<8x256xf32>
    %cst_270 = arith.constant 1.000000e+00 : f32
    %917 = vector.broadcast %cst_270 : f32 to vector<8x256xf32>
    %918 = arith.cmpf oge, %854, %917 : vector<8x256xf32>
    %919 = arith.extui %918 : vector<8x256xi1> to vector<8x256xi32>
    %920 = arith.sitofp %919 : vector<8x256xi32> to vector<8x256xf32>
    %cst_271 = arith.constant 1.100000e+00 : f32
    %921 = vector.broadcast %cst_271 : f32 to vector<8x256xf32>
    %922 = arith.cmpf oge, %854, %921 : vector<8x256xf32>
    %923 = arith.extui %922 : vector<8x256xi1> to vector<8x256xi32>
    %924 = arith.sitofp %923 : vector<8x256xi32> to vector<8x256xf32>
    %cst_272 = arith.constant 1.200000e+00 : f32
    %925 = vector.broadcast %cst_272 : f32 to vector<8x256xf32>
    %926 = arith.cmpf oge, %854, %925 : vector<8x256xf32>
    %927 = arith.extui %926 : vector<8x256xi1> to vector<8x256xi32>
    %928 = arith.sitofp %927 : vector<8x256xi32> to vector<8x256xf32>
    %cst_273 = arith.constant 1.300000e+00 : f32
    %929 = vector.broadcast %cst_273 : f32 to vector<8x256xf32>
    %930 = arith.cmpf oge, %854, %929 : vector<8x256xf32>
    %931 = arith.extui %930 : vector<8x256xi1> to vector<8x256xi32>
    %932 = arith.sitofp %931 : vector<8x256xi32> to vector<8x256xf32>
    %933 = arith.subf %868, %872 : vector<8x256xf32>
    %934 = arith.subf %872, %876 : vector<8x256xf32>
    %935 = arith.subf %876, %880 : vector<8x256xf32>
    %936 = arith.subf %880, %884 : vector<8x256xf32>
    %937 = arith.subf %884, %888 : vector<8x256xf32>
    %938 = arith.subf %888, %892 : vector<8x256xf32>
    %939 = arith.subf %892, %896 : vector<8x256xf32>
    %940 = arith.subf %896, %900 : vector<8x256xf32>
    %941 = arith.subf %900, %904 : vector<8x256xf32>
    %942 = arith.subf %904, %908 : vector<8x256xf32>
    %943 = arith.subf %908, %912 : vector<8x256xf32>
    %944 = arith.subf %912, %916 : vector<8x256xf32>
    %945 = arith.subf %916, %920 : vector<8x256xf32>
    %946 = arith.subf %920, %924 : vector<8x256xf32>
    %947 = arith.subf %924, %928 : vector<8x256xf32>
    %948 = arith.subf %928, %932 : vector<8x256xf32>
    %cst_274 = arith.constant -3.000000e-01 : f32
    %949 = vector.broadcast %cst_274 : f32 to vector<8x256xf32>
    %950 = arith.subf %854, %949 : vector<8x256xf32>
    %cst_275 = arith.constant -2.000000e-01 : f32
    %951 = vector.broadcast %cst_275 : f32 to vector<8x256xf32>
    %952 = arith.subf %854, %951 : vector<8x256xf32>
    %cst_276 = arith.constant -1.000000e-01 : f32
    %953 = vector.broadcast %cst_276 : f32 to vector<8x256xf32>
    %954 = arith.subf %854, %953 : vector<8x256xf32>
    %cst_277 = arith.constant 0.000000e+00 : f32
    %955 = vector.broadcast %cst_277 : f32 to vector<8x256xf32>
    %956 = arith.subf %854, %955 : vector<8x256xf32>
    %cst_278 = arith.constant 1.000000e-01 : f32
    %957 = vector.broadcast %cst_278 : f32 to vector<8x256xf32>
    %958 = arith.subf %854, %957 : vector<8x256xf32>
    %cst_279 = arith.constant 2.000000e-01 : f32
    %959 = vector.broadcast %cst_279 : f32 to vector<8x256xf32>
    %960 = arith.subf %854, %959 : vector<8x256xf32>
    %cst_280 = arith.constant 3.000000e-01 : f32
    %961 = vector.broadcast %cst_280 : f32 to vector<8x256xf32>
    %962 = arith.subf %854, %961 : vector<8x256xf32>
    %cst_281 = arith.constant 4.000000e-01 : f32
    %963 = vector.broadcast %cst_281 : f32 to vector<8x256xf32>
    %964 = arith.subf %854, %963 : vector<8x256xf32>
    %cst_282 = arith.constant 5.000000e-01 : f32
    %965 = vector.broadcast %cst_282 : f32 to vector<8x256xf32>
    %966 = arith.subf %854, %965 : vector<8x256xf32>
    %cst_283 = arith.constant 6.000000e-01 : f32
    %967 = vector.broadcast %cst_283 : f32 to vector<8x256xf32>
    %968 = arith.subf %854, %967 : vector<8x256xf32>
    %cst_284 = arith.constant 0.699999988 : f32
    %969 = vector.broadcast %cst_284 : f32 to vector<8x256xf32>
    %970 = arith.subf %854, %969 : vector<8x256xf32>
    %cst_285 = arith.constant 8.000000e-01 : f32
    %971 = vector.broadcast %cst_285 : f32 to vector<8x256xf32>
    %972 = arith.subf %854, %971 : vector<8x256xf32>
    %cst_286 = arith.constant 0.899999976 : f32
    %973 = vector.broadcast %cst_286 : f32 to vector<8x256xf32>
    %974 = arith.subf %854, %973 : vector<8x256xf32>
    %cst_287 = arith.constant 1.000000e+00 : f32
    %975 = vector.broadcast %cst_287 : f32 to vector<8x256xf32>
    %976 = arith.subf %854, %975 : vector<8x256xf32>
    %cst_288 = arith.constant 1.100000e+00 : f32
    %977 = vector.broadcast %cst_288 : f32 to vector<8x256xf32>
    %978 = arith.subf %854, %977 : vector<8x256xf32>
    %cst_289 = arith.constant 1.200000e+00 : f32
    %979 = vector.broadcast %cst_289 : f32 to vector<8x256xf32>
    %980 = arith.subf %854, %979 : vector<8x256xf32>
    %cst_290 = arith.constant 1.300000e+00 : f32
    %981 = vector.broadcast %cst_290 : f32 to vector<8x256xf32>
    %982 = arith.subf %854, %981 : vector<8x256xf32>
    %cst_291 = arith.constant 9.99999904 : f32
    %983 = vector.broadcast %cst_291 : f32 to vector<8x256xf32>
    %984 = arith.mulf %950, %983 : vector<8x256xf32>
    %985 = arith.mulf %984, %933 : vector<8x256xf32>
    %cst_292 = arith.constant -1.000000e+01 : f32
    %986 = vector.broadcast %cst_292 : f32 to vector<8x256xf32>
    %987 = arith.mulf %954, %986 : vector<8x256xf32>
    %988 = arith.mulf %987, %934 : vector<8x256xf32>
    %989 = arith.addf %985, %988 : vector<8x256xf32>
    %cst_293 = arith.constant 1.000000e+01 : f32
    %990 = vector.broadcast %cst_293 : f32 to vector<8x256xf32>
    %991 = arith.mulf %952, %990 : vector<8x256xf32>
    %992 = arith.mulf %991, %934 : vector<8x256xf32>
    %cst_294 = arith.constant -1.000000e+01 : f32
    %993 = vector.broadcast %cst_294 : f32 to vector<8x256xf32>
    %994 = arith.mulf %956, %993 : vector<8x256xf32>
    %995 = arith.mulf %994, %935 : vector<8x256xf32>
    %996 = arith.addf %992, %995 : vector<8x256xf32>
    %cst_295 = arith.constant 1.000000e+01 : f32
    %997 = vector.broadcast %cst_295 : f32 to vector<8x256xf32>
    %998 = arith.mulf %954, %997 : vector<8x256xf32>
    %999 = arith.mulf %998, %935 : vector<8x256xf32>
    %cst_296 = arith.constant -1.000000e+01 : f32
    %1000 = vector.broadcast %cst_296 : f32 to vector<8x256xf32>
    %1001 = arith.mulf %958, %1000 : vector<8x256xf32>
    %1002 = arith.mulf %1001, %936 : vector<8x256xf32>
    %1003 = arith.addf %999, %1002 : vector<8x256xf32>
    %cst_297 = arith.constant 1.000000e+01 : f32
    %1004 = vector.broadcast %cst_297 : f32 to vector<8x256xf32>
    %1005 = arith.mulf %956, %1004 : vector<8x256xf32>
    %1006 = arith.mulf %1005, %936 : vector<8x256xf32>
    %cst_298 = arith.constant -1.000000e+01 : f32
    %1007 = vector.broadcast %cst_298 : f32 to vector<8x256xf32>
    %1008 = arith.mulf %960, %1007 : vector<8x256xf32>
    %1009 = arith.mulf %1008, %937 : vector<8x256xf32>
    %1010 = arith.addf %1006, %1009 : vector<8x256xf32>
    %cst_299 = arith.constant 1.000000e+01 : f32
    %1011 = vector.broadcast %cst_299 : f32 to vector<8x256xf32>
    %1012 = arith.mulf %958, %1011 : vector<8x256xf32>
    %1013 = arith.mulf %1012, %937 : vector<8x256xf32>
    %cst_300 = arith.constant -9.99999904 : f32
    %1014 = vector.broadcast %cst_300 : f32 to vector<8x256xf32>
    %1015 = arith.mulf %962, %1014 : vector<8x256xf32>
    %1016 = arith.mulf %1015, %938 : vector<8x256xf32>
    %1017 = arith.addf %1013, %1016 : vector<8x256xf32>
    %cst_301 = arith.constant 9.99999904 : f32
    %1018 = vector.broadcast %cst_301 : f32 to vector<8x256xf32>
    %1019 = arith.mulf %960, %1018 : vector<8x256xf32>
    %1020 = arith.mulf %1019, %938 : vector<8x256xf32>
    %cst_302 = arith.constant -10.000001 : f32
    %1021 = vector.broadcast %cst_302 : f32 to vector<8x256xf32>
    %1022 = arith.mulf %964, %1021 : vector<8x256xf32>
    %1023 = arith.mulf %1022, %939 : vector<8x256xf32>
    %1024 = arith.addf %1020, %1023 : vector<8x256xf32>
    %cst_303 = arith.constant 10.000001 : f32
    %1025 = vector.broadcast %cst_303 : f32 to vector<8x256xf32>
    %1026 = arith.mulf %962, %1025 : vector<8x256xf32>
    %1027 = arith.mulf %1026, %939 : vector<8x256xf32>
    %cst_304 = arith.constant -10.000001 : f32
    %1028 = vector.broadcast %cst_304 : f32 to vector<8x256xf32>
    %1029 = arith.mulf %966, %1028 : vector<8x256xf32>
    %1030 = arith.mulf %1029, %940 : vector<8x256xf32>
    %1031 = arith.addf %1027, %1030 : vector<8x256xf32>
    %cst_305 = arith.constant 10.000001 : f32
    %1032 = vector.broadcast %cst_305 : f32 to vector<8x256xf32>
    %1033 = arith.mulf %964, %1032 : vector<8x256xf32>
    %1034 = arith.mulf %1033, %940 : vector<8x256xf32>
    %cst_306 = arith.constant -9.99999809 : f32
    %1035 = vector.broadcast %cst_306 : f32 to vector<8x256xf32>
    %1036 = arith.mulf %968, %1035 : vector<8x256xf32>
    %1037 = arith.mulf %1036, %941 : vector<8x256xf32>
    %1038 = arith.addf %1034, %1037 : vector<8x256xf32>
    %cst_307 = arith.constant 9.99999809 : f32
    %1039 = vector.broadcast %cst_307 : f32 to vector<8x256xf32>
    %1040 = arith.mulf %966, %1039 : vector<8x256xf32>
    %1041 = arith.mulf %1040, %941 : vector<8x256xf32>
    %cst_308 = arith.constant -10.0000038 : f32
    %1042 = vector.broadcast %cst_308 : f32 to vector<8x256xf32>
    %1043 = arith.mulf %970, %1042 : vector<8x256xf32>
    %1044 = arith.mulf %1043, %942 : vector<8x256xf32>
    %1045 = arith.addf %1041, %1044 : vector<8x256xf32>
    %cst_309 = arith.constant 10.0000038 : f32
    %1046 = vector.broadcast %cst_309 : f32 to vector<8x256xf32>
    %1047 = arith.mulf %968, %1046 : vector<8x256xf32>
    %1048 = arith.mulf %1047, %942 : vector<8x256xf32>
    %cst_310 = arith.constant -9.99999809 : f32
    %1049 = vector.broadcast %cst_310 : f32 to vector<8x256xf32>
    %1050 = arith.mulf %972, %1049 : vector<8x256xf32>
    %1051 = arith.mulf %1050, %943 : vector<8x256xf32>
    %1052 = arith.addf %1048, %1051 : vector<8x256xf32>
    %cst_311 = arith.constant 9.99999809 : f32
    %1053 = vector.broadcast %cst_311 : f32 to vector<8x256xf32>
    %1054 = arith.mulf %970, %1053 : vector<8x256xf32>
    %1055 = arith.mulf %1054, %943 : vector<8x256xf32>
    %cst_312 = arith.constant -10.0000038 : f32
    %1056 = vector.broadcast %cst_312 : f32 to vector<8x256xf32>
    %1057 = arith.mulf %974, %1056 : vector<8x256xf32>
    %1058 = arith.mulf %1057, %944 : vector<8x256xf32>
    %1059 = arith.addf %1055, %1058 : vector<8x256xf32>
    %cst_313 = arith.constant 10.0000038 : f32
    %1060 = vector.broadcast %cst_313 : f32 to vector<8x256xf32>
    %1061 = arith.mulf %972, %1060 : vector<8x256xf32>
    %1062 = arith.mulf %1061, %944 : vector<8x256xf32>
    %cst_314 = arith.constant -9.99999809 : f32
    %1063 = vector.broadcast %cst_314 : f32 to vector<8x256xf32>
    %1064 = arith.mulf %976, %1063 : vector<8x256xf32>
    %1065 = arith.mulf %1064, %945 : vector<8x256xf32>
    %1066 = arith.addf %1062, %1065 : vector<8x256xf32>
    %cst_315 = arith.constant 9.99999809 : f32
    %1067 = vector.broadcast %cst_315 : f32 to vector<8x256xf32>
    %1068 = arith.mulf %974, %1067 : vector<8x256xf32>
    %1069 = arith.mulf %1068, %945 : vector<8x256xf32>
    %cst_316 = arith.constant -9.99999809 : f32
    %1070 = vector.broadcast %cst_316 : f32 to vector<8x256xf32>
    %1071 = arith.mulf %978, %1070 : vector<8x256xf32>
    %1072 = arith.mulf %1071, %946 : vector<8x256xf32>
    %1073 = arith.addf %1069, %1072 : vector<8x256xf32>
    %cst_317 = arith.constant 9.99999809 : f32
    %1074 = vector.broadcast %cst_317 : f32 to vector<8x256xf32>
    %1075 = arith.mulf %976, %1074 : vector<8x256xf32>
    %1076 = arith.mulf %1075, %946 : vector<8x256xf32>
    %cst_318 = arith.constant -9.99999809 : f32
    %1077 = vector.broadcast %cst_318 : f32 to vector<8x256xf32>
    %1078 = arith.mulf %980, %1077 : vector<8x256xf32>
    %1079 = arith.mulf %1078, %947 : vector<8x256xf32>
    %1080 = arith.addf %1076, %1079 : vector<8x256xf32>
    %cst_319 = arith.constant 9.99999809 : f32
    %1081 = vector.broadcast %cst_319 : f32 to vector<8x256xf32>
    %1082 = arith.mulf %978, %1081 : vector<8x256xf32>
    %1083 = arith.mulf %1082, %947 : vector<8x256xf32>
    %cst_320 = arith.constant -10.0000095 : f32
    %1084 = vector.broadcast %cst_320 : f32 to vector<8x256xf32>
    %1085 = arith.mulf %982, %1084 : vector<8x256xf32>
    %1086 = arith.mulf %1085, %948 : vector<8x256xf32>
    %1087 = arith.addf %1083, %1086 : vector<8x256xf32>
    %cst_321 = arith.constant 4.99999952 : f32
    %1088 = vector.broadcast %cst_321 : f32 to vector<8x256xf32>
    %1089 = arith.mulf %950, %1088 : vector<8x256xf32>
    %1090 = arith.mulf %1089, %989 : vector<8x256xf32>
    %cst_322 = arith.constant -5.000000e+00 : f32
    %1091 = vector.broadcast %cst_322 : f32 to vector<8x256xf32>
    %1092 = arith.mulf %956, %1091 : vector<8x256xf32>
    %1093 = arith.mulf %1092, %996 : vector<8x256xf32>
    %1094 = arith.addf %1090, %1093 : vector<8x256xf32>
    %cst_323 = arith.constant 5.000000e+00 : f32
    %1095 = vector.broadcast %cst_323 : f32 to vector<8x256xf32>
    %1096 = arith.mulf %952, %1095 : vector<8x256xf32>
    %1097 = arith.mulf %1096, %996 : vector<8x256xf32>
    %cst_324 = arith.constant -5.000000e+00 : f32
    %1098 = vector.broadcast %cst_324 : f32 to vector<8x256xf32>
    %1099 = arith.mulf %958, %1098 : vector<8x256xf32>
    %1100 = arith.mulf %1099, %1003 : vector<8x256xf32>
    %1101 = arith.addf %1097, %1100 : vector<8x256xf32>
    %cst_325 = arith.constant 5.000000e+00 : f32
    %1102 = vector.broadcast %cst_325 : f32 to vector<8x256xf32>
    %1103 = arith.mulf %954, %1102 : vector<8x256xf32>
    %1104 = arith.mulf %1103, %1003 : vector<8x256xf32>
    %cst_326 = arith.constant -5.000000e+00 : f32
    %1105 = vector.broadcast %cst_326 : f32 to vector<8x256xf32>
    %1106 = arith.mulf %960, %1105 : vector<8x256xf32>
    %1107 = arith.mulf %1106, %1010 : vector<8x256xf32>
    %1108 = arith.addf %1104, %1107 : vector<8x256xf32>
    %cst_327 = arith.constant 5.000000e+00 : f32
    %1109 = vector.broadcast %cst_327 : f32 to vector<8x256xf32>
    %1110 = arith.mulf %956, %1109 : vector<8x256xf32>
    %1111 = arith.mulf %1110, %1010 : vector<8x256xf32>
    %cst_328 = arith.constant -4.99999952 : f32
    %1112 = vector.broadcast %cst_328 : f32 to vector<8x256xf32>
    %1113 = arith.mulf %962, %1112 : vector<8x256xf32>
    %1114 = arith.mulf %1113, %1017 : vector<8x256xf32>
    %1115 = arith.addf %1111, %1114 : vector<8x256xf32>
    %cst_329 = arith.constant 4.99999952 : f32
    %1116 = vector.broadcast %cst_329 : f32 to vector<8x256xf32>
    %1117 = arith.mulf %958, %1116 : vector<8x256xf32>
    %1118 = arith.mulf %1117, %1017 : vector<8x256xf32>
    %cst_330 = arith.constant -5.000000e+00 : f32
    %1119 = vector.broadcast %cst_330 : f32 to vector<8x256xf32>
    %1120 = arith.mulf %964, %1119 : vector<8x256xf32>
    %1121 = arith.mulf %1120, %1024 : vector<8x256xf32>
    %1122 = arith.addf %1118, %1121 : vector<8x256xf32>
    %cst_331 = arith.constant 5.000000e+00 : f32
    %1123 = vector.broadcast %cst_331 : f32 to vector<8x256xf32>
    %1124 = arith.mulf %960, %1123 : vector<8x256xf32>
    %1125 = arith.mulf %1124, %1024 : vector<8x256xf32>
    %cst_332 = arith.constant -5.00000048 : f32
    %1126 = vector.broadcast %cst_332 : f32 to vector<8x256xf32>
    %1127 = arith.mulf %966, %1126 : vector<8x256xf32>
    %1128 = arith.mulf %1127, %1031 : vector<8x256xf32>
    %1129 = arith.addf %1125, %1128 : vector<8x256xf32>
    %cst_333 = arith.constant 5.00000048 : f32
    %1130 = vector.broadcast %cst_333 : f32 to vector<8x256xf32>
    %1131 = arith.mulf %962, %1130 : vector<8x256xf32>
    %1132 = arith.mulf %1131, %1031 : vector<8x256xf32>
    %cst_334 = arith.constant -4.99999952 : f32
    %1133 = vector.broadcast %cst_334 : f32 to vector<8x256xf32>
    %1134 = arith.mulf %968, %1133 : vector<8x256xf32>
    %1135 = arith.mulf %1134, %1038 : vector<8x256xf32>
    %1136 = arith.addf %1132, %1135 : vector<8x256xf32>
    %cst_335 = arith.constant 4.99999952 : f32
    %1137 = vector.broadcast %cst_335 : f32 to vector<8x256xf32>
    %1138 = arith.mulf %964, %1137 : vector<8x256xf32>
    %1139 = arith.mulf %1138, %1038 : vector<8x256xf32>
    %cst_336 = arith.constant -5.00000048 : f32
    %1140 = vector.broadcast %cst_336 : f32 to vector<8x256xf32>
    %1141 = arith.mulf %970, %1140 : vector<8x256xf32>
    %1142 = arith.mulf %1141, %1045 : vector<8x256xf32>
    %1143 = arith.addf %1139, %1142 : vector<8x256xf32>
    %cst_337 = arith.constant 5.00000048 : f32
    %1144 = vector.broadcast %cst_337 : f32 to vector<8x256xf32>
    %1145 = arith.mulf %966, %1144 : vector<8x256xf32>
    %1146 = arith.mulf %1145, %1045 : vector<8x256xf32>
    %cst_338 = arith.constant -5.00000048 : f32
    %1147 = vector.broadcast %cst_338 : f32 to vector<8x256xf32>
    %1148 = arith.mulf %972, %1147 : vector<8x256xf32>
    %1149 = arith.mulf %1148, %1052 : vector<8x256xf32>
    %1150 = arith.addf %1146, %1149 : vector<8x256xf32>
    %cst_339 = arith.constant 5.00000048 : f32
    %1151 = vector.broadcast %cst_339 : f32 to vector<8x256xf32>
    %1152 = arith.mulf %968, %1151 : vector<8x256xf32>
    %1153 = arith.mulf %1152, %1052 : vector<8x256xf32>
    %cst_340 = arith.constant -5.00000048 : f32
    %1154 = vector.broadcast %cst_340 : f32 to vector<8x256xf32>
    %1155 = arith.mulf %974, %1154 : vector<8x256xf32>
    %1156 = arith.mulf %1155, %1059 : vector<8x256xf32>
    %1157 = arith.addf %1153, %1156 : vector<8x256xf32>
    %cst_341 = arith.constant 5.00000048 : f32
    %1158 = vector.broadcast %cst_341 : f32 to vector<8x256xf32>
    %1159 = arith.mulf %970, %1158 : vector<8x256xf32>
    %1160 = arith.mulf %1159, %1059 : vector<8x256xf32>
    %cst_342 = arith.constant -5.00000048 : f32
    %1161 = vector.broadcast %cst_342 : f32 to vector<8x256xf32>
    %1162 = arith.mulf %976, %1161 : vector<8x256xf32>
    %1163 = arith.mulf %1162, %1066 : vector<8x256xf32>
    %1164 = arith.addf %1160, %1163 : vector<8x256xf32>
    %cst_343 = arith.constant 5.00000048 : f32
    %1165 = vector.broadcast %cst_343 : f32 to vector<8x256xf32>
    %1166 = arith.mulf %972, %1165 : vector<8x256xf32>
    %1167 = arith.mulf %1166, %1066 : vector<8x256xf32>
    %cst_344 = arith.constant -4.99999905 : f32
    %1168 = vector.broadcast %cst_344 : f32 to vector<8x256xf32>
    %1169 = arith.mulf %978, %1168 : vector<8x256xf32>
    %1170 = arith.mulf %1169, %1073 : vector<8x256xf32>
    %1171 = arith.addf %1167, %1170 : vector<8x256xf32>
    %cst_345 = arith.constant 4.99999905 : f32
    %1172 = vector.broadcast %cst_345 : f32 to vector<8x256xf32>
    %1173 = arith.mulf %974, %1172 : vector<8x256xf32>
    %1174 = arith.mulf %1173, %1073 : vector<8x256xf32>
    %cst_346 = arith.constant -4.99999905 : f32
    %1175 = vector.broadcast %cst_346 : f32 to vector<8x256xf32>
    %1176 = arith.mulf %980, %1175 : vector<8x256xf32>
    %1177 = arith.mulf %1176, %1080 : vector<8x256xf32>
    %1178 = arith.addf %1174, %1177 : vector<8x256xf32>
    %cst_347 = arith.constant 4.99999905 : f32
    %1179 = vector.broadcast %cst_347 : f32 to vector<8x256xf32>
    %1180 = arith.mulf %976, %1179 : vector<8x256xf32>
    %1181 = arith.mulf %1180, %1080 : vector<8x256xf32>
    %cst_348 = arith.constant -5.00000191 : f32
    %1182 = vector.broadcast %cst_348 : f32 to vector<8x256xf32>
    %1183 = arith.mulf %982, %1182 : vector<8x256xf32>
    %1184 = arith.mulf %1183, %1087 : vector<8x256xf32>
    %1185 = arith.addf %1181, %1184 : vector<8x256xf32>
    %cst_349 = arith.constant 3.33333325 : f32
    %1186 = vector.broadcast %cst_349 : f32 to vector<8x256xf32>
    %1187 = arith.mulf %950, %1186 : vector<8x256xf32>
    %1188 = arith.mulf %1187, %1094 : vector<8x256xf32>
    %cst_350 = arith.constant -3.33333325 : f32
    %1189 = vector.broadcast %cst_350 : f32 to vector<8x256xf32>
    %1190 = arith.mulf %958, %1189 : vector<8x256xf32>
    %1191 = arith.mulf %1190, %1101 : vector<8x256xf32>
    %1192 = arith.addf %1188, %1191 : vector<8x256xf32>
    %cst_351 = arith.constant 3.33333325 : f32
    %1193 = vector.broadcast %cst_351 : f32 to vector<8x256xf32>
    %1194 = arith.mulf %952, %1193 : vector<8x256xf32>
    %1195 = arith.mulf %1194, %1101 : vector<8x256xf32>
    %cst_352 = arith.constant -3.33333325 : f32
    %1196 = vector.broadcast %cst_352 : f32 to vector<8x256xf32>
    %1197 = arith.mulf %960, %1196 : vector<8x256xf32>
    %1198 = arith.mulf %1197, %1108 : vector<8x256xf32>
    %1199 = arith.addf %1195, %1198 : vector<8x256xf32>
    %cst_353 = arith.constant 3.33333325 : f32
    %1200 = vector.broadcast %cst_353 : f32 to vector<8x256xf32>
    %1201 = arith.mulf %954, %1200 : vector<8x256xf32>
    %1202 = arith.mulf %1201, %1108 : vector<8x256xf32>
    %cst_354 = arith.constant -3.33333325 : f32
    %1203 = vector.broadcast %cst_354 : f32 to vector<8x256xf32>
    %1204 = arith.mulf %962, %1203 : vector<8x256xf32>
    %1205 = arith.mulf %1204, %1115 : vector<8x256xf32>
    %1206 = arith.addf %1202, %1205 : vector<8x256xf32>
    %cst_355 = arith.constant 3.33333325 : f32
    %1207 = vector.broadcast %cst_355 : f32 to vector<8x256xf32>
    %1208 = arith.mulf %956, %1207 : vector<8x256xf32>
    %1209 = arith.mulf %1208, %1115 : vector<8x256xf32>
    %cst_356 = arith.constant -3.33333325 : f32
    %1210 = vector.broadcast %cst_356 : f32 to vector<8x256xf32>
    %1211 = arith.mulf %964, %1210 : vector<8x256xf32>
    %1212 = arith.mulf %1211, %1122 : vector<8x256xf32>
    %1213 = arith.addf %1209, %1212 : vector<8x256xf32>
    %cst_357 = arith.constant 3.33333325 : f32
    %1214 = vector.broadcast %cst_357 : f32 to vector<8x256xf32>
    %1215 = arith.mulf %958, %1214 : vector<8x256xf32>
    %1216 = arith.mulf %1215, %1122 : vector<8x256xf32>
    %cst_358 = arith.constant -3.33333325 : f32
    %1217 = vector.broadcast %cst_358 : f32 to vector<8x256xf32>
    %1218 = arith.mulf %966, %1217 : vector<8x256xf32>
    %1219 = arith.mulf %1218, %1129 : vector<8x256xf32>
    %1220 = arith.addf %1216, %1219 : vector<8x256xf32>
    %cst_359 = arith.constant 3.33333325 : f32
    %1221 = vector.broadcast %cst_359 : f32 to vector<8x256xf32>
    %1222 = arith.mulf %960, %1221 : vector<8x256xf32>
    %1223 = arith.mulf %1222, %1129 : vector<8x256xf32>
    %cst_360 = arith.constant -3.33333325 : f32
    %1224 = vector.broadcast %cst_360 : f32 to vector<8x256xf32>
    %1225 = arith.mulf %968, %1224 : vector<8x256xf32>
    %1226 = arith.mulf %1225, %1136 : vector<8x256xf32>
    %1227 = arith.addf %1223, %1226 : vector<8x256xf32>
    %cst_361 = arith.constant 3.33333325 : f32
    %1228 = vector.broadcast %cst_361 : f32 to vector<8x256xf32>
    %1229 = arith.mulf %962, %1228 : vector<8x256xf32>
    %1230 = arith.mulf %1229, %1136 : vector<8x256xf32>
    %cst_362 = arith.constant -3.33333349 : f32
    %1231 = vector.broadcast %cst_362 : f32 to vector<8x256xf32>
    %1232 = arith.mulf %970, %1231 : vector<8x256xf32>
    %1233 = arith.mulf %1232, %1143 : vector<8x256xf32>
    %1234 = arith.addf %1230, %1233 : vector<8x256xf32>
    %cst_363 = arith.constant 3.33333349 : f32
    %1235 = vector.broadcast %cst_363 : f32 to vector<8x256xf32>
    %1236 = arith.mulf %964, %1235 : vector<8x256xf32>
    %1237 = arith.mulf %1236, %1143 : vector<8x256xf32>
    %cst_364 = arith.constant -3.33333325 : f32
    %1238 = vector.broadcast %cst_364 : f32 to vector<8x256xf32>
    %1239 = arith.mulf %972, %1238 : vector<8x256xf32>
    %1240 = arith.mulf %1239, %1150 : vector<8x256xf32>
    %1241 = arith.addf %1237, %1240 : vector<8x256xf32>
    %cst_365 = arith.constant 3.33333325 : f32
    %1242 = vector.broadcast %cst_365 : f32 to vector<8x256xf32>
    %1243 = arith.mulf %966, %1242 : vector<8x256xf32>
    %1244 = arith.mulf %1243, %1150 : vector<8x256xf32>
    %cst_366 = arith.constant -3.33333397 : f32
    %1245 = vector.broadcast %cst_366 : f32 to vector<8x256xf32>
    %1246 = arith.mulf %974, %1245 : vector<8x256xf32>
    %1247 = arith.mulf %1246, %1157 : vector<8x256xf32>
    %1248 = arith.addf %1244, %1247 : vector<8x256xf32>
    %cst_367 = arith.constant 3.33333397 : f32
    %1249 = vector.broadcast %cst_367 : f32 to vector<8x256xf32>
    %1250 = arith.mulf %968, %1249 : vector<8x256xf32>
    %1251 = arith.mulf %1250, %1157 : vector<8x256xf32>
    %cst_368 = arith.constant -3.33333325 : f32
    %1252 = vector.broadcast %cst_368 : f32 to vector<8x256xf32>
    %1253 = arith.mulf %976, %1252 : vector<8x256xf32>
    %1254 = arith.mulf %1253, %1164 : vector<8x256xf32>
    %1255 = arith.addf %1251, %1254 : vector<8x256xf32>
    %cst_369 = arith.constant 3.33333325 : f32
    %1256 = vector.broadcast %cst_369 : f32 to vector<8x256xf32>
    %1257 = arith.mulf %970, %1256 : vector<8x256xf32>
    %1258 = arith.mulf %1257, %1164 : vector<8x256xf32>
    %cst_370 = arith.constant -3.33333325 : f32
    %1259 = vector.broadcast %cst_370 : f32 to vector<8x256xf32>
    %1260 = arith.mulf %978, %1259 : vector<8x256xf32>
    %1261 = arith.mulf %1260, %1171 : vector<8x256xf32>
    %1262 = arith.addf %1258, %1261 : vector<8x256xf32>
    %cst_371 = arith.constant 3.33333325 : f32
    %1263 = vector.broadcast %cst_371 : f32 to vector<8x256xf32>
    %1264 = arith.mulf %972, %1263 : vector<8x256xf32>
    %1265 = arith.mulf %1264, %1171 : vector<8x256xf32>
    %cst_372 = arith.constant -3.33333254 : f32
    %1266 = vector.broadcast %cst_372 : f32 to vector<8x256xf32>
    %1267 = arith.mulf %980, %1266 : vector<8x256xf32>
    %1268 = arith.mulf %1267, %1178 : vector<8x256xf32>
    %1269 = arith.addf %1265, %1268 : vector<8x256xf32>
    %cst_373 = arith.constant 3.33333254 : f32
    %1270 = vector.broadcast %cst_373 : f32 to vector<8x256xf32>
    %1271 = arith.mulf %974, %1270 : vector<8x256xf32>
    %1272 = arith.mulf %1271, %1178 : vector<8x256xf32>
    %cst_374 = arith.constant -3.33333397 : f32
    %1273 = vector.broadcast %cst_374 : f32 to vector<8x256xf32>
    %1274 = arith.mulf %982, %1273 : vector<8x256xf32>
    %1275 = arith.mulf %1274, %1185 : vector<8x256xf32>
    %1276 = arith.addf %1272, %1275 : vector<8x256xf32>
    %1277 = tpu.concatenate %1192, %1199, %1206, %1213, %1220, %1227, %1234, %1241, %1248, %1255, %1262, %1269, %1276 in 1 : vector<8x256xf32>, vector<8x256xf32>, vector<8x256xf32>, vector<8x256xf32>, vector<8x256xf32>, vector<8x256xf32>, vector<8x256xf32>, vector<8x256xf32>, vector<8x256xf32>, vector<8x256xf32>, vector<8x256xf32>, vector<8x256xf32>, vector<8x256xf32> -> vector<8x3328xf32>
    %1278 = arith.truncf %1277 : vector<8x3328xf32> to vector<8x3328xbf16>
    %c0_375 = arith.constant 0 : index
    %c0_376 = arith.constant 0 : index
    %1279 = vector.load %arg7[%c0_375, %c0_376] : memref<3328x128xbf16, #tpu.memory_space<vmem>>, vector<3328x128xbf16>
    %cst_377 = arith.constant dense<0.000000e+00> : vector<8x128xf32>
    %1280 = tpu.matmul %1278, %1279, %cst_377 {dimension_numbers = #tpu.dot_dimension_numbers<[1], [0], [0], [1], [0, 0, 1, 1], [], []>} : vector<8x3328xbf16>, vector<3328x128xbf16>, vector<8x128xf32> -> vector<8x128xf32>
    %1281 = arith.addf %864, %1280 : vector<8x128xf32>
    %cst_378 = arith.constant 0.000000e+00 : f32
    %1282 = vector.broadcast %cst_378 : f32 to vector<8x128xf32>
    %1283 = arith.subf %1282, %1281 : vector<8x128xf32>
    %1284 = math.exp %1283 : vector<8x128xf32>
    %cst_379 = arith.constant 1.000000e+00 : f32
    %1285 = vector.broadcast %cst_379 : f32 to vector<8x128xf32>
    %1286 = arith.addf %1285, %1284 : vector<8x128xf32>
    %1287 = tpu.reciprocal %1286 {approx = true} : vector<8x128xf32> -> vector<8x128xf32>
    %1288 = arith.mulf %1281, %1287 : vector<8x128xf32>
    %1289 = arith.truncf %1288 : vector<8x128xf32> to vector<8x128xbf16>
    %c0_380 = arith.constant 0 : index
    %c0_381 = arith.constant 0 : index
    %1290 = vector.load %arg8[%c0_380, %c0_381] : memref<128x128xbf16, #tpu.memory_space<vmem>>, vector<128x128xbf16>
    %cst_382 = arith.constant dense<0.000000e+00> : vector<8x128xf32>
    %1291 = tpu.matmul %1289, %1290, %cst_382 {dimension_numbers = #tpu.dot_dimension_numbers<[1], [0], [0], [1], [0, 0, 1, 1], [], []>} : vector<8x128xbf16>, vector<128x128xbf16>, vector<8x128xf32> -> vector<8x128xf32>
    %cst_383 = arith.constant -3.000000e-01 : f32
    %1292 = vector.broadcast %cst_383 : f32 to vector<8x128xf32>
    %1293 = arith.cmpf oge, %1281, %1292 : vector<8x128xf32>
    %1294 = arith.extui %1293 : vector<8x128xi1> to vector<8x128xi32>
    %1295 = arith.sitofp %1294 : vector<8x128xi32> to vector<8x128xf32>
    %cst_384 = arith.constant -2.000000e-01 : f32
    %1296 = vector.broadcast %cst_384 : f32 to vector<8x128xf32>
    %1297 = arith.cmpf oge, %1281, %1296 : vector<8x128xf32>
    %1298 = arith.extui %1297 : vector<8x128xi1> to vector<8x128xi32>
    %1299 = arith.sitofp %1298 : vector<8x128xi32> to vector<8x128xf32>
    %cst_385 = arith.constant -1.000000e-01 : f32
    %1300 = vector.broadcast %cst_385 : f32 to vector<8x128xf32>
    %1301 = arith.cmpf oge, %1281, %1300 : vector<8x128xf32>
    %1302 = arith.extui %1301 : vector<8x128xi1> to vector<8x128xi32>
    %1303 = arith.sitofp %1302 : vector<8x128xi32> to vector<8x128xf32>
    %cst_386 = arith.constant 0.000000e+00 : f32
    %1304 = vector.broadcast %cst_386 : f32 to vector<8x128xf32>
    %1305 = arith.cmpf oge, %1281, %1304 : vector<8x128xf32>
    %1306 = arith.extui %1305 : vector<8x128xi1> to vector<8x128xi32>
    %1307 = arith.sitofp %1306 : vector<8x128xi32> to vector<8x128xf32>
    %cst_387 = arith.constant 1.000000e-01 : f32
    %1308 = vector.broadcast %cst_387 : f32 to vector<8x128xf32>
    %1309 = arith.cmpf oge, %1281, %1308 : vector<8x128xf32>
    %1310 = arith.extui %1309 : vector<8x128xi1> to vector<8x128xi32>
    %1311 = arith.sitofp %1310 : vector<8x128xi32> to vector<8x128xf32>
    %cst_388 = arith.constant 2.000000e-01 : f32
    %1312 = vector.broadcast %cst_388 : f32 to vector<8x128xf32>
    %1313 = arith.cmpf oge, %1281, %1312 : vector<8x128xf32>
    %1314 = arith.extui %1313 : vector<8x128xi1> to vector<8x128xi32>
    %1315 = arith.sitofp %1314 : vector<8x128xi32> to vector<8x128xf32>
    %cst_389 = arith.constant 3.000000e-01 : f32
    %1316 = vector.broadcast %cst_389 : f32 to vector<8x128xf32>
    %1317 = arith.cmpf oge, %1281, %1316 : vector<8x128xf32>
    %1318 = arith.extui %1317 : vector<8x128xi1> to vector<8x128xi32>
    %1319 = arith.sitofp %1318 : vector<8x128xi32> to vector<8x128xf32>
    %cst_390 = arith.constant 4.000000e-01 : f32
    %1320 = vector.broadcast %cst_390 : f32 to vector<8x128xf32>
    %1321 = arith.cmpf oge, %1281, %1320 : vector<8x128xf32>
    %1322 = arith.extui %1321 : vector<8x128xi1> to vector<8x128xi32>
    %1323 = arith.sitofp %1322 : vector<8x128xi32> to vector<8x128xf32>
    %cst_391 = arith.constant 5.000000e-01 : f32
    %1324 = vector.broadcast %cst_391 : f32 to vector<8x128xf32>
    %1325 = arith.cmpf oge, %1281, %1324 : vector<8x128xf32>
    %1326 = arith.extui %1325 : vector<8x128xi1> to vector<8x128xi32>
    %1327 = arith.sitofp %1326 : vector<8x128xi32> to vector<8x128xf32>
    %cst_392 = arith.constant 6.000000e-01 : f32
    %1328 = vector.broadcast %cst_392 : f32 to vector<8x128xf32>
    %1329 = arith.cmpf oge, %1281, %1328 : vector<8x128xf32>
    %1330 = arith.extui %1329 : vector<8x128xi1> to vector<8x128xi32>
    %1331 = arith.sitofp %1330 : vector<8x128xi32> to vector<8x128xf32>
    %cst_393 = arith.constant 0.699999988 : f32
    %1332 = vector.broadcast %cst_393 : f32 to vector<8x128xf32>
    %1333 = arith.cmpf oge, %1281, %1332 : vector<8x128xf32>
    %1334 = arith.extui %1333 : vector<8x128xi1> to vector<8x128xi32>
    %1335 = arith.sitofp %1334 : vector<8x128xi32> to vector<8x128xf32>
    %cst_394 = arith.constant 8.000000e-01 : f32
    %1336 = vector.broadcast %cst_394 : f32 to vector<8x128xf32>
    %1337 = arith.cmpf oge, %1281, %1336 : vector<8x128xf32>
    %1338 = arith.extui %1337 : vector<8x128xi1> to vector<8x128xi32>
    %1339 = arith.sitofp %1338 : vector<8x128xi32> to vector<8x128xf32>
    %cst_395 = arith.constant 0.899999976 : f32
    %1340 = vector.broadcast %cst_395 : f32 to vector<8x128xf32>
    %1341 = arith.cmpf oge, %1281, %1340 : vector<8x128xf32>
    %1342 = arith.extui %1341 : vector<8x128xi1> to vector<8x128xi32>
    %1343 = arith.sitofp %1342 : vector<8x128xi32> to vector<8x128xf32>
    %cst_396 = arith.constant 1.000000e+00 : f32
    %1344 = vector.broadcast %cst_396 : f32 to vector<8x128xf32>
    %1345 = arith.cmpf oge, %1281, %1344 : vector<8x128xf32>
    %1346 = arith.extui %1345 : vector<8x128xi1> to vector<8x128xi32>
    %1347 = arith.sitofp %1346 : vector<8x128xi32> to vector<8x128xf32>
    %cst_397 = arith.constant 1.100000e+00 : f32
    %1348 = vector.broadcast %cst_397 : f32 to vector<8x128xf32>
    %1349 = arith.cmpf oge, %1281, %1348 : vector<8x128xf32>
    %1350 = arith.extui %1349 : vector<8x128xi1> to vector<8x128xi32>
    %1351 = arith.sitofp %1350 : vector<8x128xi32> to vector<8x128xf32>
    %cst_398 = arith.constant 1.200000e+00 : f32
    %1352 = vector.broadcast %cst_398 : f32 to vector<8x128xf32>
    %1353 = arith.cmpf oge, %1281, %1352 : vector<8x128xf32>
    %1354 = arith.extui %1353 : vector<8x128xi1> to vector<8x128xi32>
    %1355 = arith.sitofp %1354 : vector<8x128xi32> to vector<8x128xf32>
    %cst_399 = arith.constant 1.300000e+00 : f32
    %1356 = vector.broadcast %cst_399 : f32 to vector<8x128xf32>
    %1357 = arith.cmpf oge, %1281, %1356 : vector<8x128xf32>
    %1358 = arith.extui %1357 : vector<8x128xi1> to vector<8x128xi32>
    %1359 = arith.sitofp %1358 : vector<8x128xi32> to vector<8x128xf32>
    %1360 = arith.subf %1295, %1299 : vector<8x128xf32>
    %1361 = arith.subf %1299, %1303 : vector<8x128xf32>
    %1362 = arith.subf %1303, %1307 : vector<8x128xf32>
    %1363 = arith.subf %1307, %1311 : vector<8x128xf32>
    %1364 = arith.subf %1311, %1315 : vector<8x128xf32>
    %1365 = arith.subf %1315, %1319 : vector<8x128xf32>
    %1366 = arith.subf %1319, %1323 : vector<8x128xf32>
    %1367 = arith.subf %1323, %1327 : vector<8x128xf32>
    %1368 = arith.subf %1327, %1331 : vector<8x128xf32>
    %1369 = arith.subf %1331, %1335 : vector<8x128xf32>
    %1370 = arith.subf %1335, %1339 : vector<8x128xf32>
    %1371 = arith.subf %1339, %1343 : vector<8x128xf32>
    %1372 = arith.subf %1343, %1347 : vector<8x128xf32>
    %1373 = arith.subf %1347, %1351 : vector<8x128xf32>
    %1374 = arith.subf %1351, %1355 : vector<8x128xf32>
    %1375 = arith.subf %1355, %1359 : vector<8x128xf32>
    %cst_400 = arith.constant -3.000000e-01 : f32
    %1376 = vector.broadcast %cst_400 : f32 to vector<8x128xf32>
    %1377 = arith.subf %1281, %1376 : vector<8x128xf32>
    %cst_401 = arith.constant -2.000000e-01 : f32
    %1378 = vector.broadcast %cst_401 : f32 to vector<8x128xf32>
    %1379 = arith.subf %1281, %1378 : vector<8x128xf32>
    %cst_402 = arith.constant -1.000000e-01 : f32
    %1380 = vector.broadcast %cst_402 : f32 to vector<8x128xf32>
    %1381 = arith.subf %1281, %1380 : vector<8x128xf32>
    %cst_403 = arith.constant 0.000000e+00 : f32
    %1382 = vector.broadcast %cst_403 : f32 to vector<8x128xf32>
    %1383 = arith.subf %1281, %1382 : vector<8x128xf32>
    %cst_404 = arith.constant 1.000000e-01 : f32
    %1384 = vector.broadcast %cst_404 : f32 to vector<8x128xf32>
    %1385 = arith.subf %1281, %1384 : vector<8x128xf32>
    %cst_405 = arith.constant 2.000000e-01 : f32
    %1386 = vector.broadcast %cst_405 : f32 to vector<8x128xf32>
    %1387 = arith.subf %1281, %1386 : vector<8x128xf32>
    %cst_406 = arith.constant 3.000000e-01 : f32
    %1388 = vector.broadcast %cst_406 : f32 to vector<8x128xf32>
    %1389 = arith.subf %1281, %1388 : vector<8x128xf32>
    %cst_407 = arith.constant 4.000000e-01 : f32
    %1390 = vector.broadcast %cst_407 : f32 to vector<8x128xf32>
    %1391 = arith.subf %1281, %1390 : vector<8x128xf32>
    %cst_408 = arith.constant 5.000000e-01 : f32
    %1392 = vector.broadcast %cst_408 : f32 to vector<8x128xf32>
    %1393 = arith.subf %1281, %1392 : vector<8x128xf32>
    %cst_409 = arith.constant 6.000000e-01 : f32
    %1394 = vector.broadcast %cst_409 : f32 to vector<8x128xf32>
    %1395 = arith.subf %1281, %1394 : vector<8x128xf32>
    %cst_410 = arith.constant 0.699999988 : f32
    %1396 = vector.broadcast %cst_410 : f32 to vector<8x128xf32>
    %1397 = arith.subf %1281, %1396 : vector<8x128xf32>
    %cst_411 = arith.constant 8.000000e-01 : f32
    %1398 = vector.broadcast %cst_411 : f32 to vector<8x128xf32>
    %1399 = arith.subf %1281, %1398 : vector<8x128xf32>
    %cst_412 = arith.constant 0.899999976 : f32
    %1400 = vector.broadcast %cst_412 : f32 to vector<8x128xf32>
    %1401 = arith.subf %1281, %1400 : vector<8x128xf32>
    %cst_413 = arith.constant 1.000000e+00 : f32
    %1402 = vector.broadcast %cst_413 : f32 to vector<8x128xf32>
    %1403 = arith.subf %1281, %1402 : vector<8x128xf32>
    %cst_414 = arith.constant 1.100000e+00 : f32
    %1404 = vector.broadcast %cst_414 : f32 to vector<8x128xf32>
    %1405 = arith.subf %1281, %1404 : vector<8x128xf32>
    %cst_415 = arith.constant 1.200000e+00 : f32
    %1406 = vector.broadcast %cst_415 : f32 to vector<8x128xf32>
    %1407 = arith.subf %1281, %1406 : vector<8x128xf32>
    %cst_416 = arith.constant 1.300000e+00 : f32
    %1408 = vector.broadcast %cst_416 : f32 to vector<8x128xf32>
    %1409 = arith.subf %1281, %1408 : vector<8x128xf32>
    %cst_417 = arith.constant 9.99999904 : f32
    %1410 = vector.broadcast %cst_417 : f32 to vector<8x128xf32>
    %1411 = arith.mulf %1377, %1410 : vector<8x128xf32>
    %1412 = arith.mulf %1411, %1360 : vector<8x128xf32>
    %cst_418 = arith.constant -1.000000e+01 : f32
    %1413 = vector.broadcast %cst_418 : f32 to vector<8x128xf32>
    %1414 = arith.mulf %1381, %1413 : vector<8x128xf32>
    %1415 = arith.mulf %1414, %1361 : vector<8x128xf32>
    %1416 = arith.addf %1412, %1415 : vector<8x128xf32>
    %cst_419 = arith.constant 1.000000e+01 : f32
    %1417 = vector.broadcast %cst_419 : f32 to vector<8x128xf32>
    %1418 = arith.mulf %1379, %1417 : vector<8x128xf32>
    %1419 = arith.mulf %1418, %1361 : vector<8x128xf32>
    %cst_420 = arith.constant -1.000000e+01 : f32
    %1420 = vector.broadcast %cst_420 : f32 to vector<8x128xf32>
    %1421 = arith.mulf %1383, %1420 : vector<8x128xf32>
    %1422 = arith.mulf %1421, %1362 : vector<8x128xf32>
    %1423 = arith.addf %1419, %1422 : vector<8x128xf32>
    %cst_421 = arith.constant 1.000000e+01 : f32
    %1424 = vector.broadcast %cst_421 : f32 to vector<8x128xf32>
    %1425 = arith.mulf %1381, %1424 : vector<8x128xf32>
    %1426 = arith.mulf %1425, %1362 : vector<8x128xf32>
    %cst_422 = arith.constant -1.000000e+01 : f32
    %1427 = vector.broadcast %cst_422 : f32 to vector<8x128xf32>
    %1428 = arith.mulf %1385, %1427 : vector<8x128xf32>
    %1429 = arith.mulf %1428, %1363 : vector<8x128xf32>
    %1430 = arith.addf %1426, %1429 : vector<8x128xf32>
    %cst_423 = arith.constant 1.000000e+01 : f32
    %1431 = vector.broadcast %cst_423 : f32 to vector<8x128xf32>
    %1432 = arith.mulf %1383, %1431 : vector<8x128xf32>
    %1433 = arith.mulf %1432, %1363 : vector<8x128xf32>
    %cst_424 = arith.constant -1.000000e+01 : f32
    %1434 = vector.broadcast %cst_424 : f32 to vector<8x128xf32>
    %1435 = arith.mulf %1387, %1434 : vector<8x128xf32>
    %1436 = arith.mulf %1435, %1364 : vector<8x128xf32>
    %1437 = arith.addf %1433, %1436 : vector<8x128xf32>
    %cst_425 = arith.constant 1.000000e+01 : f32
    %1438 = vector.broadcast %cst_425 : f32 to vector<8x128xf32>
    %1439 = arith.mulf %1385, %1438 : vector<8x128xf32>
    %1440 = arith.mulf %1439, %1364 : vector<8x128xf32>
    %cst_426 = arith.constant -9.99999904 : f32
    %1441 = vector.broadcast %cst_426 : f32 to vector<8x128xf32>
    %1442 = arith.mulf %1389, %1441 : vector<8x128xf32>
    %1443 = arith.mulf %1442, %1365 : vector<8x128xf32>
    %1444 = arith.addf %1440, %1443 : vector<8x128xf32>
    %cst_427 = arith.constant 9.99999904 : f32
    %1445 = vector.broadcast %cst_427 : f32 to vector<8x128xf32>
    %1446 = arith.mulf %1387, %1445 : vector<8x128xf32>
    %1447 = arith.mulf %1446, %1365 : vector<8x128xf32>
    %cst_428 = arith.constant -10.000001 : f32
    %1448 = vector.broadcast %cst_428 : f32 to vector<8x128xf32>
    %1449 = arith.mulf %1391, %1448 : vector<8x128xf32>
    %1450 = arith.mulf %1449, %1366 : vector<8x128xf32>
    %1451 = arith.addf %1447, %1450 : vector<8x128xf32>
    %cst_429 = arith.constant 10.000001 : f32
    %1452 = vector.broadcast %cst_429 : f32 to vector<8x128xf32>
    %1453 = arith.mulf %1389, %1452 : vector<8x128xf32>
    %1454 = arith.mulf %1453, %1366 : vector<8x128xf32>
    %cst_430 = arith.constant -10.000001 : f32
    %1455 = vector.broadcast %cst_430 : f32 to vector<8x128xf32>
    %1456 = arith.mulf %1393, %1455 : vector<8x128xf32>
    %1457 = arith.mulf %1456, %1367 : vector<8x128xf32>
    %1458 = arith.addf %1454, %1457 : vector<8x128xf32>
    %cst_431 = arith.constant 10.000001 : f32
    %1459 = vector.broadcast %cst_431 : f32 to vector<8x128xf32>
    %1460 = arith.mulf %1391, %1459 : vector<8x128xf32>
    %1461 = arith.mulf %1460, %1367 : vector<8x128xf32>
    %cst_432 = arith.constant -9.99999809 : f32
    %1462 = vector.broadcast %cst_432 : f32 to vector<8x128xf32>
    %1463 = arith.mulf %1395, %1462 : vector<8x128xf32>
    %1464 = arith.mulf %1463, %1368 : vector<8x128xf32>
    %1465 = arith.addf %1461, %1464 : vector<8x128xf32>
    %cst_433 = arith.constant 9.99999809 : f32
    %1466 = vector.broadcast %cst_433 : f32 to vector<8x128xf32>
    %1467 = arith.mulf %1393, %1466 : vector<8x128xf32>
    %1468 = arith.mulf %1467, %1368 : vector<8x128xf32>
    %cst_434 = arith.constant -10.0000038 : f32
    %1469 = vector.broadcast %cst_434 : f32 to vector<8x128xf32>
    %1470 = arith.mulf %1397, %1469 : vector<8x128xf32>
    %1471 = arith.mulf %1470, %1369 : vector<8x128xf32>
    %1472 = arith.addf %1468, %1471 : vector<8x128xf32>
    %cst_435 = arith.constant 10.0000038 : f32
    %1473 = vector.broadcast %cst_435 : f32 to vector<8x128xf32>
    %1474 = arith.mulf %1395, %1473 : vector<8x128xf32>
    %1475 = arith.mulf %1474, %1369 : vector<8x128xf32>
    %cst_436 = arith.constant -9.99999809 : f32
    %1476 = vector.broadcast %cst_436 : f32 to vector<8x128xf32>
    %1477 = arith.mulf %1399, %1476 : vector<8x128xf32>
    %1478 = arith.mulf %1477, %1370 : vector<8x128xf32>
    %1479 = arith.addf %1475, %1478 : vector<8x128xf32>
    %cst_437 = arith.constant 9.99999809 : f32
    %1480 = vector.broadcast %cst_437 : f32 to vector<8x128xf32>
    %1481 = arith.mulf %1397, %1480 : vector<8x128xf32>
    %1482 = arith.mulf %1481, %1370 : vector<8x128xf32>
    %cst_438 = arith.constant -10.0000038 : f32
    %1483 = vector.broadcast %cst_438 : f32 to vector<8x128xf32>
    %1484 = arith.mulf %1401, %1483 : vector<8x128xf32>
    %1485 = arith.mulf %1484, %1371 : vector<8x128xf32>
    %1486 = arith.addf %1482, %1485 : vector<8x128xf32>
    %cst_439 = arith.constant 10.0000038 : f32
    %1487 = vector.broadcast %cst_439 : f32 to vector<8x128xf32>
    %1488 = arith.mulf %1399, %1487 : vector<8x128xf32>
    %1489 = arith.mulf %1488, %1371 : vector<8x128xf32>
    %cst_440 = arith.constant -9.99999809 : f32
    %1490 = vector.broadcast %cst_440 : f32 to vector<8x128xf32>
    %1491 = arith.mulf %1403, %1490 : vector<8x128xf32>
    %1492 = arith.mulf %1491, %1372 : vector<8x128xf32>
    %1493 = arith.addf %1489, %1492 : vector<8x128xf32>
    %cst_441 = arith.constant 9.99999809 : f32
    %1494 = vector.broadcast %cst_441 : f32 to vector<8x128xf32>
    %1495 = arith.mulf %1401, %1494 : vector<8x128xf32>
    %1496 = arith.mulf %1495, %1372 : vector<8x128xf32>
    %cst_442 = arith.constant -9.99999809 : f32
    %1497 = vector.broadcast %cst_442 : f32 to vector<8x128xf32>
    %1498 = arith.mulf %1405, %1497 : vector<8x128xf32>
    %1499 = arith.mulf %1498, %1373 : vector<8x128xf32>
    %1500 = arith.addf %1496, %1499 : vector<8x128xf32>
    %cst_443 = arith.constant 9.99999809 : f32
    %1501 = vector.broadcast %cst_443 : f32 to vector<8x128xf32>
    %1502 = arith.mulf %1403, %1501 : vector<8x128xf32>
    %1503 = arith.mulf %1502, %1373 : vector<8x128xf32>
    %cst_444 = arith.constant -9.99999809 : f32
    %1504 = vector.broadcast %cst_444 : f32 to vector<8x128xf32>
    %1505 = arith.mulf %1407, %1504 : vector<8x128xf32>
    %1506 = arith.mulf %1505, %1374 : vector<8x128xf32>
    %1507 = arith.addf %1503, %1506 : vector<8x128xf32>
    %cst_445 = arith.constant 9.99999809 : f32
    %1508 = vector.broadcast %cst_445 : f32 to vector<8x128xf32>
    %1509 = arith.mulf %1405, %1508 : vector<8x128xf32>
    %1510 = arith.mulf %1509, %1374 : vector<8x128xf32>
    %cst_446 = arith.constant -10.0000095 : f32
    %1511 = vector.broadcast %cst_446 : f32 to vector<8x128xf32>
    %1512 = arith.mulf %1409, %1511 : vector<8x128xf32>
    %1513 = arith.mulf %1512, %1375 : vector<8x128xf32>
    %1514 = arith.addf %1510, %1513 : vector<8x128xf32>
    %cst_447 = arith.constant 4.99999952 : f32
    %1515 = vector.broadcast %cst_447 : f32 to vector<8x128xf32>
    %1516 = arith.mulf %1377, %1515 : vector<8x128xf32>
    %1517 = arith.mulf %1516, %1416 : vector<8x128xf32>
    %cst_448 = arith.constant -5.000000e+00 : f32
    %1518 = vector.broadcast %cst_448 : f32 to vector<8x128xf32>
    %1519 = arith.mulf %1383, %1518 : vector<8x128xf32>
    %1520 = arith.mulf %1519, %1423 : vector<8x128xf32>
    %1521 = arith.addf %1517, %1520 : vector<8x128xf32>
    %cst_449 = arith.constant 5.000000e+00 : f32
    %1522 = vector.broadcast %cst_449 : f32 to vector<8x128xf32>
    %1523 = arith.mulf %1379, %1522 : vector<8x128xf32>
    %1524 = arith.mulf %1523, %1423 : vector<8x128xf32>
    %cst_450 = arith.constant -5.000000e+00 : f32
    %1525 = vector.broadcast %cst_450 : f32 to vector<8x128xf32>
    %1526 = arith.mulf %1385, %1525 : vector<8x128xf32>
    %1527 = arith.mulf %1526, %1430 : vector<8x128xf32>
    %1528 = arith.addf %1524, %1527 : vector<8x128xf32>
    %cst_451 = arith.constant 5.000000e+00 : f32
    %1529 = vector.broadcast %cst_451 : f32 to vector<8x128xf32>
    %1530 = arith.mulf %1381, %1529 : vector<8x128xf32>
    %1531 = arith.mulf %1530, %1430 : vector<8x128xf32>
    %cst_452 = arith.constant -5.000000e+00 : f32
    %1532 = vector.broadcast %cst_452 : f32 to vector<8x128xf32>
    %1533 = arith.mulf %1387, %1532 : vector<8x128xf32>
    %1534 = arith.mulf %1533, %1437 : vector<8x128xf32>
    %1535 = arith.addf %1531, %1534 : vector<8x128xf32>
    %cst_453 = arith.constant 5.000000e+00 : f32
    %1536 = vector.broadcast %cst_453 : f32 to vector<8x128xf32>
    %1537 = arith.mulf %1383, %1536 : vector<8x128xf32>
    %1538 = arith.mulf %1537, %1437 : vector<8x128xf32>
    %cst_454 = arith.constant -4.99999952 : f32
    %1539 = vector.broadcast %cst_454 : f32 to vector<8x128xf32>
    %1540 = arith.mulf %1389, %1539 : vector<8x128xf32>
    %1541 = arith.mulf %1540, %1444 : vector<8x128xf32>
    %1542 = arith.addf %1538, %1541 : vector<8x128xf32>
    %cst_455 = arith.constant 4.99999952 : f32
    %1543 = vector.broadcast %cst_455 : f32 to vector<8x128xf32>
    %1544 = arith.mulf %1385, %1543 : vector<8x128xf32>
    %1545 = arith.mulf %1544, %1444 : vector<8x128xf32>
    %cst_456 = arith.constant -5.000000e+00 : f32
    %1546 = vector.broadcast %cst_456 : f32 to vector<8x128xf32>
    %1547 = arith.mulf %1391, %1546 : vector<8x128xf32>
    %1548 = arith.mulf %1547, %1451 : vector<8x128xf32>
    %1549 = arith.addf %1545, %1548 : vector<8x128xf32>
    %cst_457 = arith.constant 5.000000e+00 : f32
    %1550 = vector.broadcast %cst_457 : f32 to vector<8x128xf32>
    %1551 = arith.mulf %1387, %1550 : vector<8x128xf32>
    %1552 = arith.mulf %1551, %1451 : vector<8x128xf32>
    %cst_458 = arith.constant -5.00000048 : f32
    %1553 = vector.broadcast %cst_458 : f32 to vector<8x128xf32>
    %1554 = arith.mulf %1393, %1553 : vector<8x128xf32>
    %1555 = arith.mulf %1554, %1458 : vector<8x128xf32>
    %1556 = arith.addf %1552, %1555 : vector<8x128xf32>
    %cst_459 = arith.constant 5.00000048 : f32
    %1557 = vector.broadcast %cst_459 : f32 to vector<8x128xf32>
    %1558 = arith.mulf %1389, %1557 : vector<8x128xf32>
    %1559 = arith.mulf %1558, %1458 : vector<8x128xf32>
    %cst_460 = arith.constant -4.99999952 : f32
    %1560 = vector.broadcast %cst_460 : f32 to vector<8x128xf32>
    %1561 = arith.mulf %1395, %1560 : vector<8x128xf32>
    %1562 = arith.mulf %1561, %1465 : vector<8x128xf32>
    %1563 = arith.addf %1559, %1562 : vector<8x128xf32>
    %cst_461 = arith.constant 4.99999952 : f32
    %1564 = vector.broadcast %cst_461 : f32 to vector<8x128xf32>
    %1565 = arith.mulf %1391, %1564 : vector<8x128xf32>
    %1566 = arith.mulf %1565, %1465 : vector<8x128xf32>
    %cst_462 = arith.constant -5.00000048 : f32
    %1567 = vector.broadcast %cst_462 : f32 to vector<8x128xf32>
    %1568 = arith.mulf %1397, %1567 : vector<8x128xf32>
    %1569 = arith.mulf %1568, %1472 : vector<8x128xf32>
    %1570 = arith.addf %1566, %1569 : vector<8x128xf32>
    %cst_463 = arith.constant 5.00000048 : f32
    %1571 = vector.broadcast %cst_463 : f32 to vector<8x128xf32>
    %1572 = arith.mulf %1393, %1571 : vector<8x128xf32>
    %1573 = arith.mulf %1572, %1472 : vector<8x128xf32>
    %cst_464 = arith.constant -5.00000048 : f32
    %1574 = vector.broadcast %cst_464 : f32 to vector<8x128xf32>
    %1575 = arith.mulf %1399, %1574 : vector<8x128xf32>
    %1576 = arith.mulf %1575, %1479 : vector<8x128xf32>
    %1577 = arith.addf %1573, %1576 : vector<8x128xf32>
    %cst_465 = arith.constant 5.00000048 : f32
    %1578 = vector.broadcast %cst_465 : f32 to vector<8x128xf32>
    %1579 = arith.mulf %1395, %1578 : vector<8x128xf32>
    %1580 = arith.mulf %1579, %1479 : vector<8x128xf32>
    %cst_466 = arith.constant -5.00000048 : f32
    %1581 = vector.broadcast %cst_466 : f32 to vector<8x128xf32>
    %1582 = arith.mulf %1401, %1581 : vector<8x128xf32>
    %1583 = arith.mulf %1582, %1486 : vector<8x128xf32>
    %1584 = arith.addf %1580, %1583 : vector<8x128xf32>
    %cst_467 = arith.constant 5.00000048 : f32
    %1585 = vector.broadcast %cst_467 : f32 to vector<8x128xf32>
    %1586 = arith.mulf %1397, %1585 : vector<8x128xf32>
    %1587 = arith.mulf %1586, %1486 : vector<8x128xf32>
    %cst_468 = arith.constant -5.00000048 : f32
    %1588 = vector.broadcast %cst_468 : f32 to vector<8x128xf32>
    %1589 = arith.mulf %1403, %1588 : vector<8x128xf32>
    %1590 = arith.mulf %1589, %1493 : vector<8x128xf32>
    %1591 = arith.addf %1587, %1590 : vector<8x128xf32>
    %cst_469 = arith.constant 5.00000048 : f32
    %1592 = vector.broadcast %cst_469 : f32 to vector<8x128xf32>
    %1593 = arith.mulf %1399, %1592 : vector<8x128xf32>
    %1594 = arith.mulf %1593, %1493 : vector<8x128xf32>
    %cst_470 = arith.constant -4.99999905 : f32
    %1595 = vector.broadcast %cst_470 : f32 to vector<8x128xf32>
    %1596 = arith.mulf %1405, %1595 : vector<8x128xf32>
    %1597 = arith.mulf %1596, %1500 : vector<8x128xf32>
    %1598 = arith.addf %1594, %1597 : vector<8x128xf32>
    %cst_471 = arith.constant 4.99999905 : f32
    %1599 = vector.broadcast %cst_471 : f32 to vector<8x128xf32>
    %1600 = arith.mulf %1401, %1599 : vector<8x128xf32>
    %1601 = arith.mulf %1600, %1500 : vector<8x128xf32>
    %cst_472 = arith.constant -4.99999905 : f32
    %1602 = vector.broadcast %cst_472 : f32 to vector<8x128xf32>
    %1603 = arith.mulf %1407, %1602 : vector<8x128xf32>
    %1604 = arith.mulf %1603, %1507 : vector<8x128xf32>
    %1605 = arith.addf %1601, %1604 : vector<8x128xf32>
    %cst_473 = arith.constant 4.99999905 : f32
    %1606 = vector.broadcast %cst_473 : f32 to vector<8x128xf32>
    %1607 = arith.mulf %1403, %1606 : vector<8x128xf32>
    %1608 = arith.mulf %1607, %1507 : vector<8x128xf32>
    %cst_474 = arith.constant -5.00000191 : f32
    %1609 = vector.broadcast %cst_474 : f32 to vector<8x128xf32>
    %1610 = arith.mulf %1409, %1609 : vector<8x128xf32>
    %1611 = arith.mulf %1610, %1514 : vector<8x128xf32>
    %1612 = arith.addf %1608, %1611 : vector<8x128xf32>
    %cst_475 = arith.constant 3.33333325 : f32
    %1613 = vector.broadcast %cst_475 : f32 to vector<8x128xf32>
    %1614 = arith.mulf %1377, %1613 : vector<8x128xf32>
    %1615 = arith.mulf %1614, %1521 : vector<8x128xf32>
    %cst_476 = arith.constant -3.33333325 : f32
    %1616 = vector.broadcast %cst_476 : f32 to vector<8x128xf32>
    %1617 = arith.mulf %1385, %1616 : vector<8x128xf32>
    %1618 = arith.mulf %1617, %1528 : vector<8x128xf32>
    %1619 = arith.addf %1615, %1618 : vector<8x128xf32>
    %cst_477 = arith.constant 3.33333325 : f32
    %1620 = vector.broadcast %cst_477 : f32 to vector<8x128xf32>
    %1621 = arith.mulf %1379, %1620 : vector<8x128xf32>
    %1622 = arith.mulf %1621, %1528 : vector<8x128xf32>
    %cst_478 = arith.constant -3.33333325 : f32
    %1623 = vector.broadcast %cst_478 : f32 to vector<8x128xf32>
    %1624 = arith.mulf %1387, %1623 : vector<8x128xf32>
    %1625 = arith.mulf %1624, %1535 : vector<8x128xf32>
    %1626 = arith.addf %1622, %1625 : vector<8x128xf32>
    %cst_479 = arith.constant 3.33333325 : f32
    %1627 = vector.broadcast %cst_479 : f32 to vector<8x128xf32>
    %1628 = arith.mulf %1381, %1627 : vector<8x128xf32>
    %1629 = arith.mulf %1628, %1535 : vector<8x128xf32>
    %cst_480 = arith.constant -3.33333325 : f32
    %1630 = vector.broadcast %cst_480 : f32 to vector<8x128xf32>
    %1631 = arith.mulf %1389, %1630 : vector<8x128xf32>
    %1632 = arith.mulf %1631, %1542 : vector<8x128xf32>
    %1633 = arith.addf %1629, %1632 : vector<8x128xf32>
    %cst_481 = arith.constant 3.33333325 : f32
    %1634 = vector.broadcast %cst_481 : f32 to vector<8x128xf32>
    %1635 = arith.mulf %1383, %1634 : vector<8x128xf32>
    %1636 = arith.mulf %1635, %1542 : vector<8x128xf32>
    %cst_482 = arith.constant -3.33333325 : f32
    %1637 = vector.broadcast %cst_482 : f32 to vector<8x128xf32>
    %1638 = arith.mulf %1391, %1637 : vector<8x128xf32>
    %1639 = arith.mulf %1638, %1549 : vector<8x128xf32>
    %1640 = arith.addf %1636, %1639 : vector<8x128xf32>
    %cst_483 = arith.constant 3.33333325 : f32
    %1641 = vector.broadcast %cst_483 : f32 to vector<8x128xf32>
    %1642 = arith.mulf %1385, %1641 : vector<8x128xf32>
    %1643 = arith.mulf %1642, %1549 : vector<8x128xf32>
    %cst_484 = arith.constant -3.33333325 : f32
    %1644 = vector.broadcast %cst_484 : f32 to vector<8x128xf32>
    %1645 = arith.mulf %1393, %1644 : vector<8x128xf32>
    %1646 = arith.mulf %1645, %1556 : vector<8x128xf32>
    %1647 = arith.addf %1643, %1646 : vector<8x128xf32>
    %cst_485 = arith.constant 3.33333325 : f32
    %1648 = vector.broadcast %cst_485 : f32 to vector<8x128xf32>
    %1649 = arith.mulf %1387, %1648 : vector<8x128xf32>
    %1650 = arith.mulf %1649, %1556 : vector<8x128xf32>
    %cst_486 = arith.constant -3.33333325 : f32
    %1651 = vector.broadcast %cst_486 : f32 to vector<8x128xf32>
    %1652 = arith.mulf %1395, %1651 : vector<8x128xf32>
    %1653 = arith.mulf %1652, %1563 : vector<8x128xf32>
    %1654 = arith.addf %1650, %1653 : vector<8x128xf32>
    %cst_487 = arith.constant 3.33333325 : f32
    %1655 = vector.broadcast %cst_487 : f32 to vector<8x128xf32>
    %1656 = arith.mulf %1389, %1655 : vector<8x128xf32>
    %1657 = arith.mulf %1656, %1563 : vector<8x128xf32>
    %cst_488 = arith.constant -3.33333349 : f32
    %1658 = vector.broadcast %cst_488 : f32 to vector<8x128xf32>
    %1659 = arith.mulf %1397, %1658 : vector<8x128xf32>
    %1660 = arith.mulf %1659, %1570 : vector<8x128xf32>
    %1661 = arith.addf %1657, %1660 : vector<8x128xf32>
    %cst_489 = arith.constant 3.33333349 : f32
    %1662 = vector.broadcast %cst_489 : f32 to vector<8x128xf32>
    %1663 = arith.mulf %1391, %1662 : vector<8x128xf32>
    %1664 = arith.mulf %1663, %1570 : vector<8x128xf32>
    %cst_490 = arith.constant -3.33333325 : f32
    %1665 = vector.broadcast %cst_490 : f32 to vector<8x128xf32>
    %1666 = arith.mulf %1399, %1665 : vector<8x128xf32>
    %1667 = arith.mulf %1666, %1577 : vector<8x128xf32>
    %1668 = arith.addf %1664, %1667 : vector<8x128xf32>
    %cst_491 = arith.constant 3.33333325 : f32
    %1669 = vector.broadcast %cst_491 : f32 to vector<8x128xf32>
    %1670 = arith.mulf %1393, %1669 : vector<8x128xf32>
    %1671 = arith.mulf %1670, %1577 : vector<8x128xf32>
    %cst_492 = arith.constant -3.33333397 : f32
    %1672 = vector.broadcast %cst_492 : f32 to vector<8x128xf32>
    %1673 = arith.mulf %1401, %1672 : vector<8x128xf32>
    %1674 = arith.mulf %1673, %1584 : vector<8x128xf32>
    %1675 = arith.addf %1671, %1674 : vector<8x128xf32>
    %cst_493 = arith.constant 3.33333397 : f32
    %1676 = vector.broadcast %cst_493 : f32 to vector<8x128xf32>
    %1677 = arith.mulf %1395, %1676 : vector<8x128xf32>
    %1678 = arith.mulf %1677, %1584 : vector<8x128xf32>
    %cst_494 = arith.constant -3.33333325 : f32
    %1679 = vector.broadcast %cst_494 : f32 to vector<8x128xf32>
    %1680 = arith.mulf %1403, %1679 : vector<8x128xf32>
    %1681 = arith.mulf %1680, %1591 : vector<8x128xf32>
    %1682 = arith.addf %1678, %1681 : vector<8x128xf32>
    %cst_495 = arith.constant 3.33333325 : f32
    %1683 = vector.broadcast %cst_495 : f32 to vector<8x128xf32>
    %1684 = arith.mulf %1397, %1683 : vector<8x128xf32>
    %1685 = arith.mulf %1684, %1591 : vector<8x128xf32>
    %cst_496 = arith.constant -3.33333325 : f32
    %1686 = vector.broadcast %cst_496 : f32 to vector<8x128xf32>
    %1687 = arith.mulf %1405, %1686 : vector<8x128xf32>
    %1688 = arith.mulf %1687, %1598 : vector<8x128xf32>
    %1689 = arith.addf %1685, %1688 : vector<8x128xf32>
    %cst_497 = arith.constant 3.33333325 : f32
    %1690 = vector.broadcast %cst_497 : f32 to vector<8x128xf32>
    %1691 = arith.mulf %1399, %1690 : vector<8x128xf32>
    %1692 = arith.mulf %1691, %1598 : vector<8x128xf32>
    %cst_498 = arith.constant -3.33333254 : f32
    %1693 = vector.broadcast %cst_498 : f32 to vector<8x128xf32>
    %1694 = arith.mulf %1407, %1693 : vector<8x128xf32>
    %1695 = arith.mulf %1694, %1605 : vector<8x128xf32>
    %1696 = arith.addf %1692, %1695 : vector<8x128xf32>
    %cst_499 = arith.constant 3.33333254 : f32
    %1697 = vector.broadcast %cst_499 : f32 to vector<8x128xf32>
    %1698 = arith.mulf %1401, %1697 : vector<8x128xf32>
    %1699 = arith.mulf %1698, %1605 : vector<8x128xf32>
    %cst_500 = arith.constant -3.33333397 : f32
    %1700 = vector.broadcast %cst_500 : f32 to vector<8x128xf32>
    %1701 = arith.mulf %1409, %1700 : vector<8x128xf32>
    %1702 = arith.mulf %1701, %1612 : vector<8x128xf32>
    %1703 = arith.addf %1699, %1702 : vector<8x128xf32>
    %1704 = tpu.concatenate %1619, %1626, %1633, %1640, %1647, %1654, %1661, %1668, %1675, %1682, %1689, %1696, %1703 in 1 : vector<8x128xf32>, vector<8x128xf32>, vector<8x128xf32>, vector<8x128xf32>, vector<8x128xf32>, vector<8x128xf32>, vector<8x128xf32>, vector<8x128xf32>, vector<8x128xf32>, vector<8x128xf32>, vector<8x128xf32>, vector<8x128xf32>, vector<8x128xf32> -> vector<8x1664xf32>
    %1705 = arith.truncf %1704 : vector<8x1664xf32> to vector<8x1664xbf16>
    %c0_501 = arith.constant 0 : index
    %c0_502 = arith.constant 0 : index
    %1706 = vector.load %arg9[%c0_501, %c0_502] : memref<1664x128xbf16, #tpu.memory_space<vmem>>, vector<1664x128xbf16>
    %cst_503 = arith.constant dense<0.000000e+00> : vector<8x128xf32>
    %1707 = tpu.matmul %1705, %1706, %cst_503 {dimension_numbers = #tpu.dot_dimension_numbers<[1], [0], [0], [1], [0, 0, 1, 1], [], []>} : vector<8x1664xbf16>, vector<1664x128xbf16>, vector<8x128xf32> -> vector<8x128xf32>
    %1708 = arith.addf %1291, %1707 : vector<8x128xf32>
    %1709 = arith.truncf %1708 : vector<8x128xf32> to vector<8x128xbf16>
    %c0_504 = arith.constant 0 : index
    %c0_505 = arith.constant 0 : index
    %1710 = vector.load %arg10[%c0_504, %c0_505] : memref<128x128xbf16, #tpu.memory_space<vmem>>, vector<128x128xbf16>
    %cst_506 = arith.constant dense<0.000000e+00> : vector<8x128xf32>
    %1711 = tpu.matmul %1709, %1710, %cst_506 {dimension_numbers = #tpu.dot_dimension_numbers<[1], [0], [0], [1], [0, 0, 1, 1], [], []>} : vector<8x128xbf16>, vector<128x128xbf16>, vector<8x128xf32> -> vector<8x128xf32>
    %c0_507 = arith.constant 0 : index
    %c0_508 = arith.constant 0 : index
    %1712 = vector.load %arg11[%c0_507, %c0_508] : memref<1x128xf32, #tpu.memory_space<vmem>>, vector<1x128xf32>
    %1713 = vector.broadcast %1712 : vector<1x128xf32> to vector<8x128xf32>
    %1714 = arith.addf %1711, %1713 : vector<8x128xf32>
    %1715 = arith.truncf %1714 : vector<8x128xf32> to vector<8x128xbf16>
    %c0_509 = arith.constant 0 : index
    %c0_510 = arith.constant 0 : index
    %1716 = vector.load %arg12[%c0_509, %c0_510] : memref<128x64xbf16, #tpu.memory_space<vmem>>, vector<128x64xbf16>
    %cst_511 = arith.constant dense<0.000000e+00> : vector<8x64xf32>
    %1717 = tpu.matmul %1715, %1716, %cst_511 {dimension_numbers = #tpu.dot_dimension_numbers<[1], [0], [0], [1], [0, 0, 1, 1], [], []>} : vector<8x128xbf16>, vector<128x64xbf16>, vector<8x64xf32> -> vector<8x64xf32>
    %c0_512 = arith.constant 0 : index
    %c0_513 = arith.constant 0 : index
    %1718 = vector.load %arg13[%c0_512, %c0_513] : memref<1x64xf32, #tpu.memory_space<vmem>>, vector<1x64xf32>
    %1719 = vector.broadcast %1718 : vector<1x64xf32> to vector<8x64xf32>
    %1720 = arith.addf %1717, %1719 : vector<8x64xf32>
    %cst_514 = arith.constant 0.000000e+00 : f32
    %1721 = vector.broadcast %cst_514 : f32 to vector<8x64xf32>
    %1722 = arith.cmpf oge, %1720, %1721 : vector<8x64xf32>
    %cst_515 = arith.constant 5.000000e-02 : f32
    %1723 = vector.broadcast %cst_515 : f32 to vector<8x64xf32>
    %1724 = arith.mulf %1723, %1720 : vector<8x64xf32>
    %1725 = arith.select %1722, %1720, %1724 : vector<8x64xi1>, vector<8x64xf32>
    %1726 = arith.truncf %1725 : vector<8x64xf32> to vector<8x64xbf16>
    %c0_516 = arith.constant 0 : index
    %c0_517 = arith.constant 0 : index
    %1727 = vector.load %arg14[%c0_516, %c0_517] : memref<64x128xbf16, #tpu.memory_space<vmem>>, vector<64x128xbf16>
    %cst_518 = arith.constant dense<0.000000e+00> : vector<8x128xf32>
    %1728 = tpu.matmul %1726, %1727, %cst_518 {dimension_numbers = #tpu.dot_dimension_numbers<[1], [0], [0], [1], [0, 0, 1, 1], [], []>} : vector<8x64xbf16>, vector<64x128xbf16>, vector<8x128xf32> -> vector<8x128xf32>
    %c0_519 = arith.constant 0 : index
    %c0_520 = arith.constant 0 : index
    %1729 = vector.load %arg15[%c0_519, %c0_520] : memref<1x128xf32, #tpu.memory_space<vmem>>, vector<1x128xf32>
    %1730 = vector.broadcast %1729 : vector<1x128xf32> to vector<8x128xf32>
    %1731 = arith.addf %1728, %1730 : vector<8x128xf32>
    %cst_521 = arith.constant 0.000000e+00 : f32
    %1732 = vector.broadcast %cst_521 : f32 to vector<8x128xf32>
    %1733 = arith.subf %1732, %1731 : vector<8x128xf32>
    %1734 = math.exp %1733 : vector<8x128xf32>
    %cst_522 = arith.constant 1.000000e+00 : f32
    %1735 = vector.broadcast %cst_522 : f32 to vector<8x128xf32>
    %1736 = arith.addf %1735, %1734 : vector<8x128xf32>
    %1737 = tpu.reciprocal %1736 {approx = true} : vector<8x128xf32> -> vector<8x128xf32>
    %c0_523 = arith.constant 0 : index
    %c0_524 = arith.constant 0 : index
    %1738 = vector.load %arg16[%c0_523, %c0_524] : memref<8x128xf32, #tpu.memory_space<vmem>>, vector<8x128xf32>
    tpu.vector_store %arg16[%c0_523, %c0_524], %1737 {strides = array<i32>} : memref<8x128xf32, #tpu.memory_space<vmem>>, vector<8x128xf32>,
    return
  }
  func.func @transform_0(%arg0: i32) -> (i32, i32) {
    %c0_i32 = arith.constant 0 : i32
    %c0_i32_0 = arith.constant 0 : i32
    return %arg0, %c0_i32 : i32, i32
  }
  func.func @transform_1(%arg0: i32) -> (i32, i32) {
    %c0_i32 = arith.constant 0 : i32
    %c0_i32_0 = arith.constant 0 : i32
    %c0_i32_1 = arith.constant 0 : i32
    return %c0_i32, %c0_i32_0 : i32, i32
  }
  func.func @transform_2(%arg0: i32) -> (i32, i32) {
    %c0_i32 = arith.constant 0 : i32
    %c0_i32_0 = arith.constant 0 : i32
    %c0_i32_1 = arith.constant 0 : i32
    return %c0_i32, %c0_i32_0 : i32, i32
  }
  func.func @transform_3(%arg0: i32) -> (i32, i32) {
    %c0_i32 = arith.constant 0 : i32
    %c0_i32_0 = arith.constant 0 : i32
    %c0_i32_1 = arith.constant 0 : i32
    return %c0_i32, %c0_i32_0 : i32, i32
  }
  func.func @transform_4(%arg0: i32) -> (i32, i32) {
    %c0_i32 = arith.constant 0 : i32
    %c0_i32_0 = arith.constant 0 : i32
    %c0_i32_1 = arith.constant 0 : i32
    return %c0_i32, %c0_i32_0 : i32, i32
  }
  func.func @transform_5(%arg0: i32) -> (i32, i32) {
    %c0_i32 = arith.constant 0 : i32
    %c0_i32_0 = arith.constant 0 : i32
    %c0_i32_1 = arith.constant 0 : i32
    return %c0_i32, %c0_i32_0 : i32, i32
  }
  func.func @transform_6(%arg0: i32) -> (i32, i32) {
    %c0_i32 = arith.constant 0 : i32
    %c0_i32_0 = arith.constant 0 : i32
    %c0_i32_1 = arith.constant 0 : i32
    return %c0_i32, %c0_i32_0 : i32, i32
  }
  func.func @transform_7(%arg0: i32) -> (i32, i32) {
    %c0_i32 = arith.constant 0 : i32
    %c0_i32_0 = arith.constant 0 : i32
    %c0_i32_1 = arith.constant 0 : i32
    return %c0_i32, %c0_i32_0 : i32, i32
  }
  func.func @transform_8(%arg0: i32) -> (i32, i32) {
    %c0_i32 = arith.constant 0 : i32
    %c0_i32_0 = arith.constant 0 : i32
    %c0_i32_1 = arith.constant 0 : i32
    return %c0_i32, %c0_i32_0 : i32, i32
  }
  func.func @transform_9(%arg0: i32) -> (i32, i32) {
    %c0_i32 = arith.constant 0 : i32
    %c0_i32_0 = arith.constant 0 : i32
    %c0_i32_1 = arith.constant 0 : i32
    return %c0_i32, %c0_i32_0 : i32, i32
  }
  func.func @transform_10(%arg0: i32) -> (i32, i32) {
    %c0_i32 = arith.constant 0 : i32
    %c0_i32_0 = arith.constant 0 : i32
    %c0_i32_1 = arith.constant 0 : i32
    return %c0_i32, %c0_i32_0 : i32, i32
  }
  func.func @transform_11(%arg0: i32) -> (i32, i32) {
    %c0_i32 = arith.constant 0 : i32
    %c0_i32_0 = arith.constant 0 : i32
    %c0_i32_1 = arith.constant 0 : i32
    return %c0_i32, %c0_i32_0 : i32, i32
  }
  func.func @transform_12(%arg0: i32) -> (i32, i32) {
    %c0_i32 = arith.constant 0 : i32
    %c0_i32_0 = arith.constant 0 : i32
    %c0_i32_1 = arith.constant 0 : i32
    return %c0_i32, %c0_i32_0 : i32, i32
  }
  func.func @transform_13(%arg0: i32) -> (i32, i32) {
    %c0_i32 = arith.constant 0 : i32
    %c0_i32_0 = arith.constant 0 : i32
    %c0_i32_1 = arith.constant 0 : i32
    return %c0_i32, %c0_i32_0 : i32, i32
  }
  func.func @transform_14(%arg0: i32) -> (i32, i32) {
    %c0_i32 = arith.constant 0 : i32
    %c0_i32_0 = arith.constant 0 : i32
    %c0_i32_1 = arith.constant 0 : i32
    return %c0_i32, %c0_i32_0 : i32, i32
  }
  func.func @transform_15(%arg0: i32) -> (i32, i32) {
    %c0_i32 = arith.constant 0 : i32
    %c0_i32_0 = arith.constant 0 : i32
    return %arg0, %c0_i32 : i32, i32
  }
}

</mosaic_0001>

<bundles_post_ra>
// kernel: forward.1
= control target key start
LH: loop header
LB: loop body
LE: loop exit
PB: predicated region body
PF: predicated region fallthrough
CT: control target
= control target key end

     0   :  { %s19782_s0 = inlined_call_operand.vmem [shape: f32[8,512], index: 0, kind: input, shape index: {}]   ;;  %s19783_s1 = inlined_call_operand.hbm [shape: bf16[512,128], index: 1, kind: input, shape index: {}]   ;;  %s19784_s2 = inlined_call_operand.hbm [shape: bf16[6656,128], index: 2, kind: input, shape index: {}]   ;;  %s19785_s3 = inlined_call_operand.hbm [shape: bf16[128,256], index: 3, kind: input, shape index: {}]   ;;  %s19786_s4 = inlined_call_operand.hbm [shape: bf16[1664,256], index: 4, kind: input, shape index: {}]   ;;  %s19787_s5 = inlined_call_operand.hbm [shape: bf16[256,128], index: 5, kind: input, shape index: {}]   ;;  %s19788_s6 = inlined_call_operand.hbm [shape: bf16[3328,128], index: 6, kind: input, shape index: {}]   ;;  %s19789_s7 = inlined_call_operand.hbm [shape: bf16[128,128], index: 7, kind: input, shape index: {}]   ;;  %s19790_s8 = inlined_call_operand.hbm [shape: bf16[1664,128], index: 8, kind: input, shape index: {}]   ;;  %s19791_s9 = inlined_call_operand.hbm [shape: bf16[128,128], index: 9, kind: input, shape index: {}]   ;;  %s19792_s10 = inlined_call_operand.hbm [shape: f32[1,128], index: 10, kind: input, shape index: {}]   ;;  %s19793_s11 = inlined_call_operand.vmem [shape: bf16[128,64], index: 11, kind: input, shape index: {}]   ;;  %s19794_s12 = inlined_call_operand.hbm [shape: f32[1,64], index: 12, kind: input, shape index: {}]   ;;  %s19795_s13 = inlined_call_operand.hbm [shape: bf16[64,128], index: 13, kind: input, shape index: {}]   ;;  %s19796_s14 = inlined_call_operand.hbm [shape: f32[1,128], index: 14, kind: input, shape index: {}]   ;;  %s19797_s15 = inlined_call_operand.vmem [shape: f32[8,128], index: 15, kind: output, shape index: {}]  }
   0x1   :  { %19818 = sst [smem:[#allocation35_spill]] %s19797_s15 }
   0x2   :  { %20 = vsyncpa [#allocation3], 0 }
   0x3   :  { %21 = vsyncpa [#allocation5], 0 }
   0x4   :  { %22 = vsyncpa [#allocation8], 0 }
   0x5   :  { %23 = vsyncpa [#allocation11], 0 }
   0x6   :  { %24 = vsyncpa [#allocation14], 0 }
   0x7   :  { %25 = vsyncpa [#allocation17], 0 }
   0x8   :  { %26 = vsyncpa [#allocation20], 0  ;;  %s17035_s18 = smov [#allocation4]   ;;  %s16735_s22 = scalar_lea.hbm %s19784_s2, 53248 }
   0x9   :  { %s46_s19 = sshll.u32 %s17035_s18, 4  ;;  %p16736_p0 = scmp.ne.s32.totalorder %s19784_s2, %s16735_s22  ;;  %s47_s19 = int_to_ptr.vmem [resolvable:$true] %s46_s19 }
   0xa   :  { %p16739_p1 = scmp.lt.u32.totalorder %s16735_s22, %s19784_s2 }
   0xc   :  { %p16741_p2 = pnand %p16739_p1, %p16736_p0 }
   0xe   :  { %16744 = shalt.err (!%p16741_p2)
}
   0xf   :  { %s16745_s27 = scalar_lea.vmem %s47_s19, 53248  ;;  %p16750_p4 = scmp.lt.s32.totalorder %s47_s19, %s47_s19 }
  0x10   :  { %p16746_p3 = scmp.ne.s32.totalorder %s47_s19, %s16745_s27  ;;  %p16751_p5 = scmp.lt.s32.totalorder %s16745_s27, %s16745_s27 }
  0x12   :  { %p16752_p6 = por %p16751_p5, %p16750_p4 }
  0x14   :  { %p16753_p7 = pnand %p16752_p6, %p16746_p3 }
  0x16   :  { %16756 = shalt.err (!%p16753_p7)
}
  0x17   :  { %s17036_s28 = smov 64   ;;  %s17037_s29 = smov 4  }
  0x18   :  { %52 = dma.hbm_to_vmem [thread:$0]  %s19784_s2, 53248, %s47_s19, [#allocation5], %s17036_s28, %s17036_s28, %s17037_s29  }
  0x19   :  { %s17038_s17 = smov [#allocation7]   ;;  %s17039_s20 = smov [#allocation10]  }
  0x1a   :  { %s70_s18 = sshll.u32 %s17038_s17, 4  ;;  %s94_s21 = sshll.u32 %s17039_s20, 4  ;;  %s71_s18 = int_to_ptr.vmem [resolvable:$true] %s70_s18  ;;  %s95_s21 = int_to_ptr.vmem [resolvable:$true] %s94_s21 }
  0x1b   :  { %s16757_s24 = scalar_lea.hbm %s19786_s4, 26624 }
  0x1c   :  { %p16758_p8 = scmp.ne.s32.totalorder %s19786_s4, %s16757_s24  ;;  %p16761_p9 = scmp.lt.u32.totalorder %s16757_s24, %s19786_s4 }
  0x1e   :  { %p16763_p10 = pnand %p16761_p9, %p16758_p8 }
  0x20   :  { %16766 = shalt.err (!%p16763_p10)
}
  0x21   :  { %s16767_s2 = scalar_lea.vmem %s71_s18, 26624  ;;  %p16772_p12 = scmp.lt.s32.totalorder %s71_s18, %s71_s18 }
  0x22   :  { %p16768_p11 = scmp.ne.s32.totalorder %s71_s18, %s16767_s2  ;;  %p16773_p13 = scmp.lt.s32.totalorder %s16767_s2, %s16767_s2 }
  0x24   :  { %p16774_p0 = por %p16773_p13, %p16772_p12 }
  0x26   :  { %p16775_p1 = pnand %p16774_p0, %p16768_p11 }
  0x28   :  { %16778 = shalt.err (!%p16775_p1)
}
  0x29   :  { %s17040_s19 = smov 128   ;;  %s17041_s30 = smov 8  }
  0x2a   :  { %76 = dma.hbm_to_vmem [thread:$0]  %s19786_s4, 26624, %s71_s18, [#allocation8], %s17040_s19, %s17040_s19, %s17041_s30  }
  0x2b   :  { %s16779_s22 = scalar_lea.hbm %s19788_s6, 26624 }
  0x2c   :  { %p16780_p2 = scmp.ne.s32.totalorder %s19788_s6, %s16779_s22  ;;  %p16783_p3 = scmp.lt.u32.totalorder %s16779_s22, %s19788_s6 }
  0x2e   :  { %p16785_p4 = pnand %p16783_p3, %p16780_p2 }
  0x30   :  { %16788 = shalt.err (!%p16785_p4)
}
  0x31   :  { %s16789_s27 = scalar_lea.vmem %s95_s21, 26624  ;;  %p16794_p6 = scmp.lt.s32.totalorder %s95_s21, %s95_s21 }
  0x32   :  { %p16790_p5 = scmp.ne.s32.totalorder %s95_s21, %s16789_s27  ;;  %p16795_p7 = scmp.lt.s32.totalorder %s16789_s27, %s16789_s27 }
  0x34   :  { %p16796_p8 = por %p16795_p7, %p16794_p6 }
  0x36   :  { %p16797_p9 = pnand %p16796_p8, %p16790_p5 }
  0x38   :  { %16800 = shalt.err (!%p16797_p9)
}
  0x39   :  { %100 = dma.hbm_to_vmem [thread:$0]  %s19788_s6, 26624, %s95_s21, [#allocation11], %s17036_s28, %s17036_s28, %s17037_s29  }
  0x3a   :  { %s17042_s2 = smov [#allocation13]   ;;  %s17043_s17 = smov [#allocation16]  }
  0x3b   :  { %s118_s16 = sshll.u32 %s17042_s2, 4  ;;  %s143_s15 = sshll.u32 %s17043_s17, 4  ;;  %s119_s16 = int_to_ptr.vmem [resolvable:$true] %s118_s16  ;;  %s144_s15 = int_to_ptr.vmem [resolvable:$true] %s143_s15 }
  0x3c   :  { %s16801_s23 = scalar_lea.hbm %s19790_s8, 13312 }
  0x3d   :  { %p16802_p10 = scmp.ne.s32.totalorder %s19790_s8, %s16801_s23  ;;  %p16805_p11 = scmp.lt.u32.totalorder %s16801_s23, %s19790_s8 }
  0x3f   :  { %p16807_p12 = pnand %p16805_p11, %p16802_p10 }
  0x41   :  { %16810 = shalt.err (!%p16807_p12)
}
  0x42   :  { %s16811_s6 = scalar_lea.vmem %s119_s16, 13312  ;;  %p16816_p0 = scmp.lt.s32.totalorder %s119_s16, %s119_s16 }
  0x43   :  { %p16812_p13 = scmp.ne.s32.totalorder %s119_s16, %s16811_s6  ;;  %p16817_p1 = scmp.lt.s32.totalorder %s16811_s6, %s16811_s6 }
  0x45   :  { %p16818_p2 = por %p16817_p1, %p16816_p0 }
  0x47   :  { %p16819_p3 = pnand %p16818_p2, %p16812_p13 }
  0x49   :  { %16822 = shalt.err (!%p16819_p3)
}
  0x4a   :  { %124 = dma.hbm_to_vmem [thread:$0]  %s19790_s8, 13312, %s119_s16, [#allocation14], %s17036_s28, %s17036_s28, %s17037_s29  }
  0x4b   :  { %s16823_s17 = scalar_lea.hbm %s19792_s10, 16 }
  0x4c   :  { %p16824_p4 = scmp.ne.s32.totalorder %s19792_s10, %s16823_s17  ;;  %p16827_p5 = scmp.lt.u32.totalorder %s16823_s17, %s19792_s10 }
  0x4e   :  { %p16829_p6 = pnand %p16827_p5, %p16824_p4 }
  0x50   :  { %16832 = shalt.err (!%p16829_p6)
}
  0x51   :  { %s16833_s25 = scalar_lea.vmem %s144_s15, 16  ;;  %s16837_s26 = scalar_lea.vmem %s144_s15, 32 }
  0x52   :  { %p16834_p7 = scmp.ne.s32.totalorder %s144_s15, %s16833_s25  ;;  %p16838_p8 = scmp.lt.s32.totalorder %s144_s15, %s144_s15 }
  0x53   :  { %p16839_p9 = scmp.lt.s32.totalorder %s16837_s26, %s16833_s25 }
  0x55   :  { %p16840_p10 = por %p16839_p9, %p16838_p8 }
  0x57   :  { %p16841_p11 = pnand %p16840_p10, %p16834_p7 }
  0x59   :  { %16844 = shalt.err (!%p16841_p11)
}
  0x5a   :  { %146 = dma.hbm_to_vmem [thread:$0]  %s19792_s10, 16, %s144_s15, [#allocation17]  }
  0x5b   :  { %s17044_s27 = smov [#allocation19]   ;;  %s17045_s21 = smov [#allocation2]  }
  0x5c   :  { %s164_s6 = sshll.u32 %s17044_s27, 4  ;;  %s34_s4 = sshll.u32 %s17045_s21, 4  ;;  %s165_s6 = int_to_ptr.vmem [resolvable:$true] %s164_s6  ;;  %s35_s4 = int_to_ptr.vmem [resolvable:$true] %s34_s4 }
  0x5d   :  { %s16845_s17 = scalar_lea.hbm %s19795_s13, 512 }
  0x5e   :  { %p16846_p12 = scmp.ne.s32.totalorder %s19795_s13, %s16845_s17  ;;  %p16849_p13 = scmp.lt.u32.totalorder %s16845_s17, %s19795_s13 }
  0x60   :  { %p16851_p0 = pnand %p16849_p13, %p16846_p12 }
  0x62   :  { %16854 = shalt.err (!%p16851_p0)
}
  0x63   :  { %s16855_s10 = scalar_lea.vmem %s165_s6, 512  ;;  %p16860_p2 = scmp.lt.s32.totalorder %s165_s6, %s165_s6 }
  0x64   :  { %p16856_p1 = scmp.ne.s32.totalorder %s165_s6, %s16855_s10  ;;  %p16861_p3 = scmp.lt.s32.totalorder %s16855_s10, %s16855_s10 }
  0x66   :  { %p16862_p4 = por %p16861_p3, %p16860_p2 }
  0x68   :  { %p16863_p5 = pnand %p16862_p4, %p16856_p1 }
  0x6a   :  { %16866 = shalt.err (!%p16863_p5)
}
  0x6b   :  { %170 = dma.hbm_to_vmem [thread:$0]  %s19795_s13, 512, %s165_s6, [#allocation20], %s17036_s28, %s17036_s28, %s17037_s29  }
  0x6c   :  { %s16867_s16 = scalar_lea.hbm %s19783_s1, 4096 }
  0x6d   :  { %p16868_p6 = scmp.ne.s32.totalorder %s19783_s1, %s16867_s16  ;;  %p16871_p7 = scmp.lt.u32.totalorder %s16867_s16, %s19783_s1 }
  0x6f   :  { %p16873_p8 = pnand %p16871_p7, %p16868_p6 }
  0x71   :  { %16876 = shalt.err (!%p16873_p8)
}
  0x72   :  { %s16877_s17 = scalar_lea.vmem %s35_s4, 4096  ;;  %p16882_p10 = scmp.lt.s32.totalorder %s35_s4, %s35_s4 }
  0x73   :  { %p16878_p9 = scmp.ne.s32.totalorder %s35_s4, %s16877_s17  ;;  %p16883_p11 = scmp.lt.s32.totalorder %s16877_s17, %s16877_s17 }
  0x75   :  { %p16884_p12 = por %p16883_p11, %p16882_p10 }
  0x77   :  { %p16885_p13 = pnand %p16884_p12, %p16878_p9 }
  0x79   :  { %16888 = shalt.err (!%p16885_p13)
}
  0x7a   :  { %40 = dma.hbm_to_vmem [thread:$0]  %s19783_s1, 4096, %s35_s4, [#allocation3], %s17036_s28, %s17036_s28, %s17037_s29  }
  0x7b   :  { %s17046_s20 = smov [#allocation6]   ;;  %s17047_s23 = smov [#allocation9]  }
  0x7c   :  { %s58_s22 = sshll.u32 %s17046_s20, 4  ;;  %s82_s24 = sshll.u32 %s17047_s23, 4  ;;  %s59_s22 = int_to_ptr.vmem [resolvable:$true] %s58_s22  ;;  %s83_s24 = int_to_ptr.vmem [resolvable:$true] %s82_s24 }
  0x7d   :  { %s16889_s25 = scalar_lea.hbm %s19785_s3, 2048 }
  0x7e   :  { %p16890_p0 = scmp.ne.s32.totalorder %s19785_s3, %s16889_s25  ;;  %p16893_p1 = scmp.lt.u32.totalorder %s16889_s25, %s19785_s3 }
  0x80   :  { %p16895_p2 = pnand %p16893_p1, %p16890_p0 }
  0x82   :  { %16898 = shalt.err (!%p16895_p2)
}
  0x83   :  { %s16899_s1 = scalar_lea.vmem %s59_s22, 2048  ;;  %p16904_p4 = scmp.lt.s32.totalorder %s59_s22, %s59_s22 }
  0x84   :  { %p16900_p3 = scmp.ne.s32.totalorder %s59_s22, %s16899_s1  ;;  %p16905_p5 = scmp.lt.s32.totalorder %s16899_s1, %s16899_s1 }
  0x86   :  { %p16906_p6 = por %p16905_p5, %p16904_p4 }
  0x88   :  { %p16907_p7 = pnand %p16906_p6, %p16900_p3 }
  0x8a   :  { %16910 = shalt.err (!%p16907_p7)
}
  0x8b   :  { %64 = dma.hbm_to_vmem [thread:$0]  %s19785_s3, 2048, %s59_s22, [#allocation5], %s17040_s19, %s17040_s19, %s17041_s30  }
  0x8c   :  { %s16911_s17 = scalar_lea.hbm %s19787_s5, 2048 }
  0x8d   :  { %p16912_p8 = scmp.ne.s32.totalorder %s19787_s5, %s16911_s17  ;;  %p16915_p9 = scmp.lt.u32.totalorder %s16911_s17, %s19787_s5 }
  0x8f   :  { %p16917_p10 = pnand %p16915_p9, %p16912_p8 }
  0x91   :  { %16920 = shalt.err (!%p16917_p10)
}
  0x92   :  { %s16921_s10 = scalar_lea.vmem %s83_s24, 2048  ;;  %p16926_p12 = scmp.lt.s32.totalorder %s83_s24, %s83_s24 }
  0x93   :  { %p16922_p11 = scmp.ne.s32.totalorder %s83_s24, %s16921_s10  ;;  %p16927_p13 = scmp.lt.s32.totalorder %s16921_s10, %s16921_s10 }
  0x95   :  { %p16928_p0 = por %p16927_p13, %p16926_p12 }
  0x97   :  { %p16929_p1 = pnand %p16928_p0, %p16922_p11 }
  0x99   :  { %16932 = shalt.err (!%p16929_p1)
}
  0x9a   :  { %88 = dma.hbm_to_vmem [thread:$0]  %s19787_s5, 2048, %s83_s24, [#allocation8], %s17036_s28, %s17036_s28, %s17037_s29  }
  0x9b   :  { %s17048_s30 = smov [#allocation12]   ;;  %s17049_s15 = smov [#allocation15]  }
  0x9c   :  { %s106_s22 = sshll.u32 %s17048_s30, 4  ;;  %s130_s25 = sshll.u32 %s17049_s15, 4  ;;  %s107_s22 = int_to_ptr.vmem [resolvable:$true] %s106_s22  ;;  %s131_s25 = int_to_ptr.vmem [resolvable:$true] %s130_s25 }
  0x9d   :  { %s16933_s16 = scalar_lea.hbm %s19789_s7, 1024 }
  0x9e   :  { %p16934_p2 = scmp.ne.s32.totalorder %s19789_s7, %s16933_s16  ;;  %p16937_p3 = scmp.lt.u32.totalorder %s16933_s16, %s19789_s7 }
  0xa0   :  { %p16939_p4 = pnand %p16937_p3, %p16934_p2 }
  0xa2   :  { %16942 = shalt.err (!%p16939_p4)
}
  0xa3   :  { %s16943_s5 = scalar_lea.vmem %s107_s22, 1024  ;;  %p16948_p6 = scmp.lt.s32.totalorder %s107_s22, %s107_s22 }
  0xa4   :  { %p16944_p5 = scmp.ne.s32.totalorder %s107_s22, %s16943_s5  ;;  %p16949_p7 = scmp.lt.s32.totalorder %s16943_s5, %s16943_s5 }
  0xa6   :  { %p16950_p8 = por %p16949_p7, %p16948_p6 }
  0xa8   :  { %p16951_p9 = pnand %p16950_p8, %p16944_p5 }
  0xaa   :  { %16954 = shalt.err (!%p16951_p9)
}
  0xab   :  { %112 = dma.hbm_to_vmem [thread:$0]  %s19789_s7, 1024, %s107_s22, [#allocation11], %s17036_s28, %s17036_s28, %s17037_s29  }
  0xac   :  { %s16955_s13 = scalar_lea.hbm %s19791_s9, 1024 }
  0xad   :  { %p16956_p10 = scmp.ne.s32.totalorder %s19791_s9, %s16955_s13  ;;  %p16959_p11 = scmp.lt.u32.totalorder %s16955_s13, %s19791_s9 }
  0xaf   :  { %p16961_p12 = pnand %p16959_p11, %p16956_p10 }
  0xb1   :  { %16964 = shalt.err (!%p16961_p12)
}
  0xb2   :  { %s16965_s3 = scalar_lea.vmem %s131_s25, 1024  ;;  %p16970_p0 = scmp.lt.s32.totalorder %s131_s25, %s131_s25 }
  0xb3   :  { %p16966_p13 = scmp.ne.s32.totalorder %s131_s25, %s16965_s3  ;;  %p16971_p1 = scmp.lt.s32.totalorder %s16965_s3, %s16965_s3 }
  0xb5   :  { %p16972_p2 = por %p16971_p1, %p16970_p0 }
  0xb7   :  { %p16973_p3 = pnand %p16972_p2, %p16966_p13 }
  0xb9   :  { %16976 = shalt.err (!%p16973_p3)
}
  0xba   :  { %136 = dma.hbm_to_vmem [thread:$0]  %s19791_s9, 1024, %s131_s25, [#allocation14], %s17036_s28, %s17036_s28, %s17037_s29  }
  0xbb   :  { %s17050_s30 = smov [#allocation18]   ;;  %s17051_s15 = smov [#allocation21]  }
  0xbc   :  { %s155_s22 = sshll.u32 %s17050_s30, 4  ;;  %s177_s26 = sshll.u32 %s17051_s15, 4  ;;  %s156_s22 = int_to_ptr.vmem [resolvable:$true] %s155_s22  ;;  %s178_s26 = int_to_ptr.vmem [resolvable:$true] %s177_s26 }
  0xbd   :  { %s16977_s27 = scalar_lea.hbm %s19794_s12, 16 }
  0xbe   :  { %p16978_p4 = scmp.ne.s32.totalorder %s19794_s12, %s16977_s27  ;;  %p16981_p5 = scmp.lt.u32.totalorder %s16977_s27, %s19794_s12 }
  0xc0   :  { %p16983_p6 = pnand %p16981_p5, %p16978_p4 }
  0xc2   :  { %16986 = shalt.err (!%p16983_p6)
}
  0xc3   :  { %s16987_s9 = scalar_lea.vmem %s156_s22, 16  ;;  %s16991_s28 = scalar_lea.vmem %s156_s22, 32 }
  0xc4   :  { %p16988_p7 = scmp.ne.s32.totalorder %s156_s22, %s16987_s9  ;;  %p16992_p8 = scmp.lt.s32.totalorder %s156_s22, %s156_s22 }
  0xc5   :  { %p16993_p9 = scmp.lt.s32.totalorder %s16991_s28, %s16987_s9 }
  0xc7   :  { %p16994_p10 = por %p16993_p9, %p16992_p8 }
  0xc9   :  { %p16995_p11 = pnand %p16994_p10, %p16988_p7 }
  0xcb   :  { %16998 = shalt.err (!%p16995_p11)
}
  0xcc   :  { %158 = dma.hbm_to_vmem [thread:$0]  %s19794_s12, 16, %s156_s22, [#allocation17]  }
  0xcd   :  { %s16999_s2 = scalar_lea.hbm %s19796_s14, 16 }
  0xce   :  { %p17000_p12 = scmp.ne.s32.totalorder %s19796_s14, %s16999_s2  ;;  %p17003_p13 = scmp.lt.u32.totalorder %s16999_s2, %s19796_s14 }
  0xd0   :  { %p17005_p0 = pnand %p17003_p13, %p17000_p12 }
  0xd2   :  { %17008 = shalt.err (!%p17005_p0)
}
  0xd3   :  { %s17009_s23 = scalar_lea.vmem %s178_s26, 16  ;;  %s17013_s10 = scalar_lea.vmem %s178_s26, 32 }
  0xd4   :  { %p17010_p1 = scmp.ne.s32.totalorder %s178_s26, %s17009_s23  ;;  %p17014_p2 = scmp.lt.s32.totalorder %s178_s26, %s178_s26 }
  0xd5   :  { %p17015_p3 = scmp.lt.s32.totalorder %s17013_s10, %s17009_s23 }
  0xd7   :  { %p17016_p4 = por %p17015_p3, %p17014_p2 }
  0xd9   :  { %p17017_p5 = pnand %p17016_p4, %p17010_p1 }
  0xdb   :  { %17020 = shalt.err (!%p17017_p5)
}
  0xdc   :  { %180 = dma.hbm_to_vmem [thread:$0]  %s19796_s14, 16, %s178_s26, [#allocation20]  }
  0xdd   :  { %17021 = dma.done.wait [#allocation3], 4096  }
  0xde   :  { %17022 = vsyncadd [#allocation3], 4294963200 }
  0xdf   :  { %17023 = dma.done.wait [#allocation5], 55296  }
  0xe0   :  { %17024 = vsyncadd [#allocation5], 4294912000 }
  0xe1   :  { %17025 = dma.done.wait [#allocation8], 28672  }
  0xe2   :  { %17026 = vsyncadd [#allocation8], 4294938624 }
  0xe3   :  { %17027 = dma.done.wait [#allocation11], 27648  }
  0xe4   :  { %17028 = vsyncadd [#allocation11], 4294939648 }
  0xe5   :  { %17029 = dma.done.wait [#allocation14], 14336  }
  0xe6   :  { %17030 = vsyncadd [#allocation14], 4294952960 }
  0xe7   :  { %17031 = dma.done.wait [#allocation17], 32  }
  0xe8   :  { %17032 = vsyncadd [#allocation17], 4294967264 }
  0xe9   :  { %17033 = dma.done.wait [#allocation20], 528  }
  0xea   :  { %17034 = vsyncadd [#allocation20], 4294966768  ;;  %v15539_v0 = vld [vmem:[#allocation4 + $0x40] sm:$0xff]   ;;  %v15543_v4 = vld [vmem:[#allocation4 + $0x48] sm:$0xff]   ;;  %v19798_v33 = vmov 0.0   ;;  %s19840_s26 = sld [smem:[#allocation35_spill]] }
  0xeb   :  { %v15540_v1 = vld [vmem:[#allocation4 + $0xc0] sm:$0xff]   ;;  %14297 = vmatprep.subr.bf16.mxu0 %v15539_v0  ;;  %v15544_v5 = vld [vmem:[#allocation4 + $0xc8] sm:$0xff]   ;;  %v15547_v8 = vld [vmem:[#allocation4 + $0x50] sm:$0xff]  }
  0xec   :  { %v15541_v2 = vld [vmem:[#allocation4] sm:$0xff]   ;;  %14319 = vmatprep.subr.bf16.mxu1 %v15540_v1  ;;  %v15545_v6 = vld [vmem:[#allocation4 + $0x8] sm:$0xff]   ;;  %v15548_v9 = vld [vmem:[#allocation4 + $0xd0] sm:$0xff]  }
  0xed   :  { %v15542_v3 = vld [vmem:[#allocation4 + $0x80] sm:$0xff]   ;;  %14298 = vmatpush3.bf16.msra.mxu0 %v15541_v2  ;;  %v15546_v7 = vld [vmem:[#allocation4 + $0x88] sm:$0xff]   ;;  %v15549_v10 = vld [vmem:[#allocation4 + $0x10] sm:$0xff]  }
  0xee   :  { %14320 = vmatpush3.bf16.msra.mxu1 %v15542_v3  ;;  %14299 = vmatprep.subr.bf16.mxu0 %v15543_v4  ;;  %v15550_v11 = vld [vmem:[#allocation4 + $0x90] sm:$0xff]   ;;  %v15551_v12 = vld [vmem:[#allocation4 + $0x58] sm:$0xff]   ;;  %v15555_v16 = vld [vmem:[#allocation4 + $0x60] sm:$0xff]  }
  0xef   :  { %14321 = vmatprep.subr.bf16.mxu1 %v15544_v5  ;;  %v15552_v13 = vld [vmem:[#allocation4 + $0xd8] sm:$0xff]   ;;  %v15556_v17 = vld [vmem:[#allocation4 + $0xe0] sm:$0xff]   ;;  %v15559_v20 = vld [vmem:[#allocation4 + $0x68] sm:$0xff]  }
  0xf0   :  { %v15553_v14 = vld [vmem:[#allocation4 + $0x18] sm:$0xff]   ;;  %v15557_v18 = vld [vmem:[#allocation4 + $0x20] sm:$0xff]   ;;  %v15560_v21 = vld [vmem:[#allocation4 + $0xe8] sm:$0xff]  }
  0xf1   :  { %14300 = vmatpush3.bf16.msra.mxu0 %v15545_v6  ;;  %v15554_v15 = vld [vmem:[#allocation4 + $0x98] sm:$0xff]   ;;  %v15558_v19 = vld [vmem:[#allocation4 + $0xa0] sm:$0xff]   ;;  %v15561_v22 = vld [vmem:[#allocation4 + $0x28] sm:$0xff]  }
  0xf2   :  { %14322 = vmatpush3.bf16.msra.mxu1 %v15546_v7  ;;  %14301 = vmatprep.subr.bf16.mxu0 %v15547_v8  ;;  %v15562_v23 = vld [vmem:[#allocation4 + $0xa8] sm:$0xff]   ;;  %v15563_v24 = vld [vmem:[#allocation4 + $0x70] sm:$0xff]   ;;  %v15567_v28 = vld [vmem:[#allocation4 + $0x78] sm:$0xff]  }
  0xf3   :  { %14323 = vmatprep.subr.bf16.mxu1 %v15548_v9  ;;  %v15564_v25 = vld [vmem:[#allocation4 + $0xf0] sm:$0xff]   ;;  %v15568_v29 = vld [vmem:[#allocation4 + $0xf8] sm:$0xff]   ;;  %v17324_v32 = vld [vmem:[%s19782_s0 + $0x8] sm:$0xff] }
  0xf4   :  { %v15565_v26 = vld [vmem:[#allocation4 + $0x30] sm:$0xff]   ;;  %v15569_v30 = vld [vmem:[#allocation4 + $0x38] sm:$0xff]   ;;  %vm318_vm0 = vcmp.ge.f32.partialorder %v17324_v32, -0.3  ;;  %vm330_vm1 = vcmp.ge.f32.partialorder %v17324_v32, -0.2 }
  0xf5   :  { %14302 = vmatpush3.bf16.msra.mxu0 %v15549_v10  ;;  %v15566_v27 = vld [vmem:[#allocation4 + $0xb0] sm:$0xff]   ;;  %v15570_v31 = vld [vmem:[#allocation4 + $0xb8] sm:$0xff]   ;;  %vm342_vm2 = vcmp.ge.f32.partialorder %v17324_v32, -0.1  ;;  %v13002_v34 = vsel %vm318_vm0, 1.0, %v19798_v33  ;;  %v13006_v35 = vsel %vm330_vm1, 1.0, %v19798_v33 }
  0xf6   :  { %14324 = vmatpush3.bf16.msra.mxu1 %v15550_v11  ;;  %14303 = vmatprep.subr.bf16.mxu0 %v15551_v12  ;;  %v13010_v36 = vsel %vm342_vm2, 1.0, %v19798_v33  ;;  %vm354_vm3 = vcmp.ge.f32.partialorder %v17324_v32, 0.0  ;;  %v15571_v37 = vld [vmem:[#allocation4 + $0x140] sm:$0xff]   ;;  %vm366_vm4 = vcmp.ge.f32.partialorder %v17324_v32, 0.1  ;;  %v522_v41 = vsub.f32 %v13002_v34, %v13006_v35  ;;  %v17361_v59 = vld [vmem:[%s19782_s0 + $0x18] sm:$0xff] }
  0xf7   :  { %14325 = vmatprep.subr.bf16.mxu1 %v15552_v13  ;;  %v13014_v38 = vsel %vm354_vm3, 1.0, %v19798_v33  ;;  %v15572_v39 = vld [vmem:[#allocation4 + $0x1c0] sm:$0xff]   ;;  %v17336_v40 = vsel %vm366_vm4, 1.0, %v19798_v33  ;;  %v526_v43 = vsub.f32 %v13006_v35, %v13010_v36  ;;  %v13070_v45 = vadd.f32 0.3, %v17324_v32 }
  0xf8   :  { %v530_v42 = vsub.f32 %v13010_v36, %v13014_v38  ;;  %v17339_v44 = vsub.f32 %v13014_v38, %v17336_v40  ;;  %v17343_v46 = vadd.f32 0.2, %v17324_v32  ;;  %v17346_v47 = vadd.f32 0.1, %v17324_v32 }
  0xf9   :  { %14304 = vmatpush3.bf16.msra.mxu0 %v15553_v14  ;;  %v17349_v48 = vadd.f32 -0.1, %v17324_v32  ;;  %v678_v49 = vmul.f32 -10.0, %v17324_v32  ;;  %v958_v50 = vmul.f32 -5.0, %v17324_v32  ;;  %v650_v51 = vmul.f32 9.999999, %v13070_v45 }
  0xfa   :  { %14326 = vmatpush3.bf16.msra.mxu1 %v15554_v15  ;;  %14305 = vmatprep.subr.bf16.mxu0 %v15555_v16  ;;  %v670_v52 = vmul.f32 10.0, %v17343_v46  ;;  %v950_v53 = vmul.f32 4.9999995, %v13070_v45  ;;  %v970_v54 = vmul.f32 5.0, %v17343_v46  ;;  %v658_v55 = vmul.f32 -10.0, %v17346_v47 }
  0xfb   :  { %14327 = vmatprep.subr.bf16.mxu1 %v15556_v17  ;;  %v682_v56 = vmul.f32 %v678_v49, %v530_v42  ;;  %v690_v57 = vmul.f32 10.0, %v17346_v47  ;;  %v698_v58 = vmul.f32 -10.0, %v17349_v48  ;;  %v654_v60 = vmul.f32 %v650_v51, %v522_v41 }
  0xfc   :  { %v674_v61 = vmul.f32 %v670_v52, %v526_v43  ;;  %v978_v62 = vmul.f32 -5.0, %v17349_v48  ;;  %v1230_v63 = vmul.f32 3.3333333, %v13070_v45  ;;  %v662_v0 = vmul.f32 %v658_v55, %v526_v43  ;;  %v17408_v43 = vld [vmem:[%s19782_s0] sm:$0xff] }
  0xfd   :  { %14306 = vmatpush3.bf16.msra.mxu0 %v15557_v18  ;;  %v694_v1 = vmul.f32 %v690_v57, %v530_v42  ;;  %v702_v2 = vmul.f32 %v698_v58, %v17339_v44  ;;  %v1238_v3 = vmul.f32 -3.3333333, %v17349_v48  ;;  %vm320_vm5 = vcmp.ge.f32.partialorder %v17361_v59, -0.3 }
  0xfe   :  { %14328 = vmatpush3.bf16.msra.mxu1 %v15558_v19  ;;  %14307 = vmatprep.subr.bf16.mxu0 %v15559_v20  ;;  %v686_v4 = vadd.f32 %v682_v56, %v674_v61  ;;  %vm332_vm6 = vcmp.ge.f32.partialorder %v17361_v59, -0.2  ;;  %vm344_vm7 = vcmp.ge.f32.partialorder %v17361_v59, -0.1  ;;  %v666_v5 = vadd.f32 %v662_v0, %v654_v60 }
  0xff   :  { %14329 = vmatprep.subr.bf16.mxu1 %v15560_v21  ;;  %v17369_v6 = vadd.f32 %v702_v2, %v694_v1  ;;  %v13004_v7 = vsel %vm320_vm5, 1.0, %v19798_v33  ;;  %v13008_v8 = vsel %vm332_vm6, 1.0, %v19798_v33  ;;  %v13012_v11 = vsel %vm344_vm7, 1.0, %v19798_v33 }
 0x100   :  { %v962_v9 = vmul.f32 %v958_v50, %v686_v4  ;;  %v974_v10 = vmul.f32 %v970_v54, %v686_v4  ;;  %vm356_vm8 = vcmp.ge.f32.partialorder %v17361_v59, 0.0  ;;  %v954_v12 = vmul.f32 %v950_v53, %v666_v5 }
 0x101   :  { %14308 = vmatpush3.bf16.msra.mxu0 %v15561_v22  ;;  %v982_v13 = vmul.f32 %v978_v62, %v17369_v6  ;;  %v13016_v14 = vsel %vm356_vm8, 1.0, %v19798_v33  ;;  %vm368_vm9 = vcmp.ge.f32.partialorder %v17361_v59, 0.1  ;;  %v524_v18 = vsub.f32 %v13004_v7, %v13008_v8 }
 0x102   :  { %14330 = vmatpush3.bf16.msra.mxu1 %v15562_v23  ;;  %14309 = vmatprep.subr.bf16.mxu0 %v15563_v24  ;;  %v17379_v15 = vsel %vm368_vm9, 1.0, %v19798_v33  ;;  %v966_v16 = vadd.f32 %v962_v9, %v954_v12  ;;  %v528_v19 = vsub.f32 %v13008_v8, %v13012_v11  ;;  %v532_v20 = vsub.f32 %v13012_v11, %v13016_v14 }
 0x103   :  { %14331 = vmatprep.subr.bf16.mxu1 %v15564_v25  ;;  %v17381_v17 = vadd.f32 %v982_v13, %v974_v10  ;;  %v17384_v21 = vsub.f32 %v13016_v14, %v17379_v15  ;;  %v13072_v22 = vadd.f32 0.3, %v17361_v59  ;;  %v17388_v23 = vadd.f32 0.2, %v17361_v59 }
 0x104   :  { %vm378_vm10 = vcmp.ge.f32.partialorder %v17324_v32, 0.2  ;;  %v1234_v24 = vmul.f32 %v1230_v63, %v966_v16  ;;  %vm380_vm11 = vcmp.ge.f32.partialorder %v17361_v59, 0.2  ;;  %v960_v42 = vmul.f32 -5.0, %v17361_v59 }
 0x105   :  { %14310 = vmatpush3.bf16.msra.mxu0 %v15565_v26  ;;  %v1242_v25 = vmul.f32 %v1238_v3, %v17381_v17  ;;  %v17394_v26 = vadd.f32 0.1, %v17361_v59  ;;  %v972_v53 = vmul.f32 5.0, %v17388_v23  ;;  %v1232_v55 = vmul.f32 3.3333333, %v13072_v22 }
 0x106   :  { %14332 = vmatpush3.bf16.msra.mxu1 %v15566_v27  ;;  %14311 = vmatprep.subr.bf16.mxu0 %v15567_v28  ;;  %v17397_v27 = vadd.f32 -0.1, %v17361_v59  ;;  %v652_v28 = vmul.f32 9.999999, %v13072_v22  ;;  %vm317_vm12 = vcmp.ge.f32.partialorder %v17408_v43, -0.3 }
 0x107   :  { %14333 = vmatprep.subr.bf16.mxu1 %v15568_v29  ;;  %v672_v29 = vmul.f32 10.0, %v17388_v23  ;;  %v1246_v34 = vadd.f32 %v1242_v25, %v1234_v24  ;;  %v660_v35 = vmul.f32 -10.0, %v17394_v26  ;;  %v692_v36 = vmul.f32 10.0, %v17394_v26 }
 0x108   :  { %v656_v38 = vmul.f32 %v652_v28, %v524_v18  ;;  %v980_v54 = vmul.f32 -5.0, %v17397_v27  ;;  %v1240_v58 = vmul.f32 -3.3333333, %v17397_v27  ;;  %v13001_v62 = vsel %vm317_vm12, 1.0, %v19798_v33 }
 0x109   :  { %14312 = vmatpush3.bf16.msra.mxu0 %v15569_v30  ;;  %v680_v30 = vmul.f32 -10.0, %v17361_v59  ;;  %v1490_v45 = vpack.c.bf16 %v1246_v34, %v1246_v34  ;;  %v664_v49 = vmul.f32 %v660_v35, %v528_v19  ;;  %v696_v50 = vmul.f32 %v692_v36, %v532_v20 }
 0x10a   :  { %14334 = vmatpush3.bf16.msra.mxu1 %v15570_v31  ;;  %14341 = vmatprep.subr.bf16.mxu0 %v15571_v37  ;;  %v952_v31 = vmul.f32 4.9999995, %v13072_v22  ;;  %v700_v37 = vmul.f32 -10.0, %v17397_v27  ;;  %vm329_vm13 = vcmp.ge.f32.partialorder %v17408_v43, -0.2  ;;  %vm353_vm15 = vcmp.ge.f32.partialorder %v17408_v43, 0.0 }
 0x10b   :  { %14363 = vmatprep.subr.bf16.mxu1 %v15572_v39  ;;  %v676_v39 = vmul.f32 %v672_v29, %v528_v19  ;;  %v684_v41 = vmul.f32 %v680_v30, %v532_v20  ;;  %4901 = vmatprep.mubr.bf16.mxu0 %v1490_v45  ;;  %v668_v56 = vadd.f32 %v664_v49, %v656_v38  ;;  %v13005_v1 = vsel %vm329_vm13, 1.0, %v19798_v33 }
 0x10c   :  { %v704_v51 = vmul.f32 %v700_v37, %v17384_v21  ;;  %vm341_vm14 = vcmp.ge.f32.partialorder %v17408_v43, -0.1  ;;  %vm365_vm0 = vcmp.ge.f32.partialorder %v17408_v43, 0.1  ;;  %v13013_v5 = vsel %vm353_vm15, 1.0, %v19798_v33 }
 0x10d   :  { %v688_v52 = vadd.f32 %v684_v41, %v676_v39  ;;  %v956_v63 = vmul.f32 %v952_v31, %v668_v56  ;;  %v13009_v2 = vsel %vm341_vm14, 1.0, %v19798_v33  ;;  %v17429_v7 = vsel %vm365_vm0, 1.0, %v19798_v33  ;;  %v17464_v39 = vld [vmem:[%s19782_s0 + $0x10] sm:$0xff] }
 0x10e   :  { %v17413_v57 = vadd.f32 %v704_v51, %v696_v50  ;;  %v17434_v8 = vsel %vm378_vm10, 1.0, %v19798_v33  ;;  %v17439_v9 = vsel %vm380_vm11, 1.0, %v19798_v33  ;;  %v521_v10 = vsub.f32 %v13001_v62, %v13005_v1 }
 0x10f   :  { %v964_v60 = vmul.f32 %v960_v42, %v688_v52  ;;  %v976_v61 = vmul.f32 %v972_v53, %v688_v52  ;;  %v525_v13 = vsub.f32 %v13005_v1, %v13009_v2  ;;  %v529_v14 = vsub.f32 %v13009_v2, %v13013_v5 }
 0x110   :  { %v984_v0 = vmul.f32 %v980_v54, %v17413_v57  ;;  %v17443_v16 = vsub.f32 %v13013_v5, %v17429_v7  ;;  %v13069_v18 = vadd.f32 0.3, %v17408_v43  ;;  %v17447_v19 = vadd.f32 0.2, %v17408_v43 }
 0x111   :  { %v968_v3 = vadd.f32 %v964_v60, %v956_v63  ;;  %v17450_v20 = vadd.f32 0.1, %v17408_v43  ;;  %v17453_v24 = vadd.f32 -0.1, %v17408_v43  ;;  %v677_v25 = vmul.f32 -10.0, %v17408_v43 }
 0x112   :  { %v17425_v4 = vadd.f32 %v984_v0, %v976_v61  ;;  %v957_v28 = vmul.f32 -5.0, %v17408_v43  ;;  %v649_v29 = vmul.f32 9.999999, %v13069_v18  ;;  %v669_v31 = vmul.f32 10.0, %v17447_v19 }
 0x113   :  { %v1236_v11 = vmul.f32 %v1232_v55, %v968_v3  ;;  %v657_v30 = vmul.f32 -10.0, %v17450_v20  ;;  %v689_v34 = vmul.f32 10.0, %v17450_v20  ;;  %v681_v36 = vmul.f32 %v677_v25, %v529_v14 }
 0x114   :  { %v1244_v12 = vmul.f32 %v1240_v58, %v17425_v4  ;;  %v697_v37 = vmul.f32 -10.0, %v17453_v24  ;;  %v949_v38 = vmul.f32 4.9999995, %v13069_v18  ;;  %v653_v41 = vmul.f32 %v649_v29, %v521_v10 }
 0x115   :  { %v661_v42 = vmul.f32 %v657_v30, %v525_v13  ;;  %v673_v45 = vmul.f32 %v669_v31, %v525_v13  ;;  %v693_v49 = vmul.f32 %v689_v34, %v529_v14  ;;  %v969_v51 = vmul.f32 5.0, %v17447_v19 }
 0x116   :  { %v1248_v22 = vadd.f32 %v1244_v12, %v1236_v11  ;;  %v701_v50 = vmul.f32 %v697_v37, %v17443_v16  ;;  %v977_v52 = vmul.f32 -5.0, %v17453_v24  ;;  %v1229_v53 = vmul.f32 3.3333333, %v13069_v18 }
 0x117   :  { %v665_v54 = vadd.f32 %v661_v42, %v653_v41  ;;  %v685_v55 = vadd.f32 %v681_v36, %v673_v45  ;;  %v1237_v56 = vmul.f32 -3.3333333, %v17453_v24  ;;  %vm319_vm1 = vcmp.ge.f32.partialorder %v17464_v39, -0.3 }
 0x118   :  { %v1492_v35 = vpack.c.bf16 %v1248_v22, %v1248_v22  ;;  %v17471_v58 = vadd.f32 %v701_v50, %v693_v49  ;;  %v13003_v60 = vsel %vm319_vm1, 1.0, %v19798_v33  ;;  %vm331_vm2 = vcmp.ge.f32.partialorder %v17464_v39, -0.2 }
 0x119   :  { %vm343_vm3 = vcmp.ge.f32.partialorder %v17464_v39, -0.1  ;;  %v953_v61 = vmul.f32 %v949_v38, %v665_v54  ;;  %v961_v62 = vmul.f32 %v957_v28, %v685_v55  ;;  %v973_v63 = vmul.f32 %v969_v51, %v685_v55  ;;  %v15573_v51 = vld [vmem:[#allocation4 + $0x100] sm:$0xff]  }
 0x11a   :  { %4941 = vmatprep.mubr.bf16.mxu1 %v1492_v35  ;;  %v13007_v0 = vsel %vm331_vm2, 1.0, %v19798_v33  ;;  %v981_v1 = vmul.f32 %v977_v52, %v17471_v58  ;;  %v13011_v2 = vsel %vm343_vm3, 1.0, %v19798_v33  ;;  %vm355_vm4 = vcmp.ge.f32.partialorder %v17464_v39, 0.0  ;;  %v15575_v52 = vld [vmem:[#allocation4 + $0x148] sm:$0xff]  }
 0x11b   :  { %vm367_vm5 = vcmp.ge.f32.partialorder %v17464_v39, 0.1  ;;  %vm377_vm6 = vcmp.ge.f32.partialorder %v17408_v43, 0.2  ;;  %v965_v3 = vadd.f32 %v961_v62, %v953_v61  ;;  %v13015_v5 = vsel %vm355_vm4, 1.0, %v19798_v33 }
 0x11c   :  { %v17484_v10 = vsel %vm367_vm5, 1.0, %v19798_v33  ;;  %v17486_v11 = vadd.f32 %v981_v1, %v973_v63  ;;  %vm379_vm7 = vcmp.ge.f32.partialorder %v17464_v39, 0.2  ;;  %v523_v13 = vsub.f32 %v13003_v60, %v13007_v0 }
 0x11d   :  { %v1233_v12 = vmul.f32 %v1229_v53, %v965_v3  ;;  %v527_v14 = vsub.f32 %v13007_v0, %v13011_v2  ;;  %v531_v18 = vsub.f32 %v13011_v2, %v13015_v5  ;;  %v13071_v25 = vadd.f32 0.3, %v17464_v39 }
 0x11e   :  { %v1241_v22 = vmul.f32 %v1237_v56, %v17486_v11  ;;  %v17492_v28 = vadd.f32 0.2, %v17464_v39  ;;  %v17495_v29 = vadd.f32 0.1, %v17464_v39  ;;  %v17498_v30 = vsub.f32 %v13015_v5, %v17484_v10  ;;  %v15577_v5 = vld [vmem:[#allocation4 + $0x108] sm:$0xff]  }
 0x11f   :  { %v17501_v31 = vadd.f32 -0.1, %v17464_v39  ;;  %v679_v34 = vmul.f32 -10.0, %v17464_v39  ;;  %v959_v35 = vmul.f32 -5.0, %v17464_v39  ;;  %v651_v37 = vmul.f32 9.999999, %v13071_v25 }
 0x120   :  { %v1245_v36 = vadd.f32 %v1241_v22, %v1233_v12  ;;  %v659_v38 = vmul.f32 -10.0, %v17495_v29  ;;  %v671_v41 = vmul.f32 10.0, %v17492_v28  ;;  %v691_v45 = vmul.f32 10.0, %v17495_v29  ;;  %v15579_v12 = vld [vmem:[#allocation4 + $0x150] sm:$0xff]  }
 0x121   :  { %v683_v42 = vmul.f32 %v679_v34, %v531_v18  ;;  %v699_v49 = vmul.f32 -10.0, %v17501_v31  ;;  %v951_v50 = vmul.f32 4.9999995, %v13071_v25  ;;  %v655_v54 = vmul.f32 %v651_v37, %v523_v13 }
 0x122   :  { %v1489_v53 = vpack.c.bf16 %v1245_v36, %v1245_v36  ;;  %v663_v55 = vmul.f32 %v659_v38, %v527_v14  ;;  %v675_v56 = vmul.f32 %v671_v41, %v527_v14  ;;  %v695_v60 = vmul.f32 %v691_v45, %v531_v18 }
 0x123   :  { %v703_v61 = vmul.f32 %v699_v49, %v17498_v30  ;;  %v971_v62 = vmul.f32 5.0, %v17492_v28  ;;  %v979_v63 = vmul.f32 -5.0, %v17501_v31  ;;  %v17515_v0 = vsel %vm377_vm6, 1.0, %v19798_v33  ;;  %v15581_v49 = vld [vmem:[#allocation4 + $0x110] sm:$0xff]  }
 0x124   :  { %4902 = vmatmul.mubr.bf16.vlgmr.msra.gmra.mrb[0].mxu0 %v1489_v53  ;;  %v17520_v1 = vsel %vm379_vm7, 1.0, %v19798_v33  ;;  %v667_v2 = vadd.f32 %v663_v55, %v655_v54  ;;  %v687_v3 = vadd.f32 %v683_v42, %v675_v56  ;;  %v1231_v34 = vmul.f32 3.3333333, %v13071_v25 }
 0x125   :  { %v17522_v13 = vadd.f32 %v703_v61, %v695_v60  ;;  %14342 = vmatpush3.bf16.msra.mxu0 %v15573_v51  ;;  %v1239_v37 = vmul.f32 -3.3333333, %v17501_v31  ;;  %v710_v41 = vmul.f32 10.0, %v17324_v32  ;;  %v990_v45 = vmul.f32 5.0, %v17346_v47 }
 0x126   :  { %v955_v14 = vmul.f32 %v951_v50, %v667_v2  ;;  %v963_v18 = vmul.f32 %v959_v35, %v687_v3  ;;  %v975_v22 = vmul.f32 %v971_v62, %v687_v3  ;;  %14343 = vmatprep.subr.bf16.mxu0 %v15575_v52  ;;  %v712_v51 = vmul.f32 10.0, %v17361_v59  ;;  %v15583_v52 = vld [vmem:[#allocation4 + $0x158] sm:$0xff]  }
 0x127   :  { %v983_v36 = vmul.f32 %v979_v63, %v17522_v13  ;;  %v17533_v35 = vsub.f32 %v17336_v40, %v17434_v8  ;;  %v17537_v25 = vsub.f32 %v17379_v15, %v17439_v9  ;;  %v17540_v53 = vadd.f32 -0.2, %v17324_v32  ;;  %v15585_v15 = vld [vmem:[#allocation4 + $0x118] sm:$0xff]  }
 0x128   :  { %v967_v38 = vadd.f32 %v963_v18, %v955_v14  ;;  %v17544_v54 = vsub.f32 %v17429_v7, %v17515_v0  ;;  %v17548_v55 = vsub.f32 %v17484_v10, %v17520_v1  ;;  %v17552_v56 = vadd.f32 -0.2, %v17361_v59 }
 0x129   :  { %v17528_v42 = vadd.f32 %v983_v36, %v975_v22  ;;  %14344 = vmatpush3.bf16.msra.mxu0 %v15577_v5  ;;  %v714_v60 = vmul.f32 %v710_v41, %v17339_v44  ;;  %v718_v61 = vmul.f32 -10.0, %v17540_v53  ;;  %v994_v62 = vmul.f32 %v990_v45, %v17369_v6  ;;  %v15574_v5 = vld [vmem:[#allocation4 + $0x180] sm:$0xff]   ;;  %v15576_v22 = vld [vmem:[#allocation4 + $0x1c8] sm:$0xff]  }
 0x12a   :  { %v1235_v50 = vmul.f32 %v1231_v34, %v967_v38  ;;  %14345 = vmatprep.subr.bf16.mxu0 %v15579_v12  ;;  %v1250_v63 = vmul.f32 3.3333333, %v17343_v46  ;;  %v716_v2 = vmul.f32 %v712_v51, %v17384_v21  ;;  %v720_v10 = vmul.f32 -10.0, %v17552_v56  ;;  %v15587_v12 = vld [vmem:[#allocation4 + $0x160] sm:$0xff]   ;;  %v15580_v51 = vld [vmem:[#allocation4 + $0x1d0] sm:$0xff]  }
 0x12b   :  { %v1243_v40 = vmul.f32 %v1239_v37, %v17528_v42  ;;  %v992_v3 = vmul.f32 5.0, %v17394_v26  ;;  %v722_v14 = vmul.f32 %v718_v61, %v17533_v35  ;;  %v998_v44 = vmul.f32 -5.0, %v17540_v53  ;;  %v15578_v37 = vld [vmem:[#allocation4 + $0x188] sm:$0xff]  }
 0x12c   :  { %v17564_v18 = vadd.f32 -0.2, %v17408_v43  ;;  %v709_v46 = vmul.f32 10.0, %v17408_v43  ;;  %v724_v21 = vmul.f32 %v720_v10, %v17537_v25  ;;  %v1000_v34 = vmul.f32 -5.0, %v17552_v56 }
 0x12d   :  { %v1247_v7 = vadd.f32 %v1243_v40, %v1235_v50  ;;  %14346 = vmatpush3.bf16.msra.mxu0 %v15581_v49  ;;  %v1252_v36 = vmul.f32 3.3333333, %v17388_v23  ;;  %v17570_v38 = vadd.f32 %v722_v14, %v714_v60  ;;  %v989_v49 = vmul.f32 5.0, %v17450_v20  ;;  %v15589_v50 = vld [vmem:[#allocation4 + $0x120] sm:$0xff]   ;;  %v15591_v60 = vld [vmem:[#allocation4 + $0x168] sm:$0xff]  }
 0x12e   :  { %14347 = vmatprep.subr.bf16.mxu0 %v15583_v52  ;;  %v713_v41 = vmul.f32 %v709_v46, %v17443_v16  ;;  %v717_v45 = vmul.f32 -10.0, %v17564_v18  ;;  %v1258_v52 = vmul.f32 -3.3333333, %v17540_v53  ;;  %v17576_v40 = vadd.f32 %v724_v21, %v716_v2 }
 0x12f   :  { %v1491_v6 = vpack.c.bf16 %v1247_v7, %v1247_v7  ;;  %v996_v61 = vmul.f32 %v992_v3, %v17413_v57  ;;  %v997_v23 = vmul.f32 -5.0, %v17564_v18  ;;  %v1002_v16 = vmul.f32 %v998_v44, %v17570_v38 }
 0x130   :  { %v721_v7 = vmul.f32 %v717_v45, %v17544_v54  ;;  %v17583_v10 = vadd.f32 -0.2, %v17464_v39  ;;  %v1254_v2 = vmul.f32 %v1250_v63, %v17381_v17  ;;  %v1004_v14 = vmul.f32 %v1000_v34, %v17576_v40  ;;  %v15584_v45 = vld [vmem:[#allocation4 + $0x1d8] sm:$0xff]  }
 0x131   :  { %4942 = vmatmul.mubr.bf16.vlgmr.msra.gmra.mrb[0].mxu1 %v1491_v6  ;;  %14348 = vmatpush3.bf16.msra.mxu0 %v15585_v15  ;;  %v711_v15 = vmul.f32 10.0, %v17464_v39  ;;  %v1260_v57 = vmul.f32 -3.3333333, %v17552_v56  ;;  %v1249_v3 = vmul.f32 3.3333333, %v17447_v19  ;;  %v17590_v46 = vadd.f32 %v1002_v16, %v994_v62 }
 0x132   :  { %14364 = vmatpush3.bf16.msra.mxu1 %v15574_v5  ;;  %14349 = vmatprep.subr.bf16.mxu0 %v15587_v12  ;;  %19819 = vst [vmem:[#allocation29_spill] sm:$0xff] %v17583_v10  ;;  %v15582_v5 = vld [vmem:[#allocation4 + $0x190] sm:$0xff]   ;;  %v15593_v12 = vld [vmem:[#allocation4 + $0x128] sm:$0xff]   ;;  %v17592_v44 = vadd.f32 %v721_v7, %v713_v41  ;;  %v993_v6 = vmul.f32 %v989_v49, %v17471_v58  ;;  %v719_v21 = vmul.f32 -10.0, %v17583_v10  ;;  %v1257_v41 = vmul.f32 -3.3333333, %v17564_v18 }
 0x133   :  { %14365 = vmatprep.subr.bf16.mxu1 %v15576_v22  ;;  %v15595_v22 = vld [vmem:[#allocation4 + $0x170] sm:$0xff]   ;;  %v17596_v17 = vadd.f32 %v1004_v14, %v996_v61  ;;  %v1256_v63 = vmul.f32 %v1252_v36, %v17425_v4  ;;  %v715_v34 = vmul.f32 %v711_v15, %v17498_v30  ;;  %v1262_v19 = vmul.f32 %v1258_v52, %v17590_v46  ;;  %v15588_v15 = vld [vmem:[#allocation4 + $0x1e0] sm:$0xff]  }
 0x134   :  { %v1001_v62 = vmul.f32 %v997_v23, %v17592_v44  ;;  %v723_v58 = vmul.f32 %v719_v21, %v17548_v55  ;;  %v15597_v61 = vld [vmem:[#allocation4 + $0x130] sm:$0xff]   ;;  %v1253_v4 = vmul.f32 %v1249_v3, %v17486_v11  ;;  %v999_v52 = vmul.f32 -5.0, %v17583_v10  ;;  %v15590_v14 = vld [vmem:[#allocation4 + $0x1a0] sm:$0xff]   ;;  %v15601_v3 = vld [vmem:[#allocation4 + $0x138] sm:$0xff]  }
 0x135   :  { %14350 = vmatpush3.bf16.msra.mxu0 %v15589_v50  ;;  %v1264_v49 = vmul.f32 %v1260_v57, %v17596_v17  ;;  %v15586_v50 = vld [vmem:[#allocation4 + $0x198] sm:$0xff]   ;;  %v1266_v16 = vadd.f32 %v1262_v19, %v1254_v2  ;;  %v15592_v57 = vld [vmem:[#allocation4 + $0x1e8] sm:$0xff]   ;;  %v15605_v21 = vld [vmem:[#allocation4 + $0x200] sm:$0xff]   ;;  %v1259_v19 = vmul.f32 -3.3333333, %v17583_v10 }
 0x136   :  { %14366 = vmatpush3.bf16.msra.mxu1 %v15578_v37  ;;  %14351 = vmatprep.subr.bf16.mxu0 %v15591_v60  ;;  %v17605_v7 = vadd.f32 %v1001_v62, %v993_v6  ;;  %v17608_v36 = vadd.f32 %v723_v58, %v715_v34  ;;  %v991_v37 = vmul.f32 5.0, %v17495_v29  ;;  %v15607_v62 = vld [vmem:[#allocation4 + $0x248] sm:$0xff]   ;;  %vm390_vm8 = vcmp.ge.f32.partialorder %v17324_v32, 0.3 }
 0x137   :  { %14367 = vmatprep.subr.bf16.mxu1 %v15580_v51  ;;  %v1268_v30 = vadd.f32 %v1264_v49, %v1256_v63  ;;  %v15599_v51 = vld [vmem:[#allocation4 + $0x178] sm:$0xff]   ;;  %v1494_v23 = vpack.c.bf16 %v1266_v16, %v1266_v16  ;;  %v1251_v63 = vmul.f32 3.3333333, %v17492_v28  ;;  %v15611_v28 = vld [vmem:[#allocation4 + $0x250] sm:$0xff]   ;;  %vm392_vm9 = vcmp.ge.f32.partialorder %v17361_v59, 0.3 }
 0x138   :  { %v1261_v60 = vmul.f32 %v1257_v41, %v17605_v7  ;;  %v1003_v6 = vmul.f32 %v999_v52, %v17608_v36  ;;  %v15598_v41 = vld [vmem:[#allocation4 + $0x1b0] sm:$0xff]   ;;  %v15602_v16 = vld [vmem:[#allocation4 + $0x1b8] sm:$0xff]   ;;  %vm389_vm10 = vcmp.ge.f32.partialorder %v17408_v43, 0.3  ;;  %vm391_vm11 = vcmp.ge.f32.partialorder %v17464_v39, 0.3 }
 0x139   :  { %14352 = vmatpush3.bf16.msra.mxu0 %v15593_v12  ;;  %v1496_v2 = vpack.c.bf16 %v1268_v30, %v1268_v30  ;;  %4981 = vmatprep.mubr.bf16.mxu0 %v1494_v23  ;;  %v995_v12 = vmul.f32 %v991_v37, %v17522_v13  ;;  %v15596_v13 = vld [vmem:[#allocation4 + $0x1f0] sm:$0xff]   ;;  %v1255_v58 = vmul.f32 %v1251_v63, %v17528_v42  ;;  %v730_v37 = vmul.f32 10.0, %v17349_v48  ;;  %v15615_v52 = vld [vmem:[#allocation4 + $0x258] sm:$0xff]   ;;  %v15606_v23 = vld [vmem:[#allocation4 + $0x280] sm:$0xff]  }
 0x13a   :  { %14368 = vmatpush3.bf16.msra.mxu1 %v15582_v5  ;;  %14353 = vmatprep.subr.bf16.mxu0 %v15595_v22  ;;  %v1265_v11 = vadd.f32 %v1261_v60, %v1253_v4  ;;  %v15603_v5 = vld [vmem:[#allocation4 + $0x240] sm:$0xff]   ;;  %v15594_v22 = vld [vmem:[#allocation4 + $0x1a8] sm:$0xff]   ;;  %v15613_v30 = vld [vmem:[#allocation4 + $0x210] sm:$0xff]   ;;  %v1010_v42 = vmul.f32 5.0, %v17324_v32  ;;  %v731_v63 = vmul.f32 10.0, %v17501_v31 }
 0x13b   :  { %14369 = vmatprep.subr.bf16.mxu1 %v15584_v45  ;;  %5021 = vmatprep.mubr.bf16.mxu1 %v1496_v2  ;;  %v17616_v34 = vadd.f32 %v1003_v6, %v995_v12  ;;  %v732_v2 = vmul.f32 10.0, %v17397_v27  ;;  %v15608_v12 = vld [vmem:[#allocation4 + $0x2c8] sm:$0xff]   ;;  %v17631_v6 = vsel %vm390_vm8, 1.0, %v19798_v33 }
 0x13c   :  { %v1493_v45 = vpack.c.bf16 %v1265_v11, %v1265_v11  ;;  %v734_v11 = vmul.f32 %v730_v37, %v17533_v35  ;;  %v17642_v35 = vsub.f32 %v17434_v8, %v17631_v6  ;;  %v17653_v8 = vmul.f32 5.0, %v17464_v39 }
 0x13d   :  { %14354 = vmatpush3.bf16.msra.mxu0 %v15597_v61  ;;  %v1263_v49 = vmul.f32 %v1259_v19, %v17616_v34  ;;  %v15600_v61 = vld [vmem:[#allocation4 + $0x1f8] sm:$0xff]   ;;  %v15621_v19 = vld [vmem:[#allocation4 + $0x220] sm:$0xff]  }
 0x13e   :  { %14370 = vmatpush3.bf16.msra.mxu1 %v15586_v50  ;;  %14355 = vmatprep.subr.bf16.mxu0 %v15599_v51  ;;  %v15609_v50 = vld [vmem:[#allocation4 + $0x208] sm:$0xff]   ;;  %v15604_v51 = vld [vmem:[#allocation4 + $0x2c0] sm:$0xff]  }
 0x13f   :  { %14371 = vmatprep.subr.bf16.mxu1 %v15588_v15  ;;  %v1267_v4 = vadd.f32 %v1263_v49, %v1255_v58  ;;  %v15617_v15 = vld [vmem:[#allocation4 + $0x218] sm:$0xff]   ;;  %v15623_v58 = vld [vmem:[#allocation4 + $0x268] sm:$0xff]  }
 0x141   :  { %14356 = vmatpush3.bf16.msra.mxu0 %v15601_v3  ;;  %v1495_v60 = vpack.c.bf16 %v1267_v4, %v1267_v4  ;;  %v1012_v3 = vmul.f32 5.0, %v17361_v59  ;;  %v15614_v4 = vld [vmem:[#allocation4 + $0x290] sm:$0xff]  }
 0x142   :  { %14372 = vmatpush3.bf16.msra.mxu1 %v15590_v14  ;;  %14385 = vmatprep.subr.bf16.mxu0 %v15603_v5  ;;  %v15619_v14 = vld [vmem:[#allocation4 + $0x260] sm:$0xff]   ;;  %v17634_v5 = vadd.f32 -0.3, %v17324_v32  ;;  %v15612_v32 = vld [vmem:[#allocation4 + $0x2d0] sm:$0xff]  }
 0x143   :  { %14373 = vmatprep.subr.bf16.mxu1 %v15592_v57  ;;  %v17627_v57 = vmul.f32 %v1010_v42, %v17570_v38  ;;  %v17646_v38 = vadd.f32 -0.3, %v17361_v59  ;;  %v17656_v59 = vsel %vm392_vm9, 1.0, %v19798_v33  ;;  %v15616_v42 = vld [vmem:[#allocation4 + $0x2d8] sm:$0xff]  }
 0x144   :  { %4982 = vmatmul.mubr.bf16.vlgmr.msra.gmra.mrb[4].mxu0 %v1493_v45  ;;  %v15610_v45 = vld [vmem:[#allocation4 + $0x288] sm:$0xff]  }
 0x145   :  { %14386 = vmatpush3.bf16.msra.mxu0 %v15605_v21  ;;  %v729_v21 = vmul.f32 10.0, %v17453_v24  ;;  %v740_v49 = vmul.f32 -9.999999, %v17646_v38  ;;  %v1020_v37 = vmul.f32 -4.9999995, %v17646_v38 }
 0x146   :  { %14374 = vmatpush3.bf16.msra.mxu1 %v15594_v22  ;;  %14387 = vmatprep.subr.bf16.mxu0 %v15607_v62  ;;  %v17638_v22 = vmul.f32 5.0, %v17408_v43  ;;  %v738_v62 = vmul.f32 -9.999999, %v17634_v5 }
 0x147   :  { %14375 = vmatprep.subr.bf16.mxu1 %v15596_v13  ;;  %v1270_v13 = vmul.f32 3.3333333, %v17346_v47 }
 0x148   :  { %v742_v47 = vmul.f32 %v738_v62, %v17642_v35 }
 0x149   :  { %14388 = vmatpush3.bf16.msra.mxu0 %v15609_v50  ;;  %v1016_v50 = vmul.f32 %v1012_v3, %v17576_v40  ;;  %v17670_v40 = vsel %vm389_vm10, 1.0, %v19798_v33  ;;  %v17695_v3 = vadd.f32 -0.3, %v17464_v39 }
 0x14a   :  { %14376 = vmatpush3.bf16.msra.mxu1 %v15598_v41  ;;  %14389 = vmatprep.subr.bf16.mxu0 %v15611_v28  ;;  %v736_v41 = vmul.f32 %v732_v2, %v17537_v25  ;;  %v1272_v28 = vmul.f32 3.3333333, %v17394_v26  ;;  %v1018_v25 = vmul.f32 -4.9999995, %v17634_v5  ;;  %v17673_v26 = vadd.f32 -0.3, %v17408_v43 }
 0x14b   :  { %14377 = vmatprep.subr.bf16.mxu1 %v15600_v61  ;;  %v15625_v61 = vld [vmem:[#allocation4 + $0x228] sm:$0xff]   ;;  %v1280_v43 = vmul.f32 -3.3333333, %v17646_v38  ;;  %v15629_v2 = vld [vmem:[#allocation4 + $0x230] sm:$0xff]  }
 0x14d   :  { %14390 = vmatpush3.bf16.msra.mxu0 %v15613_v30  ;;  %v15627_v30 = vld [vmem:[#allocation4 + $0x270] sm:$0xff]  }
 0x14e   :  { %14378 = vmatpush3.bf16.msra.mxu1 %v15602_v16  ;;  %14391 = vmatprep.subr.bf16.mxu0 %v15615_v52  ;;  %v17665_v16 = vsub.f32 %v17439_v9, %v17656_v59  ;;  %v733_v52 = vmul.f32 %v729_v21, %v17544_v54  ;;  %v737_v54 = vmul.f32 -9.999999, %v17673_v26  ;;  %v15631_v21 = vld [vmem:[#allocation4 + $0x278] sm:$0xff]  }
 0x14f   :  { %14407 = vmatprep.subr.bf16.mxu1 %v15604_v51  ;;  %v17676_v51 = vadd.f32 %v742_v47, %v734_v11  ;;  %v15622_v47 = vld [vmem:[#allocation4 + $0x2a0] sm:$0xff]  }
 0x150   :  { %v744_v9 = vmul.f32 %v740_v49, %v17665_v16 }
 0x151   :  { %5022 = vmatmul.mubr.bf16.vlgmr.msra.gmra.mrb[4].mxu1 %v1495_v60  ;;  %14392 = vmatpush3.bf16.msra.mxu0 %v15617_v15  ;;  %v1278_v60 = vmul.f32 -3.3333333, %v17634_v5  ;;  %v735_v15 = vmul.f32 %v731_v63, %v17548_v55  ;;  %v1017_v55 = vmul.f32 -4.9999995, %v17673_v26 }
 0x152   :  { %14408 = vmatpush3.bf16.msra.mxu1 %v15606_v23  ;;  %14393 = vmatprep.subr.bf16.mxu0 %v15619_v14  ;;  %v17681_v23 = vsub.f32 %v17515_v0, %v17670_v40  ;;  %v1022_v14 = vmul.f32 %v1018_v25, %v17676_v51  ;;  %v17689_v11 = vadd.f32 %v744_v9, %v736_v41  ;;  %v17692_v0 = vsel %vm391_vm11, 1.0, %v19798_v33 }
 0x153   :  { %14409 = vmatprep.subr.bf16.mxu1 %v15608_v12  ;;  %v15618_v12 = vld [vmem:[#allocation4 + $0x298] sm:$0xff]   ;;  %v17702_v63 = vsub.f32 %v17520_v1, %v17692_v0  ;;  %v1269_v41 = vmul.f32 3.3333333, %v17450_v20  ;;  %v1019_v1 = vmul.f32 -4.9999995, %v17695_v3 }
 0x154   :  { %v17705_v62 = vadd.f32 %v1022_v14, %v17627_v57  ;;  %v1024_v39 = vmul.f32 %v1020_v37, %v17689_v11  ;;  %v1279_v14 = vmul.f32 -3.3333333, %v17695_v3 }
 0x155   :  { %14394 = vmatpush3.bf16.msra.mxu0 %v15621_v19  ;;  %v741_v19 = vmul.f32 %v737_v54, %v17681_v23 }
 0x156   :  { %14410 = vmatpush3.bf16.msra.mxu1 %v15610_v45  ;;  %14395 = vmatprep.subr.bf16.mxu0 %v15623_v58  ;;  %v1274_v45 = vmul.f32 %v1270_v13, %v17590_v46  ;;  %v739_v58 = vmul.f32 -9.999999, %v17695_v3  ;;  %v1013_v13 = vmul.f32 %v17638_v22, %v17592_v44  ;;  %v1282_v49 = vmul.f32 %v1278_v60, %v17705_v62 }
 0x157   :  { %14411 = vmatprep.subr.bf16.mxu1 %v15612_v32  ;;  %v15620_v32 = vld [vmem:[#allocation4 + $0x2e0] sm:$0xff]   ;;  %v17710_v46 = vadd.f32 %v741_v19, %v733_v52  ;;  %v17716_v57 = vadd.f32 %v1024_v39, %v1016_v50  ;;  %v1015_v50 = vmul.f32 %v17653_v8, %v17608_v36  ;;  %v15639_v19 = vld [vmem:[#allocation4 + $0x348] sm:$0xff]   ;;  %v15632_v39 = vld [vmem:[#allocation4 + $0x2f8] sm:$0xff]  }
 0x158   :  { %v743_v20 = vmul.f32 %v739_v58, %v17702_v63  ;;  %v1286_v37 = vadd.f32 %v1282_v49, %v1274_v45  ;;  %v15635_v52 = vld [vmem:[#allocation4 + $0x340] sm:$0xff]   ;;  %v15643_v58 = vld [vmem:[#allocation4 + $0x350] sm:$0xff]  }
 0x159   :  { %14396 = vmatpush3.bf16.msra.mxu0 %v15625_v61  ;;  %v1276_v61 = vmul.f32 %v1272_v28, %v17596_v17  ;;  %v1021_v25 = vmul.f32 %v1017_v55, %v17710_v46  ;;  %v1284_v44 = vmul.f32 %v1280_v43, %v17716_v57  ;;  %v1273_v28 = vmul.f32 %v1269_v41, %v17605_v7  ;;  %v15628_v7 = vld [vmem:[#allocation4 + $0x2f0] sm:$0xff]   ;;  %v15641_v41 = vld [vmem:[#allocation4 + $0x308] sm:$0xff]   ;;  %v15636_v49 = vld [vmem:[#allocation4 + $0x3c0] sm:$0xff]  }
 0x15a   :  { %14412 = vmatpush3.bf16.msra.mxu1 %v15614_v4  ;;  %14397 = vmatprep.subr.bf16.mxu0 %v15627_v30  ;;  %v1277_v4 = vmul.f32 -3.3333333, %v17673_v26  ;;  %v15633_v30 = vld [vmem:[#allocation4 + $0x238] sm:$0xff]   ;;  %v17723_v22 = vadd.f32 %v743_v20, %v735_v15  ;;  %v1498_v9 = vpack.c.bf16 %v1286_v37, %v1286_v37  ;;  %v1271_v15 = vmul.f32 3.3333333, %v17495_v29  ;;  %v15630_v55 = vld [vmem:[#allocation4 + $0x2b0] sm:$0xff]  }
 0x15b   :  { %14413 = vmatprep.subr.bf16.mxu1 %v15616_v42  ;;  %v17727_v17 = vadd.f32 %v1021_v25, %v1013_v13  ;;  %v15624_v42 = vld [vmem:[#allocation4 + $0x2e8] sm:$0xff]   ;;  %v1288_v60 = vadd.f32 %v1284_v44, %v1276_v61  ;;  %v15634_v13 = vld [vmem:[#allocation4 + $0x2b8] sm:$0xff]   ;;  %v15645_v61 = vld [vmem:[#allocation4 + $0x310] sm:$0xff]  }
 0x15c   :  { %v1023_v54 = vmul.f32 %v1019_v1, %v17723_v22  ;;  %5061 = vmatprep.mubr.bf16.mxu0 %v1498_v9  ;;  %v15647_v20 = vld [vmem:[#allocation4 + $0x358] sm:$0xff]   ;;  %v15640_v25 = vld [vmem:[#allocation4 + $0x3c8] sm:$0xff]   ;;  %v15644_v44 = vld [vmem:[#allocation4 + $0x3d0] sm:$0xff]  }
 0x15d   :  { %14398 = vmatpush3.bf16.msra.mxu0 %v15629_v2  ;;  %v15626_v2 = vld [vmem:[#allocation4 + $0x2a8] sm:$0xff]   ;;  %v1281_v43 = vmul.f32 %v1277_v4, %v17727_v17  ;;  %v1500_v36 = vpack.c.bf16 %v1288_v60, %v1288_v60  ;;  %v15649_v4 = vld [vmem:[#allocation4 + $0x318] sm:$0xff]  }
 0x15e   :  { %14414 = vmatpush3.bf16.msra.mxu1 %v15618_v12  ;;  %14399 = vmatprep.subr.bf16.mxu0 %v15631_v21  ;;  %v17733_v8 = vadd.f32 %v1023_v54, %v1015_v50  ;;  %v15637_v21 = vld [vmem:[#allocation4 + $0x300] sm:$0xff]   ;;  %v15642_v37 = vld [vmem:[#allocation4 + $0x388] sm:$0xff]  }
 0x15f   :  { %14415 = vmatprep.subr.bf16.mxu1 %v15620_v32  ;;  %v1285_v12 = vadd.f32 %v1281_v43, %v1273_v28  ;;  %5101 = vmatprep.mubr.bf16.mxu1 %v1500_v36  ;;  %v1275_v32 = vmul.f32 %v1271_v15, %v17616_v34  ;;  %v15653_v50 = vld [vmem:[#allocation4 + $0x320] sm:$0xff]   ;;  %v15655_v28 = vld [vmem:[#allocation4 + $0x368] sm:$0xff]   ;;  %v750_v43 = vmul.f32 9.999999, %v17540_v53  ;;  %v1030_v15 = vmul.f32 4.9999995, %v17349_v48 }
 0x160   :  { %v1283_v29 = vmul.f32 %v1279_v14, %v17733_v8  ;;  %v17741_v9 = vld [vmem:[%s19782_s0 + $0x8] sm:$0xff]  ;;  %v15650_v36 = vld [vmem:[#allocation4 + $0x398] sm:$0xff]   ;;  %v15659_v14 = vld [vmem:[#allocation4 + $0x370] sm:$0xff]  }
 0x161   :  { %14400 = vmatpush3.bf16.msra.mxu0 %v15633_v30  ;;  %v1497_v45 = vpack.c.bf16 %v1285_v12, %v1285_v12  ;;  %v15651_v30 = vld [vmem:[#allocation4 + $0x360] sm:$0xff]   ;;  %vm402_vm12 = vcmp.ge.f32.partialorder %v17741_v9, 0.4  ;;  %v17745_v60 = vadd.f32 -0.4, %v17741_v9  ;;  %v15657_v54 = vld [vmem:[#allocation4 + $0x328] sm:$0xff]  }
 0x162   :  { %14416 = vmatpush3.bf16.msra.mxu1 %v15622_v47  ;;  %14429 = vmatprep.subr.bf16.mxu0 %v15635_v52  ;;  %v1287_v1 = vadd.f32 %v1283_v29, %v1275_v32  ;;  %v15638_v47 = vld [vmem:[#allocation4 + $0x380] sm:$0xff]   ;;  %v15646_v52 = vld [vmem:[#allocation4 + $0x390] sm:$0xff]   ;;  %v17764_v29 = vld [vmem:[%s19782_s0 + $0x18] sm:$0xff]  ;;  %vm414_vm0 = vcmp.ge.f32.partialorder %v17741_v9, 0.5  ;;  %vm426_vm4 = vcmp.ge.f32.partialorder %v17741_v9, 0.6 }
 0x163   :  { %14417 = vmatprep.subr.bf16.mxu1 %v15624_v42  ;;  %v15648_v42 = vld [vmem:[#allocation4 + $0x3d8] sm:$0xff]   ;;  %v758_v12 = vmul.f32 -10.000001, %v17745_v60  ;;  %v1298_v32 = vmul.f32 -3.3333333, %v17745_v60  ;;  %vm416_vm1 = vcmp.ge.f32.partialorder %v17764_v29, 0.5 }
 0x164   :  { %5062 = vmatmul.mubr.bf16.vlgmr.msra.gmra.mrb[8].mxu0 %v1497_v45  ;;  %v1499_v34 = vpack.c.bf16 %v1287_v1, %v1287_v1  ;;  %v1290_v45 = vmul.f32 3.3333333, %v17741_v9  ;;  %vm404_vm13 = vcmp.ge.f32.partialorder %v17764_v29, 0.4  ;;  %v752_v1 = vmul.f32 9.999999, %v17552_v56 }
 0x165   :  { %14430 = vmatpush3.bf16.msra.mxu0 %v15637_v21  ;;  %v1038_v21 = vmul.f32 -5.0, %v17745_v60  ;;  %vm428_vm5 = vcmp.ge.f32.partialorder %v17764_v29, 0.6 }
 0x166   :  { %14418 = vmatpush3.bf16.msra.mxu1 %v15626_v2  ;;  %14431 = vmatprep.subr.bf16.mxu0 %v15639_v19  ;;  %v17748_v2 = vsel %vm402_vm12, 1.0, %v19798_v33  ;;  %v15652_v19 = vld [vmem:[#allocation4 + $0x3e0] sm:$0xff]  }
 0x167   :  { %14419 = vmatprep.subr.bf16.mxu1 %v15628_v7  ;;  %v17754_v7 = vsub.f32 %v17631_v6, %v17748_v2  ;;  %v15661_v6 = vld [vmem:[#allocation4 + $0x330] sm:$0xff]  }
 0x169   :  { %14432 = vmatpush3.bf16.msra.mxu0 %v15641_v41  ;;  %v1034_v41 = vmul.f32 %v1030_v15, %v17676_v51  ;;  %v15663_v51 = vld [vmem:[#allocation4 + $0x378] sm:$0xff]   ;;  %v1029_v15 = vmul.f32 4.9999995, %v17453_v24 }
 0x16a   :  { %14420 = vmatpush3.bf16.msra.mxu1 %v15630_v55  ;;  %14433 = vmatprep.subr.bf16.mxu0 %v15643_v58  ;;  %v754_v55 = vmul.f32 %v750_v43, %v17642_v35  ;;  %v17770_v58 = vsel %vm404_vm13, 1.0, %v19798_v33  ;;  %v17773_v35 = vadd.f32 -0.4, %v17764_v29  ;;  %v749_v43 = vmul.f32 9.999999, %v17564_v18 }
 0x16b   :  { %14421 = vmatprep.subr.bf16.mxu1 %v15632_v39  ;;  %v762_v39 = vmul.f32 %v758_v12, %v17754_v7 }
 0x16d   :  { %14434 = vmatpush3.bf16.msra.mxu0 %v15645_v61  ;;  %v1292_v61 = vmul.f32 3.3333333, %v17764_v29 }
 0x16e   :  { %14422 = vmatpush3.bf16.msra.mxu1 %v15634_v13  ;;  %14435 = vmatprep.subr.bf16.mxu0 %v15647_v20  ;;  %v17777_v13 = vsub.f32 %v17656_v59, %v17770_v58  ;;  %v15654_v20 = vld [vmem:[#allocation4 + $0x3a0] sm:$0xff]   ;;  %v1294_v59 = vmul.f32 %v1290_v45, %v17705_v62 }
 0x16f   :  { %14451 = vmatprep.subr.bf16.mxu1 %v15636_v49  ;;  %v1032_v49 = vmul.f32 4.9999995, %v17397_v27 }
 0x171   :  { %5102 = vmatmul.mubr.bf16.vlgmr.msra.gmra.mrb[8].mxu1 %v1499_v34  ;;  %14436 = vmatpush3.bf16.msra.mxu0 %v15649_v4  ;;  %v17782_v34 = vadd.f32 %v762_v39, %v754_v55  ;;  %v1300_v4 = vmul.f32 -3.3333333, %v17773_v35 }
 0x172   :  { %14452 = vmatpush3.bf16.msra.mxu1 %v15638_v47  ;;  %14437 = vmatprep.subr.bf16.mxu0 %v15651_v30  ;;  %v760_v47 = vmul.f32 -10.000001, %v17773_v35  ;;  %v756_v30 = vmul.f32 %v752_v1, %v17665_v16  ;;  %v15665_v16 = vld [vmem:[#allocation4 + $0x338] sm:$0xff]   ;;  %v17825_v1 = vld [vmem:[%s19782_s0 + $0x10] sm:$0xff] }
 0x173   :  { %14453 = vmatprep.subr.bf16.mxu1 %v15640_v25  ;;  %v1040_v25 = vmul.f32 -5.0, %v17773_v35  ;;  %vm403_vm15 = vcmp.ge.f32.partialorder %v17825_v1, 0.4  ;;  %vm415_vm3 = vcmp.ge.f32.partialorder %v17825_v1, 0.5  ;;  %vm427_vm7 = vcmp.ge.f32.partialorder %v17825_v1, 0.6 }
 0x175   :  { %14438 = vmatpush3.bf16.msra.mxu0 %v15653_v50  ;;  %v1042_v50 = vmul.f32 %v1038_v21, %v17782_v34 }
 0x176   :  { %14454 = vmatpush3.bf16.msra.mxu1 %v15642_v37  ;;  %14439 = vmatprep.subr.bf16.mxu0 %v15655_v28  ;;  %v17792_v37 = vld [vmem:[%s19782_s0] sm:$0xff]  ;;  %v764_v28 = vmul.f32 %v760_v47, %v17777_v13 }
 0x177   :  { %14455 = vmatprep.subr.bf16.mxu1 %v15644_v44  ;;  %vm401_vm14 = vcmp.ge.f32.partialorder %v17792_v37, 0.4  ;;  %v15656_v44 = vld [vmem:[#allocation4 + $0x3e8] sm:$0xff]   ;;  %v17801_v62 = vadd.f32 -0.4, %v17792_v37  ;;  %vm413_vm2 = vcmp.ge.f32.partialorder %v17792_v37, 0.5 }
 0x178   :  { %v17812_v12 = vadd.f32 %v764_v28, %v756_v30  ;;  %v1289_v45 = vmul.f32 3.3333333, %v17792_v37  ;;  %v15662_v30 = vld [vmem:[#allocation4 + $0x3b0] sm:$0xff]   ;;  %vm425_vm6 = vcmp.ge.f32.partialorder %v17792_v37, 0.6 }
 0x179   :  { %14440 = vmatpush3.bf16.msra.mxu0 %v15657_v54  ;;  %v757_v21 = vmul.f32 -10.000001, %v17801_v62  ;;  %v1037_v55 = vmul.f32 -5.0, %v17801_v62 }
 0x17a   :  { %14456 = vmatpush3.bf16.msra.mxu1 %v15646_v52  ;;  %14441 = vmatprep.subr.bf16.mxu0 %v15659_v14  ;;  %v17798_v52 = vsel %vm401_vm14, 1.0, %v19798_v33  ;;  %v17810_v14 = vadd.f32 %v1042_v50, %v1034_v41  ;;  %v1044_v39 = vmul.f32 %v1040_v25, %v17812_v12  ;;  %v1031_v50 = vmul.f32 4.9999995, %v17501_v31 }
 0x17b   :  { %14457 = vmatprep.subr.bf16.mxu1 %v15648_v42  ;;  %v1036_v42 = vmul.f32 %v1032_v49, %v17689_v11  ;;  %v17806_v54 = vsub.f32 %v17670_v40, %v17798_v52  ;;  %v1296_v11 = vmul.f32 %v1292_v61, %v17716_v57  ;;  %v753_v40 = vmul.f32 %v749_v43, %v17681_v23  ;;  %v15660_v57 = vld [vmem:[#allocation4 + $0x3f0] sm:$0xff]   ;;  %v15664_v43 = vld [vmem:[#allocation4 + $0x3f8] sm:$0xff]  }
 0x17c   :  { %v1033_v23 = vmul.f32 %v1029_v15, %v17710_v46  ;;  %v17830_v49 = vsel %vm403_vm15, 1.0, %v19798_v33  ;;  %v751_v61 = vmul.f32 9.999999, %v17583_v10 }
 0x17d   :  { %14442 = vmatpush3.bf16.msra.mxu0 %v15661_v6  ;;  %v1302_v6 = vmul.f32 %v1298_v32, %v17810_v14  ;;  %v761_v41 = vmul.f32 %v757_v21, %v17806_v54  ;;  %v17833_v32 = vadd.f32 -0.4, %v17825_v1  ;;  %v17842_v25 = vsub.f32 %v17692_v0, %v17830_v49 }
 0x17e   :  { %14458 = vmatpush3.bf16.msra.mxu1 %v15650_v36  ;;  %v15667_v36 = vld [vmem:[#allocation4 + $0x440] sm:$0xff]   ;;  %14443 = vmatprep.subr.bf16.mxu0 %v15663_v51  ;;  %v17836_v51 = vadd.f32 %v1044_v39, %v1036_v42  ;;  %v755_v46 = vmul.f32 %v751_v61, %v17702_v63  ;;  %v1297_v42 = vmul.f32 -3.3333333, %v17801_v62 }
 0x17f   :  { %14459 = vmatprep.subr.bf16.mxu1 %v15652_v19  ;;  %v15658_v19 = vld [vmem:[#allocation4 + $0x3a8] sm:$0xff]   ;;  %19820 = vst [vmem:[#allocation30_spill] sm:$0xff] %v17833_v32  ;;  %v17838_v47 = vadd.f32 %v761_v41, %v753_v40  ;;  %v1039_v15 = vmul.f32 -5.0, %v17833_v32  ;;  %v15668_v41 = vld [vmem:[#allocation4 + $0x4c0] sm:$0xff]  }
 0x181   :  { %14444 = vmatpush3.bf16.msra.mxu0 %v15665_v16  ;;  %v1041_v16 = vmul.f32 %v1037_v55, %v17838_v47  ;;  %v1291_v55 = vmul.f32 3.3333333, %v17825_v1 }
 0x182   :  { %14460 = vmatpush3.bf16.msra.mxu1 %v15654_v20  ;;  %v1306_v20 = vadd.f32 %v1302_v6, %v1294_v59  ;;  %14473 = vmatprep.subr.bf16.mxu0 %v15667_v36  ;;  %v1304_v59 = vmul.f32 %v1300_v4, %v17836_v51  ;;  %v15666_v36 = vld [vmem:[#allocation4 + $0x3b8] sm:$0xff]   ;;  %v1035_v4 = vmul.f32 %v1031_v50, %v17723_v22  ;;  %v15673_v50 = vld [vmem:[#allocation4 + $0x408] sm:$0xff]  }
 0x183   :  { %14461 = vmatprep.subr.bf16.mxu1 %v15656_v44  ;;  %v759_v44 = vmul.f32 -10.000001, %v17833_v32  ;;  %v17852_v21 = vadd.f32 %v1041_v16, %v1033_v23  ;;  %v15672_v16 = vld [vmem:[#allocation4 + $0x4c8] sm:$0xff]  }
 0x184   :  { %v1502_v28 = vpack.c.bf16 %v1306_v20, %v1306_v20  ;;  %v1308_v63 = vadd.f32 %v1304_v59, %v1296_v11  ;;  %v1299_v11 = vmul.f32 -3.3333333, %v17833_v32  ;;  %v15671_v20 = vld [vmem:[#allocation4 + $0x448] sm:$0xff]   ;;  %v17868_v59 = vsel %vm414_vm0, 1.0, %v19798_v33  ;;  %v15691_v32 = vld [vmem:[#allocation4 + $0x470] sm:$0xff]  }
 0x185   :  { %v763_v0 = vmul.f32 %v759_v44, %v17842_v25  ;;  %v1301_v39 = vmul.f32 %v1297_v42, %v17852_v21  ;;  %v15674_v42 = vld [vmem:[#allocation4 + $0x488] sm:$0xff]  }
 0x186   :  { %14462 = vmatpush3.bf16.msra.mxu1 %v15658_v19  ;;  %5141 = vmatprep.mubr.bf16.mxu0 %v1502_v28  ;;  %v1293_v19 = vmul.f32 %v1289_v45, %v17727_v17  ;;  %v1504_v6 = vpack.c.bf16 %v1308_v63, %v1308_v63  ;;  %v1295_v17 = vmul.f32 %v1291_v55, %v17733_v8  ;;  %v15669_v45 = vld [vmem:[#allocation4 + $0x400] sm:$0xff]   ;;  %v15675_v28 = vld [vmem:[#allocation4 + $0x450] sm:$0xff]   ;;  %v17876_v63 = vsel %vm416_vm1, 1.0, %v19798_v33 }
 0x187   :  { %14463 = vmatprep.subr.bf16.mxu1 %v15660_v57  ;;  %v17855_v40 = vadd.f32 %v763_v0, %v755_v46  ;;  %v15670_v46 = vld [vmem:[#allocation4 + $0x480] sm:$0xff]   ;;  %v15677_v0 = vld [vmem:[#allocation4 + $0x410] sm:$0xff]   ;;  %v17880_v55 = vadd.f32 -0.5, %v17764_v29 }
 0x188   :  { %5181 = vmatprep.mubr.bf16.mxu1 %v1504_v6  ;;  %v1305_v23 = vadd.f32 %v1301_v39, %v1293_v19  ;;  %v15676_v19 = vld [vmem:[#allocation4 + $0x4d0] sm:$0xff]   ;;  %v15681_v6 = vld [vmem:[#allocation4 + $0x418] sm:$0xff]   ;;  %v1052_v39 = vmul.f32 5.0, %v17552_v56 }
 0x189   :  { %v1043_v57 = vmul.f32 %v1039_v15, %v17855_v40  ;;  %v1050_v15 = vmul.f32 5.0, %v17540_v53 }
 0x18a   :  { %14464 = vmatpush3.bf16.msra.mxu1 %v15662_v30  ;;  %v1501_v22 = vpack.c.bf16 %v1305_v23, %v1305_v23  ;;  %v15682_v23 = vld [vmem:[#allocation4 + $0x498] sm:$0xff]  }
 0x18b   :  { %14465 = vmatprep.subr.bf16.mxu1 %v15664_v43  ;;  %v17862_v61 = vadd.f32 %v1043_v57, %v1035_v4  ;;  %v17872_v43 = vadd.f32 -0.5, %v17741_v9  ;;  %v15678_v4 = vld [vmem:[#allocation4 + $0x490] sm:$0xff]   ;;  %v17884_v57 = vsel %vm413_vm2, 1.0, %v19798_v33 }
 0x18c   :  { %5142 = vmatmul.mubr.bf16.vlgmr.msra.gmra.mrb[12].mxu0 %v1501_v22  ;;  %v17892_v22 = vsub.f32 %v17748_v2, %v17868_v59  ;;  %v17905_v2 = vadd.f32 -0.5, %v17825_v1 }
 0x18d   :  { %v1303_v30 = vmul.f32 %v1299_v11, %v17862_v61  ;;  %14474 = vmatpush3.bf16.msra.mxu0 %v15669_v45  ;;  %19821 = vst [vmem:[#allocation31_spill] sm:$0xff] %v17872_v43  ;;  %v15680_v11 = vld [vmem:[#allocation4 + $0x4d8] sm:$0xff]   ;;  %v15685_v45 = vld [vmem:[#allocation4 + $0x420] sm:$0xff]  }
 0x18e   :  { %14466 = vmatpush3.bf16.msra.mxu1 %v15666_v36  ;;  %14475 = vmatprep.subr.bf16.mxu0 %v15671_v20  ;;  %v15679_v36 = vld [vmem:[#allocation4 + $0x458] sm:$0xff]   ;;  %v1049_v20 = vmul.f32 5.0, %v17564_v18 }
 0x18f   :  { %14495 = vmatprep.subr.bf16.mxu1 %v15668_v41  ;;  %v1307_v44 = vadd.f32 %v1303_v30, %v1295_v17  ;;  %v15683_v41 = vld [vmem:[#allocation4 + $0x460] sm:$0xff]   ;;  %v17888_v17 = vadd.f32 -0.5, %v17792_v37  ;;  %v15687_v30 = vld [vmem:[#allocation4 + $0x468] sm:$0xff]  }
 0x191   :  { %v1503_v8 = vpack.c.bf16 %v1307_v44, %v1307_v44  ;;  %14476 = vmatpush3.bf16.msra.mxu0 %v15673_v50  ;;  %v15684_v44 = vld [vmem:[#allocation4 + $0x4e0] sm:$0xff]   ;;  %v770_v50 = vmul.f32 10.000001, %v17634_v5 }
 0x192   :  { %14477 = vmatprep.subr.bf16.mxu0 %v15675_v28  ;;  %v778_v28 = vmul.f32 -10.000001, %v17872_v43 }
 0x193   :  { %5182 = vmatmul.mubr.bf16.vlgmr.msra.gmra.mrb[12].mxu1 %v1503_v8  ;;  %v17902_v8 = vsub.f32 %v17770_v58, %v17876_v63  ;;  %v772_v58 = vmul.f32 10.000001, %v17646_v38 }
 0x194   :  { %14496 = vmatpush3.bf16.msra.mxu1 %v15670_v46  ;;  %v17896_v46 = vsel %vm415_vm3, 1.0, %v19798_v33  ;;  %v15688_v33 = vld [vmem:[#allocation4 + $0x4e8] sm:$0xff]  }
 0x195   :  { %14497 = vmatprep.subr.bf16.mxu1 %v15672_v16  ;;  %14478 = vmatpush3.bf16.msra.mxu0 %v15677_v0  ;;  %19822 = vst [vmem:[#allocation32_spill] sm:$0xff] %v17896_v46  ;;  %v15686_v16 = vld [vmem:[#allocation4 + $0x4a0] sm:$0xff]   ;;  %v1054_v0 = vmul.f32 %v1050_v15, %v17782_v34  ;;  %v1310_v34 = vmul.f32 3.3333333, %v17349_v48  ;;  %v1060_v15 = vmul.f32 -5.0000005, %v17880_v55 }
 0x196   :  { %14479 = vmatprep.subr.bf16.mxu0 %v15679_v36  ;;  %v1058_v36 = vmul.f32 -5.0000005, %v17872_v43  ;;  %v1318_v48 = vmul.f32 -3.3333333, %v17872_v43  ;;  %v15697_v43 = vld [vmem:[#allocation4 + $0x438] sm:$0xff]  }
 0x198   :  { %14498 = vmatpush3.bf16.msra.mxu1 %v15674_v42  ;;  %v15689_v42 = vld [vmem:[#allocation4 + $0x428] sm:$0xff]  }
 0x199   :  { %14499 = vmatprep.subr.bf16.mxu1 %v15676_v19  ;;  %14480 = vmatpush3.bf16.msra.mxu0 %v15681_v6  ;;  %v1056_v19 = vmul.f32 %v1052_v39, %v17812_v12  ;;  %v774_v6 = vmul.f32 %v770_v50, %v17754_v7  ;;  %v17919_v12 = vsub.f32 %v17798_v52, %v17884_v57  ;;  %v15690_v50 = vld [vmem:[#allocation4 + $0x4a8] sm:$0xff]  }
 0x19a   :  { %14481 = vmatprep.subr.bf16.mxu0 %v15683_v41  ;;  %v782_v41 = vmul.f32 %v778_v28, %v17892_v22  ;;  %v1053_v7 = vmul.f32 %v1049_v20, %v17838_v47  ;;  %v1312_v28 = vmul.f32 3.3333333, %v17397_v27  ;;  %v17932_v52 = vsub.f32 %v17830_v49, %v17896_v46  ;;  %v15692_v47 = vld [vmem:[#allocation4 + $0x4f0] sm:$0xff]  }
 0x19b   :  { %v15693_v20 = vld [vmem:[#allocation4 + $0x430] sm:$0xff]   ;;  %v1314_v27 = vmul.f32 %v1310_v34, %v17810_v14  ;;  %v771_v49 = vmul.f32 10.000001, %v17695_v3  ;;  %v1059_v34 = vmul.f32 -5.0000005, %v17905_v2 }
 0x19c   :  { %14500 = vmatpush3.bf16.msra.mxu1 %v15678_v4  ;;  %v1051_v4 = vmul.f32 5.0, %v17583_v10  ;;  %v17922_v39 = vadd.f32 %v782_v41, %v774_v6  ;;  %v777_v10 = vmul.f32 -10.000001, %v17888_v17 }
 0x19d   :  { %14501 = vmatprep.subr.bf16.mxu1 %v15680_v11  ;;  %14482 = vmatpush3.bf16.msra.mxu0 %v15685_v45  ;;  %v780_v11 = vmul.f32 -10.000001, %v17880_v55  ;;  %v776_v45 = vmul.f32 %v772_v58, %v17777_v13  ;;  %v1057_v58 = vmul.f32 -5.0000005, %v17888_v17  ;;  %v775_v14 = vmul.f32 %v771_v49, %v17842_v25 }
 0x19e   :  { %14483 = vmatprep.subr.bf16.mxu0 %v15687_v30  ;;  %v769_v30 = vmul.f32 10.000001, %v17673_v26  ;;  %v1062_v13 = vmul.f32 %v1058_v36, %v17922_v39  ;;  %v1055_v25 = vmul.f32 %v1051_v4, %v17855_v40  ;;  %v15698_v40 = vld [vmem:[#allocation4 + $0x4b8] sm:$0xff]  }
 0x1a0   :  { %14502 = vmatpush3.bf16.msra.mxu1 %v15682_v23  ;;  %v784_v23 = vmul.f32 %v780_v11, %v17902_v8  ;;  %v773_v41 = vmul.f32 %v769_v30, %v17806_v54  ;;  %v781_v11 = vmul.f32 %v777_v10, %v17919_v12  ;;  %v17943_v46 = vadd.f32 %v1062_v13, %v1054_v0 }
 0x1a1   :  { %14503 = vmatprep.subr.bf16.mxu1 %v15684_v44  ;;  %14484 = vmatpush3.bf16.msra.mxu0 %v15689_v42  ;;  %v15695_v44 = vld [vmem:[#allocation4 + $0x478] sm:$0xff]   ;;  %v779_v42 = vmul.f32 -10.000001, %v17905_v2  ;;  %v1320_v54 = vmul.f32 -3.3333333, %v17880_v55 }
 0x1a2   :  { %v17935_v6 = vadd.f32 %v784_v23, %v776_v45  ;;  %14485 = vmatprep.subr.bf16.mxu0 %v15691_v32  ;;  %v1309_v45 = vmul.f32 3.3333333, %v17453_v24  ;;  %v17948_v32 = vadd.f32 %v781_v11, %v773_v41  ;;  %v15699_v23 = vld [vmem:[#allocation4 + $0x540] sm:$0xff]   ;;  %v1317_v30 = vmul.f32 -3.3333333, %v17888_v17 }
 0x1a3   :  { %v783_v10 = vmul.f32 %v779_v42, %v17932_v52  ;;  %v1311_v41 = vmul.f32 3.3333333, %v17501_v31  ;;  %v15701_v42 = vld [vmem:[#allocation4 + $0x500] sm:$0xff]  }
 0x1a4   :  { %14504 = vmatpush3.bf16.msra.mxu1 %v15686_v16  ;;  %v1064_v36 = vmul.f32 %v1060_v15, %v17935_v6  ;;  %v15694_v16 = vld [vmem:[#allocation4 + $0x4b0] sm:$0xff]   ;;  %v1316_v15 = vmul.f32 %v1312_v28, %v17836_v51  ;;  %v1061_v24 = vmul.f32 %v1057_v58, %v17948_v32  ;;  %v1313_v51 = vmul.f32 %v1309_v45, %v17852_v21  ;;  %v15700_v21 = vld [vmem:[#allocation4 + $0x5c0] sm:$0xff]   ;;  %v15703_v45 = vld [vmem:[#allocation4 + $0x548] sm:$0xff]  }
 0x1a5   :  { %14505 = vmatprep.subr.bf16.mxu1 %v15688_v33  ;;  %14486 = vmatpush3.bf16.msra.mxu0 %v15693_v20  ;;  %v1322_v33 = vmul.f32 %v1318_v48, %v17943_v46  ;;  %v17959_v13 = vadd.f32 %v783_v10, %v775_v14  ;;  %v15696_v20 = vld [vmem:[#allocation4 + $0x4f8] sm:$0xff]   ;;  %v1319_v28 = vmul.f32 -3.3333333, %v17905_v2  ;;  %v15706_v10 = vld [vmem:[#allocation4 + $0x588] sm:$0xff]  }
 0x1a6   :  { %v17954_v0 = vadd.f32 %v1064_v36, %v1056_v19  ;;  %14487 = vmatprep.subr.bf16.mxu0 %v15695_v44  ;;  %v17964_v48 = vadd.f32 %v1061_v24, %v1053_v7  ;;  %v15712_v24 = vld [vmem:[#allocation4 + $0x5d8] sm:$0xff]  }
 0x1a7   :  { %v1326_v11 = vadd.f32 %v1322_v33, %v1314_v27  ;;  %v15709_v33 = vld [vmem:[#allocation4 + $0x510] sm:$0xff]  }
 0x1a8   :  { %14506 = vmatpush3.bf16.msra.mxu1 %v15690_v50  ;;  %v1324_v19 = vmul.f32 %v1320_v54, %v17954_v0  ;;  %v1063_v50 = vmul.f32 %v1059_v34, %v17959_v13  ;;  %v1321_v31 = vmul.f32 %v1317_v30, %v17964_v48  ;;  %v15707_v34 = vld [vmem:[#allocation4 + $0x550] sm:$0xff]   ;;  %v15711_v30 = vld [vmem:[#allocation4 + $0x558] sm:$0xff]  }
 0x1a9   :  { %14507 = vmatprep.subr.bf16.mxu1 %v15692_v47  ;;  %14488 = vmatpush3.bf16.msra.mxu0 %v15697_v43  ;;  %v1506_v44 = vpack.c.bf16 %v1326_v11, %v1326_v11  ;;  %v1315_v47 = vmul.f32 %v1311_v41, %v17862_v61  ;;  %v15702_v43 = vld [vmem:[#allocation4 + $0x580] sm:$0xff]   ;;  %v15705_v61 = vld [vmem:[#allocation4 + $0x508] sm:$0xff]   ;;  %v15714_v41 = vld [vmem:[#allocation4 + $0x598] sm:$0xff]  }
 0x1aa   :  { %v1328_v58 = vadd.f32 %v1324_v19, %v1316_v15  ;;  %v17970_v4 = vadd.f32 %v1063_v50, %v1055_v25  ;;  %14517 = vmatprep.subr.bf16.mxu0 %v15699_v23  ;;  %v1325_v27 = vadd.f32 %v1321_v31, %v1313_v51  ;;  %v15708_v23 = vld [vmem:[#allocation4 + $0x5d0] sm:$0xff]   ;;  %v15713_v25 = vld [vmem:[#allocation4 + $0x518] sm:$0xff]   ;;  %v15716_v11 = vld [vmem:[#allocation4 + $0x5e0] sm:$0xff]   ;;  %v17976_v31 = vadd.f32 -0.6, %v17741_v9 }
 0x1ab   :  { %5221 = vmatprep.mubr.bf16.mxu0 %v1506_v44  ;;  %v15710_v15 = vld [vmem:[#allocation4 + $0x590] sm:$0xff]   ;;  %v15717_v19 = vld [vmem:[#allocation4 + $0x520] sm:$0xff]   ;;  %v15719_v50 = vld [vmem:[#allocation4 + $0x568] sm:$0xff]  }
 0x1ac   :  { %14508 = vmatpush3.bf16.msra.mxu1 %v15694_v16  ;;  %v1508_v7 = vpack.c.bf16 %v1328_v58, %v1328_v58  ;;  %v1323_v49 = vmul.f32 %v1319_v28, %v17970_v4  ;;  %v1505_v36 = vpack.c.bf16 %v1325_v27, %v1325_v27  ;;  %v15704_v16 = vld [vmem:[#allocation4 + $0x5c8] sm:$0xff]   ;;  %v15718_v51 = vld [vmem:[#allocation4 + $0x5a0] sm:$0xff]   ;;  %v790_v27 = vmul.f32 10.000001, %v17745_v60 }
 0x1ad   :  { %14509 = vmatprep.subr.bf16.mxu1 %v15696_v20  ;;  %v15715_v20 = vld [vmem:[#allocation4 + $0x560] sm:$0xff]   ;;  %v15720_v28 = vld [vmem:[#allocation4 + $0x5e8] sm:$0xff]   ;;  %v1078_v9 = vmul.f32 -4.9999995, %v17976_v31 }
 0x1ae   :  { %5261 = vmatprep.mubr.bf16.mxu1 %v1508_v7  ;;  %v1327_v54 = vadd.f32 %v1323_v49, %v1315_v47  ;;  %5222 = vmatmul.mubr.bf16.vlgmr.msra.gmra.mrb[16].mxu0 %v1505_v36  ;;  %v15721_v44 = vld [vmem:[#allocation4 + $0x528] sm:$0xff]   ;;  %v15724_v47 = vld [vmem:[#allocation4 + $0x5f0] sm:$0xff]   ;;  %v19823_v7 = vmov 0.0   ;;  %v1070_v49 = vmul.f32 5.0000005, %v17634_v5 }
 0x1af   :  { %14518 = vmatpush3.bf16.msra.mxu0 %v15701_v42  ;;  %v15722_v58 = vld [vmem:[#allocation4 + $0x5a8] sm:$0xff]   ;;  %v15725_v42 = vld [vmem:[#allocation4 + $0x530] sm:$0xff]   ;;  %v798_v36 = vmul.f32 -9.999998, %v17976_v31 }
 0x1b0   :  { %14510 = vmatpush3.bf16.msra.mxu1 %v15698_v40  ;;  %v1507_v14 = vpack.c.bf16 %v1327_v54, %v1327_v54  ;;  %14519 = vmatprep.subr.bf16.mxu0 %v15703_v45  ;;  %v15723_v40 = vld [vmem:[#allocation4 + $0x570] sm:$0xff]   ;;  %v1330_v54 = vmul.f32 3.3333333, %v17540_v53  ;;  %v794_v45 = vmul.f32 %v790_v27, %v17892_v22  ;;  %v15728_v53 = vld [vmem:[#allocation4 + $0x5f8] sm:$0xff]  }
 0x1b1   :  { %14539 = vmatprep.subr.bf16.mxu1 %v15700_v21  ;;  %v17979_v21 = vsel %vm426_vm4, 1.0, %v19823_v7 }
 0x1b3   :  { %5262 = vmatmul.mubr.bf16.vlgmr.msra.gmra.mrb[16].mxu1 %v1507_v14  ;;  %14520 = vmatpush3.bf16.msra.mxu0 %v15705_v61  ;;  %v15726_v14 = vld [vmem:[#allocation4 + $0x5b0] sm:$0xff]   ;;  %v15727_v61 = vld [vmem:[#allocation4 + $0x578] sm:$0xff]  }
 0x1b4   :  { %14540 = vmatpush3.bf16.msra.mxu1 %v15702_v43  ;;  %14521 = vmatprep.subr.bf16.mxu0 %v15707_v34  ;;  %v17985_v43 = vsub.f32 %v17868_v59, %v17979_v21  ;;  %v1074_v59 = vmul.f32 %v1070_v49, %v17922_v39  ;;  %v17996_v34 = vsel %vm428_vm5, 1.0, %v19823_v7  ;;  %v15729_v39 = vld [vmem:[#allocation4 + $0x538] sm:$0xff]   ;;  %v1329_v49 = vmul.f32 3.3333333, %v17564_v18 }
 0x1b5   :  { %14541 = vmatprep.subr.bf16.mxu1 %v15704_v16  ;;  %v1338_v16 = vmul.f32 -3.3333333, %v17976_v31  ;;  %v18003_v22 = vsub.f32 %v17876_v63, %v17996_v34  ;;  %v1334_v63 = vmul.f32 %v1330_v54, %v17943_v46  ;;  %v18046_v18 = vsel %vm427_vm7, 1.0, %v19823_v7 }
 0x1b7   :  { %14522 = vmatpush3.bf16.msra.mxu0 %v15709_v33  ;;  %v792_v33 = vmul.f32 10.000001, %v17773_v35 }
 0x1b8   :  { %14542 = vmatpush3.bf16.msra.mxu1 %v15706_v10  ;;  %14523 = vmatprep.subr.bf16.mxu0 %v15711_v30  ;;  %v802_v10 = vmul.f32 %v798_v36, %v17985_v43  ;;  %v1332_v30 = vmul.f32 3.3333333, %v17552_v56 }
 0x1b9   :  { %14543 = vmatprep.subr.bf16.mxu1 %v15708_v23  ;;  %v17999_v23 = vadd.f32 -0.6, %v17764_v29 }
 0x1bb   :  { %14524 = vmatpush3.bf16.msra.mxu0 %v15713_v25  ;;  %v800_v25 = vmul.f32 -9.999998, %v17999_v23  ;;  %v1080_v29 = vmul.f32 -4.9999995, %v17999_v23 }
 0x1bc   :  { %14544 = vmatpush3.bf16.msra.mxu1 %v15710_v15  ;;  %14525 = vmatprep.subr.bf16.mxu0 %v15715_v20  ;;  %v1072_v15 = vmul.f32 5.0000005, %v17646_v38  ;;  %v796_v20 = vmul.f32 %v792_v33, %v17902_v8  ;;  %v789_v8 = vmul.f32 10.000001, %v17801_v62 }
 0x1bd   :  { %14545 = vmatprep.subr.bf16.mxu1 %v15712_v24  ;;  %v18008_v24 = vadd.f32 %v802_v10, %v794_v45 }
 0x1bf   :  { %14526 = vmatpush3.bf16.msra.mxu0 %v15717_v19  ;;  %v1082_v56 = vmul.f32 %v1078_v9, %v18008_v24  ;;  %v804_v19 = vmul.f32 %v800_v25, %v18003_v22 }
 0x1c0   :  { %14546 = vmatpush3.bf16.msra.mxu1 %v15714_v41  ;;  %14527 = vmatprep.subr.bf16.mxu0 %v15719_v50  ;;  %v1340_v41 = vmul.f32 -3.3333333, %v17999_v23  ;;  %v18022_v50 = vadd.f32 -0.6, %v17792_v37 }
 0x1c1   :  { %14547 = vmatprep.subr.bf16.mxu1 %v15716_v11  ;;  %v15730_v11 = vld [vmem:[#allocation4 + $0x5b8] sm:$0xff]   ;;  %v18033_v27 = vadd.f32 %v804_v19, %v796_v20 }
 0x1c2   :  { %v797_v37 = vmul.f32 -9.999998, %v18022_v50  ;;  %v1337_v25 = vmul.f32 -3.3333333, %v18022_v50 }
 0x1c3   :  { %14528 = vmatpush3.bf16.msra.mxu0 %v15721_v44  ;;  %v1069_v44 = vmul.f32 5.0000005, %v17673_v26  ;;  %v1084_v9 = vmul.f32 %v1080_v29, %v18033_v27 }
 0x1c4   :  { %14548 = vmatpush3.bf16.msra.mxu1 %v15718_v51  ;;  %14529 = vmatprep.subr.bf16.mxu0 %v15723_v40  ;;  %v18019_v51 = vsel %vm425_vm6, 1.0, %v19823_v7  ;;  %v15732_v40 = vld [vmem:[#allocation4 + $0x6c0] sm:$0xff]  }
 0x1c5   :  { %14549 = vmatprep.subr.bf16.mxu1 %v15720_v28  ;;  %v1076_v28 = vmul.f32 %v1072_v15, %v17935_v6  ;;  %v18027_v46 = vsub.f32 %v17884_v57, %v18019_v51  ;;  %v1336_v6 = vmul.f32 %v1332_v30, %v17954_v0  ;;  %v793_v57 = vmul.f32 %v789_v8, %v17919_v12  ;;  %v19824_v12 = vld [vmem:[#allocation30_spill] sm:$0xff] }
 0x1c6   :  { %v1073_v45 = vmul.f32 %v1069_v44, %v17948_v32  ;;  %v18049_v0 = vadd.f32 -0.6, %v17825_v1  ;;  %v1071_v1 = vmul.f32 5.0000005, %v17695_v3 }
 0x1c7   :  { %14530 = vmatpush3.bf16.msra.mxu0 %v15725_v42  ;;  %v1077_v42 = vmul.f32 -4.9999995, %v18022_v50  ;;  %v801_v54 = vmul.f32 %v797_v37, %v18027_v46 }
 0x1c8   :  { %14550 = vmatpush3.bf16.msra.mxu1 %v15722_v58  ;;  %14531 = vmatprep.subr.bf16.mxu0 %v15727_v61  ;;  %v15731_v58 = vld [vmem:[#allocation4 + $0x640] sm:$0xff]   ;;  %v799_v33 = vmul.f32 -9.999998, %v18049_v0  ;;  %v1075_v19 = vmul.f32 %v1071_v1, %v17959_v13  ;;  %v15742_v1 = vld [vmem:[#allocation4 + $0x690] sm:$0xff]  }
 0x1c9   :  { %14551 = vmatprep.subr.bf16.mxu1 %v15724_v47  ;;  %v18031_v47 = vadd.f32 %v1082_v56, %v1074_v59  ;;  %v18054_v10 = vadd.f32 %v801_v54, %v793_v57  ;;  %v19825_v59 = vld [vmem:[#allocation32_spill] sm:$0xff]  ;;  %v15737_v54 = vld [vmem:[#allocation4 + $0x608] sm:$0xff]  }
 0x1cb   :  { %14532 = vmatpush3.bf16.msra.mxu0 %v15729_v39  ;;  %v1342_v36 = vmul.f32 %v1338_v16, %v18031_v47  ;;  %v18052_v16 = vadd.f32 %v1084_v9, %v1076_v28  ;;  %v1081_v39 = vmul.f32 %v1077_v42, %v18054_v10  ;;  %v19826_v28 = vld [vmem:[#allocation29_spill] sm:$0xff] }
 0x1cc   :  { %14552 = vmatpush3.bf16.msra.mxu1 %v15726_v14  ;;  %v791_v14 = vmul.f32 10.000001, %v19824_v12  ;;  %14561 = vmatprep.subr.bf16.mxu0 %v15731_v58  ;;  %v15735_v42 = vld [vmem:[#allocation4 + $0x648] sm:$0xff]  }
 0x1cd   :  { %14553 = vmatprep.subr.bf16.mxu1 %v15728_v53  ;;  %v1346_v61 = vadd.f32 %v1342_v36, %v1334_v63  ;;  %v18058_v53 = vsub.f32 %v19825_v59, %v18046_v18  ;;  %v1344_v30 = vmul.f32 %v1340_v41, %v18052_v16  ;;  %v1079_v63 = vmul.f32 -4.9999995, %v18049_v0  ;;  %v15734_v36 = vld [vmem:[#allocation4 + $0x680] sm:$0xff]   ;;  %v15738_v59 = vld [vmem:[#allocation4 + $0x688] sm:$0xff]  }
 0x1ce   :  { %v795_v32 = vmul.f32 %v791_v14, %v17932_v52  ;;  %v1333_v52 = vmul.f32 %v1329_v49, %v17964_v48  ;;  %v1331_v41 = vmul.f32 3.3333333, %v19826_v28  ;;  %v15733_v48 = vld [vmem:[#allocation4 + $0x600] sm:$0xff]   ;;  %v18085_v28 = vld [vmem:[%s19782_s0 + $0x8] sm:$0xff] }
 0x1cf   :  { %v1510_v15 = vpack.c.bf16 %v1346_v61, %v1346_v61  ;;  %v803_v29 = vmul.f32 %v799_v33, %v18058_v53  ;;  %v1348_v20 = vadd.f32 %v1344_v30, %v1336_v6  ;;  %v15736_v61 = vld [vmem:[#allocation4 + $0x6c8] sm:$0xff]   ;;  %v15740_v33 = vld [vmem:[#allocation4 + $0x6d0] sm:$0xff]   ;;  %v15747_v30 = vld [vmem:[#allocation4 + $0x660] sm:$0xff]   ;;  %vm438_vm8 = vcmp.ge.f32.partialorder %v18085_v28, 0.7 }
 0x1d0   :  { %14554 = vmatpush3.bf16.msra.mxu1 %v15730_v11  ;;  %v18068_v11 = vadd.f32 %v1081_v39, %v1073_v45  ;;  %v1335_v57 = vmul.f32 %v1331_v41, %v17970_v4  ;;  %v15739_v45 = vld [vmem:[#allocation4 + $0x650] sm:$0xff]   ;;  %v15743_v4 = vld [vmem:[#allocation4 + $0x658] sm:$0xff]   ;;  %v18089_v41 = vadd.f32 -0.7, %v18085_v28  ;;  %vm450_vm12 = vcmp.ge.f32.partialorder %v18085_v28, 0.8 }
 0x1d1   :  { %14583 = vmatprep.subr.bf16.mxu1 %v15732_v40  ;;  %5301 = vmatprep.mubr.bf16.mxu0 %v1510_v15  ;;  %v18071_v56 = vadd.f32 %v803_v29, %v795_v32  ;;  %v1512_v8 = vpack.c.bf16 %v1348_v20, %v1348_v20  ;;  %v1339_v40 = vmul.f32 -3.3333333, %v18049_v0  ;;  %v15741_v32 = vld [vmem:[#allocation4 + $0x610] sm:$0xff]   ;;  %v15745_v15 = vld [vmem:[#allocation4 + $0x618] sm:$0xff]   ;;  %v15749_v29 = vld [vmem:[#allocation4 + $0x620] sm:$0xff]  }
 0x1d2   :  { %v1341_v44 = vmul.f32 %v1337_v25, %v18068_v11  ;;  %v15744_v39 = vld [vmem:[#allocation4 + $0x6d8] sm:$0xff]   ;;  %v15748_v20 = vld [vmem:[#allocation4 + $0x6e0] sm:$0xff]   ;;  %vm462_vm0 = vcmp.ge.f32.partialorder %v18085_v28, 0.9 }
 0x1d3   :  { %v1083_v58 = vmul.f32 %v1079_v63, %v18071_v56  ;;  %5341 = vmatprep.mubr.bf16.mxu1 %v1512_v8  ;;  %v15746_v25 = vld [vmem:[#allocation4 + $0x698] sm:$0xff]   ;;  %v15751_v63 = vld [vmem:[#allocation4 + $0x668] sm:$0xff]  }
 0x1d4   :  { %v1345_v37 = vadd.f32 %v1341_v44, %v1333_v52  ;;  %v15750_v52 = vld [vmem:[#allocation4 + $0x6a0] sm:$0xff]   ;;  %v15752_v8 = vld [vmem:[#allocation4 + $0x6e8] sm:$0xff]   ;;  %v15755_v44 = vld [vmem:[#allocation4 + $0x670] sm:$0xff]  }
 0x1d5   :  { %v18078_v6 = vadd.f32 %v1083_v58, %v1075_v19  ;;  %v15753_v19 = vld [vmem:[#allocation4 + $0x628] sm:$0xff]   ;;  %v18092_v58 = vsel %vm438_vm8, 1.0, %v19823_v7 }
 0x1d6   :  { %v1509_v49 = vpack.c.bf16 %v1345_v37, %v1345_v37 }
 0x1d7   :  { %v1343_v13 = vmul.f32 %v1339_v40, %v18078_v6  ;;  %v19827_v40 = vld [vmem:[#allocation31_spill] sm:$0xff] }
 0x1d8   :  { %5302 = vmatmul.mubr.bf16.vlgmr.msra.gmra.mrb[20].mxu0 %v1509_v49  ;;  %v810_v37 = vmul.f32 9.999998, %v19827_v40  ;;  %v818_v49 = vmul.f32 -10.000004, %v18089_v41 }
 0x1d9   :  { %v1347_v9 = vadd.f32 %v1343_v13, %v1335_v57  ;;  %14562 = vmatpush3.bf16.msra.mxu0 %v15733_v48  ;;  %v1090_v57 = vmul.f32 4.9999995, %v17745_v60  ;;  %v18098_v48 = vsub.f32 %v17979_v21, %v18092_v58  ;;  %v1350_v13 = vmul.f32 3.3333333, %v17634_v5  ;;  %v15754_v21 = vld [vmem:[#allocation4 + $0x6a8] sm:$0xff]  }
 0x1da   :  { %14563 = vmatprep.subr.bf16.mxu0 %v15735_v42  ;;  %v1098_v42 = vmul.f32 -5.0000005, %v18089_v41 }
 0x1db   :  { %v1511_v14 = vpack.c.bf16 %v1347_v9, %v1347_v9  ;;  %v814_v9 = vmul.f32 %v810_v37, %v17985_v43 }
 0x1dd   :  { %5342 = vmatmul.mubr.bf16.vlgmr.msra.gmra.mrb[20].mxu1 %v1511_v14  ;;  %14564 = vmatpush3.bf16.msra.mxu0 %v15737_v54  ;;  %v1358_v54 = vmul.f32 -3.3333335, %v18089_v41  ;;  %v15759_v14 = vld [vmem:[#allocation4 + $0x678] sm:$0xff]  }
 0x1de   :  { %14584 = vmatpush3.bf16.msra.mxu1 %v15734_v36  ;;  %14565 = vmatprep.subr.bf16.mxu0 %v15739_v45  ;;  %v15757_v36 = vld [vmem:[#allocation4 + $0x630] sm:$0xff]   ;;  %v18108_v45 = vld [vmem:[%s19782_s0 + $0x18] sm:$0xff] }
 0x1df   :  { %14585 = vmatprep.subr.bf16.mxu1 %v15736_v61  ;;  %vm440_vm9 = vcmp.ge.f32.partialorder %v18108_v45, 0.7  ;;  %v822_v61 = vmul.f32 %v818_v49, %v18098_v48  ;;  %v18117_v43 = vadd.f32 -0.7, %v18108_v45  ;;  %v1089_v49 = vmul.f32 4.9999995, %v17801_v62 }
 0x1e0   :  { %v18114_v5 = vsel %vm440_vm9, 1.0, %v19823_v7  ;;  %vm452_vm13 = vcmp.ge.f32.partialorder %v18108_v45, 0.8  ;;  %vm464_vm1 = vcmp.ge.f32.partialorder %v18108_v45, 0.9 }
 0x1e1   :  { %14566 = vmatpush3.bf16.msra.mxu0 %v15741_v32  ;;  %v15756_v32 = vld [vmem:[#allocation4 + $0x6f0] sm:$0xff]  }
 0x1e2   :  { %14586 = vmatpush3.bf16.msra.mxu1 %v15738_v59  ;;  %14567 = vmatprep.subr.bf16.mxu0 %v15743_v4  ;;  %v1094_v59 = vmul.f32 %v1090_v57, %v18008_v24  ;;  %v18121_v4 = vsub.f32 %v17996_v34, %v18114_v5  ;;  %v18126_v24 = vadd.f32 %v822_v61, %v814_v9  ;;  %v809_v57 = vmul.f32 9.999998, %v17888_v17 }
 0x1e3   :  { %14587 = vmatprep.subr.bf16.mxu1 %v15740_v33  ;;  %v812_v33 = vmul.f32 9.999998, %v17880_v55  ;;  %v1354_v34 = vmul.f32 %v1350_v13, %v18031_v47  ;;  %v15761_v47 = vld [vmem:[#allocation4 + $0x638] sm:$0xff]   ;;  %v1349_v61 = vmul.f32 3.3333333, %v17673_v26 }
 0x1e4   :  { %v15762_v26 = vld [vmem:[#allocation4 + $0x6b8] sm:$0xff]  }
 0x1e5   :  { %14568 = vmatpush3.bf16.msra.mxu0 %v15745_v15  ;;  %v1352_v15 = vmul.f32 3.3333333, %v17646_v38  ;;  %v15758_v38 = vld [vmem:[#allocation4 + $0x6b0] sm:$0xff]  }
 0x1e6   :  { %14588 = vmatpush3.bf16.msra.mxu1 %v15742_v1  ;;  %14569 = vmatprep.subr.bf16.mxu0 %v15747_v30  ;;  %v1092_v1 = vmul.f32 4.9999995, %v17773_v35  ;;  %v820_v30 = vmul.f32 -10.000004, %v18117_v43 }
 0x1e7   :  { %14589 = vmatprep.subr.bf16.mxu1 %v15744_v39  ;;  %v1100_v39 = vmul.f32 -5.0000005, %v18117_v43 }
 0x1e9   :  { %14570 = vmatpush3.bf16.msra.mxu0 %v15749_v29  ;;  %v816_v29 = vmul.f32 %v812_v33, %v18003_v22  ;;  %v15760_v22 = vld [vmem:[#allocation4 + $0x6f8] sm:$0xff]  }
 0x1ea   :  { %14590 = vmatpush3.bf16.msra.mxu1 %v15746_v25  ;;  %14571 = vmatprep.subr.bf16.mxu0 %v15751_v63  ;;  %v1360_v25 = vmul.f32 -3.3333335, %v18117_v43  ;;  %v18136_v63 = vld [vmem:[%s19782_s0] sm:$0xff] }
 0x1eb   :  { %14591 = vmatprep.subr.bf16.mxu1 %v15748_v20  ;;  %vm437_vm10 = vcmp.ge.f32.partialorder %v18136_v63, 0.7  ;;  %v1102_v20 = vmul.f32 %v1098_v42, %v18126_v24  ;;  %v15763_v42 = vld [vmem:[#allocation4 + $0x740] sm:$0xff]   ;;  %vm449_vm14 = vcmp.ge.f32.partialorder %v18136_v63, 0.8 }
 0x1ec   :  { %vm461_vm2 = vcmp.ge.f32.partialorder %v18136_v63, 0.9 }
 0x1ed   :  { %14572 = vmatpush3.bf16.msra.mxu0 %v15753_v19  ;;  %v18142_v19 = vsel %vm437_vm10, 1.0, %v19823_v7  ;;  %v18154_v13 = vadd.f32 %v1102_v20, %v1094_v59  ;;  %v18169_v59 = vld [vmem:[%s19782_s0 + $0x10] sm:$0xff]  ;;  %v15764_v20 = vld [vmem:[#allocation4 + $0x7c0] sm:$0xff]  }
 0x1ee   :  { %14592 = vmatpush3.bf16.msra.mxu1 %v15750_v52  ;;  %14573 = vmatprep.subr.bf16.mxu0 %v15755_v44  ;;  %v824_v52 = vmul.f32 %v820_v30, %v18121_v4  ;;  %v1096_v44 = vmul.f32 %v1092_v1, %v18033_v27  ;;  %v18150_v37 = vsub.f32 %v18019_v51, %v18142_v19  ;;  %vm439_vm11 = vcmp.ge.f32.partialorder %v18169_v59, 0.7 }
 0x1ef   :  { %14593 = vmatprep.subr.bf16.mxu1 %v15752_v8  ;;  %v18145_v8 = vadd.f32 -0.7, %v18136_v63  ;;  %v1356_v27 = vmul.f32 %v1352_v15, %v18052_v16  ;;  %v813_v51 = vmul.f32 %v809_v57, %v18027_v46  ;;  %v1362_v1 = vmul.f32 %v1358_v54, %v18154_v13 }
 0x1f0   :  { %v18156_v9 = vadd.f32 %v824_v52, %v816_v29  ;;  %v1093_v16 = vmul.f32 %v1089_v49, %v18054_v10  ;;  %v18174_v46 = vsel %vm439_vm11, 1.0, %v19823_v7  ;;  %v18177_v54 = vadd.f32 -0.7, %v18169_v59 }
 0x1f1   :  { %14574 = vmatpush3.bf16.msra.mxu0 %v15757_v36  ;;  %v817_v36 = vmul.f32 -10.000004, %v18145_v8  ;;  %v1097_v33 = vmul.f32 -5.0000005, %v18145_v8  ;;  %v1366_v15 = vadd.f32 %v1362_v1, %v1354_v34  ;;  %v18186_v29 = vsub.f32 %v18046_v18, %v18174_v46 }
 0x1f2   :  { %14594 = vmatpush3.bf16.msra.mxu1 %v15754_v21  ;;  %14575 = vmatprep.subr.bf16.mxu0 %v15759_v14  ;;  %v1104_v21 = vmul.f32 %v1100_v39, %v18156_v9  ;;  %v1357_v52 = vmul.f32 -3.3333335, %v18145_v8  ;;  %v819_v57 = vmul.f32 -10.000004, %v18177_v54  ;;  %v1099_v18 = vmul.f32 -5.0000005, %v18177_v54 }
 0x1f3   :  { %14595 = vmatprep.subr.bf16.mxu1 %v15756_v32  ;;  %v821_v14 = vmul.f32 %v817_v36, %v18150_v37  ;;  %v811_v32 = vmul.f32 9.999998, %v17905_v2  ;;  %v1514_v34 = vpack.c.bf16 %v1366_v15, %v1366_v15  ;;  %vm451_vm15 = vcmp.ge.f32.partialorder %v18169_v59, 0.8 }
 0x1f4   :  { %v18180_v30 = vadd.f32 %v1104_v21, %v1096_v44  ;;  %v823_v36 = vmul.f32 %v819_v57, %v18186_v29  ;;  %vm463_vm3 = vcmp.ge.f32.partialorder %v18169_v59, 0.9 }
 0x1f5   :  { %14576 = vmatpush3.bf16.msra.mxu0 %v15761_v47  ;;  %v18182_v39 = vadd.f32 %v821_v14, %v813_v51  ;;  %v815_v47 = vmul.f32 %v811_v32, %v18058_v53  ;;  %v1359_v51 = vmul.f32 -3.3333335, %v18177_v54  ;;  %5381 = vmatprep.mubr.bf16.mxu0 %v1514_v34 }
 0x1f6   :  { %14596 = vmatpush3.bf16.msra.mxu1 %v15758_v38  ;;  %v1091_v38 = vmul.f32 4.9999995, %v19824_v12  ;;  %14605 = vmatprep.subr.bf16.mxu0 %v15763_v42  ;;  %v1364_v44 = vmul.f32 %v1360_v25, %v18180_v30  ;;  %v1353_v42 = vmul.f32 %v1349_v61, %v18068_v11  ;;  %v15765_v61 = vld [vmem:[#allocation4 + $0x700] sm:$0xff]  }
 0x1f7   :  { %v14313_v10 = vpop.f32.mrb[0].mxu0  ;;  %14597 = vmatprep.subr.bf16.mxu1 %v15760_v22  ;;  %v1101_v49 = vmul.f32 %v1097_v33, %v18182_v39  ;;  %v1351_v22 = vmul.f32 3.3333333, %v17695_v3  ;;  %v18201_v21 = vadd.f32 %v823_v36, %v815_v47 }
 0x1f8   :  { %v1368_v53 = vadd.f32 %v1364_v44, %v1356_v27  ;;  %v1095_v25 = vmul.f32 %v1091_v38, %v18071_v56  ;;  %v14314_v33 = vpop.f32.mrb[1].mxu0  ;;  %v15767_v38 = vld [vmem:[#allocation4 + $0x748] sm:$0xff]  }
 0x1f9   :  { %v18198_v1 = vadd.f32 %v1101_v49, %v1093_v16  ;;  %v14315_v15 = vadd.f32 %v14314_v33, %v14313_v10  ;;  %v14316_v3 = vpop.f32.mrb[2].mxu0  ;;  %v1103_v57 = vmul.f32 %v1099_v18, %v18201_v21  ;;  %v1355_v11 = vmul.f32 %v1351_v22, %v18078_v6  ;;  %v15766_v18 = vld [vmem:[#allocation4 + $0x780] sm:$0xff]   ;;  %v15768_v6 = vld [vmem:[#allocation4 + $0x7c8] sm:$0xff]   ;;  %v15773_v33 = vld [vmem:[#allocation4 + $0x710] sm:$0xff]  }
 0x1fa   :  { %14598 = vmatpush3.bf16.msra.mxu1 %v15762_v26  ;;  %v1516_v14 = vpack.c.bf16 %v1368_v53, %v1368_v53  ;;  %v14317_v44 = vpop.f32.mrb[3].mxu0  ;;  %v15769_v53 = vld [vmem:[#allocation4 + $0x708] sm:$0xff]   ;;  %v15779_v3 = vld [vmem:[#allocation4 + $0x760] sm:$0xff]  }
 0x1fb   :  { %14627 = vmatprep.subr.bf16.mxu1 %v15764_v20  ;;  %v1361_v32 = vmul.f32 %v1357_v52, %v18198_v1  ;;  %v18206_v34 = vadd.f32 %v1103_v57, %v1095_v25  ;;  %v15770_v22 = vld [vmem:[#allocation4 + $0x788] sm:$0xff]   ;;  %v15776_v57 = vld [vmem:[#allocation4 + $0x7d8] sm:$0xff]  }
 0x1fc   :  { %5421 = vmatprep.mubr.bf16.mxu1 %v1516_v14  ;;  %v15775_v14 = vld [vmem:[#allocation4 + $0x758] sm:$0xff]  }
 0x1fd   :  { %v1365_v27 = vadd.f32 %v1361_v32, %v1353_v42  ;;  %v1363_v52 = vmul.f32 %v1359_v51, %v18206_v34  ;;  %v15771_v42 = vld [vmem:[#allocation4 + $0x750] sm:$0xff]  }
 0x1fe   :  { %v15772_v51 = vld [vmem:[#allocation4 + $0x7d0] sm:$0xff]  }
 0x1ff   :  { %v1513_v20 = vpack.c.bf16 %v1365_v27, %v1365_v27  ;;  %v1367_v36 = vadd.f32 %v1363_v52, %v1355_v11  ;;  %v15774_v32 = vld [vmem:[#allocation4 + $0x790] sm:$0xff]   ;;  %v15781_v27 = vld [vmem:[#allocation4 + $0x720] sm:$0xff]   ;;  %v15784_v52 = vld [vmem:[#allocation4 + $0x7e8] sm:$0xff]  }
 0x201   :  { %5382 = vmatmul.mubr.bf16.vlgmr.msra.gmra.mrb[24].mxu0 %v1513_v20  ;;  %v1515_v25 = vpack.c.bf16 %v1367_v36, %v1367_v36  ;;  %v15785_v20 = vld [vmem:[#allocation4 + $0x728] sm:$0xff]   ;;  %v830_v36 = vmul.f32 10.000004, %v17976_v31 }
 0x202   :  { %14606 = vmatpush3.bf16.msra.mxu0 %v15765_v61  ;;  %v15780_v61 = vld [vmem:[#allocation4 + $0x7e0] sm:$0xff]  }
 0x203   :  { %14607 = vmatprep.subr.bf16.mxu0 %v15767_v38  ;;  %5422 = vmatmul.mubr.bf16.vlgmr.msra.gmra.mrb[24].mxu1 %v1515_v25  ;;  %v18214_v38 = vadd.f32 -0.8, %v18085_v28 }
 0x204   :  { %v14335_v26 = vpop.f32.mrb[0].mxu1  ;;  %14628 = vmatpush3.bf16.msra.mxu1 %v15766_v18  ;;  %v18219_v18 = vsel %vm450_vm12, 1.0, %v19823_v7 }
 0x205   :  { %v14336_v16 = vpop.f32.mrb[1].mxu1  ;;  %14629 = vmatprep.subr.bf16.mxu1 %v15768_v6  ;;  %19828 = vst [vmem:[#allocation30_spill] sm:$0xff] %v18214_v38  ;;  %v838_v25 = vmul.f32 -9.999998, %v18214_v38  ;;  %v1118_v6 = vmul.f32 -5.0000005, %v18214_v38 }
 0x206   :  { %v14337_v47 = vadd.f32 %v14336_v16, %v14335_v26  ;;  %v14338_v56 = vpop.f32.mrb[2].mxu1  ;;  %14608 = vmatpush3.bf16.msra.mxu0 %v15769_v53  ;;  %v15778_v26 = vld [vmem:[#allocation4 + $0x798] sm:$0xff]   ;;  %v15783_v16 = vld [vmem:[#allocation4 + $0x768] sm:$0xff]   ;;  %v1110_v53 = vmul.f32 5.0000005, %v19827_v40 }
 0x207   :  { %v14339_v49 = vpop.f32.mrb[3].mxu1  ;;  %14609 = vmatprep.subr.bf16.mxu0 %v15771_v42  ;;  %v15782_v56 = vld [vmem:[#allocation4 + $0x7a0] sm:$0xff]   ;;  %v18225_v42 = vsub.f32 %v18092_v58, %v18219_v18 }
 0x208   :  { %v18210_v10 = vadd.f32 %v14337_v47, %v14315_v15  ;;  %v15777_v15 = vld [vmem:[#allocation4 + $0x718] sm:$0xff]   ;;  %14630 = vmatpush3.bf16.msra.mxu1 %v15770_v22  ;;  %v15787_v49 = vld [vmem:[#allocation4 + $0x770] sm:$0xff]   ;;  %v1370_v22 = vmul.f32 3.3333335, %v17745_v60  ;;  %v1114_v58 = vmul.f32 %v1110_v53, %v18126_v24 }
 0x209   :  { %14631 = vmatprep.subr.bf16.mxu1 %v15772_v51  ;;  %v1378_v51 = vmul.f32 -3.3333333, %v18214_v38  ;;  %v15788_v60 = vld [vmem:[#allocation4 + $0x7f0] sm:$0xff]  }
 0x20a   :  { %14610 = vmatpush3.bf16.msra.mxu0 %v15773_v33  ;;  %v15789_v33 = vld [vmem:[#allocation4 + $0x730] sm:$0xff]  }
 0x20b   :  { %14611 = vmatprep.subr.bf16.mxu0 %v15775_v14  ;;  %v834_v14 = vmul.f32 %v830_v36, %v18098_v48  ;;  %v15790_v53 = vld [vmem:[#allocation4 + $0x7b0] sm:$0xff]  }
 0x20c   :  { %14632 = vmatpush3.bf16.msra.mxu1 %v15774_v32  ;;  %v15786_v32 = vld [vmem:[#allocation4 + $0x7a8] sm:$0xff]  }
 0x20d   :  { %14633 = vmatprep.subr.bf16.mxu1 %v15776_v57  ;;  %v18236_v57 = vsel %vm452_vm13, 1.0, %v19823_v7 }
 0x20e   :  { %14612 = vmatpush3.bf16.msra.mxu0 %v15777_v15  ;;  %v15791_v15 = vld [vmem:[#allocation4 + $0x778] sm:$0xff]   ;;  %v18243_v48 = vsub.f32 %v18114_v5, %v18236_v57  ;;  %v1374_v5 = vmul.f32 %v1370_v22, %v18154_v13  ;;  %v829_v22 = vmul.f32 10.000004, %v18022_v50 }
 0x20f   :  { %14613 = vmatprep.subr.bf16.mxu0 %v15779_v3  ;;  %v842_v3 = vmul.f32 %v838_v25, %v18225_v42  ;;  %v18262_v25 = vadd.f32 -0.8, %v18136_v63 }
 0x210   :  { %14634 = vmatpush3.bf16.msra.mxu1 %v15778_v26  ;;  %v18239_v26 = vadd.f32 -0.8, %v18108_v45 }
 0x211   :  { %14635 = vmatprep.subr.bf16.mxu1 %v15780_v61  ;;  %v18248_v24 = vadd.f32 %v842_v3, %v834_v14  ;;  %v15792_v14 = vld [vmem:[#allocation4 + $0x7f8] sm:$0xff]   ;;  %v15795_v3 = vld [vmem:[#allocation4 + $0x840] sm:$0xff]   ;;  %v1117_v38 = vmul.f32 -5.0000005, %v18262_v25 }
 0x212   :  { %14614 = vmatpush3.bf16.msra.mxu0 %v15781_v27  ;;  %19829 = vst [vmem:[#allocation32_spill] sm:$0xff] %v18239_v26  ;;  %v832_v27 = vmul.f32 10.000004, %v17999_v23  ;;  %v840_v61 = vmul.f32 -9.999998, %v18239_v26 }
 0x213   :  { %14615 = vmatprep.subr.bf16.mxu0 %v15783_v16  ;;  %v1112_v16 = vmul.f32 5.0000005, %v17880_v55 }
 0x214   :  { %14636 = vmatpush3.bf16.msra.mxu1 %v15782_v56  ;;  %v836_v36 = vmul.f32 %v832_v27, %v18121_v4  ;;  %v844_v56 = vmul.f32 %v840_v61, %v18243_v48 }
 0x215   :  { %14637 = vmatprep.subr.bf16.mxu1 %v15784_v52  ;;  %v15793_v52 = vld [vmem:[#allocation4 + $0x738] sm:$0xff]   ;;  %v1116_v13 = vmul.f32 %v1112_v16, %v18156_v9 }
 0x216   :  { %14616 = vmatpush3.bf16.msra.mxu0 %v15785_v20  ;;  %v1380_v20 = vmul.f32 -3.3333333, %v18239_v26  ;;  %v18273_v61 = vadd.f32 %v844_v56, %v836_v36  ;;  %v15794_v36 = vld [vmem:[#allocation4 + $0x7b8] sm:$0xff]  }
 0x217   :  { %v14357_v11 = vpop.f32.mrb[4].mxu0  ;;  %14617 = vmatprep.subr.bf16.mxu0 %v15787_v49  ;;  %v18259_v49 = vsel %vm449_vm14, 1.0, %v19823_v7 }
 0x218   :  { %v14358_v47 = vpop.f32.mrb[5].mxu0  ;;  %v18267_v4 = vsub.f32 %v18142_v19, %v18259_v49  ;;  %14638 = vmatpush3.bf16.msra.mxu1 %v15786_v32  ;;  %v833_v19 = vmul.f32 %v829_v22, %v18150_v37  ;;  %v831_v37 = vmul.f32 10.000004, %v18049_v0 }
 0x219   :  { %v18216_v44 = vadd.f32 %v14358_v47, %v14357_v11  ;;  %v1372_v11 = vmul.f32 3.3333335, %v17773_v35  ;;  %v1120_v47 = vmul.f32 -5.0000005, %v18239_v26  ;;  %v1122_v35 = vmul.f32 %v1118_v6, %v18248_v24  ;;  %14639 = vmatprep.subr.bf16.mxu1 %v15788_v60 }
 0x21a   :  { %14618 = vmatpush3.bf16.msra.mxu0 %v15789_v33  ;;  %v1109_v6 = vmul.f32 5.0000005, %v17888_v17  ;;  %v837_v33 = vmul.f32 -9.999998, %v18262_v25  ;;  %v1369_v26 = vmul.f32 3.3333335, %v17801_v62  ;;  %v835_v22 = vmul.f32 %v831_v37, %v18186_v29 }
 0x21b   :  { %14619 = vmatprep.subr.bf16.mxu0 %v15791_v15  ;;  %v18271_v27 = vadd.f32 %v1122_v35, %v1114_v58  ;;  %v1376_v9 = vmul.f32 %v1372_v11, %v18180_v30  ;;  %v1124_v15 = vmul.f32 %v1120_v47, %v18273_v61  ;;  %v18286_v62 = vsel %vm451_vm15, 1.0, %v19823_v7  ;;  %v15796_v35 = vld [vmem:[#allocation4 + $0x8c0] sm:$0xff]  }
 0x21c   :  { %v1113_v16 = vmul.f32 %v1109_v6, %v18182_v39  ;;  %v841_v58 = vmul.f32 %v837_v33, %v18267_v4  ;;  %v18289_v30 = vadd.f32 -0.8, %v18169_v59  ;;  %v4984_v39 = vadd.f32 %v18216_v44, %v18210_v10  ;;  %14640 = vmatpush3.bf16.msra.mxu1 %v15790_v53 }
 0x21d   :  { %v1382_v32 = vmul.f32 %v1378_v51, %v18271_v27  ;;  %v18294_v60 = vadd.f32 %v1124_v15, %v1116_v13  ;;  %v18300_v47 = vsub.f32 %v18174_v46, %v18286_v62  ;;  %14641 = vmatprep.subr.bf16.mxu1 %v15792_v14  ;;  %v1111_v10 = vmul.f32 5.0000005, %v17905_v2 }
 0x21e   :  { %14620 = vmatpush3.bf16.msra.mxu0 %v15793_v52  ;;  %v18296_v11 = vadd.f32 %v841_v58, %v833_v19  ;;  %v1377_v52 = vmul.f32 -3.3333333, %v18262_v25  ;;  %v839_v6 = vmul.f32 -9.999998, %v18289_v30  ;;  %v1119_v46 = vmul.f32 -5.0000005, %v18289_v30 }
 0x21f   :  { %v1386_v51 = vadd.f32 %v1382_v32, %v1374_v5  ;;  %14649 = vmatprep.subr.bf16.mxu0 %v15795_v3  ;;  %v1384_v5 = vmul.f32 %v1380_v20, %v18294_v60  ;;  %v1371_v14 = vmul.f32 3.3333335, %v19824_v12  ;;  %v1379_v33 = vmul.f32 -3.3333333, %v18289_v30  ;;  %v14360_v12 = vpop.f32.mrb[6].mxu0 }
 0x220   :  { %v1121_v53 = vmul.f32 %v1117_v38, %v18296_v11  ;;  %v843_v13 = vmul.f32 %v839_v6, %v18300_v47  ;;  %14642 = vmatpush3.bf16.msra.mxu1 %v15794_v36  ;;  %v1373_v3 = vmul.f32 %v1369_v26, %v18198_v1  ;;  %v1115_v20 = vmul.f32 %v1111_v10, %v18201_v21  ;;  %v14361_v6 = vpop.f32.mrb[7].mxu0  ;;  %v15797_v26 = vld [vmem:[#allocation4 + $0x800] sm:$0xff]  }
 0x221   :  { %v1518_v44 = vpack.c.bf16 %v1386_v51, %v1386_v51  ;;  %v1388_v29 = vadd.f32 %v1384_v5, %v1376_v9  ;;  %14671 = vmatprep.subr.bf16.mxu1 %v15796_v35  ;;  %v1375_v1 = vmul.f32 %v1371_v14, %v18206_v34  ;;  %v15801_v5 = vld [vmem:[#allocation4 + $0x808] sm:$0xff]   ;;  %v15807_v34 = vld [vmem:[#allocation4 + $0x858] sm:$0xff]   ;;  %v15811_v12 = vld [vmem:[#allocation4 + $0x860] sm:$0xff]  }
 0x222   :  { %v18312_v19 = vadd.f32 %v1121_v53, %v1113_v16  ;;  %v18315_v32 = vadd.f32 %v843_v13, %v835_v22  ;;  %v15799_v22 = vld [vmem:[#allocation4 + $0x848] sm:$0xff]   ;;  %v15803_v53 = vld [vmem:[#allocation4 + $0x850] sm:$0xff]   ;;  %v15813_v6 = vld [vmem:[#allocation4 + $0x820] sm:$0xff]  }
 0x223   :  { %5461 = vmatprep.mubr.bf16.mxu0 %v1518_v44  ;;  %v1520_v15 = vpack.c.bf16 %v1388_v29, %v1388_v29  ;;  %v15802_v13 = vld [vmem:[#allocation4 + $0x888] sm:$0xff]   ;;  %v15805_v29 = vld [vmem:[#allocation4 + $0x810] sm:$0xff]  }
 0x224   :  { %v14379_v56 = vpop.f32.mrb[4].mxu1  ;;  %v1381_v58 = vmul.f32 %v1377_v52, %v18312_v19  ;;  %v1123_v51 = vmul.f32 %v1119_v46, %v18315_v32 }
 0x225   :  { %v14380_v38 = vpop.f32.mrb[5].mxu1  ;;  %5501 = vmatprep.mubr.bf16.mxu1 %v1520_v15 }
 0x226   :  { %v14381_v37 = vadd.f32 %v14380_v38, %v14379_v56  ;;  %v14382_v36 = vpop.f32.mrb[6].mxu1  ;;  %v1385_v9 = vadd.f32 %v1381_v58, %v1373_v3  ;;  %v18320_v44 = vadd.f32 %v1123_v51, %v1115_v20  ;;  %v15798_v56 = vld [vmem:[#allocation4 + $0x880] sm:$0xff]   ;;  %v15804_v3 = vld [vmem:[#allocation4 + $0x8d0] sm:$0xff]   ;;  %v15809_v58 = vld [vmem:[#allocation4 + $0x818] sm:$0xff]  }
 0x227   :  { %v14383_v21 = vpop.f32.mrb[7].mxu1  ;;  %v15806_v20 = vld [vmem:[#allocation4 + $0x890] sm:$0xff]   ;;  %v15808_v36 = vld [vmem:[#allocation4 + $0x8d8] sm:$0xff]  }
 0x228   :  { %v5024_v16 = vadd.f32 %v14381_v37, %v4984_v39  ;;  %v1517_v35 = vpack.c.bf16 %v1385_v9, %v1385_v9  ;;  %v1383_v10 = vmul.f32 %v1379_v33, %v18320_v44  ;;  %v15800_v39 = vld [vmem:[#allocation4 + $0x8c8] sm:$0xff]   ;;  %v15810_v9 = vld [vmem:[#allocation4 + $0x898] sm:$0xff]   ;;  %v15814_v21 = vld [vmem:[#allocation4 + $0x8a0] sm:$0xff]  }
 0x22a   :  { %5462 = vmatmul.mubr.bf16.vlgmr.msra.gmra.mrb[28].mxu0 %v1517_v35  ;;  %v1387_v52 = vadd.f32 %v1383_v10, %v1375_v1  ;;  %v15815_v1 = vld [vmem:[#allocation4 + $0x868] sm:$0xff]   ;;  %v15819_v10 = vld [vmem:[#allocation4 + $0x870] sm:$0xff]  }
 0x22b   :  { %14650 = vmatpush3.bf16.msra.mxu0 %v15797_v26  ;;  %v15812_v26 = vld [vmem:[#allocation4 + $0x8e0] sm:$0xff]   ;;  %v15817_v35 = vld [vmem:[#allocation4 + $0x828] sm:$0xff]  }
 0x22c   :  { %14651 = vmatprep.subr.bf16.mxu0 %v15799_v22  ;;  %v1519_v46 = vpack.c.bf16 %v1387_v52, %v1387_v52  ;;  %v18328_v22 = vadd.f32 -0.9, %v18085_v28  ;;  %v850_v52 = vmul.f32 9.999998, %v18089_v41 }
 0x22e   :  { %5502 = vmatmul.mubr.bf16.vlgmr.msra.gmra.mrb[28].mxu1 %v1519_v46  ;;  %v858_v46 = vmul.f32 -10.000004, %v18328_v22  ;;  %v1138_v28 = vmul.f32 -5.0000005, %v18328_v22 }
 0x22f   :  { %14652 = vmatpush3.bf16.msra.mxu0 %v15801_v5  ;;  %14672 = vmatpush3.bf16.msra.mxu1 %v15798_v56  ;;  %v18331_v56 = vsel %vm462_vm0, 1.0, %v19823_v7  ;;  %v1130_v5 = vmul.f32 5.0000005, %v17976_v31 }
 0x230   :  { %14653 = vmatprep.subr.bf16.mxu0 %v15803_v53  ;;  %14673 = vmatprep.subr.bf16.mxu1 %v15800_v39  ;;  %v18337_v53 = vsub.f32 %v18219_v18, %v18331_v56  ;;  %v1390_v39 = vmul.f32 3.3333333, %v19827_v40  ;;  %v15820_v40 = vld [vmem:[#allocation4 + $0x8f0] sm:$0xff]  }
 0x231   :  { %v1134_v18 = vmul.f32 %v1130_v5, %v18248_v24  ;;  %v15827_v5 = vld [vmem:[#allocation4 + $0x940] sm:$0xff]  }
 0x233   :  { %14654 = vmatpush3.bf16.msra.mxu0 %v15805_v29  ;;  %14674 = vmatpush3.bf16.msra.mxu1 %v15802_v13  ;;  %v15821_v13 = vld [vmem:[#allocation4 + $0x830] sm:$0xff]   ;;  %v854_v29 = vmul.f32 %v850_v52, %v18225_v42  ;;  %v1129_v52 = vmul.f32 5.0000005, %v18022_v50 }
 0x234   :  { %14655 = vmatprep.subr.bf16.mxu0 %v15807_v34  ;;  %14675 = vmatprep.subr.bf16.mxu1 %v15804_v3  ;;  %v1398_v34 = vmul.f32 -3.333334, %v18328_v22  ;;  %v15823_v3 = vld [vmem:[#allocation4 + $0x878] sm:$0xff]  }
 0x237   :  { %v14401_v14 = vpop.f32.mrb[8].mxu0  ;;  %14656 = vmatpush3.bf16.msra.mxu0 %v15809_v58  ;;  %14676 = vmatpush3.bf16.msra.mxu1 %v15806_v20  ;;  %v18348_v20 = vsel %vm464_vm1, 1.0, %v19823_v7  ;;  %v1132_v58 = vmul.f32 5.0000005, %v17999_v23 }
 0x238   :  { %v14402_v33 = vpop.f32.mrb[9].mxu0  ;;  %14657 = vmatprep.subr.bf16.mxu0 %v15811_v12  ;;  %14677 = vmatprep.subr.bf16.mxu1 %v15808_v36  ;;  %v18355_v42 = vsub.f32 %v18236_v57, %v18348_v20  ;;  %v1394_v57 = vmul.f32 %v1390_v39, %v18271_v27  ;;  %v1389_v39 = vmul.f32 3.3333333, %v17888_v17  ;;  %v18398_v17 = vsel %vm463_vm3, 1.0, %v19823_v7 }
 0x239   :  { %v14403_v38 = vadd.f32 %v14402_v33, %v14401_v14  ;;  %v14404_v15 = vpop.f32.mrb[10].mxu0  ;;  %v15818_v14 = vld [vmem:[#allocation4 + $0x8a8] sm:$0xff]   ;;  %v862_v33 = vmul.f32 %v858_v46, %v18337_v53  ;;  %v1136_v27 = vmul.f32 %v1132_v58, %v18273_v61  ;;  %v18410_v58 = vsub.f32 %v18286_v62, %v18398_v17 }
 0x23a   :  { %v14405_v37 = vpop.f32.mrb[11].mxu0  ;;  %v852_v15 = vmul.f32 9.999998, %v18117_v43 }
 0x23b   :  { %v18324_v51 = vadd.f32 %v14403_v38, %v5024_v16  ;;  %14658 = vmatpush3.bf16.msra.mxu0 %v15813_v6  ;;  %v15816_v16 = vld [vmem:[#allocation4 + $0x8e8] sm:$0xff]   ;;  %14678 = vmatpush3.bf16.msra.mxu1 %v15810_v9  ;;  %v18351_v38 = vadd.f32 -0.9, %v18108_v45  ;;  %v1392_v37 = vmul.f32 3.3333333, %v17880_v55  ;;  %v18360_v24 = vadd.f32 %v862_v33, %v854_v29  ;;  %v15822_v6 = vld [vmem:[#allocation4 + $0x8b0] sm:$0xff]  }
 0x23c   :  { %14659 = vmatprep.subr.bf16.mxu0 %v15815_v1  ;;  %14679 = vmatprep.subr.bf16.mxu1 %v15812_v26  ;;  %v856_v9 = vmul.f32 %v852_v15, %v18243_v48  ;;  %v18371_v26 = vsel %vm461_vm2, 1.0, %v19823_v7  ;;  %v15826_v33 = vld [vmem:[#allocation4 + $0x8b8] sm:$0xff]  }
 0x23d   :  { %v860_v12 = vmul.f32 -10.000004, %v18351_v38  ;;  %v1140_v45 = vmul.f32 -5.0000005, %v18351_v38  ;;  %v1400_v36 = vmul.f32 -3.333334, %v18351_v38  ;;  %v1142_v55 = vmul.f32 %v1138_v28, %v18360_v24 }
 0x23e   :  { %v18379_v48 = vsub.f32 %v18259_v49, %v18371_v26  ;;  %v1396_v61 = vmul.f32 %v1392_v37, %v18294_v60  ;;  %v18401_v60 = vadd.f32 -0.9, %v18169_v59  ;;  %v15828_v37 = vld [vmem:[#allocation4 + $0x9c0] sm:$0xff]  }
 0x23f   :  { %14660 = vmatpush3.bf16.msra.mxu0 %v15817_v35  ;;  %14680 = vmatpush3.bf16.msra.mxu1 %v15814_v21  ;;  %v864_v1 = vmul.f32 %v860_v12, %v18355_v42  ;;  %v18374_v21 = vadd.f32 -0.9, %v18136_v63  ;;  %v15824_v35 = vld [vmem:[#allocation4 + $0x8f8] sm:$0xff]   ;;  %v18383_v46 = vadd.f32 %v1142_v55, %v1134_v18  ;;  %v1133_v18 = vmul.f32 %v1129_v52, %v18296_v11 }
 0x240   :  { %14661 = vmatprep.subr.bf16.mxu0 %v15819_v10  ;;  %14681 = vmatprep.subr.bf16.mxu1 %v15816_v16  ;;  %v15825_v16 = vld [vmem:[#allocation4 + $0x838] sm:$0xff]   ;;  %v849_v10 = vmul.f32 9.999998, %v18145_v8  ;;  %19830 = vst [vmem:[#allocation29_spill] sm:$0xff] %v18401_v60  ;;  %v1139_v62 = vmul.f32 -5.0000005, %v18401_v60 }
 0x241   :  { %v18385_v63 = vadd.f32 %v864_v1, %v856_v9  ;;  %v857_v28 = vmul.f32 -10.000004, %v18374_v21  ;;  %v1402_v29 = vmul.f32 %v1398_v34, %v18383_v46  ;;  %v1397_v12 = vmul.f32 -3.333334, %v18374_v21 }
 0x242   :  { %v853_v49 = vmul.f32 %v849_v10, %v18267_v4  ;;  %v851_v4 = vmul.f32 9.999998, %v18177_v54  ;;  %v1131_v9 = vmul.f32 5.0000005, %v18049_v0  ;;  %v1393_v10 = vmul.f32 %v1389_v39, %v18312_v19  ;;  %v18434_v19 = vld [vmem:[%s19782_s0 + $0x8] sm:$0xff] }
 0x243   :  { %14662 = vmatpush3.bf16.msra.mxu0 %v15821_v13  ;;  %14682 = vmatpush3.bf16.msra.mxu1 %v15818_v14  ;;  %v1137_v13 = vmul.f32 -5.0000005, %v18374_v21  ;;  %v1144_v14 = vmul.f32 %v1140_v45, %v18385_v63  ;;  %v1406_v34 = vadd.f32 %v1402_v29, %v1394_v57  ;;  %v859_v45 = vmul.f32 -10.000004, %v18401_v60 }
 0x244   :  { %14663 = vmatprep.subr.bf16.mxu0 %v15823_v3  ;;  %14683 = vmatprep.subr.bf16.mxu1 %v15820_v40  ;;  %v861_v3 = vmul.f32 %v857_v28, %v18379_v48  ;;  %v14423_v11 = vpop.f32.mrb[8].mxu1  ;;  %v855_v59 = vmul.f32 %v851_v4, %v18300_v47  ;;  %vm474_vm4 = vcmp.ge.f32.partialorder %v18434_v19, 1.0  ;;  %v15831_v4 = vld [vmem:[#allocation4 + $0x948] sm:$0xff]   ;;  %vm486_vm8 = vcmp.ge.f32.partialorder %v18434_v19, 1.1 }
 0x245   :  { %v18404_v40 = vadd.f32 %v1144_v14, %v1136_v27  ;;  %v1522_v57 = vpack.c.bf16 %v1406_v34, %v1406_v34  ;;  %v863_v1 = vmul.f32 %v859_v45, %v18410_v58  ;;  %v18443_v34 = vld [vmem:[%s19782_s0 + $0x18] sm:$0xff]  ;;  %v15833_v45 = vld [vmem:[#allocation4 + $0x908] sm:$0xff]  }
 0x246   :  { %v18406_v15 = vadd.f32 %v861_v3, %v853_v49  ;;  %vm476_vm5 = vcmp.ge.f32.partialorder %v18443_v34, 1.0  ;;  %vm488_vm9 = vcmp.ge.f32.partialorder %v18443_v34, 1.1 }
 0x247   :  { %14664 = vmatpush3.bf16.msra.mxu0 %v15825_v16  ;;  %14684 = vmatpush3.bf16.msra.mxu1 %v15822_v6  ;;  %v1404_v6 = vmul.f32 %v1400_v36, %v18404_v40  ;;  %v1399_v16 = vmul.f32 -3.333334, %v18401_v60  ;;  %v18425_v52 = vadd.f32 %v863_v1, %v855_v59  ;;  %v1135_v36 = vmul.f32 %v1131_v9, %v18315_v32 }
 0x248   :  { %14685 = vmatprep.subr.bf16.mxu1 %v15824_v35  ;;  %14693 = vmatprep.subr.bf16.mxu0 %v15827_v5  ;;  %v1141_v55 = vmul.f32 %v1137_v13, %v18406_v15  ;;  %v1391_v35 = vmul.f32 3.3333333, %v17905_v2  ;;  %v14424_v5 = vpop.f32.mrb[9].mxu1  ;;  %v18460_v9 = vsel %vm476_vm5, 1.0, %v19823_v7  ;;  %v1152_v60 = vmul.f32 5.0000005, %v18117_v43 }
 0x249   :  { %5541 = vmatprep.mubr.bf16.mxu0 %v1522_v57  ;;  %v1408_v47 = vadd.f32 %v1404_v6, %v1396_v61  ;;  %v14425_v13 = vadd.f32 %v14424_v5, %v14423_v11  ;;  %v14426_v2 = vpop.f32.mrb[10].mxu1  ;;  %v1143_v29 = vmul.f32 %v1139_v62, %v18425_v52  ;;  %v18451_v11 = vadd.f32 -1.0, %v18434_v19  ;;  %v15835_v57 = vld [vmem:[#allocation4 + $0x950] sm:$0xff]   ;;  %v15832_v62 = vld [vmem:[#allocation4 + $0x9c8] sm:$0xff]  }
 0x24a   :  { %v18422_v27 = vadd.f32 %v1141_v55, %v1133_v18  ;;  %v14427_v14 = vpop.f32.mrb[11].mxu1  ;;  %v1395_v39 = vmul.f32 %v1391_v35, %v18320_v44  ;;  %v15830_v44 = vld [vmem:[#allocation4 + $0x980] sm:$0xff]   ;;  %v18463_v6 = vadd.f32 -1.0, %v18443_v34  ;;  %v15834_v35 = vld [vmem:[#allocation4 + $0x988] sm:$0xff]  }
 0x24b   :  { %14686 = vmatpush3.bf16.msra.mxu1 %v15826_v33  ;;  %v1524_v28 = vpack.c.bf16 %v1408_v47, %v1408_v47  ;;  %v5104_v3 = vadd.f32 %v14425_v13, %v18324_v51  ;;  %v18437_v32 = vadd.f32 %v1143_v29, %v1135_v36  ;;  %v15829_v33 = vld [vmem:[#allocation4 + $0x900] sm:$0xff]   ;;  %19831 = vst [vmem:[#allocation31_spill] sm:$0xff] %v18451_v11  ;;  %v15837_v47 = vld [vmem:[#allocation4 + $0x910] sm:$0xff]   ;;  %v15839_v36 = vld [vmem:[#allocation4 + $0x958] sm:$0xff]  }
 0x24c   :  { %14715 = vmatprep.subr.bf16.mxu1 %v15828_v37  ;;  %v1401_v49 = vmul.f32 %v1397_v12, %v18422_v27  ;;  %v18448_v37 = vsel %vm474_vm4, 1.0, %v19823_v7  ;;  %v18456_v12 = vld [vmem:[%s19782_s0] sm:$0xff]  ;;  %19832 = vst [vmem:[#allocation33_spill] sm:$0xff] %v18463_v6  ;;  %v15838_v13 = vld [vmem:[#allocation4 + $0x990] sm:$0xff]   ;;  %v15841_v14 = vld [vmem:[#allocation4 + $0x918] sm:$0xff]  }
 0x24d   :  { %5581 = vmatprep.mubr.bf16.mxu1 %v1524_v28  ;;  %v1403_v51 = vmul.f32 %v1399_v16, %v18437_v32  ;;  %vm473_vm6 = vcmp.ge.f32.partialorder %v18456_v12, 1.0  ;;  %v18469_v16 = vadd.f32 -1.0, %v18456_v12  ;;  %v15836_v28 = vld [vmem:[#allocation4 + $0x9d0] sm:$0xff]   ;;  %vm485_vm10 = vcmp.ge.f32.partialorder %v18456_v12, 1.1 }
 0x24e   :  { %v1405_v61 = vadd.f32 %v1401_v49, %v1393_v10  ;;  %v18466_v1 = vsel %vm473_vm6, 1.0, %v19823_v7  ;;  %v18474_v10 = vld [vmem:[%s19782_s0 + $0x10] sm:$0xff] }
 0x24f   :  { %v1407_v59 = vadd.f32 %v1403_v51, %v1395_v39  ;;  %19833 = vst [vmem:[#allocation34_spill] sm:$0xff] %v18474_v10  ;;  %vm475_vm7 = vcmp.ge.f32.partialorder %v18474_v10, 1.0  ;;  %v15843_v39 = vld [vmem:[#allocation4 + $0x960] sm:$0xff]  }
 0x250   :  { %v1521_v18 = vpack.c.bf16 %v1405_v61, %v1405_v61 }
 0x251   :  { %v1523_v55 = vpack.c.bf16 %v1407_v59, %v1407_v59 }
 0x252   :  { %5542 = vmatmul.mubr.bf16.vlgmr.msra.gmra.mrb[32].mxu0 %v1521_v18 }
 0x253   :  { %14694 = vmatpush3.bf16.msra.mxu0 %v15829_v33  ;;  %5582 = vmatmul.mubr.bf16.vlgmr.msra.gmra.mrb[32].mxu1 %v1523_v55  ;;  %v18480_v33 = vsel %vm475_vm7, 1.0, %v19823_v7 }
 0x254   :  { %14695 = vmatprep.subr.bf16.mxu0 %v15831_v4  ;;  %14716 = vmatpush3.bf16.msra.mxu1 %v15830_v44  ;;  %v15840_v4 = vld [vmem:[#allocation4 + $0x9d8] sm:$0xff]  }
 0x255   :  { %14717 = vmatprep.subr.bf16.mxu1 %v15832_v62  ;;  %v15842_v44 = vld [vmem:[#allocation4 + $0x998] sm:$0xff]   ;;  %v15847_v62 = vld [vmem:[#allocation4 + $0x968] sm:$0xff]  }
 0x257   :  { %14696 = vmatpush3.bf16.msra.mxu0 %v15833_v45  ;;  %v15845_v45 = vld [vmem:[#allocation4 + $0x920] sm:$0xff]  }
 0x258   :  { %14697 = vmatprep.subr.bf16.mxu0 %v15835_v57  ;;  %14718 = vmatpush3.bf16.msra.mxu1 %v15834_v35  ;;  %v18484_v35 = vsub.f32 %v18331_v56, %v18448_v37  ;;  %v1150_v56 = vmul.f32 5.0000005, %v18089_v41 }
 0x259   :  { %14719 = vmatprep.subr.bf16.mxu1 %v15836_v28  ;;  %v15846_v28 = vld [vmem:[#allocation4 + $0x9a0] sm:$0xff]  }
 0x25b   :  { %14698 = vmatpush3.bf16.msra.mxu0 %v15837_v47 }
 0x25c   :  { %14699 = vmatprep.subr.bf16.mxu0 %v15839_v36  ;;  %14720 = vmatpush3.bf16.msra.mxu1 %v15838_v13  ;;  %v15844_v36 = vld [vmem:[#allocation4 + $0x9e0] sm:$0xff]   ;;  %v878_v13 = vmul.f32 -9.999998, %v18451_v11 }
 0x25d   :  { %14721 = vmatprep.subr.bf16.mxu1 %v15840_v4  ;;  %v1410_v4 = vmul.f32 3.333334, %v17976_v31  ;;  %v18508_v31 = vsub.f32 %v18371_v26, %v18466_v1  ;;  %v18520_v26 = vsub.f32 %v18398_v17, %v18480_v33 }
 0x25f   :  { %v14445_v5 = vpop.f32.mrb[12].mxu0  ;;  %14700 = vmatpush3.bf16.msra.mxu0 %v15841_v14 }
 0x260   :  { %v14446_v49 = vpop.f32.mrb[13].mxu0  ;;  %14701 = vmatprep.subr.bf16.mxu0 %v15843_v39  ;;  %v1158_v39 = vmul.f32 -5.0000005, %v18451_v11  ;;  %14722 = vmatpush3.bf16.msra.mxu1 %v15842_v44  ;;  %v15853_v44 = vld [vmem:[#allocation4 + $0x930] sm:$0xff]  }
 0x261   :  { %v14447_v2 = vadd.f32 %v14446_v49, %v14445_v5  ;;  %v14448_v29 = vpop.f32.mrb[14].mxu0  ;;  %v15849_v49 = vld [vmem:[#allocation4 + $0x928] sm:$0xff]   ;;  %14723 = vmatprep.subr.bf16.mxu1 %v15844_v36 }
 0x262   :  { %v14449_v61 = vpop.f32.mrb[15].mxu0  ;;  %v19834_v29 = vld [vmem:[#allocation30_spill] sm:$0xff] }
 0x263   :  { %v5144_v18 = vadd.f32 %v14447_v2, %v5104_v3  ;;  %v18487_v3 = vadd.f32 -1.0, %v18474_v10  ;;  %v15851_v2 = vld [vmem:[#allocation4 + $0x970] sm:$0xff]   ;;  %v870_v14 = vmul.f32 10.000004, %v19834_v29  ;;  %14702 = vmatpush3.bf16.msra.mxu0 %v15845_v45  ;;  %v15848_v61 = vld [vmem:[#allocation4 + $0x9e8] sm:$0xff]   ;;  %v19835_v45 = vld [vmem:[#allocation32_spill] sm:$0xff] }
 0x264   :  { %14703 = vmatprep.subr.bf16.mxu0 %v15847_v62  ;;  %v869_v10 = vmul.f32 10.000004, %v18262_v25  ;;  %14724 = vmatpush3.bf16.msra.mxu1 %v15846_v28  ;;  %v1157_v28 = vmul.f32 -5.0000005, %v18469_v16 }
 0x265   :  { %14725 = vmatprep.subr.bf16.mxu1 %v15848_v61 }
 0x266   :  { %v14467_v51 = vpop.f32.mrb[12].mxu1  ;;  %v873_v17 = vmul.f32 %v869_v10, %v18379_v48  ;;  %v15854_v48 = vld [vmem:[#allocation4 + $0x9b0] sm:$0xff]   ;;  %v15856_v10 = vld [vmem:[#allocation4 + $0x9f8] sm:$0xff]  }
 0x267   :  { %v14468_v59 = vpop.f32.mrb[13].mxu1  ;;  %14704 = vmatpush3.bf16.msra.mxu0 %v15849_v49  ;;  %v877_v49 = vmul.f32 -9.999998, %v18469_v16 }
 0x268   :  { %v14469_v57 = vadd.f32 %v14468_v59, %v14467_v51  ;;  %v14470_v55 = vpop.f32.mrb[14].mxu1  ;;  %v18498_v51 = vsub.f32 %v18348_v20, %v18460_v9  ;;  %v882_v59 = vmul.f32 %v878_v13, %v18484_v35  ;;  %v15850_v20 = vld [vmem:[#allocation4 + $0x9a8] sm:$0xff]   ;;  %v1160_v13 = vmul.f32 -5.0000005, %v18463_v6  ;;  %14705 = vmatprep.subr.bf16.mxu0 %v15851_v2 }
 0x269   :  { %v14471_v47 = vpop.f32.mrb[15].mxu1  ;;  %v872_v55 = vmul.f32 10.000004, %v19835_v45  ;;  %14726 = vmatpush3.bf16.msra.mxu1 %v15850_v20  ;;  %v1159_v20 = vmul.f32 -5.0000005, %v18487_v3 }
 0x26a   :  { %v18489_v5 = vadd.f32 %v14469_v57, %v5144_v18  ;;  %v874_v18 = vmul.f32 %v870_v14, %v18337_v53  ;;  %v1418_v57 = vmul.f32 -3.3333333, %v18451_v11  ;;  %v880_v47 = vmul.f32 -9.999998, %v18463_v6 }
 0x26b   :  { %v1154_v53 = vmul.f32 %v1150_v56, %v18360_v24  ;;  %v876_v14 = vmul.f32 %v872_v55, %v18355_v42  ;;  %v1412_v11 = vmul.f32 3.333334, %v17999_v23  ;;  %v1156_v42 = vmul.f32 %v1152_v60, %v18385_v63  ;;  %v15857_v23 = vld [vmem:[#allocation4 + $0x938] sm:$0xff]   ;;  %14706 = vmatpush3.bf16.msra.mxu0 %v15853_v44  ;;  %v15859_v44 = vld [vmem:[#allocation4 + $0xa40] sm:$0xff]  }
 0x26c   :  { %v18510_v62 = vadd.f32 %v882_v59, %v874_v18  ;;  %v884_v36 = vmul.f32 %v880_v47, %v18498_v51  ;;  %v15852_v18 = vld [vmem:[#allocation4 + $0x9f0] sm:$0xff]   ;;  %v15855_v59 = vld [vmem:[#allocation4 + $0x978] sm:$0xff]   ;;  %v1149_v56 = vmul.f32 5.0000005, %v18145_v8  ;;  %v1420_v47 = vmul.f32 -3.3333333, %v18463_v6 }
 0x26d   :  { %v881_v63 = vmul.f32 %v877_v49, %v18508_v31  ;;  %v1409_v60 = vmul.f32 3.333334, %v18022_v50  ;;  %v879_v6 = vmul.f32 -9.999998, %v18487_v3  ;;  %14707 = vmatprep.subr.bf16.mxu0 %v15855_v59  ;;  %v1151_v50 = vmul.f32 5.0000005, %v18177_v54  ;;  %14727 = vmatprep.subr.bf16.mxu1 %v15852_v18 }
 0x26e   :  { %v1162_v24 = vmul.f32 %v1158_v39, %v18510_v62  ;;  %v18526_v55 = vadd.f32 %v884_v36, %v876_v14  ;;  %v1414_v39 = vmul.f32 %v1410_v4, %v18383_v46  ;;  %v1416_v14 = vmul.f32 %v1412_v11, %v18404_v40  ;;  %v15858_v59 = vld [vmem:[#allocation4 + $0x9b8] sm:$0xff]   ;;  %14728 = vmatpush3.bf16.msra.mxu1 %v15854_v48  ;;  %v15863_v48 = vld [vmem:[#allocation4 + $0xa48] sm:$0xff]  }
 0x26f   :  { %v871_v36 = vmul.f32 10.000004, %v18289_v30  ;;  %v18541_v46 = vadd.f32 %v881_v63, %v873_v17  ;;  %v1153_v4 = vmul.f32 %v1149_v56, %v18406_v15  ;;  %v883_v11 = vmul.f32 %v879_v6, %v18520_v26  ;;  %14708 = vmatpush3.bf16.msra.mxu0 %v15857_v23  ;;  %14729 = vmatprep.subr.bf16.mxu1 %v15856_v10 }
 0x270   :  { %v18531_v2 = vadd.f32 %v1162_v24, %v1154_v53  ;;  %v1164_v61 = vmul.f32 %v1160_v13, %v18526_v55  ;;  %v1417_v49 = vmul.f32 -3.3333333, %v18469_v16  ;;  %v1155_v18 = vmul.f32 %v1151_v50, %v18425_v52  ;;  %14737 = vmatprep.subr.bf16.mxu0 %v15859_v44  ;;  %v15865_v44 = vld [vmem:[#allocation4 + $0xa08] sm:$0xff]  }
 0x271   :  { %v875_v40 = vmul.f32 %v871_v36, %v18410_v58  ;;  %v1413_v17 = vmul.f32 %v1409_v60, %v18422_v27  ;;  %v15861_v60 = vld [vmem:[#allocation4 + $0xa00] sm:$0xff]  }
 0x272   :  { %v1422_v53 = vmul.f32 %v1418_v57, %v18531_v2  ;;  %v18545_v13 = vadd.f32 %v1164_v61, %v1156_v42  ;;  %v1161_v57 = vmul.f32 %v1157_v28, %v18541_v46  ;;  %v1411_v42 = vmul.f32 3.333334, %v18049_v0  ;;  %14730 = vmatpush3.bf16.msra.mxu1 %v15858_v59  ;;  %v15869_v59 = vld [vmem:[#allocation4 + $0xa10] sm:$0xff]  }
 0x273   :  { %v18553_v56 = vadd.f32 %v883_v11, %v875_v40  ;;  %v15867_v40 = vld [vmem:[#allocation4 + $0xa50] sm:$0xff]  }
 0x274   :  { %v1426_v24 = vadd.f32 %v1422_v53, %v1414_v39  ;;  %v1424_v15 = vmul.f32 %v1420_v47, %v18545_v13  ;;  %v18557_v6 = vadd.f32 %v1161_v57, %v1153_v4  ;;  %v15860_v39 = vld [vmem:[#allocation4 + $0xac0] sm:$0xff]   ;;  %v1419_v47 = vmul.f32 -3.3333333, %v18487_v3  ;;  %v15864_v4 = vld [vmem:[#allocation4 + $0xac8] sm:$0xff]   ;;  %v15868_v11 = vld [vmem:[#allocation4 + $0xad0] sm:$0xff]  }
 0x275   :  { %v1163_v23 = vmul.f32 %v1159_v20, %v18553_v56  ;;  %v1415_v0 = vmul.f32 %v1411_v42, %v18437_v32  ;;  %14759 = vmatprep.subr.bf16.mxu1 %v15860_v39  ;;  %v15862_v53 = vld [vmem:[#allocation4 + $0xa80] sm:$0xff]   ;;  %v15866_v32 = vld [vmem:[#allocation4 + $0xa88] sm:$0xff]   ;;  %v15871_v57 = vld [vmem:[#allocation4 + $0xa58] sm:$0xff]  }
 0x276   :  { %v1526_v58 = vpack.c.bf16 %v1426_v24, %v1426_v24  ;;  %v1428_v28 = vadd.f32 %v1424_v15, %v1416_v14  ;;  %v1421_v63 = vmul.f32 %v1417_v49, %v18557_v6 }
 0x277   :  { %v18563_v61 = vadd.f32 %v1163_v23, %v1155_v18  ;;  %v15870_v18 = vld [vmem:[#allocation4 + $0xa90] sm:$0xff]   ;;  %v15873_v23 = vld [vmem:[#allocation4 + $0xa18] sm:$0xff]  }
 0x278   :  { %5621 = vmatprep.mubr.bf16.mxu0 %v1526_v58  ;;  %v1528_v52 = vpack.c.bf16 %v1428_v28, %v1428_v28  ;;  %v1425_v36 = vadd.f32 %v1421_v63, %v1413_v17  ;;  %v15872_v58 = vld [vmem:[#allocation4 + $0xad8] sm:$0xff]   ;;  %v15875_v63 = vld [vmem:[#allocation4 + $0xa60] sm:$0xff]  }
 0x279   :  { %v1423_v27 = vmul.f32 %v1419_v47, %v18563_v61 }
 0x27a   :  { %5661 = vmatprep.mubr.bf16.mxu1 %v1528_v52  ;;  %v1525_v14 = vpack.c.bf16 %v1425_v36, %v1425_v36  ;;  %v15874_v36 = vld [vmem:[#allocation4 + $0xa98] sm:$0xff]  }
 0x27b   :  { %v1427_v10 = vadd.f32 %v1423_v27, %v1415_v0 }
 0x27c   :  { %5622 = vmatmul.mubr.bf16.vlgmr.msra.gmra.mrb[36].mxu0 %v1525_v14  ;;  %v15877_v14 = vld [vmem:[#allocation4 + $0xa20] sm:$0xff]  }
 0x27d   :  { %v1527_v50 = vpack.c.bf16 %v1427_v10, %v1427_v10  ;;  %14738 = vmatpush3.bf16.msra.mxu0 %v15861_v60  ;;  %v15876_v60 = vld [vmem:[#allocation4 + $0xae0] sm:$0xff]   ;;  %v15880_v10 = vld [vmem:[#allocation4 + $0xae8] sm:$0xff]  }
 0x27e   :  { %14739 = vmatprep.subr.bf16.mxu0 %v15863_v48  ;;  %v15878_v48 = vld [vmem:[#allocation4 + $0xaa0] sm:$0xff]  }
 0x27f   :  { %5662 = vmatmul.mubr.bf16.vlgmr.msra.gmra.mrb[36].mxu1 %v1527_v50  ;;  %v15882_v50 = vld [vmem:[#allocation4 + $0xaa8] sm:$0xff]  }
 0x280   :  { %14760 = vmatpush3.bf16.msra.mxu1 %v15862_v53  ;;  %v15881_v53 = vld [vmem:[#allocation4 + $0xa28] sm:$0xff]  }
 0x281   :  { %v14489_v20 = vpop.f32.mrb[16].mxu0  ;;  %14761 = vmatprep.subr.bf16.mxu1 %v15864_v4  ;;  %14740 = vmatpush3.bf16.msra.mxu0 %v15865_v44  ;;  %v18572_v4 = vadd.f32 -1.1, %v18434_v19  ;;  %v15883_v44 = vld [vmem:[#allocation4 + $0xa70] sm:$0xff]  }
 0x282   :  { %v14490_v24 = vpop.f32.mrb[17].mxu0  ;;  %14741 = vmatprep.subr.bf16.mxu0 %v15867_v40  ;;  %v18575_v40 = vsel %vm486_vm8, 1.0, %v19823_v7 }
 0x283   :  { %v14491_v15 = vadd.f32 %v14490_v24, %v14489_v20  ;;  %v14492_v28 = vpop.f32.mrb[18].mxu0  ;;  %v15884_v20 = vld [vmem:[#allocation4 + $0xaf0] sm:$0xff]   ;;  %v18581_v24 = vsub.f32 %v18448_v37, %v18575_v40  ;;  %v1178_v19 = vmul.f32 -4.999999, %v18572_v4 }
 0x284   :  { %14762 = vmatpush3.bf16.msra.mxu1 %v15866_v32  ;;  %v14493_v0 = vpop.f32.mrb[19].mxu0  ;;  %v890_v32 = vmul.f32 9.999998, %v18328_v22  ;;  %v892_v28 = vmul.f32 9.999998, %v18351_v38 }
 0x285   :  { %v5224_v17 = vadd.f32 %v14491_v15, %v18489_v5  ;;  %14763 = vmatprep.subr.bf16.mxu1 %v15868_v11  ;;  %14742 = vmatpush3.bf16.msra.mxu0 %v15869_v59  ;;  %v15879_v5 = vld [vmem:[#allocation4 + $0xa68] sm:$0xff]   ;;  %v1170_v11 = vmul.f32 5.0000005, %v19834_v29  ;;  %v15885_v59 = vld [vmem:[#allocation4 + $0xa30] sm:$0xff]  }
 0x286   :  { %v14511_v49 = vpop.f32.mrb[16].mxu1  ;;  %14743 = vmatprep.subr.bf16.mxu0 %v15871_v57  ;;  %v898_v57 = vmul.f32 -9.999998, %v18572_v4  ;;  %v894_v15 = vmul.f32 %v890_v32, %v18484_v35 }
 0x287   :  { %v14512_v42 = vpop.f32.mrb[17].mxu1  ;;  %v1174_v37 = vmul.f32 %v1170_v11, %v18510_v62 }
 0x288   :  { %v14513_v39 = vadd.f32 %v14512_v42, %v14511_v49  ;;  %v14514_v47 = vpop.f32.mrb[18].mxu1  ;;  %14764 = vmatpush3.bf16.msra.mxu1 %v15870_v18  ;;  %v1430_v49 = vmul.f32 3.3333333, %v18089_v41  ;;  %v1438_v18 = vmul.f32 -3.3333333, %v18572_v4  ;;  %v15887_v42 = vld [vmem:[#allocation4 + $0xa78] sm:$0xff]  }
 0x289   :  { %v14515_v27 = vpop.f32.mrb[19].mxu1  ;;  %14765 = vmatprep.subr.bf16.mxu1 %v15872_v58  ;;  %14744 = vmatpush3.bf16.msra.mxu0 %v15873_v23  ;;  %v902_v58 = vmul.f32 %v898_v57, %v18581_v24  ;;  %v15886_v41 = vld [vmem:[#allocation4 + $0xab0] sm:$0xff]   ;;  %v1172_v23 = vmul.f32 5.0000005, %v19835_v45  ;;  %v1432_v47 = vmul.f32 3.3333333, %v18117_v43 }
 0x28a   :  { %v18568_v52 = vadd.f32 %v14513_v39, %v5224_v17  ;;  %14745 = vmatprep.subr.bf16.mxu0 %v15875_v63  ;;  %v18592_v17 = vsel %vm488_vm9, 1.0, %v19823_v7  ;;  %v18595_v39 = vadd.f32 -1.1, %v18443_v34  ;;  %v15888_v63 = vld [vmem:[#allocation4 + $0xaf8] sm:$0xff]   ;;  %v1434_v27 = vmul.f32 %v1430_v49, %v18531_v2 }
 0x28b   :  { %v18599_v35 = vsub.f32 %v18460_v9, %v18592_v17  ;;  %v18604_v62 = vadd.f32 %v902_v58, %v894_v15  ;;  %v896_v9 = vmul.f32 %v892_v28, %v18498_v51  ;;  %v1176_v2 = vmul.f32 %v1172_v23, %v18526_v55 }
 0x28c   :  { %14766 = vmatpush3.bf16.msra.mxu1 %v15874_v36  ;;  %v900_v0 = vmul.f32 -9.999998, %v18595_v39  ;;  %v1180_v34 = vmul.f32 -4.999999, %v18595_v39  ;;  %v1440_v36 = vmul.f32 -3.3333333, %v18595_v39  ;;  %v1436_v55 = vmul.f32 %v1432_v47, %v18545_v13 }
 0x28d   :  { %14767 = vmatprep.subr.bf16.mxu1 %v15876_v60  ;;  %14746 = vmatpush3.bf16.msra.mxu0 %v15877_v14  ;;  %v15889_v60 = vld [vmem:[#allocation4 + $0xa38] sm:$0xff]   ;;  %v1182_v43 = vmul.f32 %v1178_v19, %v18604_v62 }
 0x28e   :  { %14747 = vmatprep.subr.bf16.mxu0 %v15879_v5  ;;  %v904_v14 = vmul.f32 %v900_v0, %v18599_v35  ;;  %v18615_v5 = vsel %vm485_vm10, 1.0, %v19823_v7 }
 0x28f   :  { %v18623_v51 = vsub.f32 %v18466_v1, %v18615_v5  ;;  %v18627_v32 = vadd.f32 %v1182_v43, %v1174_v37 }
 0x290   :  { %14768 = vmatpush3.bf16.msra.mxu1 %v15878_v48  ;;  %v18618_v48 = vadd.f32 -1.1, %v18456_v12  ;;  %v18629_v11 = vadd.f32 %v904_v14, %v896_v9 }
 0x291   :  { %14769 = vmatprep.subr.bf16.mxu1 %v15880_v10  ;;  %14748 = vmatpush3.bf16.msra.mxu0 %v15881_v53  ;;  %v15890_v10 = vld [vmem:[#allocation4 + $0xab8] sm:$0xff]   ;;  %v889_v53 = vmul.f32 9.999998, %v18374_v21  ;;  %v1442_v19 = vmul.f32 %v1438_v18, %v18627_v32 }
 0x292   :  { %14749 = vmatprep.subr.bf16.mxu0 %v15883_v44  ;;  %v15891_v44 = vld [vmem:[#allocation4 + $0xb40] sm:$0xff]   ;;  %v897_v12 = vmul.f32 -9.999998, %v18618_v48  ;;  %v1177_v57 = vmul.f32 -4.999999, %v18618_v48  ;;  %v1184_v49 = vmul.f32 %v1180_v34, %v18629_v11 }
 0x293   :  { %v893_v1 = vmul.f32 %v889_v53, %v18508_v31  ;;  %v19837_v31 = vld [vmem:[#allocation29_spill] sm:$0xff]  ;;  %v1437_v9 = vmul.f32 -3.3333333, %v18618_v48 }
 0x294   :  { %14770 = vmatpush3.bf16.msra.mxu1 %v15882_v50  ;;  %v1169_v50 = vmul.f32 5.0000005, %v18262_v25  ;;  %v901_v15 = vmul.f32 %v897_v12, %v18623_v51  ;;  %v891_v37 = vmul.f32 9.999998, %v19837_v31  ;;  %v18648_v28 = vadd.f32 %v1184_v49, %v1176_v2  ;;  %v15897_v49 = vld [vmem:[#allocation4 + $0xb08] sm:$0xff]  }
 0x295   :  { %14771 = vmatprep.subr.bf16.mxu1 %v15884_v20  ;;  %14750 = vmatpush3.bf16.msra.mxu0 %v15885_v59  ;;  %v1429_v20 = vmul.f32 3.3333333, %v18145_v8  ;;  %v15892_v59 = vld [vmem:[#allocation4 + $0xbc0] sm:$0xff]  }
 0x296   :  { %14751 = vmatprep.subr.bf16.mxu0 %v15887_v42  ;;  %v19836_v42 = vld [vmem:[#allocation34_spill] sm:$0xff]  ;;  %v1173_v8 = vmul.f32 %v1169_v50, %v18541_v46  ;;  %v18650_v18 = vadd.f32 %v901_v15, %v893_v1  ;;  %v895_v46 = vmul.f32 %v891_v37, %v18520_v26  ;;  %v1444_v34 = vmul.f32 %v1440_v36, %v18648_v28 }
 0x297   :  { %vm487_vm11 = vcmp.ge.f32.partialorder %v19836_v42, 1.1  ;;  %v18645_v13 = vadd.f32 -1.1, %v19836_v42  ;;  %v1433_v26 = vmul.f32 %v1429_v20, %v18557_v6  ;;  %v1431_v36 = vmul.f32 3.3333333, %v18177_v54 }
 0x298   :  { %14772 = vmatpush3.bf16.msra.mxu1 %v15886_v41  ;;  %v18642_v58 = vsel %vm487_vm11, 1.0, %v19823_v7  ;;  %v1446_v41 = vadd.f32 %v1442_v19, %v1434_v27  ;;  %v1181_v27 = vmul.f32 %v1177_v57, %v18650_v18  ;;  %v1448_v43 = vadd.f32 %v1444_v34, %v1436_v55  ;;  %v15893_v6 = vld [vmem:[#allocation4 + $0xb00] sm:$0xff]   ;;  %v15895_v57 = vld [vmem:[#allocation4 + $0xb48] sm:$0xff]   ;;  %v15899_v15 = vld [vmem:[#allocation4 + $0xb50] sm:$0xff]  }
 0x299   :  { %14773 = vmatprep.subr.bf16.mxu1 %v15888_v63  ;;  %14752 = vmatpush3.bf16.msra.mxu0 %v15889_v60  ;;  %v18654_v23 = vsub.f32 %v18480_v33, %v18642_v58  ;;  %v899_v47 = vmul.f32 -9.999998, %v18645_v13  ;;  %v1171_v63 = vmul.f32 5.0000005, %v18289_v30  ;;  %v1179_v33 = vmul.f32 -4.999999, %v18645_v13 }
 0x29a   :  { %14781 = vmatprep.subr.bf16.mxu0 %v15891_v44  ;;  %v1530_v0 = vpack.c.bf16 %v1446_v41, %v1446_v41  ;;  %v18664_v14 = vadd.f32 %v1181_v27, %v1173_v8  ;;  %v1532_v53 = vpack.c.bf16 %v1448_v43, %v1448_v43  ;;  %v1439_v12 = vmul.f32 -3.3333333, %v18645_v13  ;;  %v15894_v54 = vld [vmem:[#allocation4 + $0xb80] sm:$0xff]   ;;  %v15896_v8 = vld [vmem:[#allocation4 + $0xbc8] sm:$0xff]   ;;  %v15900_v34 = vld [vmem:[#allocation4 + $0xbd0] sm:$0xff]  }
 0x29b   :  { %v903_v60 = vmul.f32 %v899_v47, %v18654_v23  ;;  %v1175_v2 = vmul.f32 %v1171_v63, %v18553_v56  ;;  %v1435_v1 = vmul.f32 %v1431_v36, %v18563_v61  ;;  %v15898_v37 = vld [vmem:[#allocation4 + $0xb88] sm:$0xff]   ;;  %v15903_v47 = vld [vmem:[#allocation4 + $0xb58] sm:$0xff]  }
 0x29c   :  { %14774 = vmatpush3.bf16.msra.mxu1 %v15890_v10  ;;  %5701 = vmatprep.mubr.bf16.mxu0 %v1530_v0  ;;  %v1441_v50 = vmul.f32 %v1437_v9, %v18664_v14  ;;  %v15902_v9 = vld [vmem:[#allocation4 + $0xb90] sm:$0xff]   ;;  %v15904_v36 = vld [vmem:[#allocation4 + $0xbd8] sm:$0xff]  }
 0x29d   :  { %14803 = vmatprep.subr.bf16.mxu1 %v15892_v59  ;;  %v18667_v10 = vadd.f32 %v903_v60, %v895_v46  ;;  %5741 = vmatprep.mubr.bf16.mxu1 %v1532_v53  ;;  %v15901_v46 = vld [vmem:[#allocation4 + $0xb10] sm:$0xff]  }
 0x29e   :  { %v1445_v59 = vadd.f32 %v1441_v50, %v1433_v26  ;;  %v15907_v26 = vld [vmem:[#allocation4 + $0xb60] sm:$0xff]  }
 0x29f   :  { %v1183_v44 = vmul.f32 %v1179_v33, %v18667_v10  ;;  %v15905_v33 = vld [vmem:[#allocation4 + $0xb18] sm:$0xff]  }
 0x2a0   :  { %v1529_v20 = vpack.c.bf16 %v1445_v59, %v1445_v59  ;;  %v15909_v59 = vld [vmem:[#allocation4 + $0xb20] sm:$0xff]  }
 0x2a1   :  { %v18674_v55 = vadd.f32 %v1183_v44, %v1175_v2  ;;  %v15906_v44 = vld [vmem:[#allocation4 + $0xb98] sm:$0xff]  }
 0x2a2   :  { %5702 = vmatmul.mubr.bf16.vlgmr.msra.gmra.mrb[40].mxu0 %v1529_v20  ;;  %v15910_v20 = vld [vmem:[#allocation4 + $0xba0] sm:$0xff]  }
 0x2a3   :  { %v1443_v56 = vmul.f32 %v1439_v12, %v18674_v55  ;;  %14782 = vmatpush3.bf16.msra.mxu0 %v15893_v6  ;;  %v15908_v6 = vld [vmem:[#allocation4 + $0xbe0] sm:$0xff]  }
 0x2a4   :  { %14783 = vmatprep.subr.bf16.mxu0 %v15895_v57  ;;  %v15913_v57 = vld [vmem:[#allocation4 + $0xb28] sm:$0xff]  }
 0x2a5   :  { %v1447_v19 = vadd.f32 %v1443_v56, %v1435_v1  ;;  %v18684_v56 = vld [vmem:[%s19782_s0 + $0x8] sm:$0xff] }
 0x2a6   :  { %vm498_vm12 = vcmp.ge.f32.partialorder %v18684_v56, 1.2  ;;  %vm510_vm0 = vcmp.ge.f32.partialorder %v18684_v56, 1.3 }
 0x2a7   :  { %v1531_v42 = vpack.c.bf16 %v1447_v19, %v1447_v19  ;;  %14784 = vmatpush3.bf16.msra.mxu0 %v15897_v49  ;;  %v15912_v19 = vld [vmem:[#allocation4 + $0xbe8] sm:$0xff]   ;;  %v15915_v49 = vld [vmem:[#allocation4 + $0xb70] sm:$0xff]  }
 0x2a8   :  { %14785 = vmatprep.subr.bf16.mxu0 %v15899_v15  ;;  %v18689_v15 = vsel %vm498_vm12, 1.0, %v19823_v7 }
 0x2a9   :  { %5742 = vmatmul.mubr.bf16.vlgmr.msra.gmra.mrb[40].mxu1 %v1531_v42  ;;  %v19838_v42 = vld [vmem:[#allocation31_spill] sm:$0xff] }
 0x2aa   :  { %14804 = vmatpush3.bf16.msra.mxu1 %v15894_v54  ;;  %v13126_v54 = vadd.f32 -1.2, %v18684_v56 }
 0x2ab   :  { %v14533_v41 = vpop.f32.mrb[20].mxu0  ;;  %14805 = vmatprep.subr.bf16.mxu1 %v15896_v8  ;;  %14786 = vmatpush3.bf16.msra.mxu0 %v15901_v46  ;;  %v910_v8 = vmul.f32 9.999998, %v19838_v42 }
 0x2ac   :  { %v14534_v61 = vpop.f32.mrb[21].mxu0  ;;  %14787 = vmatprep.subr.bf16.mxu0 %v15903_v47  ;;  %v918_v46 = vmul.f32 -9.999998, %v13126_v54  ;;  %v1450_v47 = vmul.f32 3.3333333, %v19834_v29 }
 0x2ad   :  { %v14535_v63 = vadd.f32 %v14534_v61, %v14533_v41  ;;  %v14536_v0 = vpop.f32.mrb[22].mxu0  ;;  %v18695_v41 = vsub.f32 %v18575_v40, %v18689_v15  ;;  %v1198_v61 = vmul.f32 -4.999999, %v13126_v54 }
 0x2ae   :  { %v14537_v27 = vpop.f32.mrb[23].mxu0  ;;  %14806 = vmatpush3.bf16.msra.mxu1 %v15898_v37  ;;  %v1190_v37 = vmul.f32 4.999999, %v18328_v22  ;;  %v914_v0 = vmul.f32 %v910_v8, %v18581_v24  ;;  %v15916_v24 = vld [vmem:[#allocation4 + $0xbf0] sm:$0xff]  }
 0x2af   :  { %v5304_v60 = vadd.f32 %v14535_v63, %v18568_v52  ;;  %14807 = vmatprep.subr.bf16.mxu1 %v15900_v34  ;;  %14788 = vmatpush3.bf16.msra.mxu0 %v15905_v33  ;;  %v15911_v52 = vld [vmem:[#allocation4 + $0xb68] sm:$0xff]   ;;  %v15917_v63 = vld [vmem:[#allocation4 + $0xb30] sm:$0xff]   ;;  %v1458_v34 = vmul.f32 -3.3333325, %v13126_v54  ;;  %v18702_v27 = vld [vmem:[%s19782_s0 + $0x18] sm:$0xff]  ;;  %v922_v40 = vmul.f32 %v918_v46, %v18695_v41 }
 0x2b0   :  { %v14555_v43 = vpop.f32.mrb[20].mxu1  ;;  %14789 = vmatprep.subr.bf16.mxu0 %v15907_v26  ;;  %vm500_vm13 = vcmp.ge.f32.partialorder %v18702_v27, 1.2  ;;  %v1194_v33 = vmul.f32 %v1190_v37, %v18604_v62  ;;  %v909_v37 = vmul.f32 9.999998, %v18469_v16 }
 0x2b1   :  { %v14556_v2 = vpop.f32.mrb[21].mxu1  ;;  %v18708_v29 = vsel %vm500_vm13, 1.0, %v19823_v7  ;;  %v18718_v62 = vadd.f32 %v922_v40, %v914_v0  ;;  %v1189_v46 = vmul.f32 4.999999, %v18374_v21  ;;  %v1449_v40 = vmul.f32 3.3333333, %v18262_v25 }
 0x2b2   :  { %v14557_v53 = vadd.f32 %v14556_v2, %v14555_v43  ;;  %v14558_v50 = vpop.f32.mrb[22].mxu1  ;;  %14808 = vmatpush3.bf16.msra.mxu1 %v15902_v9  ;;  %v15914_v9 = vld [vmem:[#allocation4 + $0xba8] sm:$0xff]   ;;  %v13128_v43 = vadd.f32 -1.2, %v18702_v27  ;;  %v18713_v26 = vsub.f32 %v18592_v17, %v18708_v29  ;;  %v18725_v17 = vld [vmem:[%s19782_s0] sm:$0xff] }
 0x2b3   :  { %v14559_v12 = vpop.f32.mrb[23].mxu1  ;;  %14809 = vmatprep.subr.bf16.mxu1 %v15904_v36  ;;  %14790 = vmatpush3.bf16.msra.mxu0 %v15909_v59  ;;  %v19839_v2 = vld [vmem:[#allocation33_spill] sm:$0xff]  ;;  %v1452_v50 = vmul.f32 3.3333333, %v19835_v45  ;;  %vm497_vm14 = vcmp.ge.f32.partialorder %v18725_v17, 1.2  ;;  %v1193_v25 = vmul.f32 %v1189_v46, %v18650_v18 }
 0x2b4   :  { %v18679_v1 = vadd.f32 %v14557_v53, %v5304_v60  ;;  %14791 = vmatprep.subr.bf16.mxu0 %v15911_v52  ;;  %v15919_v60 = vld [vmem:[#allocation4 + $0xb78] sm:$0xff]   ;;  %v912_v36 = vmul.f32 9.999998, %v19839_v2  ;;  %v1192_v53 = vmul.f32 4.999999, %v18351_v38  ;;  %v1454_v52 = vmul.f32 %v1450_v47, %v18627_v32  ;;  %v15918_v45 = vld [vmem:[#allocation4 + $0xbb0] sm:$0xff]  }
 0x2b5   :  { %v1200_v12 = vmul.f32 -4.999999, %v13128_v43  ;;  %v1460_v59 = vmul.f32 -3.3333325, %v13128_v43  ;;  %v18731_v54 = vsel %vm497_vm14, 1.0, %v19823_v7  ;;  %v15920_v32 = vld [vmem:[#allocation4 + $0xbf8] sm:$0xff]  }
 0x2b6   :  { %14810 = vmatpush3.bf16.msra.mxu1 %v15906_v44  ;;  %v920_v44 = vmul.f32 -9.999998, %v13128_v43  ;;  %v18737_v8 = vsub.f32 %v18615_v5, %v18731_v54  ;;  %v913_v5 = vmul.f32 %v909_v37, %v18623_v51  ;;  %vm512_vm1 = vcmp.ge.f32.partialorder %v18702_v27, 1.3 }
 0x2b7   :  { %14811 = vmatprep.subr.bf16.mxu1 %v15908_v6  ;;  %14792 = vmatpush3.bf16.msra.mxu0 %v15913_v57  ;;  %v916_v6 = vmul.f32 %v912_v36, %v18599_v35  ;;  %v15921_v35 = vld [vmem:[#allocation4 + $0xb38] sm:$0xff]   ;;  %vm509_vm2 = vcmp.ge.f32.partialorder %v18725_v17, 1.3 }
 0x2b8   :  { %14793 = vmatprep.subr.bf16.mxu0 %v15915_v49  ;;  %v924_v57 = vmul.f32 %v920_v44, %v18713_v26  ;;  %v1196_v49 = vmul.f32 %v1192_v53, %v18629_v11  ;;  %v1456_v11 = vmul.f32 %v1452_v50, %v18648_v28 }
 0x2ba   :  { %14812 = vmatpush3.bf16.msra.mxu1 %v15910_v20  ;;  %v1202_v20 = vmul.f32 %v1198_v61, %v18718_v62  ;;  %v15923_v61 = vld [vmem:[#allocation4 + $0xc40] sm:$0xff]   ;;  %v18743_v0 = vadd.f32 %v924_v57, %v916_v6 }
 0x2bb   :  { %14813 = vmatprep.subr.bf16.mxu1 %v15912_v19  ;;  %v13125_v19 = vadd.f32 -1.2, %v18725_v17  ;;  %14794 = vmatpush3.bf16.msra.mxu0 %v15917_v63  ;;  %v15924_v57 = vld [vmem:[#allocation4 + $0xcc0] sm:$0xff]  }
 0x2bc   :  { %14795 = vmatprep.subr.bf16.mxu0 %v15919_v60  ;;  %v18741_v47 = vadd.f32 %v1202_v20, %v1194_v33  ;;  %v1204_v53 = vmul.f32 %v1200_v12, %v18743_v0  ;;  %v18754_v60 = vld [vmem:[%s19782_s0 + $0x10] sm:$0xff]  ;;  %v15922_v33 = vld [vmem:[#allocation4 + $0xbb8] sm:$0xff]   ;;  %v1191_v20 = vmul.f32 4.999999, %v19837_v31 }
 0x2bd   :  { %v917_v63 = vmul.f32 -9.999998, %v13125_v19  ;;  %v1197_v43 = vmul.f32 -4.999999, %v13125_v19  ;;  %vm499_vm15 = vcmp.ge.f32.partialorder %v18754_v60, 1.2 }
 0x2be   :  { %14814 = vmatpush3.bf16.msra.mxu1 %v15914_v9  ;;  %v1462_v36 = vmul.f32 %v1458_v34, %v18741_v47  ;;  %v18759_v28 = vsel %vm499_vm15, 1.0, %v19823_v7  ;;  %v13127_v51 = vadd.f32 -1.2, %v18754_v60  ;;  %v911_v34 = vmul.f32 9.999998, %v18487_v3 }
 0x2bf   :  { %14815 = vmatprep.subr.bf16.mxu1 %v15916_v24  ;;  %v921_v9 = vmul.f32 %v917_v63, %v18737_v8  ;;  %14796 = vmatpush3.bf16.msra.mxu0 %v15921_v35  ;;  %v18763_v50 = vadd.f32 %v1204_v53, %v1196_v49  ;;  %v18769_v12 = vsub.f32 %v18642_v58, %v18759_v28  ;;  %v1457_v49 = vmul.f32 -3.3333325, %v13125_v19 }
 0x2c0   :  { %v1466_v24 = vadd.f32 %v1462_v36, %v1454_v52  ;;  %v915_v18 = vmul.f32 %v911_v34, %v18654_v23  ;;  %v919_v6 = vmul.f32 -9.999998, %v13127_v51  ;;  %14825 = vmatprep.subr.bf16.mxu0 %v15923_v61  ;;  %v1199_v46 = vmul.f32 -4.999999, %v13127_v51 }
 0x2c1   :  { %v18765_v44 = vadd.f32 %v921_v9, %v913_v5  ;;  %v1453_v23 = vmul.f32 %v1449_v40, %v18664_v14  ;;  %v1195_v61 = vmul.f32 %v1191_v20, %v18667_v10  ;;  %v1451_v5 = vmul.f32 3.3333333, %v18289_v30  ;;  %v15925_v14 = vld [vmem:[#allocation4 + $0xc00] sm:$0xff]  }
 0x2c2   :  { %14816 = vmatpush3.bf16.msra.mxu1 %v15918_v45  ;;  %v1534_v35 = vpack.c.bf16 %v1466_v24, %v1466_v24  ;;  %v1464_v45 = vmul.f32 %v1460_v59, %v18763_v50  ;;  %v923_v37 = vmul.f32 %v919_v6, %v18769_v12  ;;  %v1459_v36 = vmul.f32 -3.3333325, %v13127_v51  ;;  %v15926_v30 = vld [vmem:[#allocation4 + $0xc80] sm:$0xff]   ;;  %v15931_v24 = vld [vmem:[#allocation4 + $0xc50] sm:$0xff]   ;;  %v15928_v51 = vld [vmem:[#allocation4 + $0xcc8] sm:$0xff]  }
 0x2c3   :  { %14817 = vmatprep.subr.bf16.mxu1 %v15920_v32  ;;  %v1201_v52 = vmul.f32 %v1197_v43, %v18765_v44  ;;  %v1455_v9 = vmul.f32 %v1451_v5, %v18674_v55  ;;  %v15930_v6 = vld [vmem:[#allocation4 + $0xc88] sm:$0xff]   ;;  %v15939_v5 = vld [vmem:[#allocation4 + $0xc60] sm:$0xff]   ;;  %vm511_vm3 = vcmp.ge.f32.partialorder %v18754_v60, 1.3 }
 0x2c4   :  { %5781 = vmatprep.mubr.bf16.mxu0 %v1534_v35  ;;  %v1468_v58 = vadd.f32 %v1464_v45, %v1456_v11  ;;  %v18779_v63 = vadd.f32 %v923_v37, %v915_v18  ;;  %v15935_v35 = vld [vmem:[#allocation4 + $0xc58] sm:$0xff]  }
 0x2c5   :  { %v18776_v32 = vadd.f32 %v1201_v52, %v1193_v25  ;;  %v15927_v25 = vld [vmem:[#allocation4 + $0xc48] sm:$0xff]  }
 0x2c6   :  { %14818 = vmatpush3.bf16.msra.mxu1 %v15922_v33  ;;  %v1536_v59 = vpack.c.bf16 %v1468_v58, %v1468_v58  ;;  %v1203_v43 = vmul.f32 %v1199_v46, %v18779_v63  ;;  %v15929_v33 = vld [vmem:[#allocation4 + $0xc08] sm:$0xff]   ;;  %v15934_v46 = vld [vmem:[#allocation4 + $0xc90] sm:$0xff]  }
 0x2c7   :  { %14847 = vmatprep.subr.bf16.mxu1 %v15924_v57  ;;  %v1461_v19 = vmul.f32 %v1457_v49, %v18776_v32  ;;  %v15933_v57 = vld [vmem:[#allocation4 + $0xc10] sm:$0xff]  }
 0x2c8   :  { %5821 = vmatprep.mubr.bf16.mxu1 %v1536_v59  ;;  %v18785_v11 = vadd.f32 %v1203_v43, %v1195_v61  ;;  %v15932_v49 = vld [vmem:[#allocation4 + $0xcd0] sm:$0xff]  }
 0x2c9   :  { %v1465_v53 = vadd.f32 %v1461_v19, %v1453_v23  ;;  %v15937_v23 = vld [vmem:[#allocation4 + $0xc18] sm:$0xff]  }
 0x2ca   :  { %v1463_v10 = vmul.f32 %v1459_v36, %v18785_v11  ;;  %v15936_v19 = vld [vmem:[#allocation4 + $0xcd8] sm:$0xff]  }
 0x2cb   :  { %v1533_v40 = vpack.c.bf16 %v1465_v53, %v1465_v53  ;;  %v15938_v53 = vld [vmem:[#allocation4 + $0xc98] sm:$0xff]  }
 0x2cc   :  { %v1467_v34 = vadd.f32 %v1463_v10, %v1455_v9  ;;  %v15942_v10 = vld [vmem:[#allocation4 + $0xca0] sm:$0xff]  }
 0x2cd   :  { %5782 = vmatmul.mubr.bf16.vlgmr.msra.gmra.mrb[44].mxu0 %v1533_v40 }
 0x2ce   :  { %14826 = vmatpush3.bf16.msra.mxu0 %v15925_v14  ;;  %v1535_v18 = vpack.c.bf16 %v1467_v34, %v1467_v34  ;;  %v15941_v14 = vld [vmem:[#allocation4 + $0xc20] sm:$0xff]   ;;  %v13130_v34 = vadd.f32 -1.3, %v18684_v56 }
 0x2cf   :  { %14827 = vmatprep.subr.bf16.mxu0 %v15927_v25  ;;  %v15940_v25 = vld [vmem:[#allocation4 + $0xce0] sm:$0xff]  }
 0x2d0   :  { %5822 = vmatmul.mubr.bf16.vlgmr.msra.gmra.mrb[44].mxu1 %v1535_v18  ;;  %v13066_v18 = vsel %vm510_vm0, 1.0, %v19823_v7 }
 0x2d1   :  { %14848 = vmatpush3.bf16.msra.mxu1 %v15926_v30  ;;  %v15945_v30 = vld [vmem:[#allocation4 + $0xc28] sm:$0xff]  }
 0x2d2   :  { %14828 = vmatpush3.bf16.msra.mxu0 %v15929_v33  ;;  %14849 = vmatprep.subr.bf16.mxu1 %v15928_v51  ;;  %v15944_v33 = vld [vmem:[#allocation4 + $0xce8] sm:$0xff]   ;;  %v930_v51 = vmul.f32 9.999998, %v18572_v4 }
 0x2d3   :  { %14829 = vmatprep.subr.bf16.mxu0 %v15931_v24  ;;  %v15947_v24 = vld [vmem:[#allocation4 + $0xc70] sm:$0xff]  }
 0x2d4   :  { %v14577_v20 = vpop.f32.mrb[24].mxu0 }
 0x2d5   :  { %v14578_v55 = vpop.f32.mrb[25].mxu0  ;;  %14850 = vmatpush3.bf16.msra.mxu1 %v15930_v6  ;;  %v1210_v6 = vmul.f32 4.999999, %v19838_v42 }
 0x2d6   :  { %v14579_v45 = vadd.f32 %v14578_v55, %v14577_v20  ;;  %v14580_v52 = vpop.f32.mrb[26].mxu0  ;;  %14830 = vmatpush3.bf16.msra.mxu0 %v15933_v57  ;;  %v14599_v61 = vpop.f32.mrb[24].mxu1  ;;  %14851 = vmatprep.subr.bf16.mxu1 %v15932_v49  ;;  %v582_v20 = vsub.f32 %v18689_v15, %v13066_v18  ;;  %v938_v57 = vmul.f32 -10.00001, %v13130_v34  ;;  %v1218_v55 = vmul.f32 -5.000002, %v13130_v34 }
 0x2d7   :  { %v14581_v37 = vpop.f32.mrb[27].mxu0  ;;  %14831 = vmatprep.subr.bf16.mxu0 %v15935_v35  ;;  %v14600_v59 = vpop.f32.mrb[25].mxu1  ;;  %v1470_v35 = vmul.f32 3.3333325, %v18328_v22  ;;  %v934_v52 = vmul.f32 %v930_v51, %v18695_v41  ;;  %v1478_v49 = vmul.f32 -3.333334, %v13130_v34  ;;  %v1214_v42 = vmul.f32 %v1210_v6, %v18718_v62 }
 0x2d8   :  { %v5384_v58 = vadd.f32 %v14579_v45, %v18679_v1  ;;  %v14601_v43 = vadd.f32 %v14600_v59, %v14599_v61  ;;  %v14602_v36 = vpop.f32.mrb[26].mxu1  ;;  %v15943_v1 = vld [vmem:[#allocation4 + $0xc68] sm:$0xff]   ;;  %v15949_v45 = vld [vmem:[#allocation4 + $0xc30] sm:$0xff]   ;;  %v942_v4 = vmul.f32 %v938_v57, %v582_v20  ;;  %v13132_v15 = vadd.f32 -1.3, %v18702_v27 }
 0x2d9   :  { %v14603_v9 = vpop.f32.mrb[27].mxu1  ;;  %14852 = vmatpush3.bf16.msra.mxu1 %v15934_v46  ;;  %v15946_v37 = vld [vmem:[#allocation4 + $0xca8] sm:$0xff]   ;;  %v15951_v46 = vld [vmem:[#allocation4 + $0xc78] sm:$0xff]   ;;  %v932_v61 = vmul.f32 9.999998, %v18595_v39  ;;  %v1474_v36 = vmul.f32 %v1470_v35, %v18741_v47 }
 0x2da   :  { %14832 = vmatpush3.bf16.msra.mxu0 %v15937_v23  ;;  %v18790_v40 = vadd.f32 %v14601_v43, %v5384_v58  ;;  %14853 = vmatprep.subr.bf16.mxu1 %v15936_v19  ;;  %v13068_v58 = vsel %vm512_vm1, 1.0, %v19823_v7  ;;  %v15948_v23 = vld [vmem:[#allocation4 + $0xcf0] sm:$0xff]   ;;  %v1212_v41 = vmul.f32 4.999999, %v19839_v2  ;;  %v946_v59 = vadd.f32 %v942_v4, %v934_v52  ;;  %v15954_v35 = vld [vmem:[#allocation4 + $0xcb8] sm:$0xff]  }
 0x2db   :  { %14833 = vmatprep.subr.bf16.mxu0 %v15939_v5  ;;  %v584_v22 = vsub.f32 %v18708_v29, %v13068_v58  ;;  %v1472_v5 = vmul.f32 3.3333325, %v18351_v38  ;;  %v940_v19 = vmul.f32 -10.00001, %v13132_v15  ;;  %v1220_v43 = vmul.f32 -5.000002, %v13132_v15 }
 0x2dc   :  { %v1480_v62 = vmul.f32 -3.333334, %v13132_v15  ;;  %v15950_v29 = vld [vmem:[#allocation4 + $0xcb0] sm:$0xff]   ;;  %v1222_v9 = vmul.f32 %v1218_v55, %v946_v59  ;;  %v13065_v2 = vsel %vm509_vm2, 1.0, %v19823_v7  ;;  %v13129_v38 = vadd.f32 -1.3, %v18725_v17 }
 0x2dd   :  { %14854 = vmatpush3.bf16.msra.mxu1 %v15938_v53  ;;  %v936_v53 = vmul.f32 %v932_v61, %v18713_v26  ;;  %v944_v39 = vmul.f32 %v940_v19, %v584_v22  ;;  %v929_v47 = vmul.f32 9.999998, %v18618_v48  ;;  %v1209_v26 = vmul.f32 4.999999, %v18469_v16 }
 0x2de   :  { %14834 = vmatpush3.bf16.msra.mxu0 %v15941_v14  ;;  %14855 = vmatprep.subr.bf16.mxu1 %v15940_v25  ;;  %v15952_v14 = vld [vmem:[#allocation4 + $0xcf8] sm:$0xff]   ;;  %v1216_v25 = vmul.f32 %v1212_v41, %v18743_v0  ;;  %v1226_v34 = vadd.f32 %v1222_v9, %v1214_v42  ;;  %v1469_v18 = vmul.f32 3.3333325, %v18374_v21  ;;  %v1476_v51 = vmul.f32 %v1472_v5, %v18763_v50 }
 0x2df   :  { %14835 = vmatprep.subr.bf16.mxu0 %v15943_v1  ;;  %v15953_v1 = vld [vmem:[#allocation4 + $0xc38] sm:$0xff]   ;;  %v933_v6 = vmul.f32 %v929_v47, %v18737_v8  ;;  %v1217_v0 = vmul.f32 -5.000002, %v13129_v38  ;;  %v1213_v16 = vmul.f32 %v1209_v26, %v18765_v44  ;;  %v13067_v48 = vsel %vm511_vm3, 1.0, %v19823_v7  ;;  %v15956_v44 = vld [vmem:[#allocation2 + $0xc0] sm:$0xff]   ;;  %v15962_v47 = vld [vmem:[#allocation2 + $0x88] sm:$0xff]  }
 0x2e0   :  { %v1482_v20 = vmul.f32 %v1478_v49, %v1226_v34  ;;  %v13131_v55 = vadd.f32 -1.3, %v18754_v60  ;;  %v931_v21 = vmul.f32 9.999998, %v18645_v13  ;;  %v583_v52 = vsub.f32 %v18759_v28, %v13067_v48  ;;  %v15967_v34 = vld [vmem:[#allocation2 + $0x58] sm:$0xff]  }
 0x2e1   :  { %14856 = vmatpush3.bf16.msra.mxu1 %v15942_v10  ;;  %v581_v10 = vsub.f32 %v18731_v54, %v13065_v2  ;;  %v1477_v15 = vmul.f32 -3.333334, %v13129_v38  ;;  %v1473_v28 = vmul.f32 %v1469_v18, %v18776_v32  ;;  %v1471_v5 = vmul.f32 3.3333325, %v19837_v31  ;;  %v15958_v32 = vld [vmem:[#allocation2 + $0x80] sm:$0xff]   ;;  %v15963_v31 = vld [vmem:[#allocation2 + $0x50] sm:$0xff]  }
 0x2e2   :  { %14836 = vmatpush3.bf16.msra.mxu0 %v15945_v30  ;;  %14857 = vmatprep.subr.bf16.mxu1 %v15944_v33  ;;  %v15955_v30 = vld [vmem:[#allocation2 + $0x40] sm:$0xff]   ;;  %v948_v33 = vadd.f32 %v944_v39, %v936_v53  ;;  %v1486_v50 = vadd.f32 %v1482_v20, %v1474_v36  ;;  %v935_v49 = vmul.f32 %v931_v21, %v18769_v12  ;;  %v15959_v39 = vld [vmem:[#allocation2 + $0x48] sm:$0xff]   ;;  %v15964_v18 = vld [vmem:[#allocation2 + $0xd0] sm:$0xff]  }
 0x2e3   :  { %14837 = vmatprep.subr.bf16.mxu0 %v15947_v24  ;;  %v937_v24 = vmul.f32 -10.00001, %v13129_v38  ;;  %v1475_v53 = vmul.f32 %v1471_v5, %v18785_v11  ;;  %v15965_v11 = vld [vmem:[#allocation2 + $0x10] sm:$0xff]   ;;  %v15970_v21 = vld [vmem:[#allocation2 + $0x98] sm:$0xff]  }
 0x2e4   :  { %v1224_v54 = vmul.f32 %v1220_v43, %v948_v33  ;;  %v1538_v4 = vpack.c.bf16 %v1486_v50, %v1486_v50  ;;  %v1479_v43 = vmul.f32 -3.333334, %v13131_v55  ;;  %v15972_v50 = vld [vmem:[#allocation2 + $0xe0] sm:$0xff]  }
 0x2e5   :  { %14858 = vmatpush3.bf16.msra.mxu1 %v15946_v37  ;;  %v941_v57 = vmul.f32 %v937_v24, %v581_v10  ;;  %v939_v37 = vmul.f32 -10.00001, %v13131_v55  ;;  %v228_v10 = vsub.f32 0.0, %v18702_v27  ;;  %v15969_v27 = vld [vmem:[#allocation2 + $0x18] sm:$0xff]  }
 0x2e6   :  { %14838 = vmatpush3.bf16.msra.mxu0 %v15949_v45  ;;  %14859 = vmatprep.subr.bf16.mxu1 %v15948_v23  ;;  %v1228_v45 = vadd.f32 %v1224_v54, %v1216_v25  ;;  %v1219_v23 = vmul.f32 -5.000002, %v13131_v55  ;;  %v15960_v25 = vld [vmem:[#allocation2 + $0xc8] sm:$0xff]   ;;  %v15971_v54 = vld [vmem:[#allocation2 + $0x60] sm:$0xff]  }
 0x2e7   :  { %14839 = vmatprep.subr.bf16.mxu0 %v15951_v46  ;;  %v945_v8 = vadd.f32 %v941_v57, %v933_v6  ;;  %v1211_v46 = vmul.f32 4.999999, %v18487_v3  ;;  %v943_v13 = vmul.f32 %v939_v37, %v583_v52  ;;  %5861 = vmatprep.mubr.bf16.mxu0 %v1538_v4  ;;  %v15966_v6 = vld [vmem:[#allocation2 + $0x90] sm:$0xff]   ;;  %v15977_v52 = vld [vmem:[#allocation2 + $0x28] sm:$0xff]  }
 0x2e8   :  { %v1484_v42 = vmul.f32 %v1480_v62, %v1228_v45  ;;  %v15973_v45 = vld [vmem:[#allocation2 + $0x20] sm:$0xff]   ;;  %v15979_v37 = vld [vmem:[#allocation2 + $0x70] sm:$0xff]   ;;  %v15976_v4 = vld [vmem:[#allocation2 + $0xe8] sm:$0xff]  }
 0x2e9   :  { %14860 = vmatpush3.bf16.msra.mxu1 %v15950_v29  ;;  %v1221_v58 = vmul.f32 %v1217_v0, %v945_v8  ;;  %v947_v41 = vadd.f32 %v943_v13, %v935_v49  ;;  %v1215_v12 = vmul.f32 %v1211_v46, %v18779_v63  ;;  %v15957_v29 = vld [vmem:[#allocation2] sm:$0xff]   ;;  %v15961_v63 = vld [vmem:[#allocation2 + $0x8] sm:$0xff]   ;;  %v15983_v13 = vld [vmem:[#allocation2 + $0x78] sm:$0xff]  }
 0x2ea   :  { %14840 = vmatpush3.bf16.msra.mxu0 %v15953_v1  ;;  %14861 = vmatprep.subr.bf16.mxu1 %v15952_v14  ;;  %v1488_v22 = vadd.f32 %v1484_v42, %v1476_v51  ;;  %v226_v14 = vsub.f32 0.0, %v18684_v56  ;;  %v225_v56 = vsub.f32 0.0, %v18725_v17  ;;  %v227_v17 = vsub.f32 0.0, %v18754_v60  ;;  %v15974_v49 = vld [vmem:[#allocation2 + $0xa0] sm:$0xff]   ;;  %v15981_v60 = vld [vmem:[#allocation2 + $0x30] sm:$0xff]  }
 0x2eb   :  { %14869 = vmatprep.subr.bf16.mxu0 %v15955_v30  ;;  %v1225_v61 = vadd.f32 %v1221_v58, %v1213_v16  ;;  %v1223_v19 = vmul.f32 %v1219_v23, %v947_v41  ;;  %v15968_v16 = vld [vmem:[#allocation2 + $0xd8] sm:$0xff]   ;;  %v15980_v23 = vld [vmem:[#allocation2 + $0xf0] sm:$0xff]  }
 0x2ec   :  { %v1540_v3 = vpack.c.bf16 %v1488_v22, %v1488_v22  ;;  %v231_v46 = vmul.f32 1.442695, %v226_v14  ;;  %v229_v42 = vmul.f32 1.442695, %v225_v56  ;;  %v233_v58 = vmul.f32 1.442695, %v227_v17 }
 0x2ed   :  { %14862 = vmatpush3.bf16.msra.mxu1 %v15954_v35  ;;  %v1481_v59 = vmul.f32 %v1477_v15, %v1225_v61  ;;  %v1227_v36 = vadd.f32 %v1223_v19, %v1215_v12  ;;  %v15978_v15 = vld [vmem:[#allocation2 + $0xa8] sm:$0xff]   ;;  %v15985_v22 = vld [vmem:[#allocation2 + $0x38] sm:$0xff]   ;;  %v15982_v61 = vld [vmem:[#allocation2 + $0xb0] sm:$0xff]  }
 0x2ee   :  { %14891 = vmatprep.subr.bf16.mxu1 %v15956_v44  ;;  %5901 = vmatprep.mubr.bf16.mxu1 %v1540_v3  ;;  %v235_v44 = vmul.f32 1.442695, %v228_v10  ;;  %16679 = vpow2.f32 %v231_v46  ;;  %v15986_v12 = vld [vmem:[#allocation2 + $0xb8] sm:$0xff]   ;;  %v16733_v14 = vld [vmem:[%s19782_s0] sm:$0xff]  ;;  %v16734_v10 = vld [vmem:[%s19782_s0 + $0x10] sm:$0xff] }
 0x2ef   :  { %v1485_v62 = vadd.f32 %v1481_v59, %v1473_v28  ;;  %v1483_v2 = vmul.f32 %v1479_v43, %v1227_v36  ;;  %v15984_v28 = vld [vmem:[#allocation2 + $0xf8] sm:$0xff]   ;;  %v15989_v56 = vld [vmem:[#allocation7 + $0x4] ss:$8 sps:$4 sm:$0xff]  }
 0x2f0   :  { %16681 = vpow2.f32 %v235_v44 }
 0x2f1   :  { %v1537_v9 = vpack.c.bf16 %v1485_v62, %v1485_v62  ;;  %v1487_v38 = vadd.f32 %v1483_v2, %v1475_v53  ;;  %16683 = vpow2.f32 %v229_v42  ;;  %v15995_v42 = vld [vmem:[#allocation7 + $0x24] ss:$8 sps:$4 sm:$0xff]  }
 0x2f2   :  { %16685 = vpow2.f32 %v233_v58  ;;  %v15998_v58 = vld [vmem:[#allocation7 + $0x34] ss:$8 sps:$4 sm:$0xff]  }
 0x2f3   :  { %5862 = vmatmul.mubr.bf16.vlgmr.msra.gmra.mrb[48].mxu0 %v1537_v9  ;;  %v1539_v1 = vpack.c.bf16 %v1487_v38, %v1487_v38  ;;  %v16731_v9 = vld [vmem:[%s19782_s0 + $0x8] sm:$0xff] }
 0x2f4   :  { %14870 = vmatpush3.bf16.msra.mxu0 %v15957_v29 }
 0x2f5   :  { %14871 = vmatprep.subr.bf16.mxu0 %v15959_v39  ;;  %5902 = vmatmul.mubr.bf16.vlgmr.msra.gmra.mrb[48].mxu1 %v1539_v1 }
 0x2f6   :  { %14892 = vmatpush3.bf16.msra.mxu1 %v15958_v32  ;;  %v16732_v32 = vld [vmem:[%s19782_s0 + $0x18] sm:$0xff] }
 0x2f7   :  { %14893 = vmatprep.subr.bf16.mxu1 %v15960_v25 }
 0x2f8   :  { %14872 = vmatpush3.bf16.msra.mxu0 %v15961_v63  ;;  %v16680_v41 = vpop.eup %16679 }
 0x2f9   :  { %14873 = vmatprep.subr.bf16.mxu0 %v15963_v31  ;;  %v238_v3 = vadd.f32 1.0, %v16680_v41  ;;  %v16010_v41 = vld [vmem:[#allocation7 + $0x74] ss:$8 sps:$4 sm:$0xff]  }
 0x2fa   :  { %14894 = vmatpush3.bf16.msra.mxu1 %v15962_v47  ;;  %v16682_v5 = vpop.eup %16681 }
 0x2fb   :  { %14895 = vmatprep.subr.bf16.mxu1 %v15964_v18  ;;  %v16684_v59 = vpop.eup %16683  ;;  %v240_v19 = vadd.f32 1.0, %v16682_v5  ;;  %16687 = vrcp.f32 %v238_v3  ;;  %v16013_v5 = vld [vmem:[#allocation7 + $0x84] ss:$8 sps:$4 sm:$0xff]   ;;  %v16011_v3 = vld [vmem:[#allocation7 + $0x80] ss:$8 sps:$4 sm:$0xff]  }
 0x2fc   :  { %14874 = vmatpush3.bf16.msra.mxu0 %v15965_v11  ;;  %v16686_v43 = vpop.eup %16685  ;;  %v237_v62 = vadd.f32 1.0, %v16684_v59  ;;  %v16016_v59 = vld [vmem:[#allocation7 + $0x94] ss:$8 sps:$4 sm:$0xff]  }
 0x2fd   :  { %v14621_v26 = vpop.f32.mrb[28].mxu0  ;;  %14875 = vmatprep.subr.bf16.mxu0 %v15967_v34  ;;  %16689 = vrcp.f32 %v240_v19  ;;  %v239_v36 = vadd.f32 1.0, %v16686_v43  ;;  %v16014_v19 = vld [vmem:[#allocation7 + $0x90] ss:$8 sps:$4 sm:$0xff]  }
 0x2fe   :  { %v14622_v30 = vpop.f32.mrb[29].mxu0  ;;  %14896 = vmatpush3.bf16.msra.mxu1 %v15966_v6  ;;  %16691 = vrcp.f32 %v237_v62  ;;  %v15987_v6 = vld [vmem:[#allocation7] ss:$8 sps:$4 sm:$0xff]  }
 0x2ff   :  { %v14623_v33 = vadd.f32 %v14622_v30, %v14621_v26  ;;  %v14624_v24 = vpop.f32.mrb[30].mxu0  ;;  %14897 = vmatprep.subr.bf16.mxu1 %v15968_v16  ;;  %16693 = vrcp.f32 %v239_v36 }
 0x300   :  { %v14625_v51 = vpop.f32.mrb[31].mxu0  ;;  %14876 = vmatpush3.bf16.msra.mxu0 %v15969_v27  ;;  %v15990_v27 = vld [vmem:[#allocation7 + $0x10] ss:$8 sps:$4 sm:$0xff]  }
 0x301   :  { %v5464_v0 = vadd.f32 %v14623_v33, %v18790_v40  ;;  %v14643_v20 = vpop.f32.mrb[28].mxu1  ;;  %14877 = vmatprep.subr.bf16.mxu0 %v15971_v54  ;;  %v15975_v40 = vld [vmem:[#allocation2 + $0x68] sm:$0xff]  }
 0x302   :  { %v14644_v57 = vpop.f32.mrb[29].mxu1  ;;  %14898 = vmatpush3.bf16.msra.mxu1 %v15970_v21 }
 0x303   :  { %v14645_v48 = vadd.f32 %v14644_v57, %v14643_v20  ;;  %v14646_v55 = vpop.f32.mrb[30].mxu1  ;;  %14899 = vmatprep.subr.bf16.mxu1 %v15972_v50  ;;  %v15992_v20 = vld [vmem:[#allocation7 + $0x14] ss:$8 sps:$4 sm:$0xff]  }
 0x304   :  { %v14647_v35 = vpop.f32.mrb[31].mxu1  ;;  %14878 = vmatpush3.bf16.msra.mxu0 %v15973_v45 }
 0x305   :  { %v18837_v8 = vadd.f32 %v14645_v48, %v5464_v0  ;;  %14879 = vmatprep.subr.bf16.mxu0 %v15975_v40  ;;  %v16688_v53 = vpop.eup %16687 }
 0x306   :  { %14900 = vmatpush3.bf16.msra.mxu1 %v15974_v49  ;;  %v246_v39 = vmul.f32 %v16731_v9, %v16688_v53 }
 0x307   :  { %14901 = vmatprep.subr.bf16.mxu1 %v15976_v4  ;;  %v16690_v29 = vpop.eup %16689  ;;  %v15993_v4 = vld [vmem:[#allocation7 + $0x20] ss:$8 sps:$4 sm:$0xff]  }
 0x308   :  { %14880 = vmatpush3.bf16.msra.mxu0 %v15977_v52  ;;  %v16692_v2 = vpop.eup %16691  ;;  %v248_v38 = vmul.f32 %v16732_v32, %v16690_v29  ;;  %v250_v31 = vpack.c.bf16 %v246_v39, %v246_v39 }
 0x309   :  { %14881 = vmatprep.subr.bf16.mxu0 %v15979_v37  ;;  %v16694_v63 = vpop.eup %16693  ;;  %v245_v1 = vmul.f32 %v16733_v14, %v16692_v2  ;;  %v16019_v2 = vld [vmem:[#allocation7 + $0xa4] ss:$8 sps:$4 sm:$0xff]  }
 0x30a   :  { %14902 = vmatpush3.bf16.msra.mxu1 %v15978_v15  ;;  %v252_v25 = vpack.c.bf16 %v248_v38, %v248_v38  ;;  %v247_v47 = vmul.f32 %v16734_v10, %v16694_v63  ;;  %6133 = vmatprep.mubr.bf16.mxu0 %v250_v31  ;;  %v16001_v15 = vld [vmem:[#allocation7 + $0x44] ss:$8 sps:$4 sm:$0xff]   ;;  %v16017_v38 = vld [vmem:[#allocation7 + $0xa0] ss:$8 sps:$4 sm:$0xff]   ;;  %v16020_v10 = vld [vmem:[#allocation7 + $0xb0] ss:$8 sps:$4 sm:$0xff]  }
 0x30b   :  { %14903 = vmatprep.subr.bf16.mxu1 %v15980_v23  ;;  %v249_v26 = vpack.c.bf16 %v245_v1, %v245_v1  ;;  %v16004_v23 = vld [vmem:[#allocation7 + $0x54] ss:$8 sps:$4 sm:$0xff]  }
 0x30c   :  { %14882 = vmatpush3.bf16.msra.mxu0 %v15981_v60  ;;  %6173 = vmatprep.mubr.bf16.mxu1 %v252_v25  ;;  %v251_v30 = vpack.c.bf16 %v247_v47, %v247_v47  ;;  %v15996_v60 = vld [vmem:[#allocation7 + $0x30] ss:$8 sps:$4 sm:$0xff]   ;;  %v16022_v25 = vld [vmem:[#allocation7 + $0xb4] ss:$8 sps:$4 sm:$0xff]   ;;  %v16025_v47 = vld [vmem:[#allocation7 + $0xc4] ss:$8 sps:$4 sm:$0xff]  }
 0x30d   :  { %14883 = vmatprep.subr.bf16.mxu0 %v15983_v13  ;;  %v15999_v13 = vld [vmem:[#allocation7 + $0x40] ss:$8 sps:$4 sm:$0xff]  }
 0x30e   :  { %14904 = vmatpush3.bf16.msra.mxu1 %v15982_v61  ;;  %v16007_v61 = vld [vmem:[#allocation7 + $0x64] ss:$8 sps:$4 sm:$0xff]  }
 0x30f   :  { %14905 = vmatprep.subr.bf16.mxu1 %v15984_v28  ;;  %v16005_v28 = vld [vmem:[#allocation7 + $0x60] ss:$8 sps:$4 sm:$0xff]  }
 0x310   :  { %14884 = vmatpush3.bf16.msra.mxu0 %v15985_v22  ;;  %v16002_v22 = vld [vmem:[#allocation7 + $0x50] ss:$8 sps:$4 sm:$0xff]  }
 0x311   :  { %7758 = vmatprep.subr.bf16.mxu0 %v15989_v56 }
 0x312   :  { %14906 = vmatpush3.bf16.msra.mxu1 %v15986_v12  ;;  %v16008_v12 = vld [vmem:[#allocation7 + $0x70] ss:$8 sps:$4 sm:$0xff]  }
 0x313   :  { %6134 = vmatmul.mubr.bf16.vlgmr.msra.gmra.mrb[52].mxu0 %v249_v26  ;;  %v16023_v26 = vld [vmem:[#allocation7 + $0xc0] ss:$8 sps:$4 sm:$0xff]  }
 0x314   :  { %7759 = vmatpush1.bf16.msra.mxu0 %v15987_v6 }
 0x315   :  { %6174 = vmatmul.mubr.bf16.vlgmr.msra.gmra.mrb[52].mxu1 %v251_v30  ;;  %7760 = vmatprep.subr.bf16.mxu0 %v15992_v20  ;;  %v16026_v30 = vld [vmem:[#allocation7 + $0xd0] ss:$8 sps:$4 sm:$0xff]  }
 0x318   :  { %7761 = vmatpush1.bf16.msra.mxu0 %v15990_v27 }
 0x319   :  { %7762 = vmatprep.subr.bf16.mxu0 %v15995_v42 }
 0x31c   :  { %7763 = vmatpush1.bf16.msra.mxu0 %v15993_v4 }
 0x31d   :  { %7764 = vmatprep.subr.bf16.mxu0 %v15998_v58 }
 0x320   :  { %7765 = vmatpush1.bf16.msra.mxu0 %v15996_v60 }
 0x321   :  { %7766 = vmatprep.subr.bf16.mxu0 %v16001_v15 }
 0x324   :  { %7767 = vmatpush1.bf16.msra.mxu0 %v15999_v13 }
 0x325   :  { %v14665_v11 = vpop.f32.mrb[32].mxu0  ;;  %7768 = vmatprep.subr.bf16.mxu0 %v16004_v23 }
 0x326   :  { %v14666_v34 = vpop.f32.mrb[33].mxu0  ;;  %v14687_v0 = vpop.f32.mrb[32].mxu1 }
 0x327   :  { %v14667_v33 = vadd.f32 %v14666_v34, %v14665_v11  ;;  %v14668_v24 = vpop.f32.mrb[34].mxu0  ;;  %v14688_v54 = vpop.f32.mrb[33].mxu1  ;;  %v16028_v11 = vld [vmem:[#allocation7 + $0xd4] ss:$8 sps:$4 sm:$0xff]   ;;  %v16031_v34 = vld [vmem:[#allocation7 + $0xe4] ss:$8 sps:$4 sm:$0xff]  }
 0x328   :  { %v14669_v18 = vpop.f32.mrb[35].mxu0  ;;  %v14689_v57 = vadd.f32 %v14688_v54, %v14687_v0  ;;  %v14690_v16 = vpop.f32.mrb[34].mxu1  ;;  %7769 = vmatpush1.bf16.msra.mxu0 %v16002_v22  ;;  %v16034_v24 = vld [vmem:[#allocation7 + $0xf4] ss:$8 sps:$4 sm:$0xff]  }
 0x329   :  { %v5544_v51 = vadd.f32 %v14667_v33, %v18837_v8  ;;  %v14691_v48 = vpop.f32.mrb[35].mxu1  ;;  %7770 = vmatprep.subr.bf16.mxu0 %v16007_v61  ;;  %v16029_v33 = vld [vmem:[#allocation7 + $0xe0] ss:$8 sps:$4 sm:$0xff]   ;;  %v16032_v18 = vld [vmem:[#allocation7 + $0xf0] ss:$8 sps:$4 sm:$0xff]  }
 0x32b   :  { %v5584_v55 = vadd.f32 %v14689_v57, %v5544_v51  ;;  %v16037_v51 = vld [vmem:[#allocation7 + $0x104] ss:$8 sps:$4 sm:$0xff]  }
 0x32c   :  { %7771 = vmatpush1.bf16.msra.mxu0 %v16005_v28 }
 0x32d   :  { %7772 = vmatprep.subr.bf16.mxu0 %v16010_v41 }
 0x330   :  { %7773 = vmatpush1.bf16.msra.mxu0 %v16008_v12 }
 0x331   :  { %7774 = vmatprep.subr.bf16.mxu0 %v16013_v5 }
 0x334   :  { %7775 = vmatpush1.bf16.msra.mxu0 %v16011_v3 }
 0x335   :  { %7776 = vmatprep.subr.bf16.mxu0 %v16016_v59 }
 0x338   :  { %7777 = vmatpush1.bf16.msra.mxu0 %v16014_v19 }
 0x339   :  { %7778 = vmatprep.subr.bf16.mxu0 %v16019_v2 }
 0x33c   :  { %7779 = vmatpush1.bf16.msra.mxu0 %v16017_v38 }
 0x33d   :  { %7780 = vmatprep.subr.bf16.mxu0 %v16022_v25 }
 0x340   :  { %7781 = vmatpush1.bf16.msra.mxu0 %v16020_v10 }
 0x341   :  { %7782 = vmatprep.subr.bf16.mxu0 %v16025_v47 }
 0x344   :  { %7783 = vmatpush1.bf16.msra.mxu0 %v16023_v26 }
 0x345   :  { %7784 = vmatprep.subr.bf16.mxu0 %v16028_v11 }
 0x348   :  { %7785 = vmatpush1.bf16.msra.mxu0 %v16026_v30 }
 0x349   :  { %7786 = vmatprep.subr.bf16.mxu0 %v16031_v34 }
 0x34c   :  { %7787 = vmatpush1.bf16.msra.mxu0 %v16029_v33 }
 0x34d   :  { %7788 = vmatprep.subr.bf16.mxu0 %v16034_v24 }
 0x34f   :  { %v14709_v21 = vpop.f32.mrb[36].mxu0 }
 0x350   :  { %v14710_v35 = vpop.f32.mrb[37].mxu0  ;;  %7789 = vmatpush1.bf16.msra.mxu0 %v16032_v18 }
 0x351   :  { %v14711_v50 = vadd.f32 %v14710_v35, %v14709_v21  ;;  %v14712_v45 = vpop.f32.mrb[38].mxu0  ;;  %7799 = vmatprep.subr.bf16.mxu0 %v16037_v51 }
 0x352   :  { %v14731_v17 = vpop.f32.mrb[36].mxu1  ;;  %v14713_v8 = vpop.f32.mrb[39].mxu0 }
 0x353   :  { %v5624_v40 = vadd.f32 %v14711_v50, %v5584_v55  ;;  %v14732_v52 = vpop.f32.mrb[37].mxu1 }
 0x354   :  { %v14733_v49 = vadd.f32 %v14732_v52, %v14731_v17  ;;  %v14734_v37 = vpop.f32.mrb[38].mxu1 }
 0x355   :  { %v14735_v46 = vpop.f32.mrb[39].mxu1 }
 0x356   :  { %v5664_v44 = vadd.f32 %v14733_v49, %v5624_v40 }
 0x375   :  { %v14753_v43 = vpop.f32.mrb[40].mxu0 }
 0x376   :  { %v14754_v62 = vpop.f32.mrb[41].mxu0 }
 0x377   :  { %v14755_v36 = vadd.f32 %v14754_v62, %v14753_v43  ;;  %v14756_v53 = vpop.f32.mrb[42].mxu0 }
 0x378   :  { %v14757_v29 = vpop.f32.mrb[43].mxu0 }
 0x379   :  { %v5704_v9 = vadd.f32 %v14755_v36, %v5664_v44 }
 0x37c   :  { %v14775_v39 = vpop.f32.mrb[40].mxu1 }
 0x37d   :  { %v14776_v32 = vpop.f32.mrb[41].mxu1 }
 0x37e   :  { %v14777_v63 = vadd.f32 %v14776_v32, %v14775_v39  ;;  %v14778_v31 = vpop.f32.mrb[42].mxu1 }
 0x37f   :  { %v14779_v14 = vpop.f32.mrb[43].mxu1 }
 0x380   :  { %v5744_v1 = vadd.f32 %v14777_v63, %v5704_v9 }
 0x3a0   :  { %v14797_v6 = vpop.f32.mrb[44].mxu0 }
 0x3a1   :  { %v14798_v56 = vpop.f32.mrb[45].mxu0 }
 0x3a2   :  { %v14799_v0 = vadd.f32 %v14798_v56, %v14797_v6  ;;  %v14800_v27 = vpop.f32.mrb[46].mxu0 }
 0x3a3   :  { %v14801_v20 = vpop.f32.mrb[47].mxu0  ;;  %v14819_v57 = vpop.f32.mrb[44].mxu1 }
 0x3a4   :  { %v5784_v54 = vadd.f32 %v14799_v0, %v5744_v1  ;;  %v14820_v16 = vpop.f32.mrb[45].mxu1 }
 0x3a5   :  { %v14821_v48 = vadd.f32 %v14820_v16, %v14819_v57  ;;  %v14822_v55 = vpop.f32.mrb[46].mxu1 }
 0x3a6   :  { %v14823_v21 = vpop.f32.mrb[47].mxu1 }
 0x3a7   :  { %v5824_v35 = vadd.f32 %v14821_v48, %v5784_v54 }
 0x3c6   :  { %v14841_v50 = vpop.f32.mrb[48].mxu0 }
 0x3c7   :  { %v14842_v45 = vpop.f32.mrb[49].mxu0 }
 0x3c8   :  { %v14843_v17 = vadd.f32 %v14842_v45, %v14841_v50  ;;  %v14844_v8 = vpop.f32.mrb[50].mxu0  ;;  %v14863_v49 = vpop.f32.mrb[48].mxu1 }
 0x3c9   :  { %v14845_v40 = vpop.f32.mrb[51].mxu0  ;;  %v14864_v37 = vpop.f32.mrb[49].mxu1 }
 0x3ca   :  { %v5864_v52 = vadd.f32 %v14843_v17, %v5824_v35  ;;  %v14865_v46 = vadd.f32 %v14864_v37, %v14863_v49  ;;  %v14866_v44 = vpop.f32.mrb[50].mxu1 }
 0x3cb   :  { %v14867_v4 = vpop.f32.mrb[51].mxu1 }
 0x3cc   :  { %v5904_v42 = vadd.f32 %v14865_v46, %v5864_v52 }
 0x3e6   :  { %v14885_v58 = vpop.f32.mrb[52].mxu0 }
 0x3e7   :  { %v14886_v15 = vpop.f32.mrb[53].mxu0 }
 0x3e8   :  { %v14907_v60 = vpop.f32.mrb[52].mxu1  ;;  %v14887_v13 = vadd.f32 %v14886_v15, %v14885_v58  ;;  %v14888_v22 = vpop.f32.mrb[54].mxu0 }
 0x3e9   :  { %v14908_v23 = vpop.f32.mrb[53].mxu1  ;;  %v14889_v41 = vpop.f32.mrb[55].mxu0 }
 0x3ea   :  { %v14909_v61 = vadd.f32 %v14908_v23, %v14907_v60  ;;  %v14910_v28 = vpop.f32.mrb[54].mxu1  ;;  %v6136_v12 = vadd.f32 %v14887_v13, %v5904_v42 }
 0x3eb   :  { %v14911_v5 = vpop.f32.mrb[55].mxu1 }
 0x3ec   :  { %v18852_v3 = vadd.f32 %v14909_v61, %v6136_v12 }
 0x3ee   :  { %vm6204_vm4 = vcmp.ge.f32.partialorder %v18852_v3, -0.3  ;;  %vm6207_vm5 = vcmp.ge.f32.partialorder %v18852_v3, -0.2  ;;  %vm6210_vm6 = vcmp.ge.f32.partialorder %v18852_v3, -0.1 }
 0x3ef   :  { %v13581_v59 = vsel %vm6204_vm4, 1.0, %v19823_v7  ;;  %v13582_v19 = vsel %vm6207_vm5, 1.0, %v19823_v7  ;;  %v13583_v43 = vsel %vm6210_vm6, 1.0, %v19823_v7  ;;  %vm6213_vm7 = vcmp.ge.f32.partialorder %v18852_v3, 0.0 }
 0x3f0   :  { %v13584_v62 = vsel %vm6213_vm7, 1.0, %v19823_v7  ;;  %vm6216_vm8 = vcmp.ge.f32.partialorder %v18852_v3, 0.1  ;;  %vm6219_vm9 = vcmp.ge.f32.partialorder %v18852_v3, 0.2  ;;  %v6255_v36 = vsub.f32 %v13581_v59, %v13582_v19 }
 0x3f1   :  { %v13585_v53 = vsel %vm6216_vm8, 1.0, %v19823_v7  ;;  %v13586_v29 = vsel %vm6219_vm9, 1.0, %v19823_v7  ;;  %v6256_v9 = vsub.f32 %v13582_v19, %v13583_v43  ;;  %v6257_v39 = vsub.f32 %v13583_v43, %v13584_v62 }
 0x3f2   :  { %v6258_v2 = vsub.f32 %v13584_v62, %v13585_v53  ;;  %v6259_v32 = vsub.f32 %v13585_v53, %v13586_v29  ;;  %v13599_v38 = vadd.f32 0.2, %v18852_v3  ;;  %v18868_v63 = vadd.f32 0.1, %v18852_v3 }
 0x3f3   :  { %v18871_v31 = vadd.f32 -0.1, %v18852_v3  ;;  %v18874_v14 = vadd.f32 -0.2, %v18852_v3  ;;  %v6294_v1 = vmul.f32 -10.0, %v18852_v3  ;;  %v6302_v25 = vmul.f32 10.0, %v18852_v3 }
 0x3f4   :  { %v6292_v10 = vmul.f32 10.0, %v13599_v38  ;;  %v6297_v47 = vmul.f32 10.0, %v18868_v63  ;;  %v6367_v26 = vmul.f32 5.0, %v13599_v38  ;;  %v6372_v11 = vmul.f32 5.0, %v18868_v63 }
 0x3f5   :  { %v6295_v30 = vmul.f32 %v6294_v1, %v6257_v39  ;;  %v6299_v34 = vmul.f32 -10.0, %v18871_v31  ;;  %v6303_v33 = vmul.f32 %v6302_v25, %v6258_v2  ;;  %v6304_v24 = vmul.f32 -10.0, %v18874_v14 }
 0x3f6   :  { %v6293_v18 = vmul.f32 %v6292_v10, %v6256_v9  ;;  %v6298_v51 = vmul.f32 %v6297_v47, %v6257_v39  ;;  %v6369_v6 = vmul.f32 -5.0, %v18871_v31  ;;  %v6374_v56 = vmul.f32 -5.0, %v18874_v14 }
 0x3f7   :  { %v6300_v0 = vmul.f32 %v6299_v34, %v6258_v2  ;;  %v6305_v27 = vmul.f32 %v6304_v24, %v6259_v32  ;;  %v6437_v20 = vmul.f32 3.3333333, %v13599_v38  ;;  %v6439_v54 = vmul.f32 -3.3333333, %v18874_v14 }
 0x3f8   :  { %v6296_v57 = vadd.f32 %v6295_v30, %v6293_v18  ;;  %v13598_v16 = vadd.f32 0.3, %v18852_v3  ;;  %v6289_v48 = vmul.f32 -10.0, %v18868_v63  ;;  %v6364_v55 = vmul.f32 -5.0, %v18852_v3 }
 0x3f9   :  { %v6301_v21 = vadd.f32 %v6300_v0, %v6298_v51  ;;  %v6306_v35 = vadd.f32 %v6305_v27, %v6303_v33  ;;  %v6434_v50 = vmul.f32 -3.3333333, %v18871_v31  ;;  %vm6222_vm10 = vcmp.ge.f32.partialorder %v18852_v3, 0.3 }
 0x3fa   :  { %v6368_v45 = vmul.f32 %v6367_v26, %v6296_v57  ;;  %v6287_v17 = vmul.f32 9.999999, %v13598_v16  ;;  %v6290_v8 = vmul.f32 %v6289_v48, %v6256_v9  ;;  %v6362_v40 = vmul.f32 4.9999995, %v13598_v16 }
 0x3fb   :  { %v6370_v52 = vmul.f32 %v6369_v6, %v6301_v21  ;;  %v6373_v49 = vmul.f32 %v6372_v11, %v6301_v21  ;;  %v6375_v37 = vmul.f32 %v6374_v56, %v6306_v35  ;;  %v6365_v46 = vmul.f32 %v6364_v55, %v6296_v57 }
 0x3fc   :  { %v6288_v44 = vmul.f32 %v6287_v17, %v6255_v36  ;;  %v6432_v4 = vmul.f32 3.3333333, %v13598_v16  ;;  %v13587_v42 = vsel %vm6222_vm10, 1.0, %v19823_v7  ;;  %vm6225_vm11 = vcmp.ge.f32.partialorder %v18852_v3, 0.4 }
 0x3fd   :  { %v6371_v58 = vadd.f32 %v6370_v52, %v6368_v45  ;;  %v6376_v60 = vadd.f32 %v6375_v37, %v6373_v49  ;;  %v13588_v15 = vsel %vm6225_vm11, 1.0, %v19823_v7  ;;  %v6260_v13 = vsub.f32 %v13586_v29, %v13587_v42  ;;  %v16038_v52 = vld [vmem:[#allocation7 + $0x110] ss:$8 sps:$4 sm:$0xff]  }
 0x3fe   :  { %v6291_v23 = vadd.f32 %v6290_v8, %v6288_v44  ;;  %v6261_v22 = vsub.f32 %v13587_v42, %v13588_v15  ;;  %v18894_v61 = vadd.f32 -0.3, %v18852_v3  ;;  %v18897_v28 = vadd.f32 -0.4, %v18852_v3 }
 0x3ff   :  { %v6438_v41 = vmul.f32 %v6437_v20, %v6371_v58  ;;  %v6440_v12 = vmul.f32 %v6439_v54, %v6376_v60  ;;  %v6435_v5 = vmul.f32 %v6434_v50, %v6371_v58  ;;  %v6307_v59 = vmul.f32 10.0, %v18871_v31  ;;  %v16040_v54 = vld [vmem:[#allocation7 + $0x114] ss:$8 sps:$4 sm:$0xff]  }
 0x400   :  { %v6363_v19 = vmul.f32 %v6362_v40, %v6291_v23  ;;  %v6309_v43 = vmul.f32 -9.999999, %v18894_v61  ;;  %v6312_v62 = vmul.f32 9.999999, %v18874_v14  ;;  %v6314_v36 = vmul.f32 -10.000001, %v18897_v28 }
 0x401   :  { %v6441_v53 = vadd.f32 %v6440_v12, %v6438_v41  ;;  %v6308_v29 = vmul.f32 %v6307_v59, %v6259_v32  ;;  %v6377_v9 = vmul.f32 5.0, %v18852_v3  ;;  %v6379_v39 = vmul.f32 -4.9999995, %v18894_v61  ;;  %v16035_v32 = vld [vmem:[#allocation7 + $0x100] ss:$8 sps:$4 sm:$0xff]  }
 0x402   :  { %v6366_v2 = vadd.f32 %v6365_v46, %v6363_v19  ;;  %v6310_v38 = vmul.f32 %v6309_v43, %v6260_v13  ;;  %v6313_v1 = vmul.f32 %v6312_v62, %v6260_v13  ;;  %v6315_v25 = vmul.f32 %v6314_v36, %v6261_v22  ;;  %v16041_v41 = vld [vmem:[#allocation7 + $0x120] ss:$8 sps:$4 sm:$0xff]   ;;  %v16046_v36 = vld [vmem:[#allocation7 + $0x134] ss:$8 sps:$4 sm:$0xff]  }
 0x403   :  { %v6498_v10 = vpack.c.bf16 %v6441_v53, %v6441_v53  ;;  %v6378_v47 = vmul.f32 %v6377_v9, %v6306_v35  ;;  %v6382_v26 = vmul.f32 4.9999995, %v18871_v31  ;;  %v6384_v11 = vmul.f32 -5.0, %v18897_v28 }
 0x404   :  { %v6433_v30 = vmul.f32 %v6432_v4, %v6366_v2  ;;  %v6311_v34 = vadd.f32 %v6310_v38, %v6308_v29  ;;  %v6316_v33 = vadd.f32 %v6315_v25, %v6313_v1  ;;  %v6447_v24 = vmul.f32 3.3333333, %v18852_v3  ;;  %v16044_v1 = vld [vmem:[#allocation7 + $0x130] ss:$8 sps:$4 sm:$0xff]  }
 0x405   :  { %7790 = vmatprep.mubr.bf16.mxu0 %v6498_v10  ;;  %v6449_v18 = vmul.f32 -3.3333333, %v18897_v28  ;;  %v6442_v51 = vmul.f32 3.3333333, %v18868_v63  ;;  %v6444_v6 = vmul.f32 -3.3333333, %v18894_v61 }
 0x406   :  { %v6436_v56 = vadd.f32 %v6435_v5, %v6433_v30  ;;  %v6380_v0 = vmul.f32 %v6379_v39, %v6311_v34  ;;  %v6383_v27 = vmul.f32 %v6382_v26, %v6311_v34  ;;  %v6385_v20 = vmul.f32 %v6384_v11, %v6316_v33  ;;  %v16049_v34 = vld [vmem:[#allocation7 + $0x144] ss:$8 sps:$4 sm:$0xff]  }
 0x407   :  { %v6443_v57 = vmul.f32 %v6442_v51, %v6376_v60  ;;  %vm6228_vm12 = vcmp.ge.f32.partialorder %v18852_v3, 0.5  ;;  %vm6231_vm13 = vcmp.ge.f32.partialorder %v18852_v3, 0.6  ;;  %v18914_v16 = vadd.f32 -0.5, %v18852_v3  ;;  %v16043_v60 = vld [vmem:[#allocation7 + $0x124] ss:$8 sps:$4 sm:$0xff]  }
 0x408   :  { %v6497_v48 = vpack.c.bf16 %v6436_v56, %v6436_v56  ;;  %v6381_v55 = vadd.f32 %v6380_v0, %v6378_v47  ;;  %v6386_v21 = vadd.f32 %v6385_v20, %v6383_v27  ;;  %v13589_v63 = vsel %vm6228_vm12, 1.0, %v19823_v7 }
 0x409   :  { %v13590_v35 = vsel %vm6231_vm13, 1.0, %v19823_v7  ;;  %v6262_v50 = vsub.f32 %v13588_v15, %v13589_v63  ;;  %v18919_v45 = vadd.f32 -0.6, %v18852_v3  ;;  %v6317_v17 = vmul.f32 10.000001, %v18894_v61 }
 0x40a   :  { %7791 = vmatmul.mubr.bf16.vlgmr.msra.gmra.mrb[56].mxu0 %v6497_v48  ;;  %v6448_v8 = vmul.f32 %v6447_v24, %v6381_v55  ;;  %v6450_v40 = vmul.f32 %v6449_v18, %v6386_v21  ;;  %v6445_v49 = vmul.f32 %v6444_v6, %v6381_v55  ;;  %v6263_v37 = vsub.f32 %v13589_v63, %v13590_v35  ;;  %v16047_v63 = vld [vmem:[#allocation7 + $0x140] ss:$8 sps:$4 sm:$0xff]  }
 0x40b   :  { %7800 = vmatpush1.bf16.msra.mxu0 %v16035_v32  ;;  %v6318_v46 = vmul.f32 %v6317_v17, %v6261_v22  ;;  %v6319_v44 = vmul.f32 -10.000001, %v18914_v16  ;;  %v6322_v4 = vmul.f32 10.000001, %v18897_v28  ;;  %v6324_v42 = vmul.f32 -9.999998, %v18919_v45 }
 0x40c   :  { %v6451_v58 = vadd.f32 %v6450_v40, %v6448_v8  ;;  %7801 = vmatprep.subr.bf16.mxu0 %v16040_v54  ;;  %v18925_v15 = vadd.f32 %v6445_v49, %v6443_v57  ;;  %v6387_v13 = vmul.f32 5.0, %v18874_v14  ;;  %v6389_v23 = vmul.f32 -5.0000005, %v18914_v16 }
 0x40d   :  { %v6320_v12 = vmul.f32 %v6319_v44, %v6262_v50  ;;  %v6323_v5 = vmul.f32 %v6322_v4, %v6262_v50  ;;  %v6325_v59 = vmul.f32 %v6324_v42, %v6263_v37  ;;  %v6392_v22 = vmul.f32 5.0000005, %v18894_v61  ;;  %v16055_v42 = vld [vmem:[#allocation7 + $0x164] ss:$8 sps:$4 sm:$0xff]  }
 0x40e   :  { %v6500_v19 = vpack.c.bf16 %v6451_v58, %v6451_v58  ;;  %v6388_v43 = vmul.f32 %v6387_v13, %v6316_v33  ;;  %v6394_v62 = vmul.f32 -4.9999995, %v18919_v45  ;;  %v6457_v9 = vmul.f32 3.3333333, %v18874_v14 }
 0x40f   :  { %7802 = vmatpush1.bf16.msra.mxu0 %v16038_v52  ;;  %v6321_v53 = vadd.f32 %v6320_v12, %v6318_v46  ;;  %v6326_v29 = vadd.f32 %v6325_v59, %v6323_v5  ;;  %v6459_v39 = vmul.f32 -3.3333333, %v18919_v45  ;;  %v6452_v2 = vmul.f32 3.3333333, %v18871_v31 }
 0x410   :  { %7831 = vmatprep.mubr.bf16.mxu0 %v6500_v19  ;;  %7803 = vmatprep.subr.bf16.mxu0 %v16043_v60  ;;  %v6454_v38 = vmul.f32 -3.3333333, %v18914_v16  ;;  %vm6234_vm14 = vcmp.ge.f32.partialorder %v18852_v3, 0.7  ;;  %vm6237_vm15 = vcmp.ge.f32.partialorder %v18852_v3, 0.8 }
 0x411   :  { %v6390_v25 = vmul.f32 %v6389_v23, %v6321_v53  ;;  %v6393_v10 = vmul.f32 %v6392_v22, %v6321_v53  ;;  %v6395_v47 = vmul.f32 %v6394_v62, %v6326_v29  ;;  %v13591_v26 = vsel %vm6234_vm14, 1.0, %v19823_v7 }
 0x412   :  { %v6453_v11 = vmul.f32 %v6452_v2, %v6386_v21  ;;  %v6264_v14 = vsub.f32 %v13590_v35, %v13591_v26  ;;  %v18939_v30 = vadd.f32 -0.7, %v18852_v3  ;;  %v13592_v24 = vsel %vm6237_vm15, 1.0, %v19823_v7  ;;  %v16052_v35 = vld [vmem:[#allocation7 + $0x154] ss:$8 sps:$4 sm:$0xff]  }
 0x413   :  { %7804 = vmatpush1.bf16.msra.mxu0 %v16041_v41  ;;  %v6391_v31 = vadd.f32 %v6390_v25, %v6388_v43  ;;  %v6396_v33 = vadd.f32 %v6395_v47, %v6393_v10  ;;  %v18943_v32 = vadd.f32 -0.8, %v18852_v3  ;;  %v6265_v18 = vsub.f32 %v13591_v26, %v13592_v24 }
 0x414   :  { %7805 = vmatprep.subr.bf16.mxu0 %v16046_v36  ;;  %v6327_v51 = vmul.f32 9.999998, %v18914_v16  ;;  %v6329_v6 = vmul.f32 -10.000004, %v18939_v30  ;;  %v6332_v56 = vmul.f32 10.000004, %v18919_v45 }
 0x415   :  { %v6458_v0 = vmul.f32 %v6457_v9, %v6391_v31  ;;  %v6460_v27 = vmul.f32 %v6459_v39, %v6396_v33  ;;  %v6455_v20 = vmul.f32 %v6454_v38, %v6391_v31  ;;  %v6334_v54 = vmul.f32 -9.999998, %v18943_v32  ;;  %v16058_v9 = vld [vmem:[#allocation7 + $0x174] ss:$8 sps:$4 sm:$0xff]  }
 0x416   :  { %v6328_v57 = vmul.f32 %v6327_v51, %v6263_v37  ;;  %v6330_v48 = vmul.f32 %v6329_v6, %v6264_v14  ;;  %v6333_v55 = vmul.f32 %v6332_v56, %v6264_v14  ;;  %v6397_v21 = vmul.f32 4.9999995, %v18897_v28  ;;  %v16050_v37 = vld [vmem:[#allocation7 + $0x150] ss:$8 sps:$4 sm:$0xff]   ;;  %v16061_v56 = vld [vmem:[#allocation7 + $0x184] ss:$8 sps:$4 sm:$0xff]  }
 0x417   :  { %7806 = vmatpush1.bf16.msra.mxu0 %v16044_v1  ;;  %v18950_v50 = vadd.f32 %v6460_v27, %v6458_v0  ;;  %v18952_v17 = vadd.f32 %v6455_v20, %v6453_v11  ;;  %v6335_v8 = vmul.f32 %v6334_v54, %v6265_v18  ;;  %v6399_v49 = vmul.f32 -5.0000005, %v18939_v30  ;;  %v16059_v54 = vld [vmem:[#allocation7 + $0x180] ss:$8 sps:$4 sm:$0xff]  }
 0x418   :  { %7807 = vmatprep.subr.bf16.mxu0 %v16049_v34  ;;  %v6331_v40 = vadd.f32 %v6330_v48, %v6328_v57  ;;  %v6398_v52 = vmul.f32 %v6397_v21, %v6326_v29  ;;  %v6402_v46 = vmul.f32 5.0000005, %v18914_v16  ;;  %v6404_v4 = vmul.f32 -5.0000005, %v18943_v32  ;;  %v16053_v29 = vld [vmem:[#allocation7 + $0x160] ss:$8 sps:$4 sm:$0xff]  }
 0x419   :  { %v6336_v44 = vadd.f32 %v6335_v8, %v6333_v55  ;;  %v6462_v13 = vmul.f32 3.3333333, %v18894_v61  ;;  %v6467_v41 = vmul.f32 3.3333335, %v18897_v28  ;;  %v6469_v12 = vmul.f32 -3.3333333, %v18943_v32 }
 0x41a   :  { %v6400_v58 = vmul.f32 %v6399_v49, %v6331_v40  ;;  %v6403_v60 = vmul.f32 %v6402_v46, %v6331_v40  ;;  %v6464_v5 = vmul.f32 -3.3333335, %v18939_v30  ;;  %vm6240_vm0 = vcmp.ge.f32.partialorder %v18852_v3, 0.9 }
 0x41b   :  { %7808 = vmatpush1.bf16.msra.mxu0 %v16047_v63  ;;  %v6405_v23 = vmul.f32 %v6404_v4, %v6336_v44  ;;  %v6463_v22 = vmul.f32 %v6462_v13, %v6396_v33  ;;  %vm6243_vm1 = vcmp.ge.f32.partialorder %v18852_v3, 1.0  ;;  %v13593_v43 = vsel %vm6240_vm0, 1.0, %v19823_v7  ;;  %v16062_v4 = vld [vmem:[#allocation7 + $0x190] ss:$8 sps:$4 sm:$0xff]  }
 0x41c   :  { %7809 = vmatprep.subr.bf16.mxu0 %v16052_v35  ;;  %v6401_v59 = vadd.f32 %v6400_v58, %v6398_v52  ;;  %v13594_v61 = vsel %vm6243_vm1, 1.0, %v19823_v7  ;;  %v18966_v62 = vadd.f32 -0.9, %v18852_v3  ;;  %v6266_v53 = vsub.f32 %v13592_v24, %v13593_v43  ;;  %v16056_v24 = vld [vmem:[#allocation7 + $0x170] ss:$8 sps:$4 sm:$0xff]  }
 0x41d   :  { %v6406_v19 = vadd.f32 %v6405_v23, %v6403_v60  ;;  %v6267_v2 = vsub.f32 %v13593_v43, %v13594_v61  ;;  %v18969_v38 = vadd.f32 -1.0, %v18852_v3  ;;  %v6337_v25 = vmul.f32 9.999998, %v18939_v30  ;;  %v16064_v35 = vld [vmem:[#allocation7 + $0x194] ss:$8 sps:$4 sm:$0xff]  }
 0x41e   :  { %v6468_v28 = vmul.f32 %v6467_v41, %v6401_v59  ;;  %v6465_v36 = vmul.f32 %v6464_v5, %v6401_v59  ;;  %v6339_v10 = vmul.f32 -10.000004, %v18966_v62  ;;  %v6342_v47 = vmul.f32 10.000004, %v18943_v32  ;;  %v16067_v5 = vld [vmem:[#allocation7 + $0x1a4] ss:$8 sps:$4 sm:$0xff]  }
 0x41f   :  { %7810 = vmatpush1.bf16.msra.mxu0 %v16050_v37  ;;  %v6470_v39 = vmul.f32 %v6469_v12, %v6406_v19  ;;  %v6344_v11 = vmul.f32 -9.999998, %v18969_v38  ;;  %v6407_v14 = vmul.f32 5.0000005, %v18919_v45  ;;  %v6338_v34 = vmul.f32 %v6337_v25, %v6265_v18 }
 0x420   :  { %7811 = vmatprep.subr.bf16.mxu0 %v16055_v42  ;;  %v18971_v1 = vadd.f32 %v6465_v36, %v6463_v22  ;;  %v6340_v31 = vmul.f32 %v6339_v10, %v6266_v53  ;;  %v6343_v33 = vmul.f32 %v6342_v47, %v6266_v53  ;;  %v6409_v27 = vmul.f32 -5.0000005, %v18966_v62 }
 0x421   :  { %v18976_v26 = vadd.f32 %v6470_v39, %v6468_v28  ;;  %v6345_v51 = vmul.f32 %v6344_v11, %v6267_v2  ;;  %v6408_v6 = vmul.f32 %v6407_v14, %v6336_v44  ;;  %v6412_v20 = vmul.f32 5.0000005, %v18939_v30  ;;  %v16070_v11 = vld [vmem:[#allocation7 + $0x1b4] ss:$8 sps:$4 sm:$0xff]  }
 0x422   :  { %v6341_v0 = vadd.f32 %v6340_v31, %v6338_v34  ;;  %v6414_v48 = vmul.f32 -5.0000005, %v18969_v38  ;;  %v6472_v55 = vmul.f32 3.3333333, %v18914_v16  ;;  %vm6246_vm2 = vcmp.ge.f32.partialorder %v18852_v3, 1.1 }
 0x423   :  { %7812 = vmatpush1.bf16.msra.mxu0 %v16053_v29  ;;  %v6346_v57 = vadd.f32 %v6345_v51, %v6343_v33  ;;  %v13595_v63 = vsel %vm6246_vm2, 1.0, %v19823_v7  ;;  %vm6249_vm3 = vcmp.ge.f32.partialorder %v18852_v3, 1.2  ;;  %v6477_v40 = vmul.f32 3.333334, %v18919_v45 }
 0x424   :  { %7813 = vmatprep.subr.bf16.mxu0 %v16058_v9  ;;  %v6410_v18 = vmul.f32 %v6409_v27, %v6341_v0  ;;  %v6413_v21 = vmul.f32 %v6412_v20, %v6341_v0  ;;  %v6473_v52 = vmul.f32 %v6472_v55, %v6406_v19  ;;  %v18989_v49 = vsel %vm6249_vm3, 1.0, %v19823_v7  ;;  %v16068_v51 = vld [vmem:[#allocation7 + $0x1b0] ss:$8 sps:$4 sm:$0xff]  }
 0x425   :  { %v6415_v8 = vmul.f32 %v6414_v48, %v6346_v57  ;;  %v6474_v16 = vmul.f32 -3.333334, %v18966_v62  ;;  %v6268_v37 = vsub.f32 %v13594_v61, %v13595_v63  ;;  %v13611_v44 = vadd.f32 -1.1, %v18852_v3  ;;  %v16073_v48 = vld [vmem:[#allocation7 + $0x1c4] ss:$8 sps:$4 sm:$0xff]  }
 0x426   :  { %v6411_v46 = vadd.f32 %v6410_v18, %v6408_v6  ;;  %v6479_v58 = vmul.f32 -3.3333333, %v18969_v38  ;;  %v13612_v60 = vadd.f32 -1.2, %v18852_v3  ;;  %v6347_v13 = vmul.f32 9.999998, %v18966_v62 }
 0x427   :  { %7814 = vmatpush1.bf16.msra.mxu0 %v16056_v24  ;;  %v6416_v42 = vadd.f32 %v6415_v8, %v6413_v21  ;;  %v6269_v41 = vsub.f32 %v13595_v63, %v18989_v49  ;;  %v6349_v12 = vmul.f32 -9.999998, %v13611_v44  ;;  %vm6252_vm4 = vcmp.ge.f32.partialorder %v18852_v3, 1.3 }
 0x428   :  { %7815 = vmatprep.subr.bf16.mxu0 %v16061_v56  ;;  %v6478_v45 = vmul.f32 %v6477_v40, %v6411_v46  ;;  %v6475_v23 = vmul.f32 %v6474_v16, %v6411_v46  ;;  %v6348_v22 = vmul.f32 %v6347_v13, %v6267_v2  ;;  %v6352_v19 = vmul.f32 9.999998, %v18969_v38  ;;  %v16065_v2 = vld [vmem:[#allocation7 + $0x1a0] ss:$8 sps:$4 sm:$0xff]  }
 0x429   :  { %v6480_v59 = vmul.f32 %v6479_v58, %v6416_v42  ;;  %v6350_v61 = vmul.f32 %v6349_v12, %v6268_v37  ;;  %v6354_v28 = vmul.f32 -9.999998, %v13612_v60  ;;  %v6417_v36 = vmul.f32 5.0000005, %v18943_v32  ;;  %v16071_v16 = vld [vmem:[#allocation7 + $0x1c0] ss:$8 sps:$4 sm:$0xff]  }
 0x42a   :  { %v18999_v43 = vadd.f32 %v6475_v23, %v6473_v52  ;;  %v6353_v29 = vmul.f32 %v6352_v19, %v6268_v37  ;;  %v6419_v9 = vmul.f32 -4.999999, %v13611_v44  ;;  %v6422_v39 = vmul.f32 4.999999, %v18966_v62  ;;  %v16077_v12 = vld [vmem:[#allocation7 + $0x1e0] ss:$8 sps:$4 sm:$0xff]  }
 0x42b   :  { %7816 = vmatpush1.bf16.msra.mxu0 %v16059_v54  ;;  %v19002_v53 = vadd.f32 %v6480_v59, %v6478_v45  ;;  %v6351_v25 = vadd.f32 %v6350_v61, %v6348_v22  ;;  %v6355_v10 = vmul.f32 %v6354_v28, %v6269_v41  ;;  %v6418_v47 = vmul.f32 %v6417_v36, %v6346_v57  ;;  %v16079_v45 = vld [vmem:[#allocation7 + $0x1e4] ss:$8 sps:$4 sm:$0xff]   ;;  %v16080_v19 = vld [vmem:[#allocation7 + $0x1f0] ss:$8 sps:$4 sm:$0xff]   ;;  %v16083_v28 = vld [vmem:[#allocation7 + $0x200] ss:$8 sps:$4 sm:$0xff]  }
 0x42c   :  { %7817 = vmatprep.subr.bf16.mxu0 %v16064_v35  ;;  %v13597_v14 = vsel %vm6252_vm4, 1.0, %v19823_v7  ;;  %v6424_v24 = vmul.f32 -4.999999, %v13612_v60  ;;  %v6487_v6 = vmul.f32 3.3333333, %v18943_v32 }
 0x42d   :  { %v6356_v34 = vadd.f32 %v6355_v10, %v6353_v29  ;;  %v6420_v31 = vmul.f32 %v6419_v9, %v6351_v25  ;;  %v6423_v33 = vmul.f32 %v6422_v39, %v6351_v25  ;;  %v6482_v56 = vmul.f32 3.3333333, %v18939_v30  ;;  %v16085_v61 = vld [vmem:[#allocation7 + $0x204] ss:$8 sps:$4 sm:$0xff]   ;;  %v16088_v36 = vld [vmem:[#allocation7 + $0x214] ss:$8 sps:$4 sm:$0xff]  }
 0x42e   :  { %v6484_v0 = vmul.f32 -3.3333333, %v13611_v44  ;;  %v13613_v54 = vadd.f32 -1.3, %v18852_v3  ;;  %v6357_v57 = vmul.f32 9.999998, %v13611_v44  ;;  %v6270_v55 = vsub.f32 %v18989_v49, %v13597_v14 }
 0x42f   :  { %7818 = vmatpush1.bf16.msra.mxu0 %v16062_v4  ;;  %v6421_v27 = vadd.f32 %v6420_v31, %v6418_v47  ;;  %v6425_v20 = vmul.f32 %v6424_v24, %v6356_v34  ;;  %v6489_v18 = vmul.f32 -3.3333325, %v13612_v60  ;;  %v6483_v21 = vmul.f32 %v6482_v56, %v6416_v42  ;;  %v16076_v4 = vld [vmem:[#allocation7 + $0x1d4] ss:$8 sps:$4 sm:$0xff]   ;;  %v16074_v60 = vld [vmem:[#allocation7 + $0x1d0] ss:$8 sps:$4 sm:$0xff]  }
 0x430   :  { %7819 = vmatprep.subr.bf16.mxu0 %v16067_v5  ;;  %v6427_v63 = vmul.f32 4.999999, %v18969_v38  ;;  %v6358_v40 = vmul.f32 %v6357_v57, %v6269_v41  ;;  %v6359_v30 = vmul.f32 -10.00001, %v13613_v54  ;;  %v6492_v46 = vmul.f32 3.3333325, %v18966_v62 }
 0x431   :  { %v6426_v35 = vadd.f32 %v6425_v20, %v6423_v33  ;;  %v6488_v8 = vmul.f32 %v6487_v6, %v6421_v27  ;;  %v6485_v32 = vmul.f32 %v6484_v0, %v6421_v27  ;;  %v6429_v58 = vmul.f32 -5.000002, %v13613_v54  ;;  %v16082_v5 = vld [vmem:[#allocation7 + $0x1f4] ss:$8 sps:$4 sm:$0xff]   ;;  %v16086_v39 = vld [vmem:[#allocation7 + $0x210] ss:$8 sps:$4 sm:$0xff]  }
 0x432   :  { %v6428_v52 = vmul.f32 %v6427_v63, %v6356_v34  ;;  %v6360_v49 = vmul.f32 %v6359_v30, %v6270_v55  ;;  %v6494_v41 = vmul.f32 -3.333334, %v13613_v54  ;;  %v6499_v29 = vpack.c.bf16 %v18925_v15, %v18925_v15  ;;  %v16091_v25 = vld [vmem:[#allocation7 + $0x224] ss:$8 sps:$4 sm:$0xff]   ;;  %v16089_v10 = vld [vmem:[#allocation7 + $0x220] ss:$8 sps:$4 sm:$0xff]  }
 0x433   :  { %7820 = vmatpush1.bf16.msra.mxu0 %v16065_v2  ;;  %v6490_v37 = vmul.f32 %v6489_v18, %v6426_v35  ;;  %v19014_v44 = vadd.f32 %v6485_v32, %v6483_v21  ;;  %v6493_v42 = vmul.f32 %v6492_v46, %v6426_v35  ;;  %v6502_v9 = vpack.c.bf16 %v18950_v50, %v18950_v50  ;;  %v16094_v47 = vld [vmem:[#allocation7 + $0x234] ss:$8 sps:$4 sm:$0xff]   ;;  %v16092_v2 = vld [vmem:[#allocation7 + $0x230] ss:$8 sps:$4 sm:$0xff]   ;;  %v16095_v15 = vld [vmem:[#allocation7 + $0x240] ss:$8 sps:$4 sm:$0xff]  }
 0x434   :  { %7821 = vmatprep.subr.bf16.mxu0 %v16070_v11  ;;  %v6361_v13 = vadd.f32 %v6360_v49, %v6358_v40  ;;  %v16097_v11 = vld [vmem:[#allocation7 + $0x244] ss:$8 sps:$4 sm:$0xff]   ;;  %v16100_v14 = vld [vmem:[#allocation7 + $0x254] ss:$8 sps:$4 sm:$0xff]   ;;  %v16098_v50 = vld [vmem:[#allocation7 + $0x250] ss:$8 sps:$4 sm:$0xff]   ;;  %v6501_v46 = vpack.c.bf16 %v18952_v17, %v18952_v17 }
 0x435   :  { %v19016_v38 = vadd.f32 %v6490_v37, %v6488_v8  ;;  %v16103_v34 = vld [vmem:[#allocation7 + $0x264] ss:$8 sps:$4 sm:$0xff]   ;;  %v16101_v31 = vld [vmem:[#allocation7 + $0x260] ss:$8 sps:$4 sm:$0xff]   ;;  %v16106_v33 = vld [vmem:[#allocation7 + $0x274] ss:$8 sps:$4 sm:$0xff]  }
 0x436   :  { %v6430_v23 = vmul.f32 %v6429_v58, %v6361_v13  ;;  %v16104_v24 = vld [vmem:[#allocation7 + $0x270] ss:$8 sps:$4 sm:$0xff]   ;;  %v16107_v6 = vld [vmem:[#allocation7 + $0x280] ss:$8 sps:$4 sm:$0xff]   ;;  %v16112_v56 = vld [vmem:[#allocation7 + $0x294] ss:$8 sps:$4 sm:$0xff]  }
 0x437   :  { %7822 = vmatpush1.bf16.msra.mxu0 %v16068_v51  ;;  %v16109_v51 = vld [vmem:[#allocation7 + $0x284] ss:$8 sps:$4 sm:$0xff]   ;;  %v16110_v0 = vld [vmem:[#allocation7 + $0x290] ss:$8 sps:$4 sm:$0xff]   ;;  %v16113_v20 = vld [vmem:[#allocation7 + $0x2a0] ss:$8 sps:$4 sm:$0xff]  }
 0x438   :  { %7823 = vmatprep.subr.bf16.mxu0 %v16073_v48  ;;  %v6431_v62 = vadd.f32 %v6430_v23, %v6428_v52  ;;  %v16115_v27 = vld [vmem:[#allocation7 + $0x2a4] ss:$8 sps:$4 sm:$0xff]   ;;  %v16118_v54 = vld [vmem:[#allocation7 + $0x2b4] ss:$8 sps:$4 sm:$0xff]   ;;  %v16116_v57 = vld [vmem:[#allocation7 + $0x2b0] ss:$8 sps:$4 sm:$0xff]  }
 0x439   :  { %v16121_v48 = vld [vmem:[#allocation7 + $0x2c4] ss:$8 sps:$4 sm:$0xff]   ;;  %v16119_v55 = vld [vmem:[#allocation7 + $0x2c0] ss:$8 sps:$4 sm:$0xff]   ;;  %v16124_v18 = vld [vmem:[#allocation7 + $0x2d4] ss:$8 sps:$4 sm:$0xff]  }
 0x43a   :  { %v6495_v59 = vmul.f32 %v6494_v41, %v6431_v62  ;;  %v16122_v21 = vld [vmem:[#allocation7 + $0x2d0] ss:$8 sps:$4 sm:$0xff]   ;;  %v16127_v63 = vld [vmem:[#allocation7 + $0x2e4] ss:$8 sps:$4 sm:$0xff]   ;;  %v16125_v35 = vld [vmem:[#allocation7 + $0x2e0] ss:$8 sps:$4 sm:$0xff]  }
 0x43b   :  { %7824 = vmatpush1.bf16.msra.mxu0 %v16071_v16  ;;  %v16130_v8 = vld [vmem:[#allocation7 + $0x2f4] ss:$8 sps:$4 sm:$0xff]   ;;  %v16128_v32 = vld [vmem:[#allocation7 + $0x2f0] ss:$8 sps:$4 sm:$0xff]   ;;  %v16133_v40 = vld [vmem:[#allocation7 + $0x304] ss:$8 sps:$4 sm:$0xff]   ;;  %v6504_v16 = vpack.c.bf16 %v18976_v26, %v18976_v26 }
 0x43c   :  { %7825 = vmatprep.subr.bf16.mxu0 %v16076_v4  ;;  %v19018_v22 = vadd.f32 %v6495_v59, %v6493_v42  ;;  %v16131_v30 = vld [vmem:[#allocation7 + $0x300] ss:$8 sps:$4 sm:$0xff]   ;;  %v16136_v52 = vld [vmem:[#allocation7 + $0x314] ss:$8 sps:$4 sm:$0xff]   ;;  %v16134_v37 = vld [vmem:[#allocation7 + $0x310] ss:$8 sps:$4 sm:$0xff]  }
 0x43d   :  { %v16139_v4 = vld [vmem:[#allocation7 + $0x324] ss:$8 sps:$4 sm:$0xff]   ;;  %v16137_v49 = vld [vmem:[#allocation7 + $0x320] ss:$8 sps:$4 sm:$0xff]   ;;  %v16142_v58 = vld [vmem:[#allocation7 + $0x334] ss:$8 sps:$4 sm:$0xff]  }
 0x43e   :  { %v16140_v42 = vld [vmem:[#allocation7 + $0x330] ss:$8 sps:$4 sm:$0xff]   ;;  %v16143_v17 = vld [vmem:[#allocation7 + $0x340] ss:$8 sps:$4 sm:$0xff]   ;;  %v16148_v13 = vld [vmem:[#allocation7 + $0x354] ss:$8 sps:$4 sm:$0xff]  }
 0x43f   :  { %7826 = vmatpush1.bf16.msra.mxu0 %v16074_v60  ;;  %v16145_v60 = vld [vmem:[#allocation7 + $0x344] ss:$8 sps:$4 sm:$0xff]   ;;  %v16146_v26 = vld [vmem:[#allocation7 + $0x350] ss:$8 sps:$4 sm:$0xff]   ;;  %v16149_v23 = vld [vmem:[#allocation7 + $0x360] ss:$8 sps:$4 sm:$0xff]  }
 0x440   :  { %7827 = vmatprep.subr.bf16.mxu0 %v16079_v45  ;;  %v16151_v45 = vld [vmem:[#allocation7 + $0x364] ss:$8 sps:$4 sm:$0xff]   ;;  %v16154_v41 = vld [vmem:[#allocation7 + $0x374] ss:$8 sps:$4 sm:$0xff]   ;;  %v16152_v62 = vld [vmem:[#allocation7 + $0x370] ss:$8 sps:$4 sm:$0xff]  }
 0x441   :  { %v16160_v59 = vld [vmem:[#allocation7 + $0x394] ss:$8 sps:$4 sm:$0xff]  }
 0x443   :  { %7828 = vmatpush1.bf16.msra.mxu0 %v16077_v12  ;;  %v16157_v12 = vld [vmem:[#allocation7 + $0x384] ss:$8 sps:$4 sm:$0xff]  }
 0x444   :  { %7829 = vmatprep.subr.bf16.mxu0 %v16082_v5  ;;  %v16155_v5 = vld [vmem:[#allocation7 + $0x380] ss:$8 sps:$4 sm:$0xff]  }
 0x447   :  { %7830 = vmatpush1.bf16.msra.mxu0 %v16080_v19  ;;  %v16158_v19 = vld [vmem:[#allocation7 + $0x390] ss:$8 sps:$4 sm:$0xff]  }
 0x448   :  { %7840 = vmatprep.subr.bf16.mxu0 %v16085_v61  ;;  %v16163_v61 = vld [vmem:[#allocation7 + $0x3a4] ss:$8 sps:$4 sm:$0xff]  }
 0x44a   :  { %7832 = vmatmul.mubr.bf16.vlgmr.msra.gmra.mrb[56].mxu0 %v6499_v29  ;;  %v16164_v29 = vld [vmem:[#allocation7 + $0x3b0] ss:$8 sps:$4 sm:$0xff]  }
 0x44b   :  { %7841 = vmatpush1.bf16.msra.mxu0 %v16083_v28  ;;  %7872 = vmatprep.mubr.bf16.mxu0 %v6502_v9  ;;  %v16161_v28 = vld [vmem:[#allocation7 + $0x3a0] ss:$8 sps:$4 sm:$0xff]   ;;  %v16169_v9 = vld [vmem:[#allocation7 + $0x3c4] ss:$8 sps:$4 sm:$0xff]  }
 0x44c   :  { %7842 = vmatprep.subr.bf16.mxu0 %v16088_v36  ;;  %v16166_v36 = vld [vmem:[#allocation7 + $0x3b4] ss:$8 sps:$4 sm:$0xff]  }
 0x44f   :  { %7843 = vmatpush1.bf16.msra.mxu0 %v16086_v39  ;;  %v16167_v39 = vld [vmem:[#allocation7 + $0x3c0] ss:$8 sps:$4 sm:$0xff]  }
 0x450   :  { %7844 = vmatprep.subr.bf16.mxu0 %v16091_v25  ;;  %v16172_v25 = vld [vmem:[#allocation7 + $0x3d4] ss:$8 sps:$4 sm:$0xff]  }
 0x453   :  { %7845 = vmatpush1.bf16.msra.mxu0 %v16089_v10  ;;  %v16170_v10 = vld [vmem:[#allocation7 + $0x3d0] ss:$8 sps:$4 sm:$0xff]  }
 0x454   :  { %7846 = vmatprep.subr.bf16.mxu0 %v16094_v47  ;;  %v16175_v47 = vld [vmem:[#allocation7 + $0x3e4] ss:$8 sps:$4 sm:$0xff]  }
 0x457   :  { %7847 = vmatpush1.bf16.msra.mxu0 %v16092_v2  ;;  %v16173_v2 = vld [vmem:[#allocation7 + $0x3e0] ss:$8 sps:$4 sm:$0xff]  }
 0x458   :  { %7848 = vmatprep.subr.bf16.mxu0 %v16097_v11  ;;  %v16178_v11 = vld [vmem:[#allocation7 + $0x3f4] ss:$8 sps:$4 sm:$0xff]  }
 0x45b   :  { %7849 = vmatpush1.bf16.msra.mxu0 %v16095_v15  ;;  %v16176_v15 = vld [vmem:[#allocation7 + $0x3f0] ss:$8 sps:$4 sm:$0xff]  }
 0x45c   :  { %7850 = vmatprep.subr.bf16.mxu0 %v16100_v14  ;;  %v16181_v14 = vld [vmem:[#allocation7 + $0x404] ss:$8 sps:$4 sm:$0xff]  }
 0x45f   :  { %7851 = vmatpush1.bf16.msra.mxu0 %v16098_v50  ;;  %v16179_v50 = vld [vmem:[#allocation7 + $0x400] ss:$8 sps:$4 sm:$0xff]  }
 0x460   :  { %7852 = vmatprep.subr.bf16.mxu0 %v16103_v34  ;;  %v6503_v34 = vpack.c.bf16 %v18971_v1, %v18971_v1  ;;  %v16191_v1 = vld [vmem:[#allocation7 + $0x440] ss:$8 sps:$4 sm:$0xff]  }
 0x463   :  { %7853 = vmatpush1.bf16.msra.mxu0 %v16101_v31  ;;  %v16184_v31 = vld [vmem:[#allocation7 + $0x414] ss:$8 sps:$4 sm:$0xff]  }
 0x464   :  { %7854 = vmatprep.subr.bf16.mxu0 %v16106_v33  ;;  %v6506_v33 = vpack.c.bf16 %v19002_v53, %v19002_v53  ;;  %v16194_v53 = vld [vmem:[#allocation7 + $0x450] ss:$8 sps:$4 sm:$0xff]  }
 0x467   :  { %7855 = vmatpush1.bf16.msra.mxu0 %v16104_v24  ;;  %v16182_v24 = vld [vmem:[#allocation7 + $0x410] ss:$8 sps:$4 sm:$0xff]  }
 0x468   :  { %7856 = vmatprep.subr.bf16.mxu0 %v16109_v51  ;;  %v16187_v51 = vld [vmem:[#allocation7 + $0x424] ss:$8 sps:$4 sm:$0xff]  }
 0x46b   :  { %7857 = vmatpush1.bf16.msra.mxu0 %v16107_v6  ;;  %v16185_v6 = vld [vmem:[#allocation7 + $0x420] ss:$8 sps:$4 sm:$0xff]  }
 0x46c   :  { %7858 = vmatprep.subr.bf16.mxu0 %v16112_v56  ;;  %v16190_v56 = vld [vmem:[#allocation7 + $0x434] ss:$8 sps:$4 sm:$0xff]  }
 0x46f   :  { %7859 = vmatpush1.bf16.msra.mxu0 %v16110_v0  ;;  %v16188_v0 = vld [vmem:[#allocation7 + $0x430] ss:$8 sps:$4 sm:$0xff]  }
 0x470   :  { %7860 = vmatprep.subr.bf16.mxu0 %v16115_v27  ;;  %v16193_v27 = vld [vmem:[#allocation7 + $0x444] ss:$8 sps:$4 sm:$0xff]  }
 0x473   :  { %7861 = vmatpush1.bf16.msra.mxu0 %v16113_v20  ;;  %v16196_v20 = vld [vmem:[#allocation7 + $0x454] ss:$8 sps:$4 sm:$0xff]  }
 0x474   :  { %7862 = vmatprep.subr.bf16.mxu0 %v16118_v54  ;;  %v16199_v54 = vld [vmem:[#allocation7 + $0x464] ss:$8 sps:$4 sm:$0xff]  }
 0x477   :  { %7863 = vmatpush1.bf16.msra.mxu0 %v16116_v57  ;;  %v16197_v57 = vld [vmem:[#allocation7 + $0x460] ss:$8 sps:$4 sm:$0xff]  }
 0x478   :  { %7864 = vmatprep.subr.bf16.mxu0 %v16121_v48  ;;  %v16202_v48 = vld [vmem:[#allocation7 + $0x474] ss:$8 sps:$4 sm:$0xff]  }
 0x47b   :  { %7865 = vmatpush1.bf16.msra.mxu0 %v16119_v55  ;;  %v16200_v55 = vld [vmem:[#allocation7 + $0x470] ss:$8 sps:$4 sm:$0xff]  }
 0x47c   :  { %7866 = vmatprep.subr.bf16.mxu0 %v16124_v18  ;;  %v16205_v18 = vld [vmem:[#allocation7 + $0x484] ss:$8 sps:$4 sm:$0xff]  }
 0x47f   :  { %7867 = vmatpush1.bf16.msra.mxu0 %v16122_v21  ;;  %v16203_v21 = vld [vmem:[#allocation7 + $0x480] ss:$8 sps:$4 sm:$0xff]  }
 0x480   :  { %7868 = vmatprep.subr.bf16.mxu0 %v16127_v63  ;;  %v16208_v63 = vld [vmem:[#allocation7 + $0x494] ss:$8 sps:$4 sm:$0xff]  }
 0x483   :  { %7869 = vmatpush1.bf16.msra.mxu0 %v16125_v35  ;;  %v16206_v35 = vld [vmem:[#allocation7 + $0x490] ss:$8 sps:$4 sm:$0xff]  }
 0x484   :  { %7870 = vmatprep.subr.bf16.mxu0 %v16130_v8  ;;  %v16211_v8 = vld [vmem:[#allocation7 + $0x4a4] ss:$8 sps:$4 sm:$0xff]  }
 0x487   :  { %7871 = vmatpush1.bf16.msra.mxu0 %v16128_v32  ;;  %v16209_v32 = vld [vmem:[#allocation7 + $0x4a0] ss:$8 sps:$4 sm:$0xff]  }
 0x488   :  { %7881 = vmatprep.subr.bf16.mxu0 %v16133_v40  ;;  %v16214_v40 = vld [vmem:[#allocation7 + $0x4b4] ss:$8 sps:$4 sm:$0xff]  }
 0x48a   :  { %7873 = vmatmul.mubr.bf16.vlgmr.msra.gmra.mrb[56].mxu0 %v6501_v46  ;;  %v16215_v46 = vld [vmem:[#allocation7 + $0x4c0] ss:$8 sps:$4 sm:$0xff]  }
 0x48b   :  { %7882 = vmatpush1.bf16.msra.mxu0 %v16131_v30  ;;  %7913 = vmatprep.mubr.bf16.mxu0 %v6504_v16  ;;  %v16212_v30 = vld [vmem:[#allocation7 + $0x4b0] ss:$8 sps:$4 sm:$0xff]   ;;  %v16220_v16 = vld [vmem:[#allocation7 + $0x4d4] ss:$8 sps:$4 sm:$0xff]  }
 0x48c   :  { %7883 = vmatprep.subr.bf16.mxu0 %v16136_v52  ;;  %v16217_v52 = vld [vmem:[#allocation7 + $0x4c4] ss:$8 sps:$4 sm:$0xff]  }
 0x48f   :  { %7884 = vmatpush1.bf16.msra.mxu0 %v16134_v37  ;;  %v16218_v37 = vld [vmem:[#allocation7 + $0x4d0] ss:$8 sps:$4 sm:$0xff]  }
 0x490   :  { %7885 = vmatprep.subr.bf16.mxu0 %v16139_v4  ;;  %v16223_v4 = vld [vmem:[#allocation7 + $0x4e4] ss:$8 sps:$4 sm:$0xff]  }
 0x493   :  { %7886 = vmatpush1.bf16.msra.mxu0 %v16137_v49  ;;  %v16221_v49 = vld [vmem:[#allocation7 + $0x4e0] ss:$8 sps:$4 sm:$0xff]  }
 0x494   :  { %7887 = vmatprep.subr.bf16.mxu0 %v16142_v58  ;;  %v16226_v58 = vld [vmem:[#allocation7 + $0x4f4] ss:$8 sps:$4 sm:$0xff]  }
 0x497   :  { %7888 = vmatpush1.bf16.msra.mxu0 %v16140_v42  ;;  %v16224_v42 = vld [vmem:[#allocation7 + $0x4f0] ss:$8 sps:$4 sm:$0xff]  }
 0x498   :  { %7889 = vmatprep.subr.bf16.mxu0 %v16145_v60  ;;  %v16229_v60 = vld [vmem:[#allocation7 + $0x504] ss:$8 sps:$4 sm:$0xff]  }
 0x49b   :  { %7890 = vmatpush1.bf16.msra.mxu0 %v16143_v17  ;;  %v16227_v17 = vld [vmem:[#allocation7 + $0x500] ss:$8 sps:$4 sm:$0xff]  }
 0x49c   :  { %7891 = vmatprep.subr.bf16.mxu0 %v16148_v13  ;;  %v6505_v13 = vpack.c.bf16 %v18999_v43, %v18999_v43  ;;  %v16233_v43 = vld [vmem:[#allocation7 + $0x520] ss:$8 sps:$4 sm:$0xff]  }
 0x49f   :  { %7892 = vmatpush1.bf16.msra.mxu0 %v16146_v26  ;;  %v16232_v26 = vld [vmem:[#allocation7 + $0x514] ss:$8 sps:$4 sm:$0xff]  }
 0x4a0   :  { %7893 = vmatprep.subr.bf16.mxu0 %v16151_v45  ;;  %v6508_v45 = vpack.c.bf16 %v19016_v38, %v19016_v38  ;;  %v16328_v38 = vld [vmem:[#allocation10 + $0x10] sm:$0xff]  }
 0x4a3   :  { %7894 = vmatpush1.bf16.msra.mxu0 %v16149_v23  ;;  %v16323_v23 = vld [vmem:[#allocation10 + $0x40] sm:$0xff]  }
 0x4a4   :  { %7895 = vmatprep.subr.bf16.mxu0 %v16154_v41  ;;  %v16324_v41 = vld [vmem:[#allocation10] sm:$0xff]   ;;  %14913 = vmatprep.subr.bf16.mxu1 %v16323_v23 }
 0x4a5   :  { %14914 = vmatpush3.bf16.msra.mxu1 %v16324_v41  ;;  %v16305_v23 = vld [vmem:[#allocation6 + $0x20] ss:$8 sps:$4 sm:$0xff]  }
 0x4a7   :  { %7896 = vmatpush1.bf16.msra.mxu0 %v16152_v62  ;;  %v16325_v62 = vld [vmem:[#allocation10 + $0x48] sm:$0xff]  }
 0x4a8   :  { %7897 = vmatprep.subr.bf16.mxu0 %v16157_v12  ;;  %v16230_v12 = vld [vmem:[#allocation7 + $0x510] ss:$8 sps:$4 sm:$0xff]   ;;  %14915 = vmatprep.subr.bf16.mxu1 %v16325_v62  ;;  %v16310_v62 = vld [vmem:[#allocation6 + $0x34] ss:$8 sps:$4 sm:$0xff]  }
 0x4ab   :  { %7898 = vmatpush1.bf16.msra.mxu0 %v16155_v5  ;;  %v16235_v5 = vld [vmem:[#allocation7 + $0x524] ss:$8 sps:$4 sm:$0xff]  }
 0x4ac   :  { %7899 = vmatprep.subr.bf16.mxu0 %v16160_v59  ;;  %v16326_v59 = vld [vmem:[#allocation10 + $0x8] sm:$0xff]  }
 0x4ad   :  { %14916 = vmatpush3.bf16.msra.mxu1 %v16326_v59  ;;  %v16313_v59 = vld [vmem:[#allocation6 + $0x44] ss:$8 sps:$4 sm:$0xff]  }
 0x4af   :  { %7900 = vmatpush1.bf16.msra.mxu0 %v16158_v19  ;;  %v16327_v19 = vld [vmem:[#allocation10 + $0x50] sm:$0xff]  }
 0x4b0   :  { %7901 = vmatprep.subr.bf16.mxu0 %v16163_v61  ;;  %v16238_v61 = vld [vmem:[#allocation7 + $0x534] ss:$8 sps:$4 sm:$0xff]   ;;  %14917 = vmatprep.subr.bf16.mxu1 %v16327_v19 }
 0x4b1   :  { %14918 = vmatpush3.bf16.msra.mxu1 %v16328_v38  ;;  %v16316_v19 = vld [vmem:[#allocation6 + $0x54] ss:$8 sps:$4 sm:$0xff]   ;;  %v16317_v38 = vld [vmem:[#allocation6 + $0x60] ss:$8 sps:$4 sm:$0xff]  }
 0x4b3   :  { %7902 = vmatpush1.bf16.msra.mxu0 %v16161_v28  ;;  %v16236_v28 = vld [vmem:[#allocation7 + $0x530] ss:$8 sps:$4 sm:$0xff]  }
 0x4b4   :  { %7903 = vmatprep.subr.bf16.mxu0 %v16166_v36  ;;  %v16241_v36 = vld [vmem:[#allocation7 + $0x544] ss:$8 sps:$4 sm:$0xff]  }
 0x4b7   :  { %7904 = vmatpush1.bf16.msra.mxu0 %v16164_v29  ;;  %v16239_v29 = vld [vmem:[#allocation7 + $0x540] ss:$8 sps:$4 sm:$0xff]  }
 0x4b8   :  { %7905 = vmatprep.subr.bf16.mxu0 %v16169_v9  ;;  %v16244_v9 = vld [vmem:[#allocation7 + $0x554] ss:$8 sps:$4 sm:$0xff]  }
 0x4bb   :  { %7906 = vmatpush1.bf16.msra.mxu0 %v16167_v39  ;;  %v16242_v39 = vld [vmem:[#allocation7 + $0x550] ss:$8 sps:$4 sm:$0xff]  }
 0x4bc   :  { %7907 = vmatprep.subr.bf16.mxu0 %v16172_v25  ;;  %v16247_v25 = vld [vmem:[#allocation7 + $0x564] ss:$8 sps:$4 sm:$0xff]  }
 0x4bf   :  { %7908 = vmatpush1.bf16.msra.mxu0 %v16170_v10  ;;  %v16245_v10 = vld [vmem:[#allocation7 + $0x560] ss:$8 sps:$4 sm:$0xff]  }
 0x4c0   :  { %7909 = vmatprep.subr.bf16.mxu0 %v16175_v47  ;;  %v16250_v47 = vld [vmem:[#allocation7 + $0x574] ss:$8 sps:$4 sm:$0xff]  }
 0x4c3   :  { %7910 = vmatpush1.bf16.msra.mxu0 %v16173_v2  ;;  %v16248_v2 = vld [vmem:[#allocation7 + $0x570] ss:$8 sps:$4 sm:$0xff]  }
 0x4c4   :  { %7911 = vmatprep.subr.bf16.mxu0 %v16178_v11  ;;  %v16253_v11 = vld [vmem:[#allocation7 + $0x584] ss:$8 sps:$4 sm:$0xff]  }
 0x4c7   :  { %7912 = vmatpush1.bf16.msra.mxu0 %v16176_v15  ;;  %v16251_v15 = vld [vmem:[#allocation7 + $0x580] ss:$8 sps:$4 sm:$0xff]  }
 0x4c8   :  { %7922 = vmatprep.subr.bf16.mxu0 %v16181_v14  ;;  %v16256_v14 = vld [vmem:[#allocation7 + $0x594] ss:$8 sps:$4 sm:$0xff]  }
 0x4ca   :  { %7914 = vmatmul.mubr.bf16.vlgmr.msra.gmra.mrb[56].mxu0 %v6503_v34  ;;  %v16259_v34 = vld [vmem:[#allocation7 + $0x5a4] ss:$8 sps:$4 sm:$0xff]  }
 0x4cb   :  { %7923 = vmatpush1.bf16.msra.mxu0 %v16179_v50  ;;  %7954 = vmatprep.mubr.bf16.mxu0 %v6506_v33  ;;  %v16254_v50 = vld [vmem:[#allocation7 + $0x590] ss:$8 sps:$4 sm:$0xff]   ;;  %v16262_v33 = vld [vmem:[#allocation7 + $0x5b4] ss:$8 sps:$4 sm:$0xff]  }
 0x4cc   :  { %7924 = vmatprep.subr.bf16.mxu0 %v16184_v31  ;;  %v16257_v31 = vld [vmem:[#allocation7 + $0x5a0] ss:$8 sps:$4 sm:$0xff]  }
 0x4cf   :  { %7925 = vmatpush1.bf16.msra.mxu0 %v16182_v24  ;;  %v16260_v24 = vld [vmem:[#allocation7 + $0x5b0] ss:$8 sps:$4 sm:$0xff]  }
 0x4d0   :  { %7926 = vmatprep.subr.bf16.mxu0 %v16187_v51  ;;  %v16265_v51 = vld [vmem:[#allocation7 + $0x5c4] ss:$8 sps:$4 sm:$0xff]  }
 0x4d3   :  { %7927 = vmatpush1.bf16.msra.mxu0 %v16185_v6  ;;  %v16263_v6 = vld [vmem:[#allocation7 + $0x5c0] ss:$8 sps:$4 sm:$0xff]  }
 0x4d4   :  { %7928 = vmatprep.subr.bf16.mxu0 %v16190_v56  ;;  %v16268_v56 = vld [vmem:[#allocation7 + $0x5d4] ss:$8 sps:$4 sm:$0xff]  }
 0x4d7   :  { %7929 = vmatpush1.bf16.msra.mxu0 %v16188_v0  ;;  %v16266_v0 = vld [vmem:[#allocation7 + $0x5d0] ss:$8 sps:$4 sm:$0xff]  }
 0x4d8   :  { %7930 = vmatprep.subr.bf16.mxu0 %v16193_v27  ;;  %v16271_v27 = vld [vmem:[#allocation7 + $0x5e4] ss:$8 sps:$4 sm:$0xff]  }
 0x4db   :  { %7931 = vmatpush1.bf16.msra.mxu0 %v16191_v1  ;;  %v16269_v1 = vld [vmem:[#allocation7 + $0x5e0] ss:$8 sps:$4 sm:$0xff]  }
 0x4dc   :  { %7932 = vmatprep.subr.bf16.mxu0 %v16196_v20  ;;  %v16274_v20 = vld [vmem:[#allocation7 + $0x5f4] ss:$8 sps:$4 sm:$0xff]  }
 0x4df   :  { %7933 = vmatpush1.bf16.msra.mxu0 %v16194_v53  ;;  %v16272_v53 = vld [vmem:[#allocation7 + $0x5f0] ss:$8 sps:$4 sm:$0xff]  }
 0x4e0   :  { %7934 = vmatprep.subr.bf16.mxu0 %v16199_v54  ;;  %v16277_v54 = vld [vmem:[#allocation7 + $0x604] ss:$8 sps:$4 sm:$0xff]  }
 0x4e3   :  { %7935 = vmatpush1.bf16.msra.mxu0 %v16197_v57  ;;  %v16275_v57 = vld [vmem:[#allocation7 + $0x600] ss:$8 sps:$4 sm:$0xff]  }
 0x4e4   :  { %7936 = vmatprep.subr.bf16.mxu0 %v16202_v48  ;;  %v6507_v48 = vpack.c.bf16 %v19014_v44, %v19014_v44  ;;  %v16292_v44 = vld [vmem:[#allocation7 + $0x654] ss:$8 sps:$4 sm:$0xff]  }
 0x4e7   :  { %7937 = vmatpush1.bf16.msra.mxu0 %v16200_v55  ;;  %v16280_v55 = vld [vmem:[#allocation7 + $0x614] ss:$8 sps:$4 sm:$0xff]  }
 0x4e8   :  { %7938 = vmatprep.subr.bf16.mxu0 %v16205_v18  ;;  %v16278_v18 = vld [vmem:[#allocation7 + $0x610] ss:$8 sps:$4 sm:$0xff]  }
 0x4eb   :  { %7939 = vmatpush1.bf16.msra.mxu0 %v16203_v21  ;;  %v17053_v21 = vmov 0  }
 0x4ec   :  { %7940 = vmatprep.subr.bf16.mxu0 %v16208_v63  ;;  %v16283_v63 = vld [vmem:[#allocation7 + $0x624] ss:$8 sps:$4 sm:$0xff]  }
 0x4ef   :  { %7941 = vmatpush1.bf16.msra.mxu0 %v16206_v35  ;;  %v16281_v35 = vld [vmem:[#allocation7 + $0x620] ss:$8 sps:$4 sm:$0xff]  }
 0x4f0   :  { %7942 = vmatprep.subr.bf16.mxu0 %v16211_v8  ;;  %v16286_v8 = vld [vmem:[#allocation7 + $0x634] ss:$8 sps:$4 sm:$0xff]  }
 0x4f3   :  { %7943 = vmatpush1.bf16.msra.mxu0 %v16209_v32  ;;  %v16284_v32 = vld [vmem:[#allocation7 + $0x630] ss:$8 sps:$4 sm:$0xff]  }
 0x4f4   :  { %7944 = vmatprep.subr.bf16.mxu0 %v16214_v40  ;;  %v16289_v40 = vld [vmem:[#allocation7 + $0x644] ss:$8 sps:$4 sm:$0xff]  }
 0x4f7   :  { %7945 = vmatpush1.bf16.msra.mxu0 %v16212_v30  ;;  %v16287_v30 = vld [vmem:[#allocation7 + $0x640] ss:$8 sps:$4 sm:$0xff]  }
 0x4f8   :  { %7946 = vmatprep.subr.bf16.mxu0 %v16217_v52  ;;  %v16290_v52 = vld [vmem:[#allocation7 + $0x650] ss:$8 sps:$4 sm:$0xff]  }
 0x4fb   :  { %7947 = vmatpush1.bf16.msra.mxu0 %v16215_v46  ;;  %v16295_v46 = vld [vmem:[#allocation7 + $0x664] ss:$8 sps:$4 sm:$0xff]  }
 0x4fc   :  { %7948 = vmatprep.subr.bf16.mxu0 %v16220_v16  ;;  %v6181_v16 = vsub.f32 0.0, %v18852_v3 }
 0x4ff   :  { %7949 = vmatpush1.bf16.msra.mxu0 %v16218_v37  ;;  %v16293_v37 = vld [vmem:[#allocation7 + $0x660] ss:$8 sps:$4 sm:$0xff]  }
 0x500   :  { %7950 = vmatprep.subr.bf16.mxu0 %v16223_v4  ;;  %v16298_v4 = vld [vmem:[#allocation7 + $0x674] ss:$8 sps:$4 sm:$0xff]  }
 0x503   :  { %7951 = vmatpush1.bf16.msra.mxu0 %v16221_v49  ;;  %v6182_v49 = vmul.f32 1.442695, %v6181_v16 }
 0x504   :  { %7952 = vmatprep.subr.bf16.mxu0 %v16226_v58  ;;  %v16296_v58 = vld [vmem:[#allocation7 + $0x670] ss:$8 sps:$4 sm:$0xff]  }
 0x505   :  { %16695 = vpow2.f32 %v6182_v49 }
 0x507   :  { %7953 = vmatpush1.bf16.msra.mxu0 %v16224_v42  ;;  %v16301_v42 = vld [vmem:[#allocation6 + $0x4] ss:$8 sps:$4 sm:$0xff]  }
 0x508   :  { %7963 = vmatprep.subr.bf16.mxu0 %v16229_v60  ;;  %v16299_v60 = vld [vmem:[#allocation6] ss:$8 sps:$4 sm:$0xff]  }
 0x50a   :  { %7955 = vmatmul.mubr.bf16.vlgmr.msra.gmra.mrb[56].mxu0 %v6505_v13  ;;  %v16304_v13 = vld [vmem:[#allocation6 + $0x14] ss:$8 sps:$4 sm:$0xff]  }
 0x50b   :  { %7964 = vmatpush1.bf16.msra.mxu0 %v16227_v17  ;;  %7995 = vmatprep.mubr.bf16.mxu0 %v6508_v45  ;;  %v6509_v17 = vpack.c.bf16 %v19018_v22, %v19018_v22  ;;  %v16307_v45 = vld [vmem:[#allocation6 + $0x24] ss:$8 sps:$4 sm:$0xff]   ;;  %v16311_v22 = vld [vmem:[#allocation6 + $0x40] ss:$8 sps:$4 sm:$0xff]  }
 0x50c   :  { %7965 = vmatprep.subr.bf16.mxu0 %v16232_v26  ;;  %v16302_v26 = vld [vmem:[#allocation6 + $0x10] ss:$8 sps:$4 sm:$0xff]  }
 0x50f   :  { %7966 = vmatpush1.bf16.msra.mxu0 %v16230_v12  ;;  %v16696_v41 = vpop.eup %16695  ;;  %v16308_v12 = vld [vmem:[#allocation6 + $0x30] ss:$8 sps:$4 sm:$0xff]  }
 0x510   :  { %7967 = vmatprep.subr.bf16.mxu0 %v16235_v5  ;;  %v6184_v5 = vadd.f32 1.0, %v16696_v41 }
 0x512   :  { %16697 = vrcp.f32 %v6184_v5 }
 0x513   :  { %7968 = vmatpush1.bf16.msra.mxu0 %v16233_v43  ;;  %v16314_v43 = vld [vmem:[#allocation6 + $0x50] ss:$8 sps:$4 sm:$0xff]  }
 0x514   :  { %7969 = vmatprep.subr.bf16.mxu0 %v16238_v61  ;;  %v16319_v61 = vld [vmem:[#allocation6 + $0x64] ss:$8 sps:$4 sm:$0xff]  }
 0x517   :  { %7970 = vmatpush1.bf16.msra.mxu0 %v16236_v28  ;;  %v16322_v28 = vld [vmem:[#allocation6 + $0x74] ss:$8 sps:$4 sm:$0xff]  }
 0x518   :  { %7971 = vmatprep.subr.bf16.mxu0 %v16241_v36 }
 0x51b   :  { %7972 = vmatpush1.bf16.msra.mxu0 %v16239_v29  ;;  %v16320_v29 = vld [vmem:[#allocation6 + $0x70] ss:$8 sps:$4 sm:$0xff]  }
 0x51c   :  { %7973 = vmatprep.subr.bf16.mxu0 %v16244_v9  ;;  %v16698_v36 = vpop.eup %16697 }
 0x51d   :  { %v6186_v9 = vmul.f32 %v16698_v36, %v18852_v3  ;;  %v16338_v3 = vld [vmem:[#allocation10 + $0x38] sm:$0xff]  }
 0x51f   :  { %7974 = vmatpush1.bf16.msra.mxu0 %v16242_v39  ;;  %v6187_v39 = vpack.c.bf16 %v6186_v9, %v6186_v9 }
 0x520   :  { %7975 = vmatprep.subr.bf16.mxu0 %v16247_v25  ;;  %v16329_v25 = vld [vmem:[#allocation10 + $0x58] sm:$0xff]  }
 0x521   :  { %14919 = vmatprep.subr.bf16.mxu1 %v16329_v25 }
 0x523   :  { %7976 = vmatpush1.bf16.msra.mxu0 %v16245_v10  ;;  %v16330_v10 = vld [vmem:[#allocation10 + $0x18] sm:$0xff]  }
 0x524   :  { %7977 = vmatprep.subr.bf16.mxu0 %v16250_v47  ;;  %14920 = vmatpush3.bf16.msra.mxu1 %v16330_v10  ;;  %v16331_v47 = vld [vmem:[#allocation10 + $0x60] sm:$0xff]  }
 0x525   :  { %14921 = vmatprep.subr.bf16.mxu1 %v16331_v47 }
 0x527   :  { %7978 = vmatpush1.bf16.msra.mxu0 %v16248_v2  ;;  %v16332_v2 = vld [vmem:[#allocation10 + $0x20] sm:$0xff]  }
 0x528   :  { %7979 = vmatprep.subr.bf16.mxu0 %v16253_v11  ;;  %v16333_v11 = vld [vmem:[#allocation10 + $0x68] sm:$0xff]   ;;  %14922 = vmatpush3.bf16.msra.mxu1 %v16332_v2 }
 0x529   :  { %14923 = vmatprep.subr.bf16.mxu1 %v16333_v11 }
 0x52b   :  { %7980 = vmatpush1.bf16.msra.mxu0 %v16251_v15  ;;  %v16334_v15 = vld [vmem:[#allocation10 + $0x28] sm:$0xff]  }
 0x52c   :  { %7981 = vmatprep.subr.bf16.mxu0 %v16256_v14  ;;  %v16335_v14 = vld [vmem:[#allocation10 + $0x70] sm:$0xff]   ;;  %14924 = vmatpush3.bf16.msra.mxu1 %v16334_v15 }
 0x52d   :  { %14925 = vmatprep.subr.bf16.mxu1 %v16335_v14 }
 0x52f   :  { %7982 = vmatpush1.bf16.msra.mxu0 %v16254_v50  ;;  %v16336_v50 = vld [vmem:[#allocation10 + $0x30] sm:$0xff]  }
 0x530   :  { %7983 = vmatprep.subr.bf16.mxu0 %v16259_v34  ;;  %v16337_v34 = vld [vmem:[#allocation10 + $0x78] sm:$0xff]   ;;  %14926 = vmatpush3.bf16.msra.mxu1 %v16336_v50 }
 0x531   :  { %14927 = vmatprep.subr.bf16.mxu1 %v16337_v34 }
 0x533   :  { %7984 = vmatpush1.bf16.msra.mxu0 %v16257_v31  ;;  %v16339_v31 = vld [vmem:[#allocation10 + $0xc0] sm:$0xff]  }
 0x534   :  { %7985 = vmatprep.subr.bf16.mxu0 %v16262_v33  ;;  %14928 = vmatpush3.bf16.msra.mxu1 %v16338_v3 }
 0x535   :  { %14935 = vmatprep.subr.bf16.mxu1 %v16339_v31 }
 0x537   :  { %7986 = vmatpush1.bf16.msra.mxu0 %v16260_v24 }
 0x538   :  { %7987 = vmatprep.subr.bf16.mxu0 %v16265_v51 }
 0x53b   :  { %7988 = vmatpush1.bf16.msra.mxu0 %v16263_v6 }
 0x53c   :  { %7989 = vmatprep.subr.bf16.mxu0 %v16268_v56 }
 0x53f   :  { %7990 = vmatpush1.bf16.msra.mxu0 %v16266_v0 }
 0x540   :  { %7991 = vmatprep.subr.bf16.mxu0 %v16271_v27 }
 0x543   :  { %7992 = vmatpush1.bf16.msra.mxu0 %v16269_v1 }
 0x544   :  { %7993 = vmatprep.subr.bf16.mxu0 %v16274_v20 }
 0x547   :  { %7994 = vmatpush1.bf16.msra.mxu0 %v16272_v53 }
 0x548   :  { %8004 = vmatprep.subr.bf16.mxu0 %v16277_v54 }
 0x54a   :  { %7996 = vmatmul.mubr.bf16.vlgmr.msra.gmra.mrb[56].mxu0 %v6507_v48 }
 0x54b   :  { %8005 = vmatpush1.bf16.msra.mxu0 %v16275_v57  ;;  %8036 = vmatprep.mubr.bf16.mxu0 %v17053_v21 }
 0x54c   :  { %8006 = vmatprep.subr.bf16.mxu0 %v16280_v55 }
 0x54f   :  { %8007 = vmatpush1.bf16.msra.mxu0 %v16278_v18 }
 0x550   :  { %8008 = vmatprep.subr.bf16.mxu0 %v16283_v63 }
 0x553   :  { %8009 = vmatpush1.bf16.msra.mxu0 %v16281_v35 }
 0x554   :  { %8010 = vmatprep.subr.bf16.mxu0 %v16286_v8 }
 0x557   :  { %8011 = vmatpush1.bf16.msra.mxu0 %v16284_v32 }
 0x558   :  { %8012 = vmatprep.subr.bf16.mxu0 %v16289_v40 }
 0x55b   :  { %8013 = vmatpush1.bf16.msra.mxu0 %v16287_v30 }
 0x55c   :  { %8014 = vmatprep.subr.bf16.mxu0 %v16292_v44 }
 0x55f   :  { %8015 = vmatpush1.bf16.msra.mxu0 %v16290_v52 }
 0x560   :  { %8016 = vmatprep.subr.bf16.mxu0 %v16295_v46 }
 0x563   :  { %8017 = vmatpush1.bf16.msra.mxu0 %v16293_v37 }
 0x564   :  { %8018 = vmatprep.subr.bf16.mxu0 %v16298_v4 }
 0x567   :  { %8019 = vmatpush1.bf16.msra.mxu0 %v16296_v58 }
 0x568   :  { %8125 = vmatprep.subr.bf16.mxu0 %v16301_v42 }
 0x56a   :  { %8037 = vmatmul.mubr.bf16.vlgmr.msra.gmra.mrb[56].mxu0 %v6509_v17 }
 0x56b   :  { %8126 = vmatpush1.bf16.msra.mxu0 %v16299_v60  ;;  %8157 = vmatprep.mubr.bf16.mxu0 %v17053_v21 }
 0x56c   :  { %8127 = vmatprep.subr.bf16.mxu0 %v16304_v13 }
 0x56f   :  { %8128 = vmatpush1.bf16.msra.mxu0 %v16302_v26 }
 0x570   :  { %8129 = vmatprep.subr.bf16.mxu0 %v16307_v45 }
 0x573   :  { %8130 = vmatpush1.bf16.msra.mxu0 %v16305_v23 }
 0x574   :  { %8131 = vmatprep.subr.bf16.mxu0 %v16310_v62 }
 0x577   :  { %8132 = vmatpush1.bf16.msra.mxu0 %v16308_v12 }
 0x578   :  { %8133 = vmatprep.subr.bf16.mxu0 %v16313_v59 }
 0x57b   :  { %8134 = vmatpush1.bf16.msra.mxu0 %v16311_v22 }
 0x57c   :  { %8135 = vmatprep.subr.bf16.mxu0 %v16316_v19 }
 0x57f   :  { %8136 = vmatpush1.bf16.msra.mxu0 %v16314_v43 }
 0x580   :  { %8137 = vmatprep.subr.bf16.mxu0 %v16319_v61 }
 0x583   :  { %8138 = vmatpush1.bf16.msra.mxu0 %v16317_v38 }
 0x584   :  { %8139 = vmatprep.subr.bf16.mxu0 %v16322_v28 }
 0x587   :  { %8140 = vmatpush1.bf16.msra.mxu0 %v16320_v29 }
 0x58a   :  { %8158 = vmatmul.mubr.bf16.vlgmr.msra.gmra.mrb[56].mxu0 %v6187_v39 }
 0x65d   :  { %v19042_v33 = vpop.f32.mrb[56].mxu0 }
 0x65e   :  { %v19044_v24 = vpop.f32.mrb[57].mxu0  ;;  %vm8212_vm5 = vcmp.ge.f32.partialorder %v19042_v33, -0.3  ;;  %vm8218_vm6 = vcmp.ge.f32.partialorder %v19042_v33, -0.2  ;;  %vm8230_vm12 = vcmp.ge.f32.partialorder %v19042_v33, 0.0 }
 0x65f   :  { %v8163_v51 = vpop.f32.mrb[58].mxu0  ;;  %vm8213_vm7 = vcmp.ge.f32.partialorder %v19044_v24, -0.3  ;;  %vm8219_vm8 = vcmp.ge.f32.partialorder %v19044_v24, -0.2  ;;  %vm8231_vm9 = vcmp.ge.f32.partialorder %v19044_v24, 0.0 }
 0x660   :  { %v8164_v6 = vpop.f32.mrb[59].mxu0  ;;  %v13839_v56 = vsel %vm8213_vm7, 1.0, %v19823_v7  ;;  %v13841_v0 = vsel %vm8219_vm8, 1.0, %v19823_v7  ;;  %vm8225_vm10 = vcmp.ge.f32.partialorder %v19044_v24, -0.1  ;;  %v13845_v27 = vsel %vm8231_vm9, 1.0, %v19823_v7 }
 0x661   :  { %v13843_v1 = vsel %vm8225_vm10, 1.0, %v19823_v7  ;;  %vm8237_vm11 = vcmp.ge.f32.partialorder %v19044_v24, 0.1  ;;  %v8315_v20 = vsub.f32 %v13839_v56, %v13841_v0  ;;  %v13873_v53 = vadd.f32 0.3, %v19044_v24 }
 0x662   :  { %v19059_v54 = vsel %vm8237_vm11, 1.0, %v19823_v7  ;;  %v8317_v57 = vsub.f32 %v13841_v0, %v13843_v1  ;;  %v8319_v48 = vsub.f32 %v13843_v1, %v13845_v27  ;;  %v19062_v55 = vadd.f32 0.2, %v19044_v24 }
 0x663   :  { %v19065_v18 = vsub.f32 %v13845_v27, %v19059_v54  ;;  %v19068_v21 = vadd.f32 0.1, %v19044_v24  ;;  %v19071_v63 = vadd.f32 -0.1, %v19044_v24  ;;  %v8379_v35 = vmul.f32 9.999999, %v13873_v53 }
 0x664   :  { %v8389_v8 = vmul.f32 10.0, %v19062_v55  ;;  %v8393_v32 = vmul.f32 -10.0, %v19044_v24  ;;  %v8529_v40 = vmul.f32 4.9999995, %v13873_v53  ;;  %v8533_v4 = vmul.f32 -5.0, %v19044_v24 }
 0x665   :  { %v8381_v30 = vmul.f32 %v8379_v35, %v8315_v20  ;;  %v8383_v44 = vmul.f32 -10.0, %v19068_v21  ;;  %v8399_v52 = vmul.f32 10.0, %v19068_v21  ;;  %v8403_v46 = vmul.f32 -10.0, %v19071_v63 }
 0x666   :  { %v8391_v16 = vmul.f32 %v8389_v8, %v8317_v57  ;;  %v8395_v37 = vmul.f32 %v8393_v32, %v8319_v48  ;;  %v8539_v49 = vmul.f32 5.0, %v19062_v55  ;;  %v8543_v17 = vmul.f32 -5.0, %v19071_v63 }
 0x667   :  { %v8385_v58 = vmul.f32 %v8383_v44, %v8317_v57  ;;  %v8401_v42 = vmul.f32 %v8399_v52, %v8319_v48  ;;  %v8405_v60 = vmul.f32 %v8403_v46, %v19065_v18  ;;  %v8669_v26 = vmul.f32 3.3333333, %v13873_v53 }
 0x668   :  { %v8397_v13 = vadd.f32 %v8395_v37, %v8391_v16  ;;  %v13838_v45 = vsel %vm8212_vm5, 1.0, %v19823_v7  ;;  %v13840_v23 = vsel %vm8218_vm6, 1.0, %v19823_v7  ;;  %vm8224_vm13 = vcmp.ge.f32.partialorder %v19042_v33, -0.1 }
 0x669   :  { %v8387_v41 = vadd.f32 %v8385_v58, %v8381_v30  ;;  %v19089_v62 = vadd.f32 %v8405_v60, %v8401_v42  ;;  %v13844_v12 = vsel %vm8230_vm12, 1.0, %v19823_v7  ;;  %v13842_v22 = vsel %vm8224_vm13, 1.0, %v19823_v7 }
 0x66a   :  { %v8535_v5 = vmul.f32 %v8533_v4, %v8397_v13  ;;  %v8541_v59 = vmul.f32 %v8539_v49, %v8397_v13  ;;  %vm8236_vm14 = vcmp.ge.f32.partialorder %v19042_v33, 0.1  ;;  %v8673_v61 = vmul.f32 -3.3333333, %v19071_v63 }
 0x66b   :  { %v8531_v19 = vmul.f32 %v8529_v40, %v8387_v41  ;;  %v8545_v43 = vmul.f32 %v8543_v17, %v19089_v62  ;;  %v13846_v38 = vsel %vm8236_vm14, 1.0, %v19823_v7  ;;  %v8314_v28 = vsub.f32 %v13838_v45, %v13840_v23 }
 0x66c   :  { %v8316_v36 = vsub.f32 %v13840_v23, %v13842_v22  ;;  %v8318_v29 = vsub.f32 %v13842_v22, %v13844_v12  ;;  %v13872_v9 = vadd.f32 0.3, %v19042_v33  ;;  %v19102_v10 = vadd.f32 0.2, %v19042_v33 }
 0x66d   :  { %v8537_v39 = vadd.f32 %v8535_v5, %v8531_v19  ;;  %v8547_v25 = vadd.f32 %v8545_v43, %v8541_v59  ;;  %v19105_v47 = vadd.f32 0.1, %v19042_v33  ;;  %v8320_v2 = vsub.f32 %v13844_v12, %v13846_v38 }
 0x66e   :  { %v19108_v11 = vadd.f32 -0.1, %v19042_v33  ;;  %v8378_v15 = vmul.f32 9.999999, %v13872_v9  ;;  %v8392_v14 = vmul.f32 -10.0, %v19042_v33  ;;  %v8388_v31 = vmul.f32 10.0, %v19102_v10 }
 0x66f   :  { %v8671_v50 = vmul.f32 %v8669_v26, %v8537_v39  ;;  %v8675_v34 = vmul.f32 %v8673_v61, %v8547_v25  ;;  %v8382_v3 = vmul.f32 -10.0, %v19105_v47  ;;  %v8398_v56 = vmul.f32 10.0, %v19105_v47 }
 0x670   :  { %v8380_v51 = vmul.f32 %v8378_v15, %v8314_v28  ;;  %v8394_v6 = vmul.f32 %v8392_v14, %v8318_v29  ;;  %v8402_v0 = vmul.f32 -10.0, %v19108_v11  ;;  %v8390_v20 = vmul.f32 %v8388_v31, %v8316_v36 }
 0x671   :  { %v8677_v27 = vadd.f32 %v8675_v34, %v8671_v50  ;;  %v8384_v1 = vmul.f32 %v8382_v3, %v8316_v36  ;;  %v8400_v53 = vmul.f32 %v8398_v56, %v8318_v29  ;;  %v8528_v48 = vmul.f32 4.9999995, %v13872_v9  ;;  %v16341_v56 = vld [vmem:[#allocation10 + $0xc8] sm:$0xff]  }
 0x672   :  { %v8404_v57 = vmul.f32 %v8402_v0, %v8320_v2  ;;  %v8532_v35 = vmul.f32 -5.0, %v19042_v33  ;;  %v8396_v40 = vadd.f32 %v8394_v6, %v8390_v20  ;;  %v8538_v30 = vmul.f32 5.0, %v19102_v10 }
 0x673   :  { %v8799_v8 = vpack.c.bf16 %v8677_v27, %v8677_v27  ;;  %v8386_v32 = vadd.f32 %v8384_v1, %v8380_v51  ;;  %v8542_v52 = vmul.f32 -5.0, %v19108_v11  ;;  %vm8243_vm15 = vcmp.ge.f32.partialorder %v19044_v24, 0.2 }
 0x674   :  { %v8406_v44 = vadd.f32 %v8404_v57, %v8400_v53  ;;  %v19120_v46 = vadd.f32 -0.2, %v19044_v24  ;;  %v8534_v37 = vmul.f32 %v8532_v35, %v8396_v40  ;;  %v8540_v4 = vmul.f32 %v8538_v30, %v8396_v40  ;;  %v16342_v57 = vld [vmem:[#allocation10 + $0x88] sm:$0xff]   ;;  %v16343_v30 = vld [vmem:[#allocation10 + $0xd0] sm:$0xff]  }
 0x675   :  { %10520 = vmatprep.mubr.bf16.mxu1 %v8799_v8  ;;  %v8530_v16 = vmul.f32 %v8528_v48, %v8386_v32  ;;  %v13849_v49 = vsel %vm8243_vm15, 1.0, %v19823_v7  ;;  %v8409_v60 = vmul.f32 10.0, %v19044_v24  ;;  %v8668_v26 = vmul.f32 3.3333333, %v13872_v9 }
 0x676   :  { %v8544_v58 = vmul.f32 %v8542_v52, %v8406_v44  ;;  %v8323_v42 = vsub.f32 %v19059_v54, %v13849_v49  ;;  %v8413_v17 = vmul.f32 -10.0, %v19120_v46  ;;  %v8672_v45 = vmul.f32 -3.3333333, %v19108_v11 }
 0x677   :  { %v8536_v13 = vadd.f32 %v8534_v37, %v8530_v16  ;;  %v8549_v23 = vmul.f32 5.0, %v19068_v21  ;;  %v8411_v12 = vmul.f32 %v8409_v60, %v19065_v18  ;;  %v8553_v59 = vmul.f32 -5.0, %v19120_v46 }
 0x678   :  { %v8546_v41 = vadd.f32 %v8544_v58, %v8540_v4  ;;  %v8415_v5 = vmul.f32 %v8413_v17, %v8323_v42  ;;  %v8679_v54 = vmul.f32 3.3333333, %v19062_v55  ;;  %vm8242_vm0 = vcmp.ge.f32.partialorder %v19042_v33, 0.2  ;;  %v16340_v55 = vld [vmem:[#allocation10 + $0x80] sm:$0xff]  }
 0x679   :  { %v8670_v22 = vmul.f32 %v8668_v26, %v8536_v13  ;;  %v8551_v19 = vmul.f32 %v8549_v23, %v19089_v62  ;;  %v13848_v28 = vsel %vm8242_vm0, 1.0, %v19823_v7  ;;  %v19135_v36 = vadd.f32 -0.2, %v19042_v33  ;;  %v16344_v13 = vld [vmem:[#allocation10 + $0x90] sm:$0xff]  }
 0x67a   :  { %v8674_v43 = vmul.f32 %v8672_v45, %v8546_v41  ;;  %v8417_v61 = vadd.f32 %v8415_v5, %v8411_v12  ;;  %v8683_v29 = vmul.f32 -3.3333333, %v19120_v46  ;;  %v8322_v18 = vsub.f32 %v13846_v38, %v13848_v28  ;;  %v16345_v12 = vld [vmem:[#allocation10 + $0xd8] sm:$0xff]  }
 0x67b   :  { %v8408_v9 = vmul.f32 10.0, %v19042_v33  ;;  %v8681_v14 = vmul.f32 %v8679_v54, %v8547_v25  ;;  %v8412_v62 = vmul.f32 -10.0, %v19135_v36  ;;  %v8548_v34 = vmul.f32 5.0, %v19105_v47 }
 0x67c   :  { %v8676_v39 = vadd.f32 %v8674_v43, %v8670_v22  ;;  %v8555_v15 = vmul.f32 %v8553_v59, %v8417_v61  ;;  %v8552_v3 = vmul.f32 -5.0, %v19135_v36  ;;  %v8678_v31 = vmul.f32 3.3333333, %v19102_v10 }
 0x67d   :  { %v8410_v50 = vmul.f32 %v8408_v9, %v8320_v2  ;;  %v8414_v0 = vmul.f32 %v8412_v62, %v8322_v18  ;;  %vm8249_vm1 = vcmp.ge.f32.partialorder %v19044_v24, 0.3  ;;  %v8550_v38 = vmul.f32 %v8548_v34, %v8406_v44  ;;  %v16347_v62 = vld [vmem:[#allocation10 + $0xe0] sm:$0xff]  }
 0x67e   :  { %v8798_v51 = vpack.c.bf16 %v8676_v39, %v8676_v39  ;;  %v8557_v6 = vadd.f32 %v8555_v15, %v8551_v19  ;;  %v13851_v27 = vsel %vm8249_vm1, 1.0, %v19823_v7  ;;  %v19146_v25 = vadd.f32 -0.3, %v19044_v24  ;;  %v16346_v39 = vld [vmem:[#allocation10 + $0x98] sm:$0xff]  }
 0x67f   :  { %v8419_v2 = vmul.f32 10.0, %v19071_v63  ;;  %v8416_v20 = vadd.f32 %v8414_v0, %v8410_v50  ;;  %v8325_v53 = vsub.f32 %v13849_v49, %v13851_v27  ;;  %v8559_v10 = vmul.f32 5.0, %v19044_v24 }
 0x680   :  { %10521 = vmatmul.mubr.bf16.vlgmr.msra.gmra.mrb[56].mxu1 %v8798_v51  ;;  %v8685_v1 = vmul.f32 %v8683_v29, %v8557_v6  ;;  %v8680_v48 = vmul.f32 %v8678_v31, %v8546_v41  ;;  %v8682_v35 = vmul.f32 -3.3333333, %v19135_v36  ;;  %v8423_v32 = vmul.f32 -9.999999, %v19146_v25 }
 0x681   :  { %14936 = vmatpush3.bf16.msra.mxu1 %v16340_v55  ;;  %v8421_v8 = vmul.f32 %v8419_v2, %v8323_v42  ;;  %v8554_v44 = vmul.f32 %v8552_v3, %v8416_v20  ;;  %v8561_v52 = vmul.f32 %v8559_v10, %v8417_v61  ;;  %v8563_v16 = vmul.f32 -4.9999995, %v19146_v25  ;;  %v16348_v2 = vld [vmem:[#allocation10 + $0xa0] sm:$0xff]  }
 0x682   :  { %v8687_v40 = vadd.f32 %v8685_v1, %v8681_v14  ;;  %14937 = vmatprep.subr.bf16.mxu1 %v16341_v56  ;;  %v8425_v37 = vmul.f32 %v8423_v32, %v8325_v53  ;;  %vm8248_vm2 = vcmp.ge.f32.partialorder %v19042_v33, 0.3  ;;  %v19155_v4 = vadd.f32 -0.3, %v19042_v33 }
 0x683   :  { %v8418_v49 = vmul.f32 10.0, %v19108_v11  ;;  %v8556_v60 = vadd.f32 %v8554_v44, %v8550_v38  ;;  %v13850_v42 = vsel %vm8248_vm2, 1.0, %v19823_v7  ;;  %v8558_v17 = vmul.f32 5.0, %v19042_v33 }
 0x684   :  { %v8801_v58 = vpack.c.bf16 %v8687_v40, %v8687_v40  ;;  %v8427_v26 = vadd.f32 %v8425_v37, %v8421_v8  ;;  %v8324_v45 = vsub.f32 %v13848_v28, %v13850_v42  ;;  %v8422_v41 = vmul.f32 -9.999999, %v19155_v4 }
 0x685   :  { %14938 = vmatpush3.bf16.msra.mxu1 %v16342_v57  ;;  %v8420_v23 = vmul.f32 %v8418_v49, %v8322_v18  ;;  %v8684_v5 = vmul.f32 %v8682_v35, %v8556_v60  ;;  %v8689_v59 = vmul.f32 3.3333333, %v19068_v21  ;;  %v8560_v22 = vmul.f32 %v8558_v17, %v8416_v20  ;;  %v16349_v57 = vld [vmem:[#allocation10 + $0xe8] sm:$0xff]  }
 0x686   :  { %10560 = vmatprep.mubr.bf16.mxu1 %v8801_v58  ;;  %14939 = vmatprep.subr.bf16.mxu1 %v16343_v30  ;;  %v8688_v19 = vmul.f32 3.3333333, %v19105_v47  ;;  %v8565_v54 = vmul.f32 %v8563_v16, %v8427_v26  ;;  %v8424_v43 = vmul.f32 %v8422_v41, %v8324_v45  ;;  %v8562_v61 = vmul.f32 -4.9999995, %v19155_v4  ;;  %v16350_v58 = vld [vmem:[#allocation10 + $0xa8] sm:$0xff]  }
 0x687   :  { %vm8255_vm3 = vcmp.ge.f32.partialorder %v19044_v24, 0.4  ;;  %v19165_v29 = vadd.f32 %v8684_v5, %v8680_v48  ;;  %v19169_v9 = vadd.f32 -0.4, %v19044_v24  ;;  %v8429_v47 = vmul.f32 9.999999, %v19120_v46 }
 0x688   :  { %v8690_v28 = vmul.f32 %v8688_v19, %v8556_v60  ;;  %v13853_v18 = vsel %vm8255_vm3, 1.0, %v19823_v7  ;;  %v8567_v21 = vadd.f32 %v8565_v54, %v8561_v52  ;;  %v8426_v15 = vadd.f32 %v8424_v43, %v8420_v23 }
 0x689   :  { %14940 = vmatpush3.bf16.msra.mxu1 %v16344_v13  ;;  %v8327_v14 = vsub.f32 %v13851_v27, %v13853_v18  ;;  %v8691_v55 = vmul.f32 %v8689_v59, %v8557_v6  ;;  %v8433_v50 = vmul.f32 -10.000001, %v19169_v9  ;;  %v8569_v34 = vmul.f32 4.9999995, %v19071_v63 }
 0x68a   :  { %14941 = vmatprep.subr.bf16.mxu1 %v16345_v12  ;;  %v8693_v3 = vmul.f32 -3.3333333, %v19146_v25  ;;  %v8564_v31 = vmul.f32 %v8562_v61, %v8426_v15  ;;  %v8692_v51 = vmul.f32 -3.3333333, %v19155_v4  ;;  %v8431_v56 = vmul.f32 %v8429_v47, %v8325_v53 }
 0x68b   :  { %v8800_v0 = vpack.c.bf16 %v19165_v29, %v19165_v29  ;;  %v8435_v38 = vmul.f32 %v8433_v50, %v8327_v14  ;;  %v8571_v27 = vmul.f32 %v8569_v34, %v8427_v26  ;;  %vm8254_vm4 = vcmp.ge.f32.partialorder %v19042_v33, 0.4  ;;  %v16351_v26 = vld [vmem:[#allocation10 + $0xf0] sm:$0xff]  }
 0x68c   :  { %v8695_v6 = vmul.f32 %v8693_v3, %v8567_v21  ;;  %v8566_v1 = vadd.f32 %v8564_v31, %v8560_v22  ;;  %v8573_v20 = vmul.f32 -5.0, %v19169_v9  ;;  %v13852_v10 = vsel %vm8254_vm4, 1.0, %v19823_v7 }
 0x68d   :  { %14942 = vmatpush3.bf16.msra.mxu1 %v16346_v39  ;;  %v8437_v48 = vadd.f32 %v8435_v38, %v8431_v56  ;;  %v8326_v35 = vsub.f32 %v13850_v42, %v13852_v10  ;;  %v19182_v53 = vadd.f32 -0.4, %v19042_v33  ;;  %v8428_v8 = vmul.f32 9.999999, %v19135_v36 }
 0x68e   :  { %14943 = vmatprep.subr.bf16.mxu1 %v16347_v62  ;;  %v8694_v32 = vmul.f32 %v8692_v51, %v8566_v1  ;;  %v8699_v40 = vmul.f32 3.3333333, %v19044_v24  ;;  %v8568_v30 = vmul.f32 4.9999995, %v19108_v11  ;;  %v8698_v44 = vmul.f32 3.3333333, %v19042_v33 }
 0x68f   :  { %v8575_v52 = vmul.f32 %v8573_v20, %v8437_v48  ;;  %v8703_v16 = vmul.f32 -3.3333333, %v19169_v9  ;;  %v8430_v37 = vmul.f32 %v8428_v8, %v8324_v45  ;;  %v8432_v49 = vmul.f32 -10.000001, %v19182_v53  ;;  %v16353_v62 = vld [vmem:[#allocation10 + $0xf8] sm:$0xff]  }
 0x690   :  { %v19190_v60 = vadd.f32 %v8694_v32, %v8690_v28  ;;  %v8701_v42 = vmul.f32 %v8699_v40, %v8567_v21  ;;  %v8570_v17 = vmul.f32 %v8568_v30, %v8426_v15  ;;  %v8700_v13 = vmul.f32 %v8698_v44, %v8566_v1  ;;  %v16352_v28 = vld [vmem:[#allocation10 + $0xb0] sm:$0xff]  }
 0x691   :  { %14944 = vmatpush3.bf16.msra.mxu1 %v16348_v2  ;;  %v8577_v23 = vadd.f32 %v8575_v52, %v8571_v27  ;;  %v8434_v41 = vmul.f32 %v8432_v49, %v8326_v35  ;;  %vm8261_vm5 = vcmp.ge.f32.partialorder %v19044_v24, 0.5  ;;  %v19194_v12 = vadd.f32 -0.5, %v19044_v24  ;;  %v16354_v27 = vld [vmem:[#allocation10 + $0xb8] sm:$0xff]   ;;  %v16356_v49 = vld [vmem:[#allocation10 + $0x100] sm:$0xff]  }
 0x692   :  { %14945 = vmatprep.subr.bf16.mxu1 %v16349_v57  ;;  %v8572_v45 = vmul.f32 -5.0, %v19182_v53  ;;  %v13855_v5 = vsel %vm8261_vm5, 1.0, %v19823_v7  ;;  %v8439_v59 = vmul.f32 10.000001, %v19146_v25  ;;  %v8579_v22 = vmul.f32 5.0, %v19120_v46  ;;  %v16355_v57 = vld [vmem:[#allocation10 + $0x140] sm:$0xff]  }
 0x693   :  { %v8705_v19 = vmul.f32 %v8703_v16, %v8577_v23  ;;  %v8436_v54 = vadd.f32 %v8434_v41, %v8430_v37  ;;  %v8329_v43 = vsub.f32 %v13853_v18, %v13855_v5  ;;  %v8443_v61 = vmul.f32 -10.000001, %v19194_v12 }
 0x694   :  { %v8697_v39 = vadd.f32 %v8695_v6, %v8691_v55  ;;  %v8441_v21 = vmul.f32 %v8439_v59, %v8327_v14  ;;  %v8581_v15 = vmul.f32 %v8579_v22, %v8437_v48  ;;  %v8709_v47 = vmul.f32 3.3333333, %v19071_v63 }
 0x695   :  { %14946 = vmatpush3.bf16.msra.mxu1 %v16350_v58  ;;  %v19202_v50 = vadd.f32 %v8705_v19, %v8701_v42  ;;  %v8574_v34 = vmul.f32 %v8572_v45, %v8436_v54  ;;  %v8702_v3 = vmul.f32 -3.3333333, %v19182_v53  ;;  %v8445_v31 = vmul.f32 %v8443_v61, %v8329_v43 }
 0x696   :  { %14947 = vmatprep.subr.bf16.mxu1 %v16351_v26  ;;  %v8711_v51 = vmul.f32 %v8709_v47, %v8577_v23  ;;  %vm8260_vm6 = vcmp.ge.f32.partialorder %v19042_v33, 0.5  ;;  %v19207_v18 = vadd.f32 -0.5, %v19042_v33  ;;  %v8438_v55 = vmul.f32 10.000001, %v19155_v4  ;;  %v16357_v23 = vld [vmem:[#allocation10 + $0x148] sm:$0xff]   ;;  %v16359_v47 = vld [vmem:[#allocation10 + $0x150] sm:$0xff]  }
 0x697   :  { %v8576_v14 = vadd.f32 %v8574_v34, %v8570_v17  ;;  %v8447_v56 = vadd.f32 %v8445_v31, %v8441_v21  ;;  %v8583_v63 = vmul.f32 -5.0000005, %v19194_v12  ;;  %v13854_v38 = vsel %vm8260_vm6, 1.0, %v19823_v7  ;;  %v16358_v21 = vld [vmem:[#allocation10 + $0x108] sm:$0xff]  }
 0x698   :  { %v8328_v2 = vsub.f32 %v13852_v10, %v13854_v38  ;;  %v8440_v6 = vmul.f32 %v8438_v55, %v8326_v35  ;;  %v8442_v1 = vmul.f32 -10.000001, %v19207_v18  ;;  %v8578_v20 = vmul.f32 5.0, %v19135_v36 }
 0x699   :  { %14948 = vmatpush3.bf16.msra.mxu1 %v16352_v28  ;;  %v8704_v48 = vmul.f32 %v8702_v3, %v8576_v14  ;;  %v8585_v8 = vmul.f32 %v8583_v63, %v8447_v56  ;;  %v8713_v32 = vmul.f32 -3.3333333, %v19194_v12  ;;  %v8708_v40 = vmul.f32 3.3333333, %v19108_v11  ;;  %v16360_v63 = vld [vmem:[#allocation10 + $0x110] sm:$0xff]  }
 0x69a   :  { %14949 = vmatprep.subr.bf16.mxu1 %v16353_v62  ;;  %v8444_v30 = vmul.f32 %v8442_v1, %v8328_v2  ;;  %v8580_v44 = vmul.f32 %v8578_v20, %v8436_v54  ;;  %v8582_v52 = vmul.f32 -5.0000005, %v19207_v18  ;;  %vm8267_vm7 = vcmp.ge.f32.partialorder %v19044_v24, 0.6 }
 0x69b   :  { %v19218_v10 = vadd.f32 %v8704_v48, %v8700_v13  ;;  %v8587_v35 = vadd.f32 %v8585_v8, %v8581_v15  ;;  %v8710_v16 = vmul.f32 %v8708_v40, %v8576_v14  ;;  %v13857_v37 = vsel %vm8267_vm7, 1.0, %v19823_v7 }
 0x69c   :  { %v8446_v58 = vadd.f32 %v8444_v30, %v8440_v6  ;;  %v8331_v42 = vsub.f32 %v13855_v5, %v13857_v37  ;;  %v19222_v17 = vadd.f32 -0.6, %v19044_v24  ;;  %v8449_v11 = vmul.f32 10.000001, %v19169_v9 }
 0x69d   :  { %14950 = vmatpush3.bf16.msra.mxu1 %v16354_v27  ;;  %v8803_v26 = vpack.c.bf16 %v8697_v39, %v8697_v39  ;;  %v8715_v41 = vmul.f32 %v8713_v32, %v8587_v35  ;;  %v8589_v13 = vmul.f32 5.0000005, %v19146_v25  ;;  %v8719_v45 = vmul.f32 3.3333333, %v19120_v46  ;;  %v16361_v27 = vld [vmem:[#allocation10 + $0x158] sm:$0xff]  }
 0x69e   :  { %14957 = vmatprep.subr.bf16.mxu1 %v16355_v57  ;;  %v8584_v59 = vmul.f32 %v8582_v52, %v8446_v58  ;;  %v8712_v22 = vmul.f32 -3.3333333, %v19207_v18  ;;  %v8451_v19 = vmul.f32 %v8449_v11, %v8329_v43  ;;  %v8453_v54 = vmul.f32 -9.999998, %v19222_v17 }
 0x69f   :  { %v19232_v5 = vadd.f32 %v8715_v41, %v8711_v51  ;;  %v8591_v61 = vmul.f32 %v8589_v13, %v8447_v56  ;;  %v8593_v28 = vmul.f32 -4.9999995, %v19222_v17  ;;  %v8721_v39 = vmul.f32 %v8719_v45, %v8587_v35 }
 0x6a0   :  { %10561 = vmatmul.mubr.bf16.vlgmr.msra.gmra.mrb[60].mxu1 %v8800_v0  ;;  %v8586_v46 = vadd.f32 %v8584_v59, %v8580_v44  ;;  %v8455_v15 = vmul.f32 %v8453_v54, %v8331_v42  ;;  %vm8266_vm8 = vcmp.ge.f32.partialorder %v19042_v33, 0.6  ;;  %v19237_v43 = vadd.f32 -0.6, %v19042_v33 }
 0x6a1   :  { %14958 = vmatpush3.bf16.msra.mxu1 %v16356_v49  ;;  %10600 = vmatprep.mubr.bf16.mxu1 %v8803_v26  ;;  %v13856_v29 = vsel %vm8266_vm8, 1.0, %v19823_v7  ;;  %v8448_v0 = vmul.f32 10.000001, %v19182_v53  ;;  %v8588_v62 = vmul.f32 5.0000005, %v19155_v4  ;;  %vm8291_vm14 = vcmp.ge.f32.partialorder %v19044_v24, 1.0 }
 0x6a2   :  { %14959 = vmatprep.subr.bf16.mxu1 %v16357_v23  ;;  %v8714_v34 = vmul.f32 %v8712_v22, %v8586_v46  ;;  %v8457_v3 = vadd.f32 %v8455_v15, %v8451_v19  ;;  %v8330_v31 = vsub.f32 %v13854_v38, %v13856_v29  ;;  %v8452_v51 = vmul.f32 -9.999998, %v19237_v43  ;;  %v16363_v23 = vld [vmem:[#allocation10 + $0x160] sm:$0xff]  }
 0x6a3   :  { %v8450_v55 = vmul.f32 %v8448_v0, %v8328_v2  ;;  %v8590_v14 = vmul.f32 %v8588_v62, %v8446_v58  ;;  %v8718_v56 = vmul.f32 3.3333333, %v19135_v36  ;;  %v8723_v20 = vmul.f32 -3.3333333, %v19222_v17 }
 0x6a4   :  { %v19244_v6 = vadd.f32 %v8714_v34, %v8710_v16  ;;  %v8595_v1 = vmul.f32 %v8593_v28, %v8457_v3  ;;  %v8454_v57 = vmul.f32 %v8452_v51, %v8330_v31  ;;  %vm8273_vm9 = vcmp.ge.f32.partialorder %v19044_v24, 0.7  ;;  %v16362_v16 = vld [vmem:[#allocation10 + $0x118] sm:$0xff]   ;;  %v16364_v28 = vld [vmem:[#allocation10 + $0x120] sm:$0xff]  }
 0x6a5   :  { %14960 = vmatpush3.bf16.msra.mxu1 %v16358_v21  ;;  %v8720_v48 = vmul.f32 %v8718_v56, %v8586_v46  ;;  %v19249_v38 = vadd.f32 -0.7, %v19044_v24  ;;  %v8459_v2 = vmul.f32 9.999998, %v19194_v12  ;;  %v8592_v32 = vmul.f32 -4.9999995, %v19237_v43 }
 0x6a6   :  { %14961 = vmatprep.subr.bf16.mxu1 %v16359_v47  ;;  %v8597_v8 = vadd.f32 %v8595_v1, %v8591_v61  ;;  %v8456_v36 = vadd.f32 %v8454_v57, %v8450_v55  ;;  %v13859_v40 = vsel %vm8273_vm9, 1.0, %v19823_v7  ;;  %v8599_v35 = vmul.f32 4.9999995, %v19169_v9 }
 0x6a7   :  { %v8333_v30 = vsub.f32 %v13857_v37, %v13859_v40  ;;  %v8461_v44 = vmul.f32 %v8459_v2, %v8331_v42  ;;  %v8463_v52 = vmul.f32 -10.000004, %v19249_v38  ;;  %v8722_v11 = vmul.f32 -3.3333333, %v19237_v43 }
 0x6a8   :  { %v8725_v49 = vmul.f32 %v8723_v20, %v8597_v8  ;;  %v8594_v58 = vmul.f32 %v8592_v32, %v8456_v36  ;;  %v8729_v26 = vmul.f32 3.3333333, %v19146_v25  ;;  %v8601_v13 = vmul.f32 %v8599_v35, %v8457_v3  ;;  %v16367_v20 = vld [vmem:[#allocation10 + $0x170] sm:$0xff]  }
 0x6a9   :  { %14962 = vmatpush3.bf16.msra.mxu1 %v16360_v63  ;;  %v8465_v41 = vmul.f32 %v8463_v52, %v8333_v30  ;;  %v8603_v45 = vmul.f32 -5.0000005, %v19249_v38  ;;  %vm8272_vm10 = vcmp.ge.f32.partialorder %v19042_v33, 0.7  ;;  %v19264_v61 = vadd.f32 -0.7, %v19042_v33 }
 0x6aa   :  { %14963 = vmatprep.subr.bf16.mxu1 %v16361_v27  ;;  %v19260_v37 = vadd.f32 %v8725_v49, %v8721_v39  ;;  %v8596_v42 = vadd.f32 %v8594_v58, %v8590_v14  ;;  %v8731_v59 = vmul.f32 %v8729_v26, %v8597_v8  ;;  %v13858_v22 = vsel %vm8272_vm10, 1.0, %v19823_v7  ;;  %v16365_v39 = vld [vmem:[#allocation10 + $0x168] sm:$0xff]   ;;  %v16368_v52 = vld [vmem:[#allocation10 + $0x130] sm:$0xff]  }
 0x6ab   :  { %v8467_v19 = vadd.f32 %v8465_v41, %v8461_v44  ;;  %v8332_v54 = vsub.f32 %v13856_v29, %v13858_v22  ;;  %v8458_v25 = vmul.f32 9.999998, %v19207_v18  ;;  %v8598_v46 = vmul.f32 4.9999995, %v19182_v53  ;;  %v16366_v63 = vld [vmem:[#allocation10 + $0x128] sm:$0xff]  }
 0x6ac   :  { %v8724_v21 = vmul.f32 %v8722_v11, %v8596_v42  ;;  %v8728_v15 = vmul.f32 3.3333333, %v19155_v4  ;;  %v8733_v0 = vmul.f32 -3.3333335, %v19249_v38  ;;  %v8462_v29 = vmul.f32 -10.000004, %v19264_v61 }
 0x6ad   :  { %14964 = vmatpush3.bf16.msra.mxu1 %v16362_v16  ;;  %v8605_v47 = vmul.f32 %v8603_v45, %v8467_v19  ;;  %v8460_v62 = vmul.f32 %v8458_v25, %v8330_v31  ;;  %v8600_v3 = vmul.f32 %v8598_v46, %v8456_v36  ;;  %v8602_v51 = vmul.f32 -5.0000005, %v19264_v61  ;;  %v16370_v46 = vld [vmem:[#allocation10 + $0x138] sm:$0xff]  }
 0x6ae   :  { %14965 = vmatprep.subr.bf16.mxu1 %v16363_v23  ;;  %v19271_v34 = vadd.f32 %v8724_v21, %v8720_v48  ;;  %v8730_v55 = vmul.f32 %v8728_v15, %v8596_v42  ;;  %v8464_v56 = vmul.f32 %v8462_v29, %v8332_v54  ;;  %vm8279_vm11 = vcmp.ge.f32.partialorder %v19044_v24, 0.8 }
 0x6af   :  { %v8607_v14 = vadd.f32 %v8605_v47, %v8601_v13  ;;  %v19276_v4 = vadd.f32 -0.8, %v19044_v24  ;;  %v13861_v27 = vsel %vm8279_vm11, 1.0, %v19823_v7  ;;  %v8469_v31 = vmul.f32 10.000004, %v19222_v17 }
 0x6b0   :  { %v8609_v1 = vmul.f32 5.0000005, %v19194_v12  ;;  %v8466_v48 = vadd.f32 %v8464_v56, %v8460_v62  ;;  %v8335_v2 = vsub.f32 %v13859_v40, %v13861_v27  ;;  %v8739_v44 = vmul.f32 3.3333335, %v19169_v9 }
 0x6b1   :  { %14966 = vmatpush3.bf16.msra.mxu1 %v16364_v28  ;;  %v8735_v57 = vmul.f32 %v8733_v0, %v8607_v14  ;;  %v8473_v8 = vmul.f32 -9.999998, %v19276_v4  ;;  %v8471_v36 = vmul.f32 %v8469_v31, %v8333_v30  ;;  %v8802_v35 = vpack.c.bf16 %v19190_v60, %v19190_v60  ;;  %v16369_v30 = vld [vmem:[#allocation10 + $0x178] sm:$0xff]  }
 0x6b2   :  { %14967 = vmatprep.subr.bf16.mxu1 %v16365_v39  ;;  %v8611_v32 = vmul.f32 %v8609_v1, %v8467_v19  ;;  %v8604_v49 = vmul.f32 %v8602_v51, %v8466_v48  ;;  %v8732_v11 = vmul.f32 -3.3333335, %v19264_v61  ;;  %v8741_v26 = vmul.f32 %v8739_v44, %v8607_v14  ;;  %v16372_v1 = vld [vmem:[#allocation10 + $0x180] sm:$0xff]  }
 0x6b3   :  { %v19285_v16 = vadd.f32 %v8735_v57, %v8731_v59  ;;  %v8475_v58 = vmul.f32 %v8473_v8, %v8335_v2  ;;  %vm8278_vm12 = vcmp.ge.f32.partialorder %v19042_v33, 0.8  ;;  %v19290_v40 = vadd.f32 -0.8, %v19042_v33  ;;  %v16373_v8 = vld [vmem:[#allocation10 + $0x1c8] sm:$0xff]  }
 0x6b4   :  { %v8606_v9 = vadd.f32 %v8604_v49, %v8600_v3  ;;  %v8613_v41 = vmul.f32 -5.0000005, %v19276_v4  ;;  %v13860_v60 = vsel %vm8278_vm12, 1.0, %v19823_v7  ;;  %v8468_v45 = vmul.f32 10.000004, %v19237_v43 }
 0x6b5   :  { %14968 = vmatpush3.bf16.msra.mxu1 %v16366_v63  ;;  %v8477_v23 = vadd.f32 %v8475_v58, %v8471_v36  ;;  %v8334_v13 = vsub.f32 %v13858_v22, %v13860_v60  ;;  %v8472_v42 = vmul.f32 -9.999998, %v19290_v40  ;;  %v8608_v59 = vmul.f32 5.0000005, %v19207_v18  ;;  %v16371_v22 = vld [vmem:[#allocation10 + $0x1c0] sm:$0xff]  }
 0x6b6   :  { %14969 = vmatprep.subr.bf16.mxu1 %v16367_v20  ;;  %v8734_v19 = vmul.f32 %v8732_v11, %v8606_v9  ;;  %v8743_v28 = vmul.f32 -3.3333333, %v19276_v4  ;;  %v8738_v21 = vmul.f32 3.3333335, %v19182_v53  ;;  %v8470_v15 = vmul.f32 %v8468_v45, %v8332_v54  ;;  %v16375_v45 = vld [vmem:[#allocation10 + $0x1d0] sm:$0xff]  }
 0x6b7   :  { %v8615_v25 = vmul.f32 %v8613_v41, %v8477_v23  ;;  %v8474_v39 = vmul.f32 %v8472_v42, %v8334_v13  ;;  %v8610_v47 = vmul.f32 %v8608_v59, %v8466_v48  ;;  %v8612_v0 = vmul.f32 -5.0000005, %v19290_v40 }
 0x6b8   :  { %v19300_v62 = vadd.f32 %v8734_v19, %v8730_v55  ;;  %v8740_v3 = vmul.f32 %v8738_v21, %v8606_v9  ;;  %vm8285_vm13 = vcmp.ge.f32.partialorder %v19044_v24, 0.9  ;;  %v19305_v53 = vadd.f32 -0.9, %v19044_v24 }
 0x6b9   :  { %14970 = vmatpush3.bf16.msra.mxu1 %v16368_v52  ;;  %v8617_v29 = vadd.f32 %v8615_v25, %v8611_v32  ;;  %v8476_v51 = vadd.f32 %v8474_v39, %v8470_v15  ;;  %v13863_v14 = vsel %vm8285_vm13, 1.0, %v19823_v7  ;;  %v8479_v54 = vmul.f32 9.999998, %v19249_v38  ;;  %v16376_v39 = vld [vmem:[#allocation10 + $0x190] sm:$0xff]  }
 0x6ba   :  { %14971 = vmatprep.subr.bf16.mxu1 %v16369_v30  ;;  %v8805_v56 = vpack.c.bf16 %v19202_v50, %v19202_v50  ;;  %v8337_v31 = vsub.f32 %v13861_v27, %v13863_v14  ;;  %v8619_v55 = vmul.f32 5.0000005, %v19222_v17  ;;  %v8483_v48 = vmul.f32 -10.000004, %v19305_v53  ;;  %v16374_v30 = vld [vmem:[#allocation10 + $0x188] sm:$0xff]  }
 0x6bb   :  { %v8745_v63 = vmul.f32 %v8743_v28, %v8617_v29  ;;  %v8614_v20 = vmul.f32 %v8612_v0, %v8476_v51  ;;  %v8481_v57 = vmul.f32 %v8479_v54, %v8335_v2  ;;  %v8742_v32 = vmul.f32 -3.3333333, %v19290_v40 }
 0x6bc   :  { %v8621_v44 = vmul.f32 %v8619_v55, %v8477_v23  ;;  %v8749_v50 = vmul.f32 3.3333333, %v19194_v12  ;;  %v8485_v52 = vmul.f32 %v8483_v48, %v8337_v31  ;;  %vm8284_vm15 = vcmp.ge.f32.partialorder %v19042_v33, 0.9  ;;  %v16378_v48 = vld [vmem:[#allocation10 + $0x198] sm:$0xff]  }
 0x6bd   :  { %14972 = vmatpush3.bf16.msra.mxu1 %v16370_v46  ;;  %v19313_v36 = vadd.f32 %v8745_v63, %v8741_v26  ;;  %v8616_v27 = vadd.f32 %v8614_v20, %v8610_v47  ;;  %v19319_v49 = vadd.f32 -0.9, %v19042_v33  ;;  %v8623_v2 = vmul.f32 -5.0000005, %v19305_v53 }
 0x6be   :  { %14979 = vmatprep.subr.bf16.mxu1 %v16371_v22  ;;  %v8751_v58 = vmul.f32 %v8749_v50, %v8617_v29  ;;  %v13862_v11 = vsel %vm8284_vm15, 1.0, %v19823_v7  ;;  %v8478_v26 = vmul.f32 9.999998, %v19264_v61  ;;  %v8487_v12 = vadd.f32 %v8485_v52, %v8481_v57 }
 0x6bf   :  { %v8744_v9 = vmul.f32 %v8742_v32, %v8616_v27  ;;  %v8336_v23 = vsub.f32 %v13860_v60, %v13862_v11  ;;  %v8482_v41 = vmul.f32 -10.000004, %v19319_v49  ;;  %v19329_v59 = vsel %vm8291_vm14, 1.0, %v19823_v7 }
 0x6c0   :  { %10601 = vmatmul.mubr.bf16.vlgmr.msra.gmra.mrb[64].mxu1 %v8802_v35  ;;  %v8480_v42 = vmul.f32 %v8478_v26, %v8334_v13  ;;  %v8618_v35 = vmul.f32 5.0000005, %v19237_v43  ;;  %v8625_v25 = vmul.f32 %v8623_v2, %v8487_v12  ;;  %v8748_v21 = vmul.f32 3.3333333, %v19207_v18 }
 0x6c1   :  { %14980 = vmatpush3.bf16.msra.mxu1 %v16372_v1  ;;  %10640 = vmatprep.mubr.bf16.mxu1 %v8805_v56  ;;  %v19331_v19 = vadd.f32 %v8744_v9, %v8740_v3  ;;  %v8484_v28 = vmul.f32 %v8482_v41, %v8336_v23  ;;  %v8753_v60 = vmul.f32 -3.333334, %v19305_v53  ;;  %v8339_v15 = vsub.f32 %v13863_v14, %v19329_v59  ;;  %v16377_v3 = vld [vmem:[#allocation10 + $0x1d8] sm:$0xff]  }
 0x6c2   :  { %14981 = vmatprep.subr.bf16.mxu1 %v16373_v8  ;;  %v8620_v46 = vmul.f32 %v8618_v35, %v8476_v51  ;;  %v19337_v13 = vadd.f32 -1.0, %v19044_v24  ;;  %v8627_v47 = vadd.f32 %v8625_v25, %v8621_v44  ;;  %v8622_v22 = vmul.f32 -5.0000005, %v19319_v49 }
 0x6c3   :  { %v8486_v0 = vadd.f32 %v8484_v28, %v8480_v42  ;;  %v8750_v29 = vmul.f32 %v8748_v21, %v8616_v27  ;;  %v8489_v54 = vmul.f32 10.000004, %v19276_v4  ;;  %vm8290_vm0 = vcmp.ge.f32.partialorder %v19042_v33, 1.0  ;;  %v16379_v27 = vld [vmem:[#allocation10 + $0x1e0] sm:$0xff]   ;;  %v16381_v21 = vld [vmem:[#allocation10 + $0x1e8] sm:$0xff]  }
 0x6c4   :  { %v8493_v18 = vmul.f32 -9.999998, %v19337_v13  ;;  %v8755_v51 = vmul.f32 %v8753_v60, %v8627_v47  ;;  %v8752_v56 = vmul.f32 -3.333334, %v19319_v49  ;;  %v8629_v63 = vmul.f32 5.0000005, %v19249_v38 }
 0x6c5   :  { %14982 = vmatpush3.bf16.msra.mxu1 %v16374_v30  ;;  %v8624_v14 = vmul.f32 %v8622_v22, %v8486_v0  ;;  %v8491_v55 = vmul.f32 %v8489_v54, %v8337_v31  ;;  %v8633_v20 = vmul.f32 -5.0000005, %v19337_v13  ;;  %v8759_v57 = vmul.f32 3.333334, %v19222_v17  ;;  %v16380_v42 = vld [vmem:[#allocation10 + $0x1a0] sm:$0xff]   ;;  %v16382_v54 = vld [vmem:[#allocation10 + $0x1a8] sm:$0xff]  }
 0x6c6   :  { %14983 = vmatprep.subr.bf16.mxu1 %v16375_v45  ;;  %v8495_v1 = vmul.f32 %v8493_v18, %v8339_v15  ;;  %v19347_v8 = vadd.f32 %v8755_v51, %v8751_v58  ;;  %v8631_v44 = vmul.f32 %v8629_v63, %v8487_v12  ;;  %v13864_v50 = vsel %vm8290_vm0, 1.0, %v19823_v7 }
 0x6c7   :  { %v8626_v32 = vadd.f32 %v8624_v14, %v8620_v46  ;;  %v8761_v2 = vmul.f32 %v8759_v57, %v8627_v47  ;;  %v8338_v26 = vsub.f32 %v13862_v11, %v13864_v50  ;;  %v19351_v31 = vadd.f32 -1.0, %v19042_v33 }
 0x6c8   :  { %v8497_v52 = vadd.f32 %v8495_v1, %v8491_v55  ;;  %v8488_v9 = vmul.f32 10.000004, %v19290_v40  ;;  %v8628_v17 = vmul.f32 5.0000005, %v19264_v61  ;;  %v8763_v58 = vmul.f32 -3.3333333, %v19337_v13 }
 0x6c9   :  { %14984 = vmatpush3.bf16.msra.mxu1 %v16376_v39  ;;  %v8754_v30 = vmul.f32 %v8752_v56, %v8626_v32  ;;  %v8492_v12 = vmul.f32 -9.999998, %v19351_v31  ;;  %v8758_v45 = vmul.f32 3.333334, %v19237_v43  ;;  %v8632_v28 = vmul.f32 -5.0000005, %v19351_v31 }
 0x6ca   :  { %14985 = vmatprep.subr.bf16.mxu1 %v16377_v3  ;;  %v8635_v41 = vmul.f32 %v8633_v20, %v8497_v52  ;;  %v8490_v11 = vmul.f32 %v8488_v9, %v8336_v23  ;;  %v8630_v25 = vmul.f32 %v8628_v17, %v8486_v0  ;;  %vm8297_vm1 = vcmp.ge.f32.partialorder %v19044_v24, 1.1  ;;  %v16383_v56 = vld [vmem:[#allocation10 + $0x1f0] sm:$0xff]   ;;  %v16385_v17 = vld [vmem:[#allocation10 + $0x1f8] sm:$0xff]  }
 0x6cb   :  { %v19358_v35 = vadd.f32 %v8754_v30, %v8750_v29  ;;  %v8494_v46 = vmul.f32 %v8492_v12, %v8338_v26  ;;  %v8760_v39 = vmul.f32 %v8758_v45, %v8626_v32  ;;  %v13867_v47 = vsel %vm8297_vm1, 1.0, %v19823_v7 }
 0x6cc   :  { %v8637_v60 = vadd.f32 %v8635_v41, %v8631_v44  ;;  %v19364_v22 = vadd.f32 -1.1, %v19044_v24  ;;  %v8499_v43 = vmul.f32 9.999998, %v19305_v53  ;;  %v8341_v23 = vsub.f32 %v19329_v59, %v13867_v47 }
 0x6cd   :  { %14986 = vmatpush3.bf16.msra.mxu1 %v16378_v48  ;;  %v8496_v3 = vadd.f32 %v8494_v46, %v8490_v11  ;;  %v8639_v0 = vmul.f32 5.0000005, %v19276_v4  ;;  %v8769_v14 = vmul.f32 3.3333333, %v19249_v38  ;;  %v8762_v1 = vmul.f32 -3.3333333, %v19351_v31 }
 0x6ce   :  { %14987 = vmatprep.subr.bf16.mxu1 %v16379_v27  ;;  %v8765_v29 = vmul.f32 %v8763_v58, %v8637_v60  ;;  %v8501_v18 = vmul.f32 %v8499_v43, %v8339_v15  ;;  %v8503_v51 = vmul.f32 -9.999998, %v19364_v22  ;;  %vm8296_vm2 = vcmp.ge.f32.partialorder %v19042_v33, 1.1  ;;  %v16384_v27 = vld [vmem:[#allocation10 + $0x1b0] sm:$0xff]   ;;  %v16386_v46 = vld [vmem:[#allocation10 + $0x1b8] sm:$0xff]  }
 0x6cf   :  { %v8634_v55 = vmul.f32 %v8632_v28, %v8496_v3  ;;  %v8641_v20 = vmul.f32 %v8639_v0, %v8497_v52  ;;  %v8771_v48 = vmul.f32 %v8769_v14, %v8637_v60  ;;  %v19376_v59 = vadd.f32 -1.1, %v19042_v33 }
 0x6d0   :  { %v19371_v63 = vadd.f32 %v8765_v29, %v8761_v2  ;;  %v8505_v57 = vmul.f32 %v8503_v51, %v8341_v23  ;;  %v8643_v32 = vmul.f32 -4.999999, %v19364_v22  ;;  %v13866_v38 = vsel %vm8296_vm2, 1.0, %v19823_v7 }
 0x6d1   :  { %14988 = vmatpush3.bf16.msra.mxu1 %v16380_v42  ;;  %v8636_v15 = vadd.f32 %v8634_v55, %v8630_v25  ;;  %v8498_v44 = vmul.f32 9.999998, %v19319_v49  ;;  %v8340_v30 = vsub.f32 %v13864_v50, %v13866_v38  ;;  %v8502_v52 = vmul.f32 -9.999998, %v19376_v59 }
 0x6d2   :  { %14989 = vmatprep.subr.bf16.mxu1 %v16381_v21  ;;  %v8507_v2 = vadd.f32 %v8505_v57, %v8501_v18  ;;  %v8638_v9 = vmul.f32 5.0000005, %v19290_v40  ;;  %v8773_v58 = vmul.f32 -3.3333333, %v19364_v22  ;;  %v8768_v45 = vmul.f32 3.3333333, %v19264_v61 }
 0x6d3   :  { %v8764_v41 = vmul.f32 %v8762_v1, %v8636_v15  ;;  %v8500_v12 = vmul.f32 %v8498_v44, %v8338_v26  ;;  %v8504_v11 = vmul.f32 %v8502_v52, %v8340_v30  ;;  %v8642_v28 = vmul.f32 -4.999999, %v19376_v59 }
 0x6d4   :  { %v8645_v42 = vmul.f32 %v8643_v32, %v8507_v2  ;;  %v8640_v25 = vmul.f32 %v8638_v9, %v8496_v3  ;;  %v8770_v50 = vmul.f32 %v8768_v45, %v8636_v15  ;;  %vm8303_vm3 = vcmp.ge.f32.partialorder %v19044_v24, 1.2  ;;  %v16388_v32 = vld [vmem:[#allocation10 + $0x200] sm:$0xff]  }
 0x6d5   :  { %14990 = vmatpush3.bf16.msra.mxu1 %v16382_v54  ;;  %v19386_v21 = vadd.f32 %v8764_v41, %v8760_v39  ;;  %v13901_v60 = vadd.f32 -1.2, %v19044_v24  ;;  %v8506_v29 = vadd.f32 %v8504_v11, %v8500_v12  ;;  %v19391_v26 = vsel %vm8303_vm3, 1.0, %v19823_v7  ;;  %v16387_v39 = vld [vmem:[#allocation10 + $0x240] sm:$0xff]  }
 0x6d6   :  { %14991 = vmatprep.subr.bf16.mxu1 %v16383_v56  ;;  %v8647_v43 = vadd.f32 %v8645_v42, %v8641_v20  ;;  %v8509_v61 = vmul.f32 9.999998, %v19337_v13  ;;  %v8804_v3 = vpack.c.bf16 %v19218_v10, %v19218_v10  ;;  %v8343_v0 = vsub.f32 %v13867_v47, %v19391_v26  ;;  %v16390_v42 = vld [vmem:[#allocation10 + $0x208] sm:$0xff]  }
 0x6d7   :  { %v8513_v54 = vmul.f32 -9.999998, %v13901_v60  ;;  %v8649_v18 = vmul.f32 4.999999, %v19305_v53  ;;  %v8644_v14 = vmul.f32 %v8642_v28, %v8506_v29  ;;  %v8772_v56 = vmul.f32 -3.3333333, %v19376_v59 }
 0x6d8   :  { %v8775_v51 = vmul.f32 %v8773_v58, %v8647_v43  ;;  %v8511_v55 = vmul.f32 %v8509_v61, %v8341_v23  ;;  %v8653_v57 = vmul.f32 -4.999999, %v13901_v60  ;;  %v8779_v15 = vmul.f32 3.3333333, %v19276_v4 }
 0x6d9   :  { %14992 = vmatpush3.bf16.msra.mxu1 %v16384_v27  ;;  %v8515_v1 = vmul.f32 %v8513_v54, %v8343_v0  ;;  %v8651_v20 = vmul.f32 %v8649_v18, %v8507_v2  ;;  %v8646_v10 = vadd.f32 %v8644_v14, %v8640_v25  ;;  %vm8302_vm4 = vcmp.ge.f32.partialorder %v19042_v33, 1.2  ;;  %v16389_v27 = vld [vmem:[#allocation10 + $0x248] sm:$0xff]  }
 0x6da   :  { %14993 = vmatprep.subr.bf16.mxu1 %v16385_v17  ;;  %v19400_v44 = vadd.f32 %v8775_v51, %v8771_v48  ;;  %v13900_v47 = vadd.f32 -1.2, %v19042_v33  ;;  %v8781_v9 = vmul.f32 %v8779_v15, %v8647_v43  ;;  %v19405_v23 = vsel %vm8302_vm4, 1.0, %v19823_v7 }
 0x6db   :  { %v8517_v52 = vadd.f32 %v8515_v1, %v8511_v55  ;;  %v8508_v2 = vmul.f32 9.999998, %v19351_v31  ;;  %v8807_v4 = vpack.c.bf16 %v19232_v5, %v19232_v5  ;;  %v8774_v17 = vmul.f32 %v8772_v56, %v8646_v10  ;;  %v16391_v5 = vld [vmem:[#allocation10 + $0x250] sm:$0xff]   ;;  %v16393_v56 = vld [vmem:[#allocation10 + $0x258] sm:$0xff]  }
 0x6dc   :  { %v8342_v48 = vsub.f32 %v13866_v38, %v19405_v23  ;;  %v8512_v41 = vmul.f32 -9.999998, %v13900_v47  ;;  %v8648_v45 = vmul.f32 4.999999, %v19319_v49  ;;  %v8783_v25 = vmul.f32 -3.3333325, %v13901_v60 }
 0x6dd   :  { %14994 = vmatpush3.bf16.msra.mxu1 %v16386_v46  ;;  %v8655_v58 = vmul.f32 %v8653_v57, %v8517_v52  ;;  %v8510_v12 = vmul.f32 %v8508_v2, %v8340_v30  ;;  %v19412_v11 = vadd.f32 %v8774_v17, %v8770_v50  ;;  %v8778_v46 = vmul.f32 3.3333333, %v19290_v40  ;;  %v16392_v40 = vld [vmem:[#allocation10 + $0x210] sm:$0xff]  }
 0x6de   :  { %15001 = vmatprep.subr.bf16.mxu1 %v16387_v39  ;;  %v8514_v28 = vmul.f32 %v8512_v41, %v8342_v48  ;;  %v8650_v61 = vmul.f32 %v8648_v45, %v8506_v29  ;;  %vm8309_vm5 = vcmp.ge.f32.partialorder %v19044_v24, 1.3  ;;  %v13903_v38 = vadd.f32 -1.3, %v19044_v24 }
 0x6df   :  { %v8657_v43 = vadd.f32 %v8655_v58, %v8651_v20  ;;  %v8780_v39 = vmul.f32 %v8778_v46, %v8646_v10  ;;  %v13871_v54 = vsel %vm8309_vm5, 1.0, %v19823_v7  ;;  %v8519_v60 = vmul.f32 9.999998, %v19364_v22 }
 0x6e0   :  { %10641 = vmatmul.mubr.bf16.vlgmr.msra.gmra.mrb[68].mxu1 %v8804_v3  ;;  %v8516_v30 = vadd.f32 %v8514_v28, %v8510_v12  ;;  %v8652_v3 = vmul.f32 -4.999999, %v13900_v47  ;;  %v8345_v50 = vsub.f32 %v19391_v26, %v13871_v54  ;;  %v8523_v51 = vmul.f32 -10.00001, %v13903_v38 }
 0x6e1   :  { %15002 = vmatpush3.bf16.msra.mxu1 %v16388_v32  ;;  %10680 = vmatprep.mubr.bf16.mxu1 %v8807_v4  ;;  %v8785_v18 = vmul.f32 %v8783_v25, %v8657_v43  ;;  %v8659_v29 = vmul.f32 4.999999, %v19337_v13  ;;  %v8521_v1 = vmul.f32 %v8519_v60, %v8343_v0  ;;  %v8789_v57 = vmul.f32 3.3333325, %v19305_v53  ;;  %v16394_v13 = vld [vmem:[#allocation10 + $0x218] sm:$0xff]   ;;  %v16395_v53 = vld [vmem:[#allocation10 + $0x260] sm:$0xff]  }
 0x6e2   :  { %15003 = vmatprep.subr.bf16.mxu1 %v16389_v27  ;;  %v8654_v14 = vmul.f32 %v8652_v3, %v8516_v30  ;;  %v8525_v20 = vmul.f32 %v8523_v51, %v8345_v50  ;;  %v8782_v32 = vmul.f32 -3.3333325, %v13900_v47  ;;  %vm8308_vm6 = vcmp.ge.f32.partialorder %v19042_v33, 1.3  ;;  %v16401_v50 = vld [vmem:[#allocation10 + $0x278] sm:$0xff]  }
 0x6e3   :  { %v19421_v55 = vadd.f32 %v8785_v18, %v8781_v9  ;;  %v8661_v10 = vmul.f32 %v8659_v29, %v8517_v52  ;;  %v8663_v26 = vmul.f32 -5.000002, %v13903_v38  ;;  %v8791_v27 = vmul.f32 %v8789_v57, %v8657_v43  ;;  %v16402_v51 = vld [vmem:[#allocation10 + $0x238] sm:$0xff]   ;;  %v16407_v57 = vld [vmem:[#allocation10 + $0x2d0] sm:$0xff]  }
 0x6e4   :  { %v8656_v15 = vadd.f32 %v8654_v14, %v8650_v61  ;;  %v8527_v22 = vadd.f32 %v8525_v20, %v8521_v1  ;;  %v13870_v2 = vsel %vm8308_vm6, 1.0, %v19823_v7  ;;  %v13902_v0 = vadd.f32 -1.3, %v19042_v33  ;;  %v16404_v14 = vld [vmem:[#allocation10 + $0x280] sm:$0xff]   ;;  %v16406_v20 = vld [vmem:[#allocation10 + $0x288] sm:$0xff]  }
 0x6e5   :  { %15004 = vmatpush3.bf16.msra.mxu1 %v16390_v42  ;;  %v8344_v9 = vsub.f32 %v19405_v23, %v13870_v2  ;;  %v8518_v17 = vmul.f32 9.999998, %v19376_v59  ;;  %v8658_v52 = vmul.f32 4.999999, %v19351_v31  ;;  %v8788_v41 = vmul.f32 3.3333325, %v19319_v49 }
 0x6e6   :  { %15005 = vmatprep.subr.bf16.mxu1 %v16391_v5  ;;  %v8784_v4 = vmul.f32 %v8782_v32, %v8656_v15  ;;  %v8665_v47 = vmul.f32 %v8663_v26, %v8527_v22  ;;  %v8522_v45 = vmul.f32 -10.00001, %v13902_v0  ;;  %v8793_v25 = vmul.f32 -3.333334, %v13903_v38  ;;  %v16396_v23 = vld [vmem:[#allocation10 + $0x220] sm:$0xff]   ;;  %v16397_v59 = vld [vmem:[#allocation10 + $0x268] sm:$0xff]  }
 0x6e7   :  { %v8520_v12 = vmul.f32 %v8518_v17, %v8342_v48  ;;  %v8660_v28 = vmul.f32 %v8658_v52, %v8516_v30  ;;  %v8790_v46 = vmul.f32 %v8788_v41, %v8656_v15  ;;  %v8662_v3 = vmul.f32 -5.000002, %v13902_v0  ;;  %v16398_v49 = vld [vmem:[#allocation10 + $0x228] sm:$0xff]   ;;  %v16399_v48 = vld [vmem:[#allocation10 + $0x270] sm:$0xff]   ;;  %v16409_v32 = vld [vmem:[#allocation10 + $0x2d8] sm:$0xff]  }
 0x6e8   :  { %v19431_v58 = vadd.f32 %v8784_v4, %v8780_v39  ;;  %v8667_v42 = vadd.f32 %v8665_v47, %v8661_v10  ;;  %v8524_v5 = vmul.f32 %v8522_v45, %v8344_v9  ;;  %v8792_v18 = vmul.f32 -3.333334, %v13902_v0  ;;  %v16400_v38 = vld [vmem:[#allocation10 + $0x230] sm:$0xff]   ;;  %v16410_v10 = vld [vmem:[#allocation10 + $0x298] sm:$0xff]   ;;  %v16411_v22 = vld [vmem:[#allocation10 + $0x2e0] sm:$0xff]  }
 0x6e9   :  { %15006 = vmatpush3.bf16.msra.mxu1 %v16392_v40  ;;  %v16403_v40 = vld [vmem:[#allocation10 + $0x2c0] sm:$0xff]   ;;  %v8806_v29 = vpack.c.bf16 %v19244_v6, %v19244_v6  ;;  %v8809_v1 = vpack.c.bf16 %v19260_v37, %v19260_v37  ;;  %v16408_v15 = vld [vmem:[#allocation10 + $0x290] sm:$0xff]   ;;  %v16413_v26 = vld [vmem:[#allocation10 + $0x2e8] sm:$0xff]   ;;  %v8808_v17 = vpack.c.bf16 %v19271_v34, %v19271_v34  ;;  %v8811_v47 = vpack.c.bf16 %v19285_v16, %v19285_v16 }
 0x6ea   :  { %15007 = vmatprep.subr.bf16.mxu1 %v16393_v56  ;;  %v8795_v43 = vmul.f32 %v8793_v25, %v8667_v42  ;;  %v8526_v61 = vadd.f32 %v8524_v5, %v8520_v12  ;;  %v16405_v56 = vld [vmem:[#allocation10 + $0x2c8] sm:$0xff]   ;;  %v16412_v6 = vld [vmem:[#allocation10 + $0x2a0] sm:$0xff]   ;;  %v16416_v2 = vld [vmem:[#allocation10 + $0x2b0] sm:$0xff]  }
 0x6eb   :  { %v16414_v37 = vld [vmem:[#allocation10 + $0x2a8] sm:$0xff]   ;;  %v16418_v4 = vld [vmem:[#allocation10 + $0x2b8] sm:$0xff]   ;;  %v16419_v9 = vld [vmem:[#allocation10 + $0x340] sm:$0xff]  }
 0x6ec   :  { %v19433_v54 = vadd.f32 %v8795_v43, %v8791_v27  ;;  %v8664_v31 = vmul.f32 %v8662_v3, %v8526_v61  ;;  %v16415_v27 = vld [vmem:[#allocation10 + $0x2f0] sm:$0xff]   ;;  %v16420_v0 = vld [vmem:[#allocation10 + $0x300] sm:$0xff]   ;;  %v16422_v52 = vld [vmem:[#allocation10 + $0x308] sm:$0xff]   ;;  %v8810_v3 = vpack.c.bf16 %v19300_v62, %v19300_v62 }
 0x6ed   :  { %15008 = vmatpush3.bf16.msra.mxu1 %v16394_v13  ;;  %v16417_v13 = vld [vmem:[#allocation10 + $0x2f8] sm:$0xff]   ;;  %v16423_v41 = vld [vmem:[#allocation10 + $0x350] sm:$0xff]   ;;  %v16427_v25 = vld [vmem:[#allocation10 + $0x360] sm:$0xff]  }
 0x6ee   :  { %15009 = vmatprep.subr.bf16.mxu1 %v16395_v53  ;;  %v8666_v39 = vadd.f32 %v8664_v31, %v8660_v28  ;;  %v16421_v53 = vld [vmem:[#allocation10 + $0x348] sm:$0xff]   ;;  %v16424_v12 = vld [vmem:[#allocation10 + $0x310] sm:$0xff]   ;;  %v16425_v45 = vld [vmem:[#allocation10 + $0x358] sm:$0xff]   ;;  %v8813_v31 = vpack.c.bf16 %v19313_v36, %v19313_v36 }
 0x6ef   :  { %v16426_v42 = vld [vmem:[#allocation10 + $0x318] sm:$0xff]   ;;  %v16428_v34 = vld [vmem:[#allocation10 + $0x320] sm:$0xff]   ;;  %v16429_v28 = vld [vmem:[#allocation10 + $0x368] sm:$0xff]  }
 0x6f0   :  { %v8794_v30 = vmul.f32 %v8792_v18, %v8666_v39  ;;  %v16430_v16 = vld [vmem:[#allocation10 + $0x328] sm:$0xff]   ;;  %v16433_v5 = vld [vmem:[#allocation10 + $0x378] sm:$0xff]   ;;  %v16435_v43 = vld [vmem:[#allocation10 + $0x3c0] sm:$0xff]  }
 0x6f1   :  { %15010 = vmatpush3.bf16.msra.mxu1 %v16396_v23  ;;  %v16432_v23 = vld [vmem:[#allocation10 + $0x330] sm:$0xff]   ;;  %v16436_v61 = vld [vmem:[#allocation10 + $0x380] sm:$0xff]   ;;  %v16446_v36 = vld [vmem:[#allocation10 + $0x3a8] sm:$0xff]  }
 0x6f2   :  { %15011 = vmatprep.subr.bf16.mxu1 %v16397_v59  ;;  %v19435_v60 = vadd.f32 %v8794_v30, %v8790_v46  ;;  %v16431_v46 = vld [vmem:[#allocation10 + $0x370] sm:$0xff]   ;;  %v16434_v59 = vld [vmem:[#allocation10 + $0x338] sm:$0xff]   ;;  %v16444_v62 = vld [vmem:[#allocation10 + $0x3a0] sm:$0xff]  }
 0x6f3   :  { %v16439_v39 = vld [vmem:[#allocation10 + $0x3d0] sm:$0xff]   ;;  %v16442_v30 = vld [vmem:[#allocation10 + $0x398] sm:$0xff]  }
 0x6f4   :  { %v16440_v18 = vld [vmem:[#allocation10 + $0x390] sm:$0xff]  }
 0x6f5   :  { %15012 = vmatpush3.bf16.msra.mxu1 %v16398_v49  ;;  %v16437_v49 = vld [vmem:[#allocation10 + $0x3c8] sm:$0xff]  }
 0x6f6   :  { %15013 = vmatprep.subr.bf16.mxu1 %v16399_v48  ;;  %v16438_v48 = vld [vmem:[#allocation10 + $0x388] sm:$0xff]  }
 0x6f9   :  { %15014 = vmatpush3.bf16.msra.mxu1 %v16400_v38  ;;  %v16441_v38 = vld [vmem:[#allocation10 + $0x3d8] sm:$0xff]  }
 0x6fa   :  { %15015 = vmatprep.subr.bf16.mxu1 %v16401_v50  ;;  %v16443_v50 = vld [vmem:[#allocation10 + $0x3e0] sm:$0xff]  }
 0x6fd   :  { %15016 = vmatpush3.bf16.msra.mxu1 %v16402_v51  ;;  %v16445_v51 = vld [vmem:[#allocation10 + $0x3e8] sm:$0xff]  }
 0x6fe   :  { %15023 = vmatprep.subr.bf16.mxu1 %v16403_v40  ;;  %v16447_v40 = vld [vmem:[#allocation10 + $0x3f0] sm:$0xff]  }
 0x700   :  { %10681 = vmatmul.mubr.bf16.vlgmr.msra.gmra.mrb[72].mxu1 %v8806_v29 }
 0x701   :  { %15024 = vmatpush3.bf16.msra.mxu1 %v16404_v14  ;;  %10720 = vmatprep.mubr.bf16.mxu1 %v8809_v1 }
 0x702   :  { %15025 = vmatprep.subr.bf16.mxu1 %v16405_v56 }
 0x705   :  { %15026 = vmatpush3.bf16.msra.mxu1 %v16406_v20  ;;  %v16448_v20 = vld [vmem:[#allocation10 + $0x3b0] sm:$0xff]  }
 0x706   :  { %15027 = vmatprep.subr.bf16.mxu1 %v16407_v57 }
 0x709   :  { %15028 = vmatpush3.bf16.msra.mxu1 %v16408_v15  ;;  %v16449_v15 = vld [vmem:[#allocation10 + $0x3f8] sm:$0xff]  }
 0x70a   :  { %15029 = vmatprep.subr.bf16.mxu1 %v16409_v32  ;;  %v16450_v32 = vld [vmem:[#allocation10 + $0x3b8] sm:$0xff]  }
 0x70d   :  { %15030 = vmatpush3.bf16.msra.mxu1 %v16410_v10  ;;  %v16451_v10 = vld [vmem:[#allocation10 + $0x440] sm:$0xff]  }
 0x70e   :  { %15031 = vmatprep.subr.bf16.mxu1 %v16411_v22  ;;  %v16452_v22 = vld [vmem:[#allocation10 + $0x400] sm:$0xff]  }
 0x711   :  { %15032 = vmatpush3.bf16.msra.mxu1 %v16412_v6  ;;  %v8812_v6 = vpack.c.bf16 %v19331_v19, %v19331_v19  ;;  %v16460_v19 = vld [vmem:[#allocation10 + $0x420] sm:$0xff]  }
 0x712   :  { %15033 = vmatprep.subr.bf16.mxu1 %v16413_v26  ;;  %v16453_v26 = vld [vmem:[#allocation10 + $0x448] sm:$0xff]  }
 0x715   :  { %15034 = vmatpush3.bf16.msra.mxu1 %v16414_v37  ;;  %v8815_v37 = vpack.c.bf16 %v19347_v8, %v19347_v8  ;;  %v16462_v8 = vld [vmem:[#allocation10 + $0x428] sm:$0xff]  }
 0x716   :  { %15035 = vmatprep.subr.bf16.mxu1 %v16415_v27  ;;  %v16454_v27 = vld [vmem:[#allocation10 + $0x408] sm:$0xff]  }
 0x719   :  { %15036 = vmatpush3.bf16.msra.mxu1 %v16416_v2  ;;  %v16455_v2 = vld [vmem:[#allocation10 + $0x450] sm:$0xff]  }
 0x71a   :  { %15037 = vmatprep.subr.bf16.mxu1 %v16417_v13  ;;  %v16456_v13 = vld [vmem:[#allocation10 + $0x410] sm:$0xff]  }
 0x71d   :  { %15038 = vmatpush3.bf16.msra.mxu1 %v16418_v4  ;;  %v16457_v4 = vld [vmem:[#allocation10 + $0x458] sm:$0xff]  }
 0x71e   :  { %15045 = vmatprep.subr.bf16.mxu1 %v16419_v9  ;;  %v16458_v9 = vld [vmem:[#allocation10 + $0x418] sm:$0xff]  }
 0x720   :  { %10721 = vmatmul.mubr.bf16.vlgmr.msra.gmra.mrb[76].mxu1 %v8808_v17  ;;  %v16461_v17 = vld [vmem:[#allocation10 + $0x468] sm:$0xff]  }
 0x721   :  { %15046 = vmatpush3.bf16.msra.mxu1 %v16420_v0  ;;  %10760 = vmatprep.mubr.bf16.mxu1 %v8811_v47  ;;  %v16459_v0 = vld [vmem:[#allocation10 + $0x460] sm:$0xff]  }
 0x722   :  { %15047 = vmatprep.subr.bf16.mxu1 %v16421_v53  ;;  %v16463_v53 = vld [vmem:[#allocation10 + $0x470] sm:$0xff]  }
 0x725   :  { %15048 = vmatpush3.bf16.msra.mxu1 %v16422_v52 }
 0x726   :  { %15049 = vmatprep.subr.bf16.mxu1 %v16423_v41 }
 0x729   :  { %15050 = vmatpush3.bf16.msra.mxu1 %v16424_v12 }
 0x72a   :  { %15051 = vmatprep.subr.bf16.mxu1 %v16425_v45  ;;  %v16464_v45 = vld [vmem:[#allocation10 + $0x430] sm:$0xff]  }
 0x72d   :  { %15052 = vmatpush3.bf16.msra.mxu1 %v16426_v42 }
 0x72e   :  { %15053 = vmatprep.subr.bf16.mxu1 %v16427_v25  ;;  %v16465_v25 = vld [vmem:[#allocation10 + $0x478] sm:$0xff]  }
 0x731   :  { %15054 = vmatpush3.bf16.msra.mxu1 %v16428_v34 }
 0x732   :  { %15055 = vmatprep.subr.bf16.mxu1 %v16429_v28  ;;  %v16466_v28 = vld [vmem:[#allocation10 + $0x438] sm:$0xff]  }
 0x735   :  { %15056 = vmatpush3.bf16.msra.mxu1 %v16430_v16  ;;  %v16467_v16 = vld [vmem:[#allocation10 + $0x4c0] sm:$0xff]  }
 0x736   :  { %15057 = vmatprep.subr.bf16.mxu1 %v16431_v46  ;;  %v16468_v46 = vld [vmem:[#allocation10 + $0x480] sm:$0xff]  }
 0x739   :  { %15058 = vmatpush3.bf16.msra.mxu1 %v16432_v23  ;;  %v8814_v23 = vpack.c.bf16 %v19358_v35, %v19358_v35  ;;  %v16476_v35 = vld [vmem:[#allocation10 + $0x4a0] sm:$0xff]  }
 0x73a   :  { %15059 = vmatprep.subr.bf16.mxu1 %v16433_v5  ;;  %v16469_v5 = vld [vmem:[#allocation10 + $0x4c8] sm:$0xff]  }
 0x73d   :  { %15060 = vmatpush3.bf16.msra.mxu1 %v16434_v59  ;;  %v8817_v59 = vpack.c.bf16 %v19371_v63, %v19371_v63  ;;  %v16478_v63 = vld [vmem:[#allocation10 + $0x4a8] sm:$0xff]  }
 0x73e   :  { %15067 = vmatprep.subr.bf16.mxu1 %v16435_v43  ;;  %v16470_v43 = vld [vmem:[#allocation10 + $0x488] sm:$0xff]  }
 0x740   :  { %10761 = vmatmul.mubr.bf16.vlgmr.msra.gmra.mrb[80].mxu1 %v8810_v3  ;;  %v16472_v3 = vld [vmem:[#allocation10 + $0x490] sm:$0xff]  }
 0x741   :  { %15068 = vmatpush3.bf16.msra.mxu1 %v16436_v61  ;;  %10800 = vmatprep.mubr.bf16.mxu1 %v8813_v31  ;;  %v16471_v61 = vld [vmem:[#allocation10 + $0x4d0] sm:$0xff]   ;;  %v16474_v31 = vld [vmem:[#allocation10 + $0x498] sm:$0xff]  }
 0x742   :  { %15069 = vmatprep.subr.bf16.mxu1 %v16437_v49  ;;  %v16473_v49 = vld [vmem:[#allocation10 + $0x4d8] sm:$0xff]  }
 0x745   :  { %15070 = vmatpush3.bf16.msra.mxu1 %v16438_v48  ;;  %v16475_v48 = vld [vmem:[#allocation10 + $0x4e0] sm:$0xff]  }
 0x746   :  { %15071 = vmatprep.subr.bf16.mxu1 %v16439_v39  ;;  %v16477_v39 = vld [vmem:[#allocation10 + $0x4e8] sm:$0xff]  }
 0x749   :  { %15072 = vmatpush3.bf16.msra.mxu1 %v16440_v18  ;;  %v16479_v18 = vld [vmem:[#allocation10 + $0x4f0] sm:$0xff]  }
 0x74a   :  { %15073 = vmatprep.subr.bf16.mxu1 %v16441_v38 }
 0x74d   :  { %15074 = vmatpush3.bf16.msra.mxu1 %v16442_v30 }
 0x74e   :  { %15075 = vmatprep.subr.bf16.mxu1 %v16443_v50 }
 0x751   :  { %15076 = vmatpush3.bf16.msra.mxu1 %v16444_v62 }
 0x752   :  { %15077 = vmatprep.subr.bf16.mxu1 %v16445_v51  ;;  %v16480_v51 = vld [vmem:[#allocation10 + $0x4b0] sm:$0xff]  }
 0x753   :  { %v14929_v14 = vpop.f32.mrb[56].mxu1 }
 0x754   :  { %v14930_v29 = vpop.f32.mrb[57].mxu1 }
 0x755   :  { %v14931_v56 = vadd.f32 %v14930_v29, %v14929_v14  ;;  %15078 = vmatpush3.bf16.msra.mxu1 %v16446_v36  ;;  %v14932_v1 = vpop.f32.mrb[58].mxu1  ;;  %v16482_v29 = vld [vmem:[#allocation10 + $0x4b8] sm:$0xff]  }
 0x756   :  { %v14933_v57 = vpop.f32.mrb[59].mxu1  ;;  %15079 = vmatprep.subr.bf16.mxu1 %v16447_v40  ;;  %v16481_v40 = vld [vmem:[#allocation10 + $0x4f8] sm:$0xff]   ;;  %v16484_v1 = vld [vmem:[#allocation10 + $0x500] sm:$0xff]  }
 0x757   :  { %v16485_v57 = vld [vmem:[#allocation10 + $0x548] sm:$0xff]  }
 0x759   :  { %15080 = vmatpush3.bf16.msra.mxu1 %v16448_v20  ;;  %v8816_v20 = vpack.c.bf16 %v19386_v21, %v19386_v21  ;;  %v16492_v21 = vld [vmem:[#allocation10 + $0x520] sm:$0xff]  }
 0x75a   :  { %15081 = vmatprep.subr.bf16.mxu1 %v16449_v15  ;;  %v8819_v15 = vpack.c.bf16 %v19400_v44, %v19400_v44  ;;  %v16494_v44 = vld [vmem:[#allocation10 + $0x528] sm:$0xff]  }
 0x75d   :  { %15082 = vmatpush3.bf16.msra.mxu1 %v16450_v32  ;;  %v16486_v32 = vld [vmem:[#allocation10 + $0x508] sm:$0xff]  }
 0x75e   :  { %15089 = vmatprep.subr.bf16.mxu1 %v16451_v10  ;;  %v16487_v10 = vld [vmem:[#allocation10 + $0x550] sm:$0xff]  }
 0x760   :  { %10801 = vmatmul.mubr.bf16.vlgmr.msra.gmra.mrb[84].mxu1 %v8812_v6  ;;  %v16489_v6 = vld [vmem:[#allocation10 + $0x558] sm:$0xff]  }
 0x761   :  { %15090 = vmatpush3.bf16.msra.mxu1 %v16452_v22  ;;  %10840 = vmatprep.mubr.bf16.mxu1 %v8815_v37  ;;  %v16488_v22 = vld [vmem:[#allocation10 + $0x510] sm:$0xff]   ;;  %v16491_v37 = vld [vmem:[#allocation10 + $0x560] sm:$0xff]  }
 0x762   :  { %15091 = vmatprep.subr.bf16.mxu1 %v16453_v26  ;;  %v16490_v26 = vld [vmem:[#allocation10 + $0x518] sm:$0xff]  }
 0x765   :  { %15092 = vmatpush3.bf16.msra.mxu1 %v16454_v27  ;;  %v16493_v27 = vld [vmem:[#allocation10 + $0x568] sm:$0xff]  }
 0x766   :  { %15093 = vmatprep.subr.bf16.mxu1 %v16455_v2  ;;  %v16495_v2 = vld [vmem:[#allocation10 + $0x570] sm:$0xff]  }
 0x769   :  { %15094 = vmatpush3.bf16.msra.mxu1 %v16456_v13 }
 0x76a   :  { %15095 = vmatprep.subr.bf16.mxu1 %v16457_v4 }
 0x76d   :  { %15096 = vmatpush3.bf16.msra.mxu1 %v16458_v9 }
 0x76e   :  { %15097 = vmatprep.subr.bf16.mxu1 %v16459_v0 }
 0x771   :  { %15098 = vmatpush3.bf16.msra.mxu1 %v16460_v19  ;;  %v16496_v19 = vld [vmem:[#allocation10 + $0x530] sm:$0xff]  }
 0x772   :  { %15099 = vmatprep.subr.bf16.mxu1 %v16461_v17 }
 0x773   :  { %v14951_v47 = vpop.f32.mrb[60].mxu1 }
 0x774   :  { %v14952_v52 = vpop.f32.mrb[61].mxu1 }
 0x775   :  { %v14953_v41 = vadd.f32 %v14952_v52, %v14951_v47  ;;  %v14954_v12 = vpop.f32.mrb[62].mxu1  ;;  %15100 = vmatpush3.bf16.msra.mxu1 %v16462_v8  ;;  %v16497_v8 = vld [vmem:[#allocation10 + $0x578] sm:$0xff]   ;;  %v16499_v52 = vld [vmem:[#allocation10 + $0x5c0] sm:$0xff]  }
 0x776   :  { %v14955_v42 = vpop.f32.mrb[63].mxu1  ;;  %15101 = vmatprep.subr.bf16.mxu1 %v16463_v53  ;;  %v16498_v47 = vld [vmem:[#allocation10 + $0x538] sm:$0xff]   ;;  %v8818_v12 = vpack.c.bf16 %v19412_v11, %v19412_v11  ;;  %v16508_v11 = vld [vmem:[#allocation10 + $0x5a0] sm:$0xff]  }
 0x777   :  { %v10563_v34 = vadd.f32 %v14953_v41, %v14931_v56  ;;  %v16483_v56 = vld [vmem:[#allocation10 + $0x540] sm:$0xff]   ;;  %v8821_v42 = vpack.c.bf16 %v19421_v55, %v19421_v55  ;;  %v16510_v55 = vld [vmem:[#allocation10 + $0x5a8] sm:$0xff]  }
 0x778   :  { %v16500_v41 = vld [vmem:[#allocation10 + $0x580] sm:$0xff]  }
 0x779   :  { %15102 = vmatpush3.bf16.msra.mxu1 %v16464_v45  ;;  %v16501_v45 = vld [vmem:[#allocation10 + $0x5c8] sm:$0xff]  }
 0x77a   :  { %15103 = vmatprep.subr.bf16.mxu1 %v16465_v25  ;;  %v16502_v25 = vld [vmem:[#allocation10 + $0x588] sm:$0xff]  }
 0x77d   :  { %15104 = vmatpush3.bf16.msra.mxu1 %v16466_v28  ;;  %v16504_v28 = vld [vmem:[#allocation10 + $0x590] sm:$0xff]  }
 0x77e   :  { %15111 = vmatprep.subr.bf16.mxu1 %v16467_v16  ;;  %v16505_v16 = vld [vmem:[#allocation10 + $0x5d8] sm:$0xff]  }
 0x780   :  { %10841 = vmatmul.mubr.bf16.vlgmr.msra.gmra.mrb[88].mxu1 %v8814_v23  ;;  %v16507_v23 = vld [vmem:[#allocation10 + $0x5e0] sm:$0xff]  }
 0x781   :  { %15112 = vmatpush3.bf16.msra.mxu1 %v16468_v46  ;;  %10880 = vmatprep.mubr.bf16.mxu1 %v8817_v59  ;;  %v16506_v46 = vld [vmem:[#allocation10 + $0x598] sm:$0xff]   ;;  %v16511_v59 = vld [vmem:[#allocation10 + $0x5f0] sm:$0xff]  }
 0x782   :  { %15113 = vmatprep.subr.bf16.mxu1 %v16469_v5  ;;  %v16509_v5 = vld [vmem:[#allocation10 + $0x5e8] sm:$0xff]  }
 0x785   :  { %15114 = vmatpush3.bf16.msra.mxu1 %v16470_v43 }
 0x786   :  { %15115 = vmatprep.subr.bf16.mxu1 %v16471_v61 }
 0x789   :  { %15116 = vmatpush3.bf16.msra.mxu1 %v16472_v3 }
 0x78a   :  { %15117 = vmatprep.subr.bf16.mxu1 %v16473_v49 }
 0x78d   :  { %15118 = vmatpush3.bf16.msra.mxu1 %v16474_v31  ;;  %v16512_v31 = vld [vmem:[#allocation10 + $0x5b0] sm:$0xff]  }
 0x78e   :  { %15119 = vmatprep.subr.bf16.mxu1 %v16475_v48  ;;  %v8167_v48 = vsub.f32 0.0, %v19044_v24 }
 0x791   :  { %15120 = vmatpush3.bf16.msra.mxu1 %v16476_v35 }
 0x792   :  { %15121 = vmatprep.subr.bf16.mxu1 %v16477_v39  ;;  %v16513_v39 = vld [vmem:[#allocation10 + $0x5f8] sm:$0xff]  }
 0x793   :  { %v14973_v38 = vpop.f32.mrb[64].mxu1 }
 0x794   :  { %v14974_v30 = vpop.f32.mrb[65].mxu1 }
 0x795   :  { %v14975_v50 = vadd.f32 %v14974_v30, %v14973_v38  ;;  %v14976_v62 = vpop.f32.mrb[66].mxu1  ;;  %15122 = vmatpush3.bf16.msra.mxu1 %v16478_v63  ;;  %v8170_v38 = vmul.f32 1.442695, %v8167_v48  ;;  %v16515_v30 = vld [vmem:[#allocation10 + $0x640] sm:$0xff]   ;;  %v16546_v48 = vld [vmem:[#allocation9 + $0x38] sm:$0xff]  }
 0x796   :  { %v14977_v36 = vpop.f32.mrb[67].mxu1  ;;  %15123 = vmatprep.subr.bf16.mxu1 %v16479_v18  ;;  %v16514_v18 = vld [vmem:[#allocation10 + $0x5b8] sm:$0xff]   ;;  %v8820_v62 = vpack.c.bf16 %v19431_v58, %v19431_v58  ;;  %v16523_v58 = vld [vmem:[#allocation10 + $0x660] sm:$0xff]  }
 0x797   :  { %v10603_v14 = vadd.f32 %v14975_v50, %v10563_v34  ;;  %v16503_v34 = vld [vmem:[#allocation10 + $0x5d0] sm:$0xff]   ;;  %v16516_v50 = vld [vmem:[#allocation10 + $0x600] sm:$0xff]   ;;  %16699 = vpow2.f32 %v8170_v38  ;;  %v8823_v36 = vpack.c.bf16 %v19433_v54, %v19433_v54  ;;  %v16525_v54 = vld [vmem:[#allocation10 + $0x668] sm:$0xff]  }
 0x799   :  { %15124 = vmatpush3.bf16.msra.mxu1 %v16480_v51  ;;  %v16517_v51 = vld [vmem:[#allocation10 + $0x648] sm:$0xff]  }
 0x79a   :  { %15125 = vmatprep.subr.bf16.mxu1 %v16481_v40  ;;  %v16518_v40 = vld [vmem:[#allocation10 + $0x608] sm:$0xff]  }
 0x79d   :  { %15126 = vmatpush3.bf16.msra.mxu1 %v16482_v29  ;;  %v16520_v29 = vld [vmem:[#allocation10 + $0x610] sm:$0xff]  }
 0x79e   :  { %15133 = vmatprep.subr.bf16.mxu1 %v16483_v56  ;;  %v16521_v56 = vld [vmem:[#allocation10 + $0x658] sm:$0xff]  }
 0x7a0   :  { %10881 = vmatmul.mubr.bf16.vlgmr.msra.gmra.mrb[92].mxu1 %v8816_v20  ;;  %v16522_v20 = vld [vmem:[#allocation10 + $0x618] sm:$0xff]  }
 0x7a1   :  { %15134 = vmatpush3.bf16.msra.mxu1 %v16484_v1  ;;  %10920 = vmatprep.mubr.bf16.mxu1 %v8819_v15  ;;  %v16700_v1 = vpop.eup %16699  ;;  %v16524_v15 = vld [vmem:[#allocation10 + $0x620] sm:$0xff]  }
 0x7a2   :  { %15135 = vmatprep.subr.bf16.mxu1 %v16485_v57  ;;  %v8173_v57 = vadd.f32 1.0, %v16700_v1  ;;  %v16547_v1 = vld [vmem:[#allocation13 + $0x40] sm:$0xff]  }
 0x7a3   :  { %15221 = vmatprep.subr.bf16.mxu0 %v16547_v1 }
 0x7a4   :  { %16701 = vrcp.f32 %v8173_v57  ;;  %v16550_v57 = vld [vmem:[#allocation13 + $0x80] sm:$0xff]  }
 0x7a5   :  { %15136 = vmatpush3.bf16.msra.mxu1 %v16486_v32  ;;  %v16526_v32 = vld [vmem:[#allocation10 + $0x628] sm:$0xff]  }
 0x7a6   :  { %15137 = vmatprep.subr.bf16.mxu1 %v16487_v10  ;;  %v16527_v10 = vld [vmem:[#allocation10 + $0x670] sm:$0xff]  }
 0x7a9   :  { %15138 = vmatpush3.bf16.msra.mxu1 %v16488_v22 }
 0x7aa   :  { %15139 = vmatprep.subr.bf16.mxu1 %v16489_v6 }
 0x7ad   :  { %15140 = vmatpush3.bf16.msra.mxu1 %v16490_v26  ;;  %v8166_v26 = vsub.f32 0.0, %v19042_v33 }
 0x7ae   :  { %15141 = vmatprep.subr.bf16.mxu1 %v16491_v37 }
 0x7b1   :  { %15142 = vmatpush3.bf16.msra.mxu1 %v16492_v21 }
 0x7b2   :  { %15143 = vmatprep.subr.bf16.mxu1 %v16493_v27  ;;  %v16528_v27 = vld [vmem:[#allocation10 + $0x630] sm:$0xff]  }
 0x7b3   :  { %v14995_v13 = vpop.f32.mrb[68].mxu1 }
 0x7b4   :  { %v14996_v4 = vpop.f32.mrb[69].mxu1 }
 0x7b5   :  { %v14997_v9 = vadd.f32 %v14996_v4, %v14995_v13  ;;  %v14998_v0 = vpop.f32.mrb[70].mxu1  ;;  %15144 = vmatpush3.bf16.msra.mxu1 %v16494_v44  ;;  %v16702_v4 = vpop.eup %16701 }
 0x7b6   :  { %v14999_v17 = vpop.f32.mrb[71].mxu1  ;;  %15145 = vmatprep.subr.bf16.mxu1 %v16495_v2  ;;  %v16529_v2 = vld [vmem:[#allocation10 + $0x678] sm:$0xff]  }
 0x7b7   :  { %v10643_v53 = vadd.f32 %v14997_v9, %v10603_v14  ;;  %v16519_v14 = vld [vmem:[#allocation10 + $0x650] sm:$0xff]   ;;  %v8168_v9 = vmul.f32 1.442695, %v8166_v26  ;;  %v16530_v0 = vld [vmem:[#allocation10 + $0x638] sm:$0xff]   ;;  %v8177_v17 = vmul.f32 %v16702_v4, %v19044_v24 }
 0x7b8   :  { %v16537_v24 = vld [vmem:[#allocation9 + $0x58] sm:$0xff]  }
 0x7b9   :  { %15146 = vmatpush3.bf16.msra.mxu1 %v16496_v19  ;;  %v16531_v19 = vld [vmem:[#allocation9 + $0x40] sm:$0xff]   ;;  %16703 = vpow2.f32 %v8168_v9  ;;  %v16559_v4 = vld [vmem:[#allocation13 + $0x58] sm:$0xff]  }
 0x7ba   :  { %15147 = vmatprep.subr.bf16.mxu1 %v16497_v8  ;;  %v16532_v8 = vld [vmem:[#allocation9] sm:$0xff]   ;;  %v16560_v9 = vld [vmem:[#allocation13 + $0xd8] sm:$0xff]  }
 0x7bd   :  { %15148 = vmatpush3.bf16.msra.mxu1 %v16498_v47  ;;  %v16533_v47 = vld [vmem:[#allocation9 + $0x48] sm:$0xff]  }
 0x7be   :  { %15155 = vmatprep.subr.bf16.mxu1 %v16499_v52  ;;  %v8179_v52 = vpack.c.bf16 %v8177_v17, %v8177_v17  ;;  %v16563_v17 = vld [vmem:[#allocation13 + $0x60] sm:$0xff]  }
 0x7c0   :  { %10921 = vmatmul.mubr.bf16.vlgmr.msra.gmra.mrb[96].mxu1 %v8818_v12  ;;  %v16535_v12 = vld [vmem:[#allocation9 + $0x50] sm:$0xff]  }
 0x7c1   :  { %15156 = vmatpush3.bf16.msra.mxu1 %v16500_v41  ;;  %10960 = vmatprep.mubr.bf16.mxu1 %v8821_v42  ;;  %v16534_v41 = vld [vmem:[#allocation9 + $0x8] sm:$0xff]  }
 0x7c2   :  { %15157 = vmatprep.subr.bf16.mxu1 %v16501_v45  ;;  %v16536_v45 = vld [vmem:[#allocation9 + $0x10] sm:$0xff]  }
 0x7c3   :  { %v16704_v42 = vpop.eup %16703 }
 0x7c5   :  { %15158 = vmatpush3.bf16.msra.mxu1 %v16502_v25  ;;  %v16538_v25 = vld [vmem:[#allocation9 + $0x18] sm:$0xff]  }
 0x7c6   :  { %15159 = vmatprep.subr.bf16.mxu1 %v16503_v34  ;;  %v8172_v34 = vadd.f32 1.0, %v16704_v42  ;;  %v16571_v42 = vld [vmem:[#allocation13 + $0x70] sm:$0xff]  }
 0x7c8   :  { %16705 = vrcp.f32 %v8172_v34  ;;  %v16574_v34 = vld [vmem:[#allocation13 + $0xb0] sm:$0xff]  }
 0x7c9   :  { %15160 = vmatpush3.bf16.msra.mxu1 %v16504_v28  ;;  %v16539_v28 = vld [vmem:[#allocation9 + $0x60] sm:$0xff]  }
 0x7ca   :  { %15161 = vmatprep.subr.bf16.mxu1 %v16505_v16  ;;  %v16541_v16 = vld [vmem:[#allocation9 + $0x68] sm:$0xff]  }
 0x7cd   :  { %15162 = vmatpush3.bf16.msra.mxu1 %v16506_v46  ;;  %v16542_v46 = vld [vmem:[#allocation9 + $0x28] sm:$0xff]  }
 0x7ce   :  { %15163 = vmatprep.subr.bf16.mxu1 %v16507_v23  ;;  %v16543_v23 = vld [vmem:[#allocation9 + $0x70] sm:$0xff]  }
 0x7d1   :  { %15164 = vmatpush3.bf16.msra.mxu1 %v16508_v11 }
 0x7d2   :  { %15165 = vmatprep.subr.bf16.mxu1 %v16509_v5 }
 0x7d3   :  { %v15017_v43 = vpop.f32.mrb[72].mxu1 }
 0x7d4   :  { %v15018_v61 = vpop.f32.mrb[73].mxu1 }
 0x7d5   :  { %v15019_v3 = vadd.f32 %v15018_v61, %v15017_v43  ;;  %v15020_v49 = vpop.f32.mrb[74].mxu1  ;;  %15166 = vmatpush3.bf16.msra.mxu1 %v16510_v55  ;;  %v16544_v43 = vld [vmem:[#allocation9 + $0x30] sm:$0xff]  }
 0x7d6   :  { %v15021_v35 = vpop.f32.mrb[75].mxu1  ;;  %15167 = vmatprep.subr.bf16.mxu1 %v16511_v59  ;;  %v16706_v49 = vpop.eup %16705 }
 0x7d7   :  { %v10683_v63 = vadd.f32 %v15019_v3, %v10643_v53  ;;  %v8822_v53 = vpack.c.bf16 %v19435_v60, %v19435_v60  ;;  %v16540_v60 = vld [vmem:[#allocation9 + $0x20] sm:$0xff]   ;;  %v16545_v3 = vld [vmem:[#allocation9 + $0x78] sm:$0xff]   ;;  %v8176_v35 = vmul.f32 %v16706_v49, %v19042_v33  ;;  %v16551_v33 = vld [vmem:[#allocation13 + $0x48] sm:$0xff]  }
 0x7d9   :  { %15168 = vmatpush3.bf16.msra.mxu1 %v16512_v31 }
 0x7da   :  { %15169 = vmatprep.subr.bf16.mxu1 %v16513_v39  ;;  %v8178_v39 = vpack.c.bf16 %v8176_v35, %v8176_v35 }
 0x7dd   :  { %15170 = vmatpush3.bf16.msra.mxu1 %v16514_v18 }
 0x7de   :  { %15177 = vmatprep.subr.bf16.mxu1 %v16515_v30 }
 0x7e0   :  { %10961 = vmatmul.mubr.bf16.vlgmr.msra.gmra.mrb[100].mxu1 %v8820_v62 }
 0x7e1   :  { %15178 = vmatpush3.bf16.msra.mxu1 %v16516_v50  ;;  %11000 = vmatprep.mubr.bf16.mxu1 %v8823_v36 }
 0x7e2   :  { %15179 = vmatprep.subr.bf16.mxu1 %v16517_v51 }
 0x7e5   :  { %15180 = vmatpush3.bf16.msra.mxu1 %v16518_v40 }
 0x7e6   :  { %15181 = vmatprep.subr.bf16.mxu1 %v16519_v14 }
 0x7e9   :  { %15182 = vmatpush3.bf16.msra.mxu1 %v16520_v29 }
 0x7ea   :  { %15183 = vmatprep.subr.bf16.mxu1 %v16521_v56 }
 0x7ed   :  { %15184 = vmatpush3.bf16.msra.mxu1 %v16522_v20  ;;  %v16548_v20 = vld [vmem:[#allocation13 + $0xc0] sm:$0xff]  }
 0x7ee   :  { %15185 = vmatprep.subr.bf16.mxu1 %v16523_v58  ;;  %v16549_v58 = vld [vmem:[#allocation13] sm:$0xff]  }
 0x7ef   :  { %15222 = vmatpush3.bf16.msra.mxu0 %v16549_v58 }
 0x7f0   :  { %15223 = vmatprep.subr.bf16.mxu0 %v16551_v33 }
 0x7f1   :  { %15186 = vmatpush3.bf16.msra.mxu1 %v16524_v15  ;;  %v16552_v15 = vld [vmem:[#allocation13 + $0xc8] sm:$0xff]  }
 0x7f2   :  { %15187 = vmatprep.subr.bf16.mxu1 %v16525_v54  ;;  %v16553_v54 = vld [vmem:[#allocation13 + $0x8] sm:$0xff]  }
 0x7f3   :  { %v15039_v22 = vpop.f32.mrb[76].mxu1  ;;  %15224 = vmatpush3.bf16.msra.mxu0 %v16553_v54 }
 0x7f4   :  { %v15040_v6 = vpop.f32.mrb[77].mxu1 }
 0x7f5   :  { %v15041_v37 = vadd.f32 %v15040_v6, %v15039_v22  ;;  %v15042_v21 = vpop.f32.mrb[78].mxu1  ;;  %15188 = vmatpush3.bf16.msra.mxu1 %v16526_v32  ;;  %v16554_v32 = vld [vmem:[#allocation13 + $0x88] sm:$0xff]   ;;  %v16555_v22 = vld [vmem:[#allocation13 + $0x50] sm:$0xff]  }
 0x7f6   :  { %v15043_v44 = vpop.f32.mrb[79].mxu1  ;;  %15189 = vmatprep.subr.bf16.mxu1 %v16527_v10  ;;  %v16556_v6 = vld [vmem:[#allocation13 + $0xd0] sm:$0xff]   ;;  %15225 = vmatprep.subr.bf16.mxu0 %v16555_v22 }
 0x7f7   :  { %v10723_v13 = vadd.f32 %v15041_v37, %v10683_v63 }
 0x7f9   :  { %15190 = vmatpush3.bf16.msra.mxu1 %v16528_v27 }
 0x7fa   :  { %15191 = vmatprep.subr.bf16.mxu1 %v16529_v2  ;;  %v16557_v2 = vld [vmem:[#allocation13 + $0x10] sm:$0xff]  }
 0x7fb   :  { %15226 = vmatpush3.bf16.msra.mxu0 %v16557_v2 }
 0x7fc   :  { %15227 = vmatprep.subr.bf16.mxu0 %v16559_v4 }
 0x7fd   :  { %15192 = vmatpush3.bf16.msra.mxu1 %v16530_v0  ;;  %v16561_v0 = vld [vmem:[#allocation13 + $0x18] sm:$0xff]  }
 0x7fe   :  { %15199 = vmatprep.subr.bf16.mxu1 %v16531_v19  ;;  %v16562_v19 = vld [vmem:[#allocation13 + $0x98] sm:$0xff]  }
 0x7ff   :  { %15228 = vmatpush3.bf16.msra.mxu0 %v16561_v0 }
 0x800   :  { %11001 = vmatmul.mubr.bf16.vlgmr.msra.gmra.mrb[104].mxu1 %v8822_v53  ;;  %v16565_v53 = vld [vmem:[#allocation13 + $0x20] sm:$0xff]   ;;  %15229 = vmatprep.subr.bf16.mxu0 %v16563_v17 }
 0x801   :  { %15200 = vmatpush3.bf16.msra.mxu1 %v16532_v8  ;;  %11136 = vmatprep.mubr.bf16.mxu1 %v8179_v52  ;;  %v16564_v8 = vld [vmem:[#allocation13 + $0xe0] sm:$0xff]   ;;  %v16567_v52 = vld [vmem:[#allocation13 + $0x68] sm:$0xff]  }
 0x802   :  { %15201 = vmatprep.subr.bf16.mxu1 %v16533_v47  ;;  %v16566_v47 = vld [vmem:[#allocation13 + $0xa0] sm:$0xff]  }
 0x803   :  { %15230 = vmatpush3.bf16.msra.mxu0 %v16565_v53 }
 0x804   :  { %15231 = vmatprep.subr.bf16.mxu0 %v16567_v52 }
 0x805   :  { %15202 = vmatpush3.bf16.msra.mxu1 %v16534_v41  ;;  %v16568_v41 = vld [vmem:[#allocation13 + $0xe8] sm:$0xff]  }
 0x806   :  { %15203 = vmatprep.subr.bf16.mxu1 %v16535_v12  ;;  %v16569_v12 = vld [vmem:[#allocation13 + $0x28] sm:$0xff]  }
 0x807   :  { %15232 = vmatpush3.bf16.msra.mxu0 %v16569_v12 }
 0x808   :  { %15233 = vmatprep.subr.bf16.mxu0 %v16571_v42 }
 0x809   :  { %15204 = vmatpush3.bf16.msra.mxu1 %v16536_v45  ;;  %v16570_v45 = vld [vmem:[#allocation13 + $0xa8] sm:$0xff]  }
 0x80a   :  { %15205 = vmatprep.subr.bf16.mxu1 %v16537_v24  ;;  %v16572_v24 = vld [vmem:[#allocation13 + $0xf0] sm:$0xff]  }
 0x80d   :  { %15206 = vmatpush3.bf16.msra.mxu1 %v16538_v25  ;;  %v16573_v25 = vld [vmem:[#allocation13 + $0x30] sm:$0xff]  }
 0x80e   :  { %15207 = vmatprep.subr.bf16.mxu1 %v16539_v28  ;;  %v16575_v28 = vld [vmem:[#allocation13 + $0x78] sm:$0xff]   ;;  %15234 = vmatpush3.bf16.msra.mxu0 %v16573_v25 }
 0x80f   :  { %15235 = vmatprep.subr.bf16.mxu0 %v16575_v28 }
 0x811   :  { %15208 = vmatpush3.bf16.msra.mxu1 %v16540_v60  ;;  %v16576_v60 = vld [vmem:[#allocation13 + $0xf8] sm:$0xff]  }
 0x812   :  { %15209 = vmatprep.subr.bf16.mxu1 %v16541_v16  ;;  %v16577_v16 = vld [vmem:[#allocation13 + $0x38] sm:$0xff]  }
 0x813   :  { %v15061_v11 = vpop.f32.mrb[80].mxu1  ;;  %15236 = vmatpush3.bf16.msra.mxu0 %v16577_v16 }
 0x814   :  { %v15062_v5 = vpop.f32.mrb[81].mxu1 }
 0x815   :  { %v15063_v55 = vadd.f32 %v15062_v5, %v15061_v11  ;;  %v15064_v59 = vpop.f32.mrb[82].mxu1  ;;  %15210 = vmatpush3.bf16.msra.mxu1 %v16542_v46  ;;  %v16578_v46 = vld [vmem:[#allocation13 + $0xb8] sm:$0xff]  }
 0x816   :  { %v15065_v61 = vpop.f32.mrb[83].mxu1  ;;  %15211 = vmatprep.subr.bf16.mxu1 %v16543_v23 }
 0x817   :  { %v10763_v31 = vadd.f32 %v15063_v55, %v10723_v13  ;;  %v16558_v13 = vld [vmem:[#allocation13 + $0x90] sm:$0xff]   ;;  %v16579_v61 = vld [vmem:[#allocation13 + $0x140] sm:$0xff]  }
 0x818   :  { %15265 = vmatprep.subr.bf16.mxu0 %v16579_v61 }
 0x819   :  { %15212 = vmatpush3.bf16.msra.mxu1 %v16544_v43 }
 0x81a   :  { %15213 = vmatprep.subr.bf16.mxu1 %v16545_v3  ;;  %v16580_v3 = vld [vmem:[#allocation13 + $0x1c0] sm:$0xff]  }
 0x81d   :  { %15214 = vmatpush3.bf16.msra.mxu1 %v16546_v48 }
 0x81e   :  { %15243 = vmatprep.subr.bf16.mxu1 %v16548_v20 }
 0x820   :  { %11137 = vmatmul.mubr.bf16.vlgmr.msra.gmra.mrb[108].mxu1 %v8178_v39 }
 0x821   :  { %15244 = vmatpush3.bf16.msra.mxu1 %v16550_v57 }
 0x822   :  { %15245 = vmatprep.subr.bf16.mxu1 %v16552_v15 }
 0x825   :  { %15246 = vmatpush3.bf16.msra.mxu1 %v16554_v32 }
 0x826   :  { %15247 = vmatprep.subr.bf16.mxu1 %v16556_v6 }
 0x829   :  { %15248 = vmatpush3.bf16.msra.mxu1 %v16558_v13 }
 0x82a   :  { %15249 = vmatprep.subr.bf16.mxu1 %v16560_v9 }
 0x82d   :  { %15250 = vmatpush3.bf16.msra.mxu1 %v16562_v19 }
 0x82e   :  { %15251 = vmatprep.subr.bf16.mxu1 %v16564_v8 }
 0x831   :  { %15252 = vmatpush3.bf16.msra.mxu1 %v16566_v47 }
 0x832   :  { %15253 = vmatprep.subr.bf16.mxu1 %v16568_v41 }
 0x833   :  { %v15083_v63 = vpop.f32.mrb[84].mxu1 }
 0x834   :  { %v15084_v18 = vpop.f32.mrb[85].mxu1 }
 0x835   :  { %v15085_v38 = vadd.f32 %v15084_v18, %v15083_v63  ;;  %v15086_v30 = vpop.f32.mrb[86].mxu1  ;;  %15254 = vmatpush3.bf16.msra.mxu1 %v16570_v45 }
 0x836   :  { %v15087_v50 = vpop.f32.mrb[87].mxu1  ;;  %15255 = vmatprep.subr.bf16.mxu1 %v16572_v24 }
 0x837   :  { %v10803_v62 = vadd.f32 %v15085_v38, %v10763_v31 }
 0x839   :  { %15256 = vmatpush3.bf16.msra.mxu1 %v16574_v34 }
 0x83a   :  { %15257 = vmatprep.subr.bf16.mxu1 %v16576_v60 }
 0x83d   :  { %15258 = vmatpush3.bf16.msra.mxu1 %v16578_v46 }
 0x83e   :  { %15287 = vmatprep.subr.bf16.mxu1 %v16580_v3 }
 0x853   :  { %v15105_v51 = vpop.f32.mrb[88].mxu1 }
 0x854   :  { %v15106_v36 = vpop.f32.mrb[89].mxu1 }
 0x855   :  { %v15107_v40 = vadd.f32 %v15106_v36, %v15105_v51  ;;  %v15108_v14 = vpop.f32.mrb[90].mxu1 }
 0x856   :  { %v15109_v29 = vpop.f32.mrb[91].mxu1 }
 0x857   :  { %v10843_v56 = vadd.f32 %v15107_v40, %v10803_v62 }
 0x873   :  { %v15127_v10 = vpop.f32.mrb[92].mxu1 }
 0x874   :  { %v15128_v26 = vpop.f32.mrb[93].mxu1 }
 0x875   :  { %v15129_v37 = vadd.f32 %v15128_v26, %v15127_v10  ;;  %v15130_v21 = vpop.f32.mrb[94].mxu1 }
 0x876   :  { %v15131_v27 = vpop.f32.mrb[95].mxu1 }
 0x877   :  { %v10883_v44 = vadd.f32 %v15129_v37, %v10843_v56 }
 0x893   :  { %v15149_v23 = vpop.f32.mrb[96].mxu1 }
 0x894   :  { %v15150_v11 = vpop.f32.mrb[97].mxu1 }
 0x895   :  { %v15151_v5 = vadd.f32 %v15150_v11, %v15149_v23  ;;  %v15152_v55 = vpop.f32.mrb[98].mxu1 }
 0x896   :  { %v15153_v59 = vpop.f32.mrb[99].mxu1 }
 0x897   :  { %v10923_v43 = vadd.f32 %v15151_v5, %v10883_v44 }
 0x8b3   :  { %v15171_v49 = vpop.f32.mrb[100].mxu1 }
 0x8b4   :  { %v15172_v31 = vpop.f32.mrb[101].mxu1 }
 0x8b5   :  { %v15173_v48 = vadd.f32 %v15172_v31, %v15171_v49  ;;  %v15174_v35 = vpop.f32.mrb[102].mxu1 }
 0x8b6   :  { %v15175_v39 = vpop.f32.mrb[103].mxu1 }
 0x8b7   :  { %v10963_v63 = vadd.f32 %v15173_v48, %v10923_v43 }
 0x8d3   :  { %v15193_v18 = vpop.f32.mrb[104].mxu1 }
 0x8d4   :  { %v15194_v38 = vpop.f32.mrb[105].mxu1 }
 0x8d5   :  { %v15195_v30 = vadd.f32 %v15194_v38, %v15193_v18  ;;  %v15196_v50 = vpop.f32.mrb[106].mxu1 }
 0x8d6   :  { %v15197_v62 = vpop.f32.mrb[107].mxu1 }
 0x8d7   :  { %v11003_v51 = vadd.f32 %v15195_v30, %v10963_v63 }
 0x8f3   :  { %v15215_v36 = vpop.f32.mrb[108].mxu1 }
 0x8f4   :  { %v15216_v40 = vpop.f32.mrb[109].mxu1 }
 0x8f5   :  { %v15217_v14 = vadd.f32 %v15216_v40, %v15215_v36  ;;  %v15218_v29 = vpop.f32.mrb[110].mxu1 }
 0x8f6   :  { %v15219_v56 = vpop.f32.mrb[111].mxu1 }
 0x8f7   :  { %v19475_v1 = vadd.f32 %v15217_v14, %v11003_v51 }
 0x8f9   :  { %vm11167_vm7 = vcmp.ge.f32.partialorder %v19475_v1, -0.3  ;;  %vm11170_vm8 = vcmp.ge.f32.partialorder %v19475_v1, -0.2  ;;  %vm11173_vm9 = vcmp.ge.f32.partialorder %v19475_v1, -0.1 }
 0x8fa   :  { %v19481_v20 = vsel %vm11170_vm8, 1.0, %v19823_v7  ;;  %v14130_v58 = vsel %vm11173_vm9, 1.0, %v19823_v7  ;;  %vm11176_vm10 = vcmp.ge.f32.partialorder %v19475_v1, 0.0  ;;  %v19486_v57 = vsel %vm11167_vm7, 1.0, %v19823_v7 }
 0x8fb   :  { %v14131_v33 = vsel %vm11176_vm10, 1.0, %v19823_v7  ;;  %vm11179_vm11 = vcmp.ge.f32.partialorder %v19475_v1, 0.1  ;;  %vm11182_vm12 = vcmp.ge.f32.partialorder %v19475_v1, 0.2  ;;  %v19494_v32 = vsub.f32 %v19481_v20, %v14130_v58 }
 0x8fc   :  { %v14132_v15 = vsel %vm11179_vm11, 1.0, %v19823_v7  ;;  %v14133_v54 = vsel %vm11182_vm12, 1.0, %v19823_v7  ;;  %v11220_v10 = vsub.f32 %v14130_v58, %v14131_v33  ;;  %v14146_v26 = vadd.f32 0.2, %v19475_v1 }
 0x8fd   :  { %v11221_v22 = vsub.f32 %v14131_v33, %v14132_v15  ;;  %v11222_v6 = vsub.f32 %v14132_v15, %v14133_v54  ;;  %v19498_v37 = vadd.f32 0.1, %v19475_v1  ;;  %v19501_v21 = vadd.f32 -0.1, %v19475_v1 }
 0x8fe   :  { %v19504_v27 = vadd.f32 -0.2, %v19475_v1  ;;  %v11257_v44 = vmul.f32 -10.0, %v19475_v1  ;;  %v11265_v2 = vmul.f32 10.0, %v19475_v1  ;;  %v11255_v13 = vmul.f32 10.0, %v14146_v26 }
 0x8ff   :  { %v11260_v4 = vmul.f32 10.0, %v19498_v37  ;;  %v11330_v9 = vmul.f32 5.0, %v14146_v26  ;;  %v11335_v0 = vmul.f32 5.0, %v19498_v37  ;;  %v11262_v17 = vmul.f32 -10.0, %v19501_v21 }
 0x900   :  { %v11258_v19 = vmul.f32 %v11257_v44, %v11220_v10  ;;  %v11266_v8 = vmul.f32 %v11265_v2, %v11221_v22  ;;  %v11267_v53 = vmul.f32 -10.0, %v19504_v27  ;;  %v11256_v47 = vmul.f32 %v11255_v13, %v19494_v32 }
 0x901   :  { %v11261_v52 = vmul.f32 %v11260_v4, %v11220_v10  ;;  %v11332_v41 = vmul.f32 -5.0, %v19501_v21  ;;  %v11337_v12 = vmul.f32 -5.0, %v19504_v27  ;;  %v11263_v45 = vmul.f32 %v11262_v17, %v11221_v22 }
 0x902   :  { %v11268_v42 = vmul.f32 %v11267_v53, %v11222_v6  ;;  %v11400_v24 = vmul.f32 3.3333333, %v14146_v26  ;;  %v11402_v25 = vmul.f32 -3.3333333, %v19504_v27  ;;  %v11259_v34 = vadd.f32 %v11258_v19, %v11256_v47 }
 0x903   :  { %vm11185_vm13 = vcmp.ge.f32.partialorder %v19475_v1, 0.3  ;;  %vm11188_vm14 = vcmp.ge.f32.partialorder %v19475_v1, 0.4  ;;  %v19519_v28 = vadd.f32 -0.3, %v19475_v1  ;;  %v11264_v60 = vadd.f32 %v11263_v45, %v11261_v52 }
 0x904   :  { %v11269_v16 = vadd.f32 %v11268_v42, %v11266_v8  ;;  %v14134_v46 = vsel %vm11185_vm13, 1.0, %v19823_v7  ;;  %v19523_v23 = vsel %vm11188_vm14, 1.0, %v19823_v7  ;;  %v11331_v11 = vmul.f32 %v11330_v9, %v11259_v34 }
 0x905   :  { %v11223_v5 = vsub.f32 %v14133_v54, %v14134_v46  ;;  %v19526_v55 = vsub.f32 %v14134_v46, %v19523_v23  ;;  %v19529_v59 = vadd.f32 -0.4, %v19475_v1  ;;  %v11333_v43 = vmul.f32 %v11332_v41, %v11264_v60 }
 0x906   :  { %v11336_v61 = vmul.f32 %v11335_v0, %v11264_v60  ;;  %v11338_v3 = vmul.f32 %v11337_v12, %v11269_v16  ;;  %v11270_v49 = vmul.f32 10.0, %v19501_v21  ;;  %v11218_v31 = vsub.f32 %v19486_v57, %v19481_v20 }
 0x907   :  { %v11272_v48 = vmul.f32 -9.999999, %v19519_v28  ;;  %v11275_v35 = vmul.f32 9.999999, %v19504_v27  ;;  %v11277_v39 = vmul.f32 -10.000001, %v19529_v59  ;;  %v11334_v63 = vadd.f32 %v11333_v43, %v11331_v11 }
 0x908   :  { %v11339_v18 = vadd.f32 %v11338_v3, %v11336_v61  ;;  %v11271_v38 = vmul.f32 %v11270_v49, %v11222_v6  ;;  %v11340_v30 = vmul.f32 5.0, %v19475_v1  ;;  %v11342_v36 = vmul.f32 -4.9999995, %v19519_v28  ;;  %v16582_v43 = vld [vmem:[#allocation13 + $0x180] sm:$0xff]  }
 0x909   :  { %v11273_v50 = vmul.f32 %v11272_v48, %v11223_v5  ;;  %v11276_v62 = vmul.f32 %v11275_v35, %v11223_v5  ;;  %v11278_v51 = vmul.f32 %v11277_v39, %v19526_v55  ;;  %v11401_v40 = vmul.f32 %v11400_v24, %v11334_v63 }
 0x90a   :  { %v11403_v14 = vmul.f32 %v11402_v25, %v11339_v18  ;;  %v11341_v29 = vmul.f32 %v11340_v30, %v11269_v16  ;;  %v11345_v56 = vmul.f32 4.9999995, %v19501_v21  ;;  %v11347_v57 = vmul.f32 -5.0, %v19529_v59  ;;  %v16584_v30 = vld [vmem:[#allocation13 + $0x1c8] sm:$0xff]  }
 0x90b   :  { %v11274_v20 = vadd.f32 %v11273_v50, %v11271_v38  ;;  %v11279_v58 = vadd.f32 %v11278_v51, %v11276_v62  ;;  %v11410_v33 = vmul.f32 3.3333333, %v19475_v1  ;;  %v11412_v54 = vmul.f32 -3.3333333, %v19529_v59 }
 0x90c   :  { %v11404_v15 = vadd.f32 %v11403_v14, %v11401_v40  ;;  %v14145_v10 = vadd.f32 0.3, %v19475_v1  ;;  %v11252_v22 = vmul.f32 -10.0, %v19498_v37  ;;  %v11327_v2 = vmul.f32 -5.0, %v19475_v1 }
 0x90d   :  { %v11343_v6 = vmul.f32 %v11342_v36, %v11274_v20  ;;  %v11346_v26 = vmul.f32 %v11345_v56, %v11274_v20  ;;  %v11348_v44 = vmul.f32 %v11347_v57, %v11279_v58  ;;  %v11397_v52 = vmul.f32 -3.3333333, %v19501_v21 }
 0x90e   :  { %v11461_v13 = vpack.c.bf16 %v11404_v15, %v11404_v15  ;;  %v11250_v4 = vmul.f32 9.999999, %v14145_v10  ;;  %v11253_v9 = vmul.f32 %v11252_v22, %v19494_v32  ;;  %v11325_v0 = vmul.f32 4.9999995, %v14145_v10  ;;  %v16588_v15 = vld [vmem:[#allocation13 + $0x1d0] sm:$0xff]  }
 0x90f   :  { %v11344_v19 = vadd.f32 %v11343_v6, %v11341_v29  ;;  %v19548_v17 = vadd.f32 %v11348_v44, %v11346_v26  ;;  %v11328_v8 = vmul.f32 %v11327_v2, %v11259_v34  ;;  %v11395_v53 = vmul.f32 3.3333333, %v14145_v10 }
 0x910   :  { %12337 = vmatprep.mubr.bf16.mxu0 %v11461_v13  ;;  %v11251_v47 = vmul.f32 %v11250_v4, %v11218_v31  ;;  %v11405_v41 = vmul.f32 3.3333333, %v19498_v37  ;;  %v11407_v12 = vmul.f32 -3.3333333, %v19519_v28  ;;  %vm11191_vm15 = vcmp.ge.f32.partialorder %v19475_v1, 0.5 }
 0x911   :  { %v11411_v45 = vmul.f32 %v11410_v33, %v11344_v19  ;;  %v11413_v42 = vmul.f32 %v11412_v54, %v19548_v17  ;;  %vm11194_vm0 = vcmp.ge.f32.partialorder %v19475_v1, 0.6  ;;  %v11398_v24 = vmul.f32 %v11397_v52, %v11334_v63  ;;  %v16586_v33 = vld [vmem:[#allocation13 + $0x188] sm:$0xff]  }
 0x912   :  { %v11254_v32 = vadd.f32 %v11253_v9, %v11251_v47  ;;  %v11406_v25 = vmul.f32 %v11405_v41, %v11339_v18  ;;  %v11408_v34 = vmul.f32 %v11407_v12, %v11344_v19  ;;  %v14136_v16 = vsel %vm11191_vm15, 1.0, %v19823_v7  ;;  %v16592_v47 = vld [vmem:[#allocation13 + $0x1d8] sm:$0xff]  }
 0x913   :  { %v11414_v60 = vadd.f32 %v11413_v42, %v11411_v45  ;;  %v14137_v46 = vsel %vm11194_vm0, 1.0, %v19823_v7  ;;  %v19559_v37 = vadd.f32 -0.5, %v19475_v1  ;;  %v11225_v61 = vsub.f32 %v19523_v23, %v14136_v16 }
 0x914   :  { %v11326_v11 = vmul.f32 %v11325_v0, %v11254_v32  ;;  %v11409_v5 = vadd.f32 %v11408_v34, %v11406_v25  ;;  %v11226_v3 = vsub.f32 %v14136_v16, %v14137_v46  ;;  %v19563_v31 = vadd.f32 -0.6, %v19475_v1  ;;  %v16585_v25 = vld [vmem:[#allocation13 + $0x108] sm:$0xff]  }
 0x915   :  { %v11463_v49 = vpack.c.bf16 %v11414_v60, %v11414_v60  ;;  %v11280_v48 = vmul.f32 10.000001, %v19519_v28  ;;  %v11282_v35 = vmul.f32 -10.000001, %v19559_v37  ;;  %v11285_v18 = vmul.f32 10.000001, %v19529_v59 }
 0x916   :  { %v11329_v39 = vadd.f32 %v11328_v8, %v11326_v11  ;;  %v11462_v63 = vpack.c.bf16 %v11409_v5, %v11409_v5  ;;  %v11350_v38 = vmul.f32 5.0, %v19504_v27  ;;  %v11287_v62 = vmul.f32 -9.999998, %v19563_v31  ;;  %v16587_v11 = vld [vmem:[#allocation13 + $0x150] sm:$0xff]  }
 0x917   :  { %12377 = vmatprep.mubr.bf16.mxu1 %v11463_v49  ;;  %v11281_v50 = vmul.f32 %v11280_v48, %v19526_v55  ;;  %v11283_v23 = vmul.f32 %v11282_v35, %v11225_v61  ;;  %v11286_v36 = vmul.f32 %v11285_v18, %v11225_v61  ;;  %v11352_v14 = vmul.f32 -5.0000005, %v19559_v37  ;;  %v16594_v61 = vld [vmem:[#allocation13 + $0x198] sm:$0xff]  }
 0x918   :  { %v11396_v51 = vmul.f32 %v11395_v53, %v11329_v39  ;;  %12378 = vmatmul.mubr.bf16.vlgmr.msra.gmra.mrb[112].mxu1 %v11462_v63  ;;  %v11351_v40 = vmul.f32 %v11350_v38, %v11279_v58  ;;  %v11288_v56 = vmul.f32 %v11287_v62, %v11226_v3  ;;  %v11355_v20 = vmul.f32 5.0000005, %v19519_v28  ;;  %v16581_v58 = vld [vmem:[#allocation13 + $0x100] sm:$0xff]   ;;  %v16590_v53 = vld [vmem:[#allocation13 + $0x190] sm:$0xff]   ;;  %v16591_v62 = vld [vmem:[#allocation13 + $0x158] sm:$0xff]  }
 0x919   :  { %15288 = vmatpush3.bf16.msra.mxu1 %v16582_v43  ;;  %v11284_v29 = vadd.f32 %v11283_v23, %v11281_v50  ;;  %v11357_v57 = vmul.f32 -4.9999995, %v19563_v31  ;;  %v11420_v55 = vmul.f32 3.3333333, %v19504_v27  ;;  %vm11197_vm1 = vcmp.ge.f32.partialorder %v19475_v1, 0.7 }
 0x91a   :  { %v11399_v54 = vadd.f32 %v11398_v24, %v11396_v51  ;;  %vm11200_vm2 = vcmp.ge.f32.partialorder %v19475_v1, 0.8  ;;  %15289 = vmatprep.subr.bf16.mxu1 %v16584_v30  ;;  %v11289_v10 = vadd.f32 %v11288_v56, %v11286_v36  ;;  %v14138_v26 = vsel %vm11197_vm1, 1.0, %v19823_v7  ;;  %v16583_v27 = vld [vmem:[#allocation13 + $0x148] sm:$0xff]   ;;  %v16596_v63 = vld [vmem:[#allocation13 + $0x1e0] sm:$0xff]   ;;  %v16589_v30 = vld [vmem:[#allocation13 + $0x110] sm:$0xff]  }
 0x91b   :  { %v11353_v22 = vmul.f32 %v11352_v14, %v11284_v29  ;;  %v11356_v6 = vmul.f32 %v11355_v20, %v11284_v29  ;;  %v19579_v2 = vsel %vm11200_vm2, 1.0, %v19823_v7  ;;  %v11227_v13 = vsub.f32 %v14137_v46, %v14138_v26  ;;  %v16598_v14 = vld [vmem:[#allocation13 + $0x1a0] sm:$0xff]   ;;  %v16600_v20 = vld [vmem:[#allocation13 + $0x1e8] sm:$0xff]  }
 0x91c   :  { %v11460_v44 = vpack.c.bf16 %v11399_v54, %v11399_v54  ;;  %v19582_v4 = vadd.f32 -0.7, %v19475_v1  ;;  %v11358_v0 = vmul.f32 %v11357_v57, %v11289_v10  ;;  %v19587_v19 = vsub.f32 %v14138_v26, %v19579_v2 }
 0x91d   :  { %v19584_v9 = vadd.f32 %v11353_v22, %v11351_v40  ;;  %v19590_v8 = vadd.f32 -0.8, %v19475_v1  ;;  %15290 = vmatpush3.bf16.msra.mxu1 %v16586_v33  ;;  %v11290_v52 = vmul.f32 9.999998, %v19559_v37  ;;  %v11295_v12 = vmul.f32 10.000004, %v19563_v31 }
 0x91e   :  { %12338 = vmatmul.mubr.bf16.vlgmr.msra.gmra.mrb[60].mxu0 %v11460_v44  ;;  %v11292_v41 = vmul.f32 -10.000004, %v19582_v4  ;;  %15291 = vmatprep.subr.bf16.mxu1 %v16588_v15  ;;  %v11359_v45 = vadd.f32 %v11358_v0, %v11356_v6  ;;  %v11422_v32 = vmul.f32 -3.3333333, %v19563_v31  ;;  %v11360_v46 = vmul.f32 4.9999995, %v19529_v59 }
 0x91f   :  { %15266 = vmatpush3.bf16.msra.mxu0 %v16581_v58  ;;  %v11421_v42 = vmul.f32 %v11420_v55, %v19584_v9  ;;  %v11297_v24 = vmul.f32 -9.999998, %v19590_v8  ;;  %v11291_v34 = vmul.f32 %v11290_v52, %v11226_v3  ;;  %v11296_v16 = vmul.f32 %v11295_v12, %v11227_v13  ;;  %v16595_v58 = vld [vmem:[#allocation13 + $0x160] sm:$0xff]  }
 0x920   :  { %v11293_v60 = vmul.f32 %v11292_v41, %v11227_v13  ;;  %15267 = vmatprep.subr.bf16.mxu0 %v16583_v27  ;;  %v11423_v5 = vmul.f32 %v11422_v32, %v11359_v45  ;;  %v11361_v48 = vmul.f32 %v11360_v46, %v11289_v10  ;;  %v11362_v35 = vmul.f32 -5.0000005, %v19582_v4  ;;  %v16597_v44 = vld [vmem:[#allocation13 + $0x120] sm:$0xff]   ;;  %v16602_v13 = vld [vmem:[#allocation13 + $0x1a8] sm:$0xff]   ;;  %v16604_v27 = vld [vmem:[#allocation13 + $0x1f0] sm:$0xff]  }
 0x921   :  { %v11298_v43 = vmul.f32 %v11297_v24, %v19587_v19  ;;  %15292 = vmatpush3.bf16.msra.mxu1 %v16590_v53  ;;  %v11365_v39 = vmul.f32 5.0000005, %v19559_v37  ;;  %v11367_v38 = vmul.f32 -5.0000005, %v19590_v8  ;;  %v11430_v40 = vmul.f32 3.3333335, %v19529_v59 }
 0x922   :  { %v11294_v49 = vadd.f32 %v11293_v60, %v11291_v34  ;;  %15293 = vmatprep.subr.bf16.mxu1 %v16592_v47  ;;  %v11424_v3 = vadd.f32 %v11423_v5, %v11421_v42  ;;  %v11425_v29 = vmul.f32 3.3333333, %v19519_v28  ;;  %v11427_v57 = vmul.f32 -3.3333335, %v19582_v4  ;;  %v16593_v59 = vld [vmem:[#allocation13 + $0x118] sm:$0xff]   ;;  %v16599_v24 = vld [vmem:[#allocation13 + $0x168] sm:$0xff]  }
 0x923   :  { %v19602_v18 = vadd.f32 %v11298_v43, %v11296_v16  ;;  %15268 = vmatpush3.bf16.msra.mxu0 %v16585_v25  ;;  %vm11203_vm3 = vcmp.ge.f32.partialorder %v19475_v1, 0.9  ;;  %vm11206_vm4 = vcmp.ge.f32.partialorder %v19475_v1, 1.0  ;;  %v11432_v15 = vmul.f32 -3.3333333, %v19590_v8  ;;  %v16606_v46 = vld [vmem:[#allocation13 + $0x1b0] sm:$0xff]  }
 0x924   :  { %v11363_v50 = vmul.f32 %v11362_v35, %v11294_v49  ;;  %v11366_v23 = vmul.f32 %v11365_v39, %v11294_v49  ;;  %15269 = vmatprep.subr.bf16.mxu0 %v16587_v11  ;;  %v11465_v51 = vpack.c.bf16 %v11424_v3, %v11424_v3  ;;  %v14140_v54 = vsel %vm11203_vm3, 1.0, %v19823_v7  ;;  %v16608_v11 = vld [vmem:[#allocation13 + $0x1f8] sm:$0xff]   ;;  %v16601_v35 = vld [vmem:[#allocation13 + $0x128] sm:$0xff]   ;;  %v16603_v39 = vld [vmem:[#allocation13 + $0x170] sm:$0xff]  }
 0x925   :  { %v11368_v36 = vmul.f32 %v11367_v38, %v19602_v18  ;;  %15294 = vmatpush3.bf16.msra.mxu1 %v16594_v61  ;;  %v19616_v28 = vsel %vm11206_vm4, 1.0, %v19823_v7  ;;  %v11426_v10 = vmul.f32 %v11425_v29, %v11359_v45  ;;  %v11229_v6 = vsub.f32 %v19579_v2, %v14140_v54 }
 0x926   :  { %v11364_v56 = vadd.f32 %v11363_v50, %v11361_v48  ;;  %15295 = vmatprep.subr.bf16.mxu1 %v16596_v63  ;;  %12417 = vmatprep.mubr.bf16.mxu0 %v11465_v51  ;;  %v19621_v0 = vsub.f32 %v14140_v54, %v19616_v28  ;;  %v19624_v53 = vadd.f32 -0.9, %v19475_v1  ;;  %v19627_v47 = vadd.f32 -1.0, %v19475_v1 }
 0x927   :  { %v19611_v33 = vadd.f32 %v11368_v36, %v11366_v23  ;;  %15270 = vmatpush3.bf16.msra.mxu0 %v16589_v30  ;;  %v11415_v52 = vmul.f32 3.3333333, %v19501_v21  ;;  %v11300_v2 = vmul.f32 9.999998, %v19582_v4  ;;  %v11305_v41 = vmul.f32 10.000004, %v19590_v8 }
 0x928   :  { %v11431_v55 = vmul.f32 %v11430_v40, %v11364_v56  ;;  %15271 = vmatprep.subr.bf16.mxu0 %v16591_v62  ;;  %v11428_v22 = vmul.f32 %v11427_v57, %v11364_v56  ;;  %v11417_v45 = vmul.f32 -3.3333333, %v19559_v37  ;;  %v11302_v42 = vmul.f32 -10.000004, %v19624_v53  ;;  %v16610_v23 = vld [vmem:[#allocation13 + $0x1b8] sm:$0xff]  }
 0x929   :  { %v11433_v26 = vmul.f32 %v11432_v15, %v19611_v33  ;;  %15296 = vmatpush3.bf16.msra.mxu1 %v16598_v14  ;;  %v11307_v32 = vmul.f32 -9.999998, %v19627_v47  ;;  %v19636_v25 = vmul.f32 %v11415_v52, %v19548_v17  ;;  %v11301_v34 = vmul.f32 %v11300_v2, %v19587_v19  ;;  %v16612_v14 = vld [vmem:[#allocation13 + $0x2c0] sm:$0xff]   ;;  %v16607_v57 = vld [vmem:[#allocation13 + $0x178] sm:$0xff]  }
 0x92a   :  { %15297 = vmatprep.subr.bf16.mxu1 %v16600_v20  ;;  %v11306_v21 = vmul.f32 %v11305_v41, %v11229_v6  ;;  %v11370_v60 = vmul.f32 5.0000005, %v19563_v31  ;;  %v19640_v5 = vadd.f32 %v11428_v22, %v11426_v10  ;;  %v11303_v43 = vmul.f32 %v11302_v42, %v11229_v6  ;;  %v16605_v20 = vld [vmem:[#allocation13 + $0x130] sm:$0xff]   ;;  %v16616_v41 = vld [vmem:[#allocation13 + $0x2c8] sm:$0xff]  }
 0x92b   :  { %v11434_v12 = vadd.f32 %v11433_v26, %v11431_v55  ;;  %15272 = vmatpush3.bf16.msra.mxu0 %v16593_v59  ;;  %v11308_v61 = vmul.f32 %v11307_v32, %v19621_v0  ;;  %v11372_v17 = vmul.f32 -5.0000005, %v19624_v53  ;;  %v11375_v48 = vmul.f32 5.0000005, %v19582_v4 }
 0x92c   :  { %15273 = vmatprep.subr.bf16.mxu0 %v16595_v58  ;;  %v11371_v49 = vmul.f32 %v11370_v60, %v19602_v18  ;;  %v11377_v19 = vmul.f32 -5.0000005, %v19627_v47  ;;  %v11304_v63 = vadd.f32 %v11303_v43, %v11301_v34  ;;  %vm11209_vm5 = vcmp.ge.f32.partialorder %v19475_v1, 1.1  ;;  %v16611_v34 = vld [vmem:[#allocation13 + $0x240] sm:$0xff]   ;;  %v16618_v43 = vld [vmem:[#allocation13 + $0x288] sm:$0xff]  }
 0x92d   :  { %v11467_v16 = vpack.c.bf16 %v11434_v12, %v11434_v12  ;;  %15298 = vmatpush3.bf16.msra.mxu1 %v16602_v13  ;;  %v11309_v3 = vadd.f32 %v11308_v61, %v11306_v21  ;;  %vm11212_vm6 = vcmp.ge.f32.partialorder %v19475_v1, 1.2  ;;  %v11440_v38 = vmul.f32 3.333334, %v19563_v31  ;;  %v16609_v12 = vld [vmem:[#allocation13 + $0x138] sm:$0xff]  }
 0x92e   :  { %15299 = vmatprep.subr.bf16.mxu1 %v16604_v27  ;;  %v14142_v18 = vsel %vm11209_vm5, 1.0, %v19823_v7  ;;  %v19652_v30 = vsel %vm11212_vm6, 1.0, %v19823_v7  ;;  %v19655_v50 = vadd.f32 -1.1, %v19475_v1  ;;  %v11373_v62 = vmul.f32 %v11372_v17, %v11304_v63  ;;  %v16613_v17 = vld [vmem:[#allocation13 + $0x200] sm:$0xff]  }
 0x92f   :  { %12457 = vmatprep.mubr.bf16.mxu1 %v11467_v16  ;;  %15274 = vmatpush3.bf16.msra.mxu0 %v16597_v44  ;;  %v11376_v51 = vmul.f32 %v11375_v48, %v11304_v63  ;;  %v11378_v36 = vmul.f32 %v11377_v19, %v11309_v3  ;;  %v11442_v40 = vmul.f32 -3.3333333, %v19627_v47  ;;  %vm11215_vm7 = vcmp.ge.f32.partialorder %v19475_v1, 1.3  ;;  %v16614_v44 = vld [vmem:[#allocation13 + $0x280] sm:$0xff]  }
 0x930   :  { %15275 = vmatprep.subr.bf16.mxu0 %v16599_v24  ;;  %v11231_v31 = vsub.f32 %v19616_v28, %v14142_v18  ;;  %v19661_v29 = vsub.f32 %v14142_v18, %v19652_v30  ;;  %v14159_v56 = vadd.f32 -1.2, %v19475_v1  ;;  %v19664_v15 = vadd.f32 %v11373_v62, %v11371_v49  ;;  %v16620_v49 = vld [vmem:[#allocation13 + $0x2d0] sm:$0xff]  }
 0x931   :  { %15300 = vmatpush3.bf16.msra.mxu1 %v16606_v46  ;;  %v19666_v59 = vadd.f32 %v11378_v36, %v11376_v51  ;;  %v11310_v54 = vmul.f32 9.999998, %v19624_v53  ;;  %v11312_v55 = vmul.f32 -9.999998, %v19655_v50  ;;  %v11418_v58 = vmul.f32 %v11417_v45, %v19584_v9  ;;  %v16622_v51 = vld [vmem:[#allocation13 + $0x290] sm:$0xff]  }
 0x932   :  { %15301 = vmatprep.subr.bf16.mxu1 %v16608_v11  ;;  %v11315_v28 = vmul.f32 9.999998, %v19627_v47  ;;  %v11317_v10 = vmul.f32 -9.999998, %v14159_v56  ;;  %v11380_v22 = vmul.f32 5.0000005, %v19590_v8  ;;  %v11441_v6 = vmul.f32 %v11440_v38, %v19664_v15 }
 0x933   :  { %15276 = vmatpush3.bf16.msra.mxu0 %v16601_v35  ;;  %v11443_v26 = vmul.f32 %v11442_v40, %v19666_v59  ;;  %v11311_v13 = vmul.f32 %v11310_v54, %v19621_v0  ;;  %v11313_v27 = vmul.f32 %v11312_v55, %v11231_v31  ;;  %v11466_v52 = vpack.c.bf16 %v19640_v5, %v19640_v5  ;;  %v16615_v38 = vld [vmem:[#allocation13 + $0x248] sm:$0xff]   ;;  %v16624_v40 = vld [vmem:[#allocation13 + $0x2d8] sm:$0xff]  }
 0x934   :  { %15277 = vmatprep.subr.bf16.mxu0 %v16603_v39  ;;  %v11316_v2 = vmul.f32 %v11315_v28, %v11231_v31  ;;  %v11318_v9 = vmul.f32 %v11317_v10, %v19661_v29  ;;  %v11381_v42 = vmul.f32 %v11380_v22, %v11309_v3  ;;  %v11382_v32 = vmul.f32 -4.999999, %v19655_v50  ;;  %v16626_v54 = vld [vmem:[#allocation13 + $0x298] sm:$0xff]   ;;  %v16628_v22 = vld [vmem:[#allocation13 + $0x2e0] sm:$0xff]  }
 0x935   :  { %15302 = vmatpush3.bf16.msra.mxu1 %v16610_v23  ;;  %v11314_v45 = vadd.f32 %v11313_v27, %v11311_v13  ;;  %v11385_v24 = vmul.f32 4.999999, %v19624_v53  ;;  %v11419_v0 = vadd.f32 %v11418_v58, %v19636_v25  ;;  %v14144_v21 = vsel %vm11215_vm7, 1.0, %v19823_v7 }
 0x936   :  { %15331 = vmatprep.subr.bf16.mxu1 %v16612_v14  ;;  %v11319_v60 = vadd.f32 %v11318_v9, %v11316_v2  ;;  %v11387_v16 = vmul.f32 -4.999999, %v14159_v56  ;;  %v11444_v46 = vadd.f32 %v11443_v26, %v11441_v6  ;;  %v11233_v25 = vsub.f32 %v19652_v30, %v14144_v21  ;;  %v16617_v14 = vld [vmem:[#allocation13 + $0x208] sm:$0xff]   ;;  %v16621_v6 = vld [vmem:[#allocation13 + $0x210] sm:$0xff]   ;;  %v16625_v9 = vld [vmem:[#allocation13 + $0x218] sm:$0xff]  }
 0x937   :  { %15278 = vmatpush3.bf16.msra.mxu0 %v16605_v20  ;;  %v11383_v11 = vmul.f32 %v11382_v32, %v11314_v45  ;;  %v11386_v5 = vmul.f32 %v11385_v24, %v11314_v45  ;;  %v11450_v19 = vmul.f32 3.3333333, %v19590_v8  ;;  %v14160_v35 = vadd.f32 -1.3, %v19475_v1  ;;  %v16632_v2 = vld [vmem:[#allocation13 + $0x2e8] sm:$0xff]   ;;  %v16636_v32 = vld [vmem:[#allocation13 + $0x2f0] sm:$0xff]  }
 0x938   :  { %15279 = vmatprep.subr.bf16.mxu0 %v16607_v57  ;;  %12458 = vmatmul.mubr.bf16.vlgmr.msra.gmra.mrb[116].mxu1 %v11466_v52  ;;  %v11388_v61 = vmul.f32 %v11387_v16, %v11319_v60  ;;  %v11464_v39 = vpack.c.bf16 %v11419_v0, %v11419_v0  ;;  %v11452_v3 = vmul.f32 -3.3333325, %v14159_v56  ;;  %v11320_v18 = vmul.f32 9.999998, %v19655_v50  ;;  %v16619_v57 = vld [vmem:[#allocation13 + $0x250] sm:$0xff]   ;;  %v16634_v45 = vld [vmem:[#allocation13 + $0x2a8] sm:$0xff]  }
 0x939   :  { %15332 = vmatpush3.bf16.msra.mxu1 %v16614_v44  ;;  %v19686_v48 = vadd.f32 %v11383_v11, %v11381_v42  ;;  %v11469_v23 = vpack.c.bf16 %v11444_v46, %v11444_v46  ;;  %v11322_v36 = vmul.f32 -10.00001, %v14160_v35  ;;  %v11390_v56 = vmul.f32 4.999999, %v19627_v47  ;;  %v16623_v44 = vld [vmem:[#allocation13 + $0x258] sm:$0xff]   ;;  %v16630_v47 = vld [vmem:[#allocation13 + $0x2a0] sm:$0xff]  }
 0x93a   :  { %15333 = vmatprep.subr.bf16.mxu1 %v16616_v41  ;;  %v11389_v63 = vadd.f32 %v11388_v61, %v11386_v5  ;;  %v11321_v8 = vmul.f32 %v11320_v18, %v19661_v29  ;;  %v11392_v28 = vmul.f32 -5.000002, %v14160_v35  ;;  %v11455_v26 = vmul.f32 3.3333325, %v19624_v53  ;;  %v16629_v24 = vld [vmem:[#allocation13 + $0x220] sm:$0xff]   ;;  %v16631_v0 = vld [vmem:[#allocation13 + $0x268] sm:$0xff]  }
 0x93b   :  { %15280 = vmatpush3.bf16.msra.mxu0 %v16609_v12  ;;  %v11451_v62 = vmul.f32 %v11450_v19, %v19686_v48  ;;  %v11323_v31 = vmul.f32 %v11322_v36, %v11233_v25  ;;  %v11391_v58 = vmul.f32 %v11390_v56, %v11319_v60  ;;  %v11457_v52 = vmul.f32 -3.333334, %v14160_v35  ;;  %v16627_v12 = vld [vmem:[#allocation13 + $0x260] sm:$0xff]   ;;  %v16638_v60 = vld [vmem:[#allocation13 + $0x2b0] sm:$0xff]   ;;  %v16640_v16 = vld [vmem:[#allocation13 + $0x2f8] sm:$0xff]  }
 0x93c   :  { %15309 = vmatprep.subr.bf16.mxu0 %v16611_v34  ;;  %v11453_v30 = vmul.f32 %v11452_v3, %v11389_v63  ;;  %v11456_v27 = vmul.f32 %v11455_v26, %v11389_v63  ;;  %v11445_v34 = vmul.f32 3.3333333, %v19582_v4  ;;  %v11447_v21 = vmul.f32 -3.3333333, %v19655_v50  ;;  %v16633_v5 = vld [vmem:[#allocation13 + $0x228] sm:$0xff]   ;;  %v16642_v61 = vld [vmem:[#allocation13 + $0x2b8] sm:$0xff]  }
 0x93d   :  { %15334 = vmatpush3.bf16.msra.mxu1 %v16618_v43  ;;  %v11324_v55 = vadd.f32 %v11323_v31, %v11321_v8  ;;  %v16635_v43 = vld [vmem:[#allocation13 + $0x270] sm:$0xff]   ;;  %v11437_v4 = vmul.f32 -3.333334, %v19624_v53  ;;  %v16639_v25 = vld [vmem:[#allocation13 + $0x278] sm:$0xff]   ;;  %vm17054_vm8 = vmmov 0   ;;  %v16647_v3 = vld [vmem:[#allocation13 + $0x320] sm:$0xff]  }
 0x93e   :  { %12418 = vmatmul.mubr.bf16.vlgmr.msra.gmra.mrb[64].mxu0 %v11464_v39  ;;  %15335 = vmatprep.subr.bf16.mxu1 %v16620_v49  ;;  %v11454_v20 = vadd.f32 %v11453_v30, %v11451_v62  ;;  %v11446_v46 = vmul.f32 %v11445_v34, %v19666_v59  ;;  %v11448_v11 = vmul.f32 %v11447_v21, %v19686_v48  ;;  %v11435_v49 = vmul.f32 3.3333333, %v19559_v37  ;;  %v16641_v35 = vld [vmem:[#allocation13 + $0x238] sm:$0xff]   ;;  %v16643_v37 = vld [vmem:[#allocation13 + $0x300] sm:$0xff]   ;;  %v16653_v8 = vld [vmem:[#allocation12 + $0x10] sm:$0xff]  }
 0x93f   :  { %15310 = vmatpush3.bf16.msra.mxu0 %v16613_v17  ;;  %12497 = vmatprep.mubr.bf16.mxu0 %v11469_v23  ;;  %v11393_v29 = vmul.f32 %v11392_v28, %v11324_v55  ;;  %v16637_v17 = vld [vmem:[#allocation13 + $0x230] sm:$0xff]   ;;  %v11438_v48 = vmul.f32 %v11437_v4, %v19664_v15  ;;  %v16646_v63 = vld [vmem:[#allocation13 + $0x318] sm:$0xff]   ;;  %v11144_v18 = vsub.f32 0.0, %v19475_v1  ;;  %v16651_v36 = vld [vmem:[#allocation12] sm:$0xff]   ;;  %vm12940_vm10 = vcmask 523264  }
 0x940   :  { %15311 = vmatprep.subr.bf16.mxu0 %v16615_v38  ;;  %v11471_v10 = vpack.c.bf16 %v11454_v20, %v11454_v20  ;;  %v11449_v50 = vadd.f32 %v11448_v11, %v11446_v46  ;;  %v11436_v59 = vmul.f32 %v11435_v49, %v19611_v33  ;;  %v16644_v33 = vld [vmem:[#allocation13 + $0x308] sm:$0xff]   ;;  %v16645_v15 = vld [vmem:[#allocation13 + $0x310] sm:$0xff]   ;;  %v16654_v31 = vld [vmem:[#allocation12 + $0x18] sm:$0xff]  }
 0x941   :  { %15336 = vmatpush3.bf16.msra.mxu1 %v16622_v51  ;;  %v11394_v13 = vadd.f32 %v11393_v29, %v11391_v58  ;;  %v16648_v38 = vld [vmem:[#allocation13 + $0x328] sm:$0xff]   ;;  %v16649_v23 = vld [vmem:[#allocation13 + $0x330] sm:$0xff]   ;;  %v11145_v62 = vmul.f32 1.442695, %v11144_v18  ;;  %v16650_v51 = vld [vmem:[#allocation13 + $0x338] sm:$0xff]  }
 0x942   :  { %15337 = vmatprep.subr.bf16.mxu1 %v16624_v40  ;;  %12537 = vmatprep.mubr.bf16.mxu1 %v11471_v10  ;;  %v11470_v19 = vpack.c.bf16 %v11449_v50, %v11449_v50  ;;  %v11439_v39 = vadd.f32 %v11438_v48, %v11436_v59  ;;  %v16652_v40 = vld [vmem:[#allocation12 + $0x8] sm:$0xff]   ;;  %v16655_v20 = vld [vmem:[#allocation12 + $0x20] sm:$0xff]   ;;  %v16658_v58 = vld [vmem:[#allocation12 + $0x38] sm:$0xff]  }
 0x943   :  { %15312 = vmatpush3.bf16.msra.mxu0 %v16617_v14  ;;  %v11458_v41 = vmul.f32 %v11457_v52, %v11394_v13  ;;  %16707 = vpow2.f32 %v11145_v62  ;;  %v16661_v29 = vld [vmem:[#allocation15 + $0x10] sm:$0xff]   ;;  %v16662_v26 = vld [vmem:[#allocation15 + $0x18] sm:$0xff]   ;;  %v16667_v62 = vld [vmem:[%s19793_s11] sm:$0xff]  }
 0x944   :  { %15313 = vmatprep.subr.bf16.mxu0 %v16619_v57  ;;  %v11468_v53 = vpack.c.bf16 %v11439_v39, %v11439_v39  ;;  %v16656_v57 = vld [vmem:[#allocation12 + $0x28] sm:$0xff]  }
 0x945   :  { %15338 = vmatpush3.bf16.msra.mxu1 %v16626_v54  ;;  %v19695_v42 = vadd.f32 %v11458_v41, %v11456_v27  ;;  %v16657_v54 = vld [vmem:[#allocation12 + $0x30] sm:$0xff]  }
 0x946   :  { %15339 = vmatprep.subr.bf16.mxu1 %v16628_v22  ;;  %v16659_v22 = vld [vmem:[#allocation15] sm:$0xff]  }
 0x947   :  { %15314 = vmatpush3.bf16.msra.mxu0 %v16621_v6  ;;  %v11472_v30 = vpack.c.bf16 %v19695_v42, %v19695_v42  ;;  %v16660_v6 = vld [vmem:[#allocation15 + $0x8] sm:$0xff]  }
 0x948   :  { %15315 = vmatprep.subr.bf16.mxu0 %v16623_v44  ;;  %v16664_v44 = vld [vmem:[#allocation15 + $0x28] sm:$0xff]  }
 0x949   :  { %15340 = vmatpush3.bf16.msra.mxu1 %v16630_v47  ;;  %v16665_v47 = vld [vmem:[#allocation15 + $0x30] sm:$0xff]  }
 0x94a   :  { %15341 = vmatprep.subr.bf16.mxu1 %v16632_v2 }
 0x94b   :  { %15316 = vmatpush3.bf16.msra.mxu0 %v16625_v9 }
 0x94c   :  { %15317 = vmatprep.subr.bf16.mxu0 %v16627_v12 }
 0x94d   :  { %15342 = vmatpush3.bf16.msra.mxu1 %v16634_v45  ;;  %v16708_v14 = vpop.eup %16707 }
 0x94e   :  { %15343 = vmatprep.subr.bf16.mxu1 %v16636_v32  ;;  %v11147_v56 = vadd.f32 1.0, %v16708_v14  ;;  %v16671_v14 = vld [vmem:[%s19793_s11 + $0x20] sm:$0xff]  }
 0x94f   :  { %15318 = vmatpush3.bf16.msra.mxu0 %v16629_v24  ;;  %v16666_v24 = vld [vmem:[#allocation15 + $0x38] sm:$0xff]  }
 0x950   :  { %15319 = vmatprep.subr.bf16.mxu0 %v16631_v0  ;;  %16709 = vrcp.f32 %v11147_v56  ;;  %v16673_v56 = vld [vmem:[%s19793_s11 + $0x30] sm:$0xff]  }
 0x951   :  { %15344 = vmatpush3.bf16.msra.mxu1 %v16638_v60 }
 0x952   :  { %15345 = vmatprep.subr.bf16.mxu1 %v16640_v16 }
 0x953   :  { %15320 = vmatpush3.bf16.msra.mxu0 %v16633_v5 }
 0x954   :  { %15321 = vmatprep.subr.bf16.mxu0 %v16635_v43 }
 0x955   :  { %15346 = vmatpush3.bf16.msra.mxu1 %v16642_v61 }
 0x956   :  { %15434 = vmatprep.subr.bf16.mxu1 %v19823_v7 }
 0x957   :  { %15322 = vmatpush3.bf16.msra.mxu0 %v16637_v17 }
 0x958   :  { %15323 = vmatprep.subr.bf16.mxu0 %v16639_v25  ;;  %12538 = vmatmul.mubr.bf16.vlgmr.msra.gmra.mrb[120].mxu1 %v11470_v19 }
 0x959   :  { %15450 = vmatprep.mubr.msk.bf16.mxu1 %vm17054_vm8, %v19823_v7  ;;  %15435 = vmatpush3.bf16.msra.mxu1 %v16659_v22 }
 0x95a   :  { %v16710_v55 = vpop.eup %16709  ;;  %15436 = vmatprep.subr.bf16.mxu1 %v19823_v7 }
 0x95b   :  { %15324 = vmatpush3.bf16.msra.mxu0 %v16641_v35  ;;  %v11149_v28 = vmul.f32 %v16710_v55, %v19475_v1  ;;  %v16663_v1 = vld [vmem:[#allocation15 + $0x20] sm:$0xff]  }
 0x95c   :  { %15394 = vmatprep.subr.bf16.mxu0 %v19823_v7  ;;  %v14273_v55 = vld [vmem:[#allocation16] ss:$0 sm:$0xff] }
 0x95d   :  { %v11150_v10 = vpack.c.bf16 %v11149_v28, %v11149_v28  ;;  %15437 = vmatpush3.bf16.msra.mxu1 %v16660_v6 }
 0x95e   :  { %12498 = vmatmul.mubr.bf16.vlgmr.msra.gmra.mrb[68].mxu0 %v11468_v53  ;;  %15438 = vmatprep.subr.bf16.mxu1 %v19823_v7 }
 0x95f   :  { %15395 = vmatpush3.bf16.msra.mxu0 %v16643_v37  ;;  %15410 = vmatprep.mubr.msk.bf16.mxu0 %vm17054_vm8, %v19823_v7 }
 0x960   :  { %15396 = vmatprep.subr.bf16.mxu0 %v19823_v7 }
 0x961   :  { %15439 = vmatpush3.bf16.msra.mxu1 %v16661_v29 }
 0x962   :  { %15440 = vmatprep.subr.bf16.mxu1 %v19823_v7 }
 0x963   :  { %15397 = vmatpush3.bf16.msra.mxu0 %v16644_v33 }
 0x964   :  { %15398 = vmatprep.subr.bf16.mxu0 %v19823_v7 }
 0x965   :  { %15441 = vmatpush3.bf16.msra.mxu1 %v16662_v26  ;;  %v16677_v26 = vld [vmem:[#allocation19 + $0x10] sm:$0xff]  }
 0x966   :  { %15442 = vmatprep.subr.bf16.mxu1 %v19823_v7 }
 0x967   :  { %15399 = vmatpush3.bf16.msra.mxu0 %v16645_v15 }
 0x968   :  { %15400 = vmatprep.subr.bf16.mxu0 %v19823_v7 }
 0x969   :  { %15443 = vmatpush3.bf16.msra.mxu1 %v16663_v1  ;;  %v16678_v1 = vld [vmem:[#allocation19 + $0x18] sm:$0xff]  }
 0x96a   :  { %15444 = vmatprep.subr.bf16.mxu1 %v19823_v7 }
 0x96b   :  { %15401 = vmatpush3.bf16.msra.mxu0 %v16646_v63 }
 0x96c   :  { %15402 = vmatprep.subr.bf16.mxu0 %v19823_v7 }
 0x96d   :  { %15445 = vmatpush3.bf16.msra.mxu1 %v16664_v44  ;;  %v14282_v44 = vld [vmem:[#allocation18] ss:$0 sm:$0xff] }
 0x96e   :  { %15446 = vmatprep.subr.bf16.mxu1 %v19823_v7 }
 0x96f   :  { %15403 = vmatpush3.bf16.msra.mxu0 %v16647_v3 }
 0x970   :  { %15404 = vmatprep.subr.bf16.mxu0 %v19823_v7 }
 0x971   :  { %15447 = vmatpush3.bf16.msra.mxu1 %v16665_v47 }
 0x972   :  { %15448 = vmatprep.subr.bf16.mxu1 %v19823_v7 }
 0x973   :  { %15405 = vmatpush3.bf16.msra.mxu0 %v16648_v38 }
 0x974   :  { %15406 = vmatprep.subr.bf16.mxu0 %v19823_v7 }
 0x975   :  { %15449 = vmatpush3.bf16.msra.mxu1 %v16666_v24 }
 0x976   :  { %15454 = vmatprep.subr.bf16.mxu1 %v19823_v7 }
 0x977   :  { %15407 = vmatpush3.bf16.msra.mxu0 %v16649_v23 }
 0x978   :  { %15408 = vmatprep.subr.bf16.mxu0 %v19823_v7 }
 0x97b   :  { %15409 = vmatpush3.bf16.msra.mxu0 %v16650_v51 }
 0x97c   :  { %15414 = vmatprep.subr.bf16.mxu0 %v19823_v7 }
 0x97e   :  { %15411 = vmatmul.mubr.bf16.vlgmr.msra.gmra.mrb[72].mxu0 %v11472_v30  ;;  %v16668_v30 = vld [vmem:[%s19793_s11 + $0x8] sm:$0xff]  }
 0x97f   :  { %15415 = vmatpush3.bf16.msra.mxu0 %v16651_v36  ;;  %15430 = vmatprep.mubr.msk.bf16.mxu0 %vm17054_vm8, %v19823_v7 }
 0x980   :  { %15416 = vmatprep.subr.bf16.mxu0 %v19823_v7 }
 0x983   :  { %15417 = vmatpush3.bf16.msra.mxu0 %v16652_v40  ;;  %v16669_v40 = vld [vmem:[%s19793_s11 + $0x10] sm:$0xff]  }
 0x984   :  { %15418 = vmatprep.subr.bf16.mxu0 %v19823_v7 }
 0x987   :  { %15419 = vmatpush3.bf16.msra.mxu0 %v16653_v8  ;;  %v16670_v8 = vld [vmem:[%s19793_s11 + $0x18] sm:$0xff]  }
 0x988   :  { %15420 = vmatprep.subr.bf16.mxu0 %v19823_v7 }
 0x98b   :  { %15421 = vmatpush3.bf16.msra.mxu0 %v16654_v31  ;;  %v16672_v31 = vld [vmem:[%s19793_s11 + $0x28] sm:$0xff]  }
 0x98c   :  { %15422 = vmatprep.subr.bf16.mxu0 %v19823_v7 }
 0x98f   :  { %15423 = vmatpush3.bf16.msra.mxu0 %v16655_v20  ;;  %v16674_v20 = vld [vmem:[%s19793_s11 + $0x38] sm:$0xff]  }
 0x990   :  { %15424 = vmatprep.subr.bf16.mxu0 %v19823_v7 }
 0x993   :  { %15425 = vmatpush3.bf16.msra.mxu0 %v16656_v57  ;;  %v16675_v57 = vld [vmem:[#allocation19] sm:$0xff]  }
 0x994   :  { %15426 = vmatprep.subr.bf16.mxu0 %v19823_v7 }
 0x997   :  { %15427 = vmatpush3.bf16.msra.mxu0 %v16657_v54  ;;  %v16676_v54 = vld [vmem:[#allocation19 + $0x8] sm:$0xff]  }
 0x998   :  { %15428 = vmatprep.subr.bf16.mxu0 %v19823_v7 }
 0x99b   :  { %15429 = vmatpush3.bf16.msra.mxu0 %v16658_v58 }
 0x99c   :  { %15474 = vmatprep.subr.bf16.mxu0 %v19823_v7 }
 0x99e   :  { %15431 = vmatmul.mubr.bf16.vlgmr.msra.gmra.mrb[72].mxu0 %v11150_v10 }
 0x99f   :  { %15482 = vmatprep.mubr.msk.bf16.mxu0 %vm17054_vm8, %v19823_v7  ;;  %15475 = vmatpush3.bf16.msra.mxu0 %v16675_v57 }
 0x9a0   :  { %15476 = vmatprep.subr.bf16.mxu0 %v19823_v7 }
 0x9a3   :  { %15477 = vmatpush3.bf16.msra.mxu0 %v16676_v54 }
 0x9a4   :  { %15478 = vmatprep.subr.bf16.mxu0 %v19823_v7 }
 0x9a7   :  { %15479 = vmatpush3.bf16.msra.mxu0 %v16677_v26 }
 0x9a8   :  { %15480 = vmatprep.subr.bf16.mxu0 %v19823_v7 }
 0x9ab   :  { %15481 = vmatpush3.bf16.msra.mxu0 %v16678_v1 }
 0x9eb   :  { %v15259_v13 = vpop.f32.mrb[112].mxu1 }
 0x9ec   :  { %v15260_v27 = vpop.f32.mrb[113].mxu1 }
 0x9ed   :  { %v15261_v52 = vadd.f32 %v15260_v27, %v15259_v13  ;;  %v15262_v2 = vpop.f32.mrb[114].mxu1 }
 0x9ee   :  { %v15263_v9 = vpop.f32.mrb[115].mxu1 }
 0x9f1   :  { %v15237_v41 = vpop.f32.mrb[60].mxu0 }
 0x9f2   :  { %v15238_v12 = vpop.f32.mrb[61].mxu0 }
 0x9f3   :  { %v15239_v45 = vadd.f32 %v15238_v12, %v15237_v41  ;;  %v15240_v42 = vpop.f32.mrb[62].mxu0 }
 0x9f4   :  { %v15241_v32 = vpop.f32.mrb[63].mxu0 }
 0x9f5   :  { %v12380_v0 = vadd.f32 %v15261_v52, %v15239_v45  ;;  %v14291_v45 = vld [vmem:[#allocation21] ss:$0 sm:$0xff] }
 0xa0b   :  { %v15303_v34 = vpop.f32.mrb[116].mxu1 }
 0xa0c   :  { %v15304_v21 = vpop.f32.mrb[117].mxu1 }
 0xa0d   :  { %v15305_v60 = vadd.f32 %v15304_v21, %v15303_v34  ;;  %v15306_v16 = vpop.f32.mrb[118].mxu1 }
 0xa0e   :  { %v15307_v46 = vpop.f32.mrb[119].mxu1 }
 0xa11   :  { %v15281_v11 = vpop.f32.mrb[64].mxu0 }
 0xa12   :  { %v15282_v5 = vpop.f32.mrb[65].mxu0 }
 0xa13   :  { %v15283_v43 = vadd.f32 %v15282_v5, %v15281_v11  ;;  %v15284_v61 = vpop.f32.mrb[66].mxu0 }
 0xa14   :  { %v15285_v49 = vpop.f32.mrb[67].mxu0 }
 0xa15   :  { %v12420_v4 = vadd.f32 %v15283_v43, %v12380_v0 }
 0xa17   :  { %v12460_v50 = vadd.f32 %v15305_v60, %v12420_v4 }
 0xa2b   :  { %v15347_v17 = vpop.f32.mrb[120].mxu1 }
 0xa2c   :  { %v15348_v25 = vpop.f32.mrb[121].mxu1 }
 0xa2d   :  { %v15349_v59 = vadd.f32 %v15348_v25, %v15347_v17  ;;  %v15350_v48 = vpop.f32.mrb[122].mxu1 }
 0xa2e   :  { %v15351_v19 = vpop.f32.mrb[123].mxu1 }
 0xa31   :  { %v15325_v35 = vpop.f32.mrb[68].mxu0 }
 0xa32   :  { %v15326_v39 = vpop.f32.mrb[69].mxu0 }
 0xa33   :  { %v15327_v37 = vadd.f32 %v15326_v39, %v15325_v35  ;;  %v15328_v53 = vpop.f32.mrb[70].mxu0 }
 0xa34   :  { %v15329_v33 = vpop.f32.mrb[71].mxu0 }
 0xa35   :  { %v12500_v15 = vadd.f32 %v15327_v37, %v12460_v50 }
 0xa37   :  { %v12540_v63 = vadd.f32 %v15349_v59, %v12500_v15 }
 0xa71   :  { %v12667_v3 = vpop.f32.mrb[72].mxu0 }
 0xa72   :  { %v15486_v38 = vadd.f32 %v12667_v3, %v12540_v63  ;;  %v15432_v18 = vpop.f32.mrb[73].mxu0 }
 0xa73   :  { %v12670_v23 = vpop.f32.mrb[74].mxu0 }
 0xa74   :  { %v12673_v51 = vpack.c.bf16 %v15486_v38, %v15486_v38  ;;  %v15433_v36 = vpop.f32.mrb[75].mxu0 }
 0xa76   :  { %15451 = vmatmul.mubr.bf16.vlgmr.msra.gmra.mrb[124].mxu1 %v12673_v51 }
 0xa77   :  { %15455 = vmatpush3.bf16.msra.mxu1 %v16667_v62  ;;  %15470 = vmatprep.mubr.msk.bf16.mxu1 %vm17054_vm8, %v19823_v7 }
 0xa78   :  { %15456 = vmatprep.subr.bf16.mxu1 %v19823_v7 }
 0xa7b   :  { %15457 = vmatpush3.bf16.msra.mxu1 %v16668_v30 }
 0xa7c   :  { %15458 = vmatprep.subr.bf16.mxu1 %v19823_v7 }
 0xa7f   :  { %15459 = vmatpush3.bf16.msra.mxu1 %v16669_v40 }
 0xa80   :  { %15460 = vmatprep.subr.bf16.mxu1 %v19823_v7 }
 0xa83   :  { %15461 = vmatpush3.bf16.msra.mxu1 %v16670_v8 }
 0xa84   :  { %15462 = vmatprep.subr.bf16.mxu1 %v19823_v7 }
 0xa87   :  { %15463 = vmatpush3.bf16.msra.mxu1 %v16671_v14 }
 0xa88   :  { %15464 = vmatprep.subr.bf16.mxu1 %v19823_v7 }
 0xa8b   :  { %15465 = vmatpush3.bf16.msra.mxu1 %v16672_v31 }
 0xa8c   :  { %15466 = vmatprep.subr.bf16.mxu1 %v19823_v7 }
 0xa8f   :  { %15467 = vmatpush3.bf16.msra.mxu1 %v16673_v56 }
 0xa90   :  { %15468 = vmatprep.subr.bf16.mxu1 %v19823_v7 }
 0xa93   :  { %15469 = vmatpush3.bf16.msra.mxu1 %v16674_v20 }
 0xb49   :  { %v12779_v58 = vpop.f32.mrb[124].mxu1 }
 0xb4a   :  { %v12780_v28 = vadd.f32 %v14273_v55, %v12779_v58  ;;  %v15452_v10 = vpop.f32.mrb[125].mxu1 }
 0xb4b   :  { %v12782_v22 = vpop.f32.mrb[126].mxu1 }
 0xb4c   :  { %v12785_v6 = vpack.c.bf16 %v12780_v28, %v12780_v28  ;;  %v15453_v29 = vpop.f32.mrb[127].mxu1 }
 0xb4e   :  { %15471 = vmatmul.mubr.bf16.vlgmr.msra.gmra.mrb[128].mxu1 %v12785_v6 }
 0xc21   :  { %v12891_v47 = vpop.f32.mrb[128].mxu1 }
 0xc22   :  { %v12892_v13 = vadd.f32 %v14282_v44, %v12891_v47  ;;  %v15472_v27 = vpop.f32.mrb[129].mxu1 }
 0xc23   :  { %v12894_v52 = vpop.f32.mrb[130].mxu1 }
 0xc24   :  { %vm12897_vm9 = vcmp.ge.f32.partialorder %v12892_v13, 0.0  ;;  %v12898_v2 = vmul.f32 0.05, %v12892_v13  ;;  %v15473_v9 = vpop.f32.mrb[131].mxu1 }
 0xc26   :  { %v12899_v41 = vsel %vm12897_vm9, %v12892_v13, %v12898_v2 }
 0xc27   :  { %v12900_v12 = vpack.c.bf16 %v12899_v41, %v12899_v41 }
 0xc29   :  { %15483 = vmatmul.mubr.msk.bf16.vlgmr.msra.gmra.mrb[76].mxu0 %vm12940_vm10, %v12900_v12 }
 0xcfc   :  { %v12978_v42 = vpop.f32.mrb[76].mxu0 }
 0xcfd   :  { %v12979_v32 = vadd.f32 %v14291_v45, %v12978_v42  ;;  %v15484_v24 = vpop.f32.mrb[77].mxu0 }
 0xcfe   :  { %v12981_v0 = vpop.f32.mrb[78].mxu0 }
 0xcff   :  { %v12984_v34 = vsub.f32 0.0, %v12979_v32  ;;  %v15485_v7 = vpop.f32.mrb[79].mxu0 }
 0xd01   :  { %v12985_v21 = vmul.f32 1.442695, %v12984_v34 }
 0xd03   :  { %16711 = vpow2.f32 %v12985_v21 }
 0xd0d   :  { %v16712_v60 = vpop.eup %16711 }
 0xd0e   :  { %v12987_v16 = vadd.f32 1.0, %v16712_v60 }
 0xd10   :  { %16713 = vrcp.f32 %v12987_v16 }
 0xd1a   :  { %v16714_v46 = vpop.eup %16713 }
 0xd1b   :  { %12989 = vst [vmem:[%s19840_s26] sm:$0xff] %v16714_v46 }
 0xd1c   :  { %12994 = vsyncpa [#allocation3], 1 }
 0xd1d   :  { %12995 = vsyncpa [#allocation5], 1 }
 0xd1e   :  { %12996 = vsyncpa [#allocation8], 1 }
 0xd1f   :  { %12997 = vsyncpa [#allocation11], 1 }
 0xd20   :  { %12998 = vsyncpa [#allocation14], 1 }
 0xd21   :  { %12999 = vsyncpa [#allocation17], 1 }
 0xd22   :  { %13000 = vsyncpa [#allocation20], 1 }

</bundles_post_ra>
